<compile_context>
chip_gen: v7x
topology: tpu7x:2x2x1
jax: 0.10.0
libtpu: 0.0.40
codegen_flags: <defaults>
</compile_context>

<pallas_src>
import numpy as np
import jax
import jax.numpy as jnp
from jax.experimental import pallas as pl
from jax.experimental.pallas import tpu as pltpu

EPS = 1e-5          # nn.BatchNorm1d default eps
ND = 3              # "nd" in the PyTorch module (output channels)
L0 = 16             # spatial positions per phase (set by the K=16 projection)
_VMEM = pltpu.MemorySpace.VMEM

# (Cin, Cout) of the four stride-2 / K=4 / pad=1 transposed convs.
_DECONV_PLAN = [(512, 256), (256, 128), (128, 64), (64, ND)]


def _tap_stride(cout):
    # Taps are stored 128-lane aligned inside the stacked weight and u_buf so every
    # in-kernel lane slice starts at a multiple of 128.
    return max(cout, 128)


def _bn_scale_shift(s, ss, cnt, g_ref, b_ref):
    mean = s / cnt
    var = jnp.maximum(ss / cnt - mean * mean, 0.0)     # clamp single-pass variance
    scale = jax.lax.rsqrt(var + EPS) * g_ref[...]
    shift = b_ref[...] - mean * scale
    return scale, shift


def _deconv_layer(in_buf, store, u_buf, w_ref, sh_prev, sh_next, *, F, cin, cout, R, N):
    """Polyphase ConvTranspose1d(K=4, stride=2, pad=1).

    in_buf[phi, :, :cin] holds the F input phases (rows r = m*N + n, m in [0,16)).
    `store(q, value)` receives the 2F raw output phases (value shape (R, cout)).
    Returns per-channel (sum, sum_sq) over every produced element (for BatchNorm).
    """
    f32 = jnp.float32
    S = _tap_stride(cout)              # lane stride between taps in w_ref / u_buf
    W4 = 4 * S

    # ---- pass 1: one tap-stacked matmul per input phase (chunked along lanes) ----
    for phi in range(F):
        p = in_buf[phi, :, 0:cin]                                      # (R, cin)
        for c0 in range(0, W4, 256):
            ce = c0 + 256
            u_buf[phi, :, c0:ce] = jnp.dot(p, w_ref[:, c0:ce],
                                           preferred_element_type=f32)

    # ---- boundary neighbours: spatial shift by one position == N rows ----
    # prev: tap-3 of the last phase, shifted down (zero at m == 0)
    sh_prev[0:N, 0:cout] = jnp.zeros((N, cout), f32)
    sh_prev[N:R, 0:cout] = u_buf[F - 1, 0:R - N, 3 * S:3 * S + cout]
    # next: tap-0 of the first phase, shifted up (zero at m == 15)
    sh_next[0:R - N, 0:cout] = u_buf[0, N:R, 0:cout]
    sh_next[R - N:R, 0:cout] = jnp.zeros((N, cout), f32)

    s = jnp.zeros((1, cout), f32)
    ss = jnp.zeros((1, cout), f32)

    # ---- pass 2: recombine taps of neighbouring phases ----
    for phi in range(F):
        t1 = u_buf[phi, :, S:S + cout]
        t2 = u_buf[phi, :, 2 * S:2 * S + cout]
        t3p = (u_buf[phi - 1, :, 3 * S:3 * S + cout] if phi > 0
               else sh_prev[:, 0:cout])
        t0n = (u_buf[phi + 1, :, 0:cout] if phi < F - 1
               else sh_next[:, 0:cout])
        q_even = t1 + t3p                        # output phase 2*phi
        q_odd = t2 + t0n                         # output phase 2*phi + 1
        s = (s + jnp.sum(q_even, axis=0, keepdims=True)
               + jnp.sum(q_odd, axis=0, keepdims=True))
        ss = (ss + jnp.sum(q_even * q_even, axis=0, keepdims=True)
                 + jnp.sum(q_odd * q_odd, axis=0, keepdims=True))
        store(2 * phi, q_even)
        store(2 * phi + 1, q_odd)
    return s, ss


def _make_generator_kernel(N):
    R = N * L0     # rows per phase, ordered r = m*N + n (spatial-major, batch-minor)

    def kernel(x_ref, w0_ref, w1_ref, w2_ref, w3_ref, w4_ref,
               g0_ref, b0_ref, g1_ref, b1_ref, g2_ref, b2_ref, g3_ref, b3_ref,
               out_ref, buf_a, buf_b, u_buf, sh_prev, sh_next):
        f32 = jnp.float32

        # ---- layer 0: ConvT(nz, 512, K=16, s=1, p=0) on a length-1 latent == projection
        x = x_ref[...]                                                  # (N, nz)
        for k in range(L0):
            buf_a[0, k * N:(k + 1) * N, :] = jnp.dot(
                x, w0_ref[k], preferred_element_type=f32)               # (N, 512)
        h0 = buf_a[0, :, :]                                             # (R, 512)
        s0 = jnp.sum(h0, axis=0, keepdims=True)
        ss0 = jnp.sum(h0 * h0, axis=0, keepdims=True)
        scale, shift = _bn_scale_shift(s0, ss0, float(R), g0_ref, b0_ref)
        buf_a[0, :, :] = jnp.maximum(h0 * scale + shift, 0.0)

        # ---- layers 1..3: deconv + BatchNorm + ReLU (ping-pong buf_a <-> buf_b)
        bn_layers = [
            (buf_a, buf_b, w1_ref, g1_ref, b1_ref, 1),   # 512 -> 256, F: 1 -> 2
            (buf_b, buf_a, w2_ref, g2_ref, b2_ref, 2),   # 256 -> 128, F: 2 -> 4
            (buf_a, buf_b, w3_ref, g3_ref, b3_ref, 4),   # 128 ->  64, F: 4 -> 8
        ]
        for li, (src, dst, w_ref, g_ref, b_ref, F) in enumerate(bn_layers):
            cin, cout = _DECONV_PLAN[li]

            def store(q, v, dst=dst, cout=cout):
                dst[q, :, 0:cout] = v

            s, ss = _deconv_layer(src, store, u_buf, w_ref, sh_prev, sh_next,
                                  F=F, cin=cin, cout=cout, R=R, N=N)
            scale, shift = _bn_scale_shift(s, ss, float(R * 2 * F), g_ref, b_ref)
            for q in range(2 * F):
                v = dst[q, :, 0:cout]
                dst[q, :, 0:cout] = jnp.maximum(v * scale + shift, 0.0)

        # ---- layer 4: deconv(64 -> 3) + tanh, written straight to the output ref
        def store_out(q, v):
            out_ref[q, :, :] = jnp.tanh(v)

        _deconv_layer(buf_b, store_out, u_buf, w4_ref, sh_prev, sh_next,
                      F=8, cin=64, cout=ND, R=R, N=N)

    return kernel


# ----------------------------------------------------------------------------
# Parameter preparation (done once, outside the forward path)
# ----------------------------------------------------------------------------
def prepare_params(params):
    ws, gammas, betas = params
    w0 = jnp.transpose(ws[0], (2, 0, 1))                       # (16, nz, 512)
    stacked = []
    for w in ws[1:]:
        cin, cout, K = w.shape
        S = _tap_stride(cout)
        wt = jnp.transpose(w, (0, 2, 1))                       # (cin, K, cout)
        if S > cout:
            wt = jnp.pad(wt, ((0, 0), (0, 0), (0, S - cout)))
        stacked.append(wt.reshape(cin, K * S))                 # tap k at lanes [k*S, k*S+cout)
    gs = [g.reshape(1, -1).astype(jnp.float32) for g in gammas]
    bs = [b.reshape(1, -1).astype(jnp.float32) for b in betas]
    return (w0, stacked[0], stacked[1], stacked[2], stacked[3],
            gs[0], bs[0], gs[1], bs[1], gs[2], bs[2], gs[3], bs[3])


# ----------------------------------------------------------------------------
# Forward pass (single pallas_call + one tiny transpose to PyTorch NCL layout)
# ----------------------------------------------------------------------------
def generator_forward(x_ncl, prep):
    (w0, w1, w2, w3, w4, g0, b0, g1, b1, g2, b2, g3, b3) = prep
    N, nz, L_in = x_ncl.shape
    assert L_in == 1, "DCGAN generator expects a length-1 latent (N, nz, 1)"
    R = N * L0
    x2 = x_ncl.reshape(N, nz)

    out_phases = pl.pallas_call(
        _make_generator_kernel(N),
        out_shape=jax.ShapeDtypeStruct((L0, R, ND), jnp.float32),
        in_specs=[pl.BlockSpec(memory_space=_VMEM) for _ in range(14)],
        out_specs=pl.BlockSpec(memory_space=_VMEM),
        scratch_shapes=[
            pltpu.VMEM((4, R, 512), jnp.float32),     # buf_a : layer-0 / layer-2 activations
            pltpu.VMEM((8, R, 256), jnp.float32),     # buf_b : layer-1 / layer-3 activations
            pltpu.VMEM((8, R, 1024), jnp.float32),    # u_buf : tap-stacked matmul results
            pltpu.VMEM((R, 256), jnp.float32),        # sh_prev (boundary shift helper)
            pltpu.VMEM((R, 256), jnp.float32),        # sh_next (boundary shift helper)
        ],
    )(x2, w0, w1, w2, w3, w4, g0, b0, g1, b1, g2, b2, g3, b3)

    # out_phases[q, m*N + n, c] == y[n, c, 16*m + q]  ->  PyTorch NCL (N, 3, 256)
    out = out_phases.reshape(L0, L0, N, ND)           # (q, m, n, c)
    return out.transpose(2, 3, 1, 0).reshape(N, ND, L0 * L0)


# ----------------------------------------------------------------------------
# Deterministic parameter init (shapes from the module's __init__)
# ----------------------------------------------------------------------------
def init_params(key, nz):
    layer_defs = [(nz, 512, 16), (512, 256, 4), (256, 128, 4), (128, 64, 4), (64, ND, 4)]
    keys = jax.random.split(key, 13)
    ws = []
    for i, (cin, cout, k) in enumerate(layer_defs):
        ws.append(jax.random.normal(keys[i], (cin, cout, k), jnp.float32) / np.sqrt(cin * k))
    gammas, betas = [], []
    for i, c in enumerate([512, 256, 128, 64]):
        gammas.append(1.0 + 0.1 * jax.random.normal(keys[5 + i], (c,), jnp.float32))
        betas.append(0.1 * jax.random.normal(keys[9 + i], (c,), jnp.float32))
    return ws, gammas, betas


# ----------------------------------------------------------------------------
# Pure-JAX reference (lax.conv_general_dilated formulation of ConvTranspose1d)
# ----------------------------------------------------------------------------
def reference_forward(x_ncl, params):
    ws, gammas, betas = params

    def conv_t(x, w, stride, pad):
        K = w.shape[2]
        wf = jnp.flip(jnp.transpose(w, (1, 0, 2)), axis=2)          # (Cout, Cin, K) flipped
        return jax.lax.conv_general_dilated(
            x, wf, window_strides=(1,), padding=[(K - 1 - pad, K - 1 - pad)],
            lhs_dilation=(stride,), dimension_numbers=("NCH", "OIH", "NCH"),
            precision=jax.lax.Precision.HIGHEST)

    def bn_relu(x, g, b):
        mean = jnp.mean(x, axis=(0, 2), keepdims=True)
        var = jnp.var(x, axis=(0, 2), keepdims=True)
        xn = (x - mean) / jnp.sqrt(var + EPS)
        return jax.nn.relu(xn * g[None, :, None] + b[None, :, None])

    h = bn_relu(conv_t(x_ncl, ws[0], 1, 0), gammas[0], betas[0])
    for li in range(1, 4):
        h = bn_relu(conv_t(h, ws[li], 2, 1), gammas[li], betas[li])
    return jnp.tanh(conv_t(h, ws[4], 2, 1))


if __name__ == "__main__":
    key = jax.random.PRNGKey(0)
    k_x, k_p = jax.random.split(key)
    N, NZ = 2, 16
    x = jax.random.normal(k_x, (N, NZ, 1), jnp.float32)     # PyTorch NCL latent (N, nz, 1)
    params = init_params(k_p, NZ)
    prep = jax.tree_util.tree_map(jax.block_until_ready, prepare_params(params))

    fwd = jax.jit(generator_forward)
    out = jax.block_until_ready(fwd(x, prep))
    assert out.shape == (N, ND, 256), out.shape
    assert bool(jnp.all(jnp.isfinite(out)))

    ref = jax.block_until_ready(reference_forward(x, params))
    np.testing.assert_allclose(np.asarray(out), np.asarray(ref), atol=5e-3, rtol=1e-2)
    print("KERNEL_OK")
</pallas_src>

<mosaic_0001>
module attributes {stable_mosaic.version = 11 : i64} {
  func.func @kernel(%arg0: memref<2x16xf32, #tpu.memory_space<vmem>>, %arg1: memref<16x16x512xf32, #tpu.memory_space<vmem>>, %arg2: memref<512x1024xf32, #tpu.memory_space<vmem>>, %arg3: memref<256x512xf32, #tpu.memory_space<vmem>>, %arg4: memref<128x512xf32, #tpu.memory_space<vmem>>, %arg5: memref<64x512xf32, #tpu.memory_space<vmem>>, %arg6: memref<1x512xf32, #tpu.memory_space<vmem>>, %arg7: memref<1x512xf32, #tpu.memory_space<vmem>>, %arg8: memref<1x256xf32, #tpu.memory_space<vmem>>, %arg9: memref<1x256xf32, #tpu.memory_space<vmem>>, %arg10: memref<1x128xf32, #tpu.memory_space<vmem>>, %arg11: memref<1x128xf32, #tpu.memory_space<vmem>>, %arg12: memref<1x64xf32, #tpu.memory_space<vmem>>, %arg13: memref<1x64xf32, #tpu.memory_space<vmem>>, %arg14: memref<16x32x3xf32, #tpu.memory_space<vmem>>, %arg15: memref<4x32x512xf32, #tpu.memory_space<vmem>>, %arg16: memref<8x32x256xf32, #tpu.memory_space<vmem>>, %arg17: memref<8x32x1024xf32, #tpu.memory_space<vmem>>, %arg18: memref<32x256xf32, #tpu.memory_space<vmem>>, %arg19: memref<32x256xf32, #tpu.memory_space<vmem>>) attributes {dimension_semantics = [], scalar_prefetch = 0 : i64, scratch_operands = 5 : i64, tpu.core_type = #tpu.core_type<tc>} {
    %c0 = arith.constant 0 : index
    %c0_0 = arith.constant 0 : index
    %0 = vector.load %arg0[%c0, %c0_0] : memref<2x16xf32, #tpu.memory_space<vmem>>, vector<2x16xf32>
    %c0_1 = arith.constant 0 : index
    %c0_2 = arith.constant 0 : index
    %c0_3 = arith.constant 0 : index
    %1 = vector.load %arg1[%c0_1, %c0_2, %c0_3] : memref<16x16x512xf32, #tpu.memory_space<vmem>>, vector<1x16x512xf32>
    %2 = vector.shape_cast %1 : vector<1x16x512xf32> to vector<16x512xf32>
    %cst = arith.constant dense<0.000000e+00> : vector<2x512xf32>
    %3 = tpu.matmul %0, %2, %cst {dimension_numbers = #tpu.dot_dimension_numbers<[1], [0], [0], [1], [0, 0, 1, 1], [], []>} : vector<2x16xf32>, vector<16x512xf32>, vector<2x512xf32> -> vector<2x512xf32>
    %c0_4 = arith.constant 0 : index
    %c0_5 = arith.constant 0 : index
    %c0_6 = arith.constant 0 : index
    %4 = vector.load %arg15[%c0_4, %c0_5, %c0_6] : memref<4x32x512xf32, #tpu.memory_space<vmem>>, vector<1x2x512xf32>
    %5 = vector.shape_cast %4 : vector<1x2x512xf32> to vector<2x512xf32>
    %6 = vector.shape_cast %3 : vector<2x512xf32> to vector<1x2x512xf32>
    tpu.vector_store %arg15[%c0_4, %c0_5, %c0_6], %6 {strides = array<i32>} : memref<4x32x512xf32, #tpu.memory_space<vmem>>, vector<1x2x512xf32>,
    %c1 = arith.constant 1 : index
    %c0_7 = arith.constant 0 : index
    %c0_8 = arith.constant 0 : index
    %7 = vector.load %arg1[%c1, %c0_7, %c0_8] : memref<16x16x512xf32, #tpu.memory_space<vmem>>, vector<1x16x512xf32>
    %8 = vector.shape_cast %7 : vector<1x16x512xf32> to vector<16x512xf32>
    %cst_9 = arith.constant dense<0.000000e+00> : vector<2x512xf32>
    %9 = tpu.matmul %0, %8, %cst_9 {dimension_numbers = #tpu.dot_dimension_numbers<[1], [0], [0], [1], [0, 0, 1, 1], [], []>} : vector<2x16xf32>, vector<16x512xf32>, vector<2x512xf32> -> vector<2x512xf32>
    %c0_10 = arith.constant 0 : index
    %c2 = arith.constant 2 : index
    %c0_11 = arith.constant 0 : index
    %10 = vector.load %arg15[%c0_10, %c2, %c0_11] : memref<4x32x512xf32, #tpu.memory_space<vmem>>, vector<1x2x512xf32>
    %11 = vector.shape_cast %10 : vector<1x2x512xf32> to vector<2x512xf32>
    %12 = vector.shape_cast %9 : vector<2x512xf32> to vector<1x2x512xf32>
    tpu.vector_store %arg15[%c0_10, %c2, %c0_11], %12 {strides = array<i32>} : memref<4x32x512xf32, #tpu.memory_space<vmem>>, vector<1x2x512xf32>,
    %c2_12 = arith.constant 2 : index
    %c0_13 = arith.constant 0 : index
    %c0_14 = arith.constant 0 : index
    %13 = vector.load %arg1[%c2_12, %c0_13, %c0_14] : memref<16x16x512xf32, #tpu.memory_space<vmem>>, vector<1x16x512xf32>
    %14 = vector.shape_cast %13 : vector<1x16x512xf32> to vector<16x512xf32>
    %cst_15 = arith.constant dense<0.000000e+00> : vector<2x512xf32>
    %15 = tpu.matmul %0, %14, %cst_15 {dimension_numbers = #tpu.dot_dimension_numbers<[1], [0], [0], [1], [0, 0, 1, 1], [], []>} : vector<2x16xf32>, vector<16x512xf32>, vector<2x512xf32> -> vector<2x512xf32>
    %c0_16 = arith.constant 0 : index
    %c4 = arith.constant 4 : index
    %c0_17 = arith.constant 0 : index
    %16 = vector.load %arg15[%c0_16, %c4, %c0_17] : memref<4x32x512xf32, #tpu.memory_space<vmem>>, vector<1x2x512xf32>
    %17 = vector.shape_cast %16 : vector<1x2x512xf32> to vector<2x512xf32>
    %18 = vector.shape_cast %15 : vector<2x512xf32> to vector<1x2x512xf32>
    tpu.vector_store %arg15[%c0_16, %c4, %c0_17], %18 {strides = array<i32>} : memref<4x32x512xf32, #tpu.memory_space<vmem>>, vector<1x2x512xf32>,
    %c3 = arith.constant 3 : index
    %c0_18 = arith.constant 0 : index
    %c0_19 = arith.constant 0 : index
    %19 = vector.load %arg1[%c3, %c0_18, %c0_19] : memref<16x16x512xf32, #tpu.memory_space<vmem>>, vector<1x16x512xf32>
    %20 = vector.shape_cast %19 : vector<1x16x512xf32> to vector<16x512xf32>
    %cst_20 = arith.constant dense<0.000000e+00> : vector<2x512xf32>
    %21 = tpu.matmul %0, %20, %cst_20 {dimension_numbers = #tpu.dot_dimension_numbers<[1], [0], [0], [1], [0, 0, 1, 1], [], []>} : vector<2x16xf32>, vector<16x512xf32>, vector<2x512xf32> -> vector<2x512xf32>
    %c0_21 = arith.constant 0 : index
    %c6 = arith.constant 6 : index
    %c0_22 = arith.constant 0 : index
    %22 = vector.load %arg15[%c0_21, %c6, %c0_22] : memref<4x32x512xf32, #tpu.memory_space<vmem>>, vector<1x2x512xf32>
    %23 = vector.shape_cast %22 : vector<1x2x512xf32> to vector<2x512xf32>
    %24 = vector.shape_cast %21 : vector<2x512xf32> to vector<1x2x512xf32>
    tpu.vector_store %arg15[%c0_21, %c6, %c0_22], %24 {strides = array<i32>} : memref<4x32x512xf32, #tpu.memory_space<vmem>>, vector<1x2x512xf32>,
    %c4_23 = arith.constant 4 : index
    %c0_24 = arith.constant 0 : index
    %c0_25 = arith.constant 0 : index
    %25 = vector.load %arg1[%c4_23, %c0_24, %c0_25] : memref<16x16x512xf32, #tpu.memory_space<vmem>>, vector<1x16x512xf32>
    %26 = vector.shape_cast %25 : vector<1x16x512xf32> to vector<16x512xf32>
    %cst_26 = arith.constant dense<0.000000e+00> : vector<2x512xf32>
    %27 = tpu.matmul %0, %26, %cst_26 {dimension_numbers = #tpu.dot_dimension_numbers<[1], [0], [0], [1], [0, 0, 1, 1], [], []>} : vector<2x16xf32>, vector<16x512xf32>, vector<2x512xf32> -> vector<2x512xf32>
    %c0_27 = arith.constant 0 : index
    %c8 = arith.constant 8 : index
    %c0_28 = arith.constant 0 : index
    %28 = vector.load %arg15[%c0_27, %c8, %c0_28] : memref<4x32x512xf32, #tpu.memory_space<vmem>>, vector<1x2x512xf32>
    %29 = vector.shape_cast %28 : vector<1x2x512xf32> to vector<2x512xf32>
    %30 = vector.shape_cast %27 : vector<2x512xf32> to vector<1x2x512xf32>
    tpu.vector_store %arg15[%c0_27, %c8, %c0_28], %30 {strides = array<i32>} : memref<4x32x512xf32, #tpu.memory_space<vmem>>, vector<1x2x512xf32>,
    %c5 = arith.constant 5 : index
    %c0_29 = arith.constant 0 : index
    %c0_30 = arith.constant 0 : index
    %31 = vector.load %arg1[%c5, %c0_29, %c0_30] : memref<16x16x512xf32, #tpu.memory_space<vmem>>, vector<1x16x512xf32>
    %32 = vector.shape_cast %31 : vector<1x16x512xf32> to vector<16x512xf32>
    %cst_31 = arith.constant dense<0.000000e+00> : vector<2x512xf32>
    %33 = tpu.matmul %0, %32, %cst_31 {dimension_numbers = #tpu.dot_dimension_numbers<[1], [0], [0], [1], [0, 0, 1, 1], [], []>} : vector<2x16xf32>, vector<16x512xf32>, vector<2x512xf32> -> vector<2x512xf32>
    %c0_32 = arith.constant 0 : index
    %c10 = arith.constant 10 : index
    %c0_33 = arith.constant 0 : index
    %34 = vector.load %arg15[%c0_32, %c10, %c0_33] : memref<4x32x512xf32, #tpu.memory_space<vmem>>, vector<1x2x512xf32>
    %35 = vector.shape_cast %34 : vector<1x2x512xf32> to vector<2x512xf32>
    %36 = vector.shape_cast %33 : vector<2x512xf32> to vector<1x2x512xf32>
    tpu.vector_store %arg15[%c0_32, %c10, %c0_33], %36 {strides = array<i32>} : memref<4x32x512xf32, #tpu.memory_space<vmem>>, vector<1x2x512xf32>,
    %c6_34 = arith.constant 6 : index
    %c0_35 = arith.constant 0 : index
    %c0_36 = arith.constant 0 : index
    %37 = vector.load %arg1[%c6_34, %c0_35, %c0_36] : memref<16x16x512xf32, #tpu.memory_space<vmem>>, vector<1x16x512xf32>
    %38 = vector.shape_cast %37 : vector<1x16x512xf32> to vector<16x512xf32>
    %cst_37 = arith.constant dense<0.000000e+00> : vector<2x512xf32>
    %39 = tpu.matmul %0, %38, %cst_37 {dimension_numbers = #tpu.dot_dimension_numbers<[1], [0], [0], [1], [0, 0, 1, 1], [], []>} : vector<2x16xf32>, vector<16x512xf32>, vector<2x512xf32> -> vector<2x512xf32>
    %c0_38 = arith.constant 0 : index
    %c12 = arith.constant 12 : index
    %c0_39 = arith.constant 0 : index
    %40 = vector.load %arg15[%c0_38, %c12, %c0_39] : memref<4x32x512xf32, #tpu.memory_space<vmem>>, vector<1x2x512xf32>
    %41 = vector.shape_cast %40 : vector<1x2x512xf32> to vector<2x512xf32>
    %42 = vector.shape_cast %39 : vector<2x512xf32> to vector<1x2x512xf32>
    tpu.vector_store %arg15[%c0_38, %c12, %c0_39], %42 {strides = array<i32>} : memref<4x32x512xf32, #tpu.memory_space<vmem>>, vector<1x2x512xf32>,
    %c7 = arith.constant 7 : index
    %c0_40 = arith.constant 0 : index
    %c0_41 = arith.constant 0 : index
    %43 = vector.load %arg1[%c7, %c0_40, %c0_41] : memref<16x16x512xf32, #tpu.memory_space<vmem>>, vector<1x16x512xf32>
    %44 = vector.shape_cast %43 : vector<1x16x512xf32> to vector<16x512xf32>
    %cst_42 = arith.constant dense<0.000000e+00> : vector<2x512xf32>
    %45 = tpu.matmul %0, %44, %cst_42 {dimension_numbers = #tpu.dot_dimension_numbers<[1], [0], [0], [1], [0, 0, 1, 1], [], []>} : vector<2x16xf32>, vector<16x512xf32>, vector<2x512xf32> -> vector<2x512xf32>
    %c0_43 = arith.constant 0 : index
    %c14 = arith.constant 14 : index
    %c0_44 = arith.constant 0 : index
    %46 = vector.load %arg15[%c0_43, %c14, %c0_44] : memref<4x32x512xf32, #tpu.memory_space<vmem>>, vector<1x2x512xf32>
    %47 = vector.shape_cast %46 : vector<1x2x512xf32> to vector<2x512xf32>
    %48 = vector.shape_cast %45 : vector<2x512xf32> to vector<1x2x512xf32>
    tpu.vector_store %arg15[%c0_43, %c14, %c0_44], %48 {strides = array<i32>} : memref<4x32x512xf32, #tpu.memory_space<vmem>>, vector<1x2x512xf32>,
    %c8_45 = arith.constant 8 : index
    %c0_46 = arith.constant 0 : index
    %c0_47 = arith.constant 0 : index
    %49 = vector.load %arg1[%c8_45, %c0_46, %c0_47] : memref<16x16x512xf32, #tpu.memory_space<vmem>>, vector<1x16x512xf32>
    %50 = vector.shape_cast %49 : vector<1x16x512xf32> to vector<16x512xf32>
    %cst_48 = arith.constant dense<0.000000e+00> : vector<2x512xf32>
    %51 = tpu.matmul %0, %50, %cst_48 {dimension_numbers = #tpu.dot_dimension_numbers<[1], [0], [0], [1], [0, 0, 1, 1], [], []>} : vector<2x16xf32>, vector<16x512xf32>, vector<2x512xf32> -> vector<2x512xf32>
    %c0_49 = arith.constant 0 : index
    %c16 = arith.constant 16 : index
    %c0_50 = arith.constant 0 : index
    %52 = vector.load %arg15[%c0_49, %c16, %c0_50] : memref<4x32x512xf32, #tpu.memory_space<vmem>>, vector<1x2x512xf32>
    %53 = vector.shape_cast %52 : vector<1x2x512xf32> to vector<2x512xf32>
    %54 = vector.shape_cast %51 : vector<2x512xf32> to vector<1x2x512xf32>
    tpu.vector_store %arg15[%c0_49, %c16, %c0_50], %54 {strides = array<i32>} : memref<4x32x512xf32, #tpu.memory_space<vmem>>, vector<1x2x512xf32>,
    %c9 = arith.constant 9 : index
    %c0_51 = arith.constant 0 : index
    %c0_52 = arith.constant 0 : index
    %55 = vector.load %arg1[%c9, %c0_51, %c0_52] : memref<16x16x512xf32, #tpu.memory_space<vmem>>, vector<1x16x512xf32>
    %56 = vector.shape_cast %55 : vector<1x16x512xf32> to vector<16x512xf32>
    %cst_53 = arith.constant dense<0.000000e+00> : vector<2x512xf32>
    %57 = tpu.matmul %0, %56, %cst_53 {dimension_numbers = #tpu.dot_dimension_numbers<[1], [0], [0], [1], [0, 0, 1, 1], [], []>} : vector<2x16xf32>, vector<16x512xf32>, vector<2x512xf32> -> vector<2x512xf32>
    %c0_54 = arith.constant 0 : index
    %c18 = arith.constant 18 : index
    %c0_55 = arith.constant 0 : index
    %58 = vector.load %arg15[%c0_54, %c18, %c0_55] : memref<4x32x512xf32, #tpu.memory_space<vmem>>, vector<1x2x512xf32>
    %59 = vector.shape_cast %58 : vector<1x2x512xf32> to vector<2x512xf32>
    %60 = vector.shape_cast %57 : vector<2x512xf32> to vector<1x2x512xf32>
    tpu.vector_store %arg15[%c0_54, %c18, %c0_55], %60 {strides = array<i32>} : memref<4x32x512xf32, #tpu.memory_space<vmem>>, vector<1x2x512xf32>,
    %c10_56 = arith.constant 10 : index
    %c0_57 = arith.constant 0 : index
    %c0_58 = arith.constant 0 : index
    %61 = vector.load %arg1[%c10_56, %c0_57, %c0_58] : memref<16x16x512xf32, #tpu.memory_space<vmem>>, vector<1x16x512xf32>
    %62 = vector.shape_cast %61 : vector<1x16x512xf32> to vector<16x512xf32>
    %cst_59 = arith.constant dense<0.000000e+00> : vector<2x512xf32>
    %63 = tpu.matmul %0, %62, %cst_59 {dimension_numbers = #tpu.dot_dimension_numbers<[1], [0], [0], [1], [0, 0, 1, 1], [], []>} : vector<2x16xf32>, vector<16x512xf32>, vector<2x512xf32> -> vector<2x512xf32>
    %c0_60 = arith.constant 0 : index
    %c20 = arith.constant 20 : index
    %c0_61 = arith.constant 0 : index
    %64 = vector.load %arg15[%c0_60, %c20, %c0_61] : memref<4x32x512xf32, #tpu.memory_space<vmem>>, vector<1x2x512xf32>
    %65 = vector.shape_cast %64 : vector<1x2x512xf32> to vector<2x512xf32>
    %66 = vector.shape_cast %63 : vector<2x512xf32> to vector<1x2x512xf32>
    tpu.vector_store %arg15[%c0_60, %c20, %c0_61], %66 {strides = array<i32>} : memref<4x32x512xf32, #tpu.memory_space<vmem>>, vector<1x2x512xf32>,
    %c11 = arith.constant 11 : index
    %c0_62 = arith.constant 0 : index
    %c0_63 = arith.constant 0 : index
    %67 = vector.load %arg1[%c11, %c0_62, %c0_63] : memref<16x16x512xf32, #tpu.memory_space<vmem>>, vector<1x16x512xf32>
    %68 = vector.shape_cast %67 : vector<1x16x512xf32> to vector<16x512xf32>
    %cst_64 = arith.constant dense<0.000000e+00> : vector<2x512xf32>
    %69 = tpu.matmul %0, %68, %cst_64 {dimension_numbers = #tpu.dot_dimension_numbers<[1], [0], [0], [1], [0, 0, 1, 1], [], []>} : vector<2x16xf32>, vector<16x512xf32>, vector<2x512xf32> -> vector<2x512xf32>
    %c0_65 = arith.constant 0 : index
    %c22 = arith.constant 22 : index
    %c0_66 = arith.constant 0 : index
    %70 = vector.load %arg15[%c0_65, %c22, %c0_66] : memref<4x32x512xf32, #tpu.memory_space<vmem>>, vector<1x2x512xf32>
    %71 = vector.shape_cast %70 : vector<1x2x512xf32> to vector<2x512xf32>
    %72 = vector.shape_cast %69 : vector<2x512xf32> to vector<1x2x512xf32>
    tpu.vector_store %arg15[%c0_65, %c22, %c0_66], %72 {strides = array<i32>} : memref<4x32x512xf32, #tpu.memory_space<vmem>>, vector<1x2x512xf32>,
    %c12_67 = arith.constant 12 : index
    %c0_68 = arith.constant 0 : index
    %c0_69 = arith.constant 0 : index
    %73 = vector.load %arg1[%c12_67, %c0_68, %c0_69] : memref<16x16x512xf32, #tpu.memory_space<vmem>>, vector<1x16x512xf32>
    %74 = vector.shape_cast %73 : vector<1x16x512xf32> to vector<16x512xf32>
    %cst_70 = arith.constant dense<0.000000e+00> : vector<2x512xf32>
    %75 = tpu.matmul %0, %74, %cst_70 {dimension_numbers = #tpu.dot_dimension_numbers<[1], [0], [0], [1], [0, 0, 1, 1], [], []>} : vector<2x16xf32>, vector<16x512xf32>, vector<2x512xf32> -> vector<2x512xf32>
    %c0_71 = arith.constant 0 : index
    %c24 = arith.constant 24 : index
    %c0_72 = arith.constant 0 : index
    %76 = vector.load %arg15[%c0_71, %c24, %c0_72] : memref<4x32x512xf32, #tpu.memory_space<vmem>>, vector<1x2x512xf32>
    %77 = vector.shape_cast %76 : vector<1x2x512xf32> to vector<2x512xf32>
    %78 = vector.shape_cast %75 : vector<2x512xf32> to vector<1x2x512xf32>
    tpu.vector_store %arg15[%c0_71, %c24, %c0_72], %78 {strides = array<i32>} : memref<4x32x512xf32, #tpu.memory_space<vmem>>, vector<1x2x512xf32>,
    %c13 = arith.constant 13 : index
    %c0_73 = arith.constant 0 : index
    %c0_74 = arith.constant 0 : index
    %79 = vector.load %arg1[%c13, %c0_73, %c0_74] : memref<16x16x512xf32, #tpu.memory_space<vmem>>, vector<1x16x512xf32>
    %80 = vector.shape_cast %79 : vector<1x16x512xf32> to vector<16x512xf32>
    %cst_75 = arith.constant dense<0.000000e+00> : vector<2x512xf32>
    %81 = tpu.matmul %0, %80, %cst_75 {dimension_numbers = #tpu.dot_dimension_numbers<[1], [0], [0], [1], [0, 0, 1, 1], [], []>} : vector<2x16xf32>, vector<16x512xf32>, vector<2x512xf32> -> vector<2x512xf32>
    %c0_76 = arith.constant 0 : index
    %c26 = arith.constant 26 : index
    %c0_77 = arith.constant 0 : index
    %82 = vector.load %arg15[%c0_76, %c26, %c0_77] : memref<4x32x512xf32, #tpu.memory_space<vmem>>, vector<1x2x512xf32>
    %83 = vector.shape_cast %82 : vector<1x2x512xf32> to vector<2x512xf32>
    %84 = vector.shape_cast %81 : vector<2x512xf32> to vector<1x2x512xf32>
    tpu.vector_store %arg15[%c0_76, %c26, %c0_77], %84 {strides = array<i32>} : memref<4x32x512xf32, #tpu.memory_space<vmem>>, vector<1x2x512xf32>,
    %c14_78 = arith.constant 14 : index
    %c0_79 = arith.constant 0 : index
    %c0_80 = arith.constant 0 : index
    %85 = vector.load %arg1[%c14_78, %c0_79, %c0_80] : memref<16x16x512xf32, #tpu.memory_space<vmem>>, vector<1x16x512xf32>
    %86 = vector.shape_cast %85 : vector<1x16x512xf32> to vector<16x512xf32>
    %cst_81 = arith.constant dense<0.000000e+00> : vector<2x512xf32>
    %87 = tpu.matmul %0, %86, %cst_81 {dimension_numbers = #tpu.dot_dimension_numbers<[1], [0], [0], [1], [0, 0, 1, 1], [], []>} : vector<2x16xf32>, vector<16x512xf32>, vector<2x512xf32> -> vector<2x512xf32>
    %c0_82 = arith.constant 0 : index
    %c28 = arith.constant 28 : index
    %c0_83 = arith.constant 0 : index
    %88 = vector.load %arg15[%c0_82, %c28, %c0_83] : memref<4x32x512xf32, #tpu.memory_space<vmem>>, vector<1x2x512xf32>
    %89 = vector.shape_cast %88 : vector<1x2x512xf32> to vector<2x512xf32>
    %90 = vector.shape_cast %87 : vector<2x512xf32> to vector<1x2x512xf32>
    tpu.vector_store %arg15[%c0_82, %c28, %c0_83], %90 {strides = array<i32>} : memref<4x32x512xf32, #tpu.memory_space<vmem>>, vector<1x2x512xf32>,
    %c15 = arith.constant 15 : index
    %c0_84 = arith.constant 0 : index
    %c0_85 = arith.constant 0 : index
    %91 = vector.load %arg1[%c15, %c0_84, %c0_85] : memref<16x16x512xf32, #tpu.memory_space<vmem>>, vector<1x16x512xf32>
    %92 = vector.shape_cast %91 : vector<1x16x512xf32> to vector<16x512xf32>
    %cst_86 = arith.constant dense<0.000000e+00> : vector<2x512xf32>
    %93 = tpu.matmul %0, %92, %cst_86 {dimension_numbers = #tpu.dot_dimension_numbers<[1], [0], [0], [1], [0, 0, 1, 1], [], []>} : vector<2x16xf32>, vector<16x512xf32>, vector<2x512xf32> -> vector<2x512xf32>
    %c0_87 = arith.constant 0 : index
    %c30 = arith.constant 30 : index
    %c0_88 = arith.constant 0 : index
    %94 = vector.load %arg15[%c0_87, %c30, %c0_88] : memref<4x32x512xf32, #tpu.memory_space<vmem>>, vector<1x2x512xf32>
    %95 = vector.shape_cast %94 : vector<1x2x512xf32> to vector<2x512xf32>
    %96 = vector.shape_cast %93 : vector<2x512xf32> to vector<1x2x512xf32>
    tpu.vector_store %arg15[%c0_87, %c30, %c0_88], %96 {strides = array<i32>} : memref<4x32x512xf32, #tpu.memory_space<vmem>>, vector<1x2x512xf32>,
    %c0_89 = arith.constant 0 : index
    %c0_90 = arith.constant 0 : index
    %c0_91 = arith.constant 0 : index
    %97 = vector.load %arg15[%c0_89, %c0_90, %c0_91] : memref<4x32x512xf32, #tpu.memory_space<vmem>>, vector<1x32x512xf32>
    %98 = vector.shape_cast %97 : vector<1x32x512xf32> to vector<32x512xf32>
    %cst_92 = arith.constant dense<0.000000e+00> : vector<512xf32>
    %99 = vector.multi_reduction <add>, %98, %cst_92 [0] : vector<32x512xf32> to vector<512xf32>
    %100 = vector.shape_cast %99 : vector<512xf32> to vector<1x512xf32>
    %101 = arith.mulf %98, %98 : vector<32x512xf32>
    %cst_93 = arith.constant dense<0.000000e+00> : vector<512xf32>
    %102 = vector.multi_reduction <add>, %101, %cst_93 [0] : vector<32x512xf32> to vector<512xf32>
    %103 = vector.shape_cast %102 : vector<512xf32> to vector<1x512xf32>
    %cst_94 = arith.constant 3.200000e+01 : f32
    %104 = vector.broadcast %cst_94 : f32 to vector<1x512xf32>
    %105 = arith.divf %100, %104 : vector<1x512xf32>
    %cst_95 = arith.constant 3.200000e+01 : f32
    %106 = vector.broadcast %cst_95 : f32 to vector<1x512xf32>
    %107 = arith.divf %103, %106 : vector<1x512xf32>
    %108 = arith.mulf %105, %105 : vector<1x512xf32>
    %109 = arith.subf %107, %108 : vector<1x512xf32>
    %cst_96 = arith.constant 0.000000e+00 : f32
    %110 = vector.broadcast %cst_96 : f32 to vector<1x512xf32>
    %111 = arith.maximumf %109, %110 : vector<1x512xf32>
    %cst_97 = arith.constant 9.99999974E-6 : f32
    %112 = vector.broadcast %cst_97 : f32 to vector<1x512xf32>
    %113 = arith.addf %111, %112 : vector<1x512xf32>
    %114 = math.rsqrt %113 : vector<1x512xf32>
    %c0_98 = arith.constant 0 : index
    %c0_99 = arith.constant 0 : index
    %115 = vector.load %arg6[%c0_98, %c0_99] : memref<1x512xf32, #tpu.memory_space<vmem>>, vector<1x512xf32>
    %116 = arith.mulf %114, %115 : vector<1x512xf32>
    %c0_100 = arith.constant 0 : index
    %c0_101 = arith.constant 0 : index
    %117 = vector.load %arg7[%c0_100, %c0_101] : memref<1x512xf32, #tpu.memory_space<vmem>>, vector<1x512xf32>
    %118 = arith.mulf %105, %116 : vector<1x512xf32>
    %119 = arith.subf %117, %118 : vector<1x512xf32>
    %120 = vector.broadcast %116 : vector<1x512xf32> to vector<32x512xf32>
    %121 = arith.mulf %98, %120 : vector<32x512xf32>
    %122 = vector.broadcast %119 : vector<1x512xf32> to vector<32x512xf32>
    %123 = arith.addf %121, %122 : vector<32x512xf32>
    %cst_102 = arith.constant 0.000000e+00 : f32
    %124 = vector.broadcast %cst_102 : f32 to vector<32x512xf32>
    %125 = arith.maximumf %123, %124 : vector<32x512xf32>
    %c0_103 = arith.constant 0 : index
    %c0_104 = arith.constant 0 : index
    %c0_105 = arith.constant 0 : index
    %126 = vector.load %arg15[%c0_103, %c0_104, %c0_105] : memref<4x32x512xf32, #tpu.memory_space<vmem>>, vector<1x32x512xf32>
    %127 = vector.shape_cast %126 : vector<1x32x512xf32> to vector<32x512xf32>
    %128 = vector.shape_cast %125 : vector<32x512xf32> to vector<1x32x512xf32>
    tpu.vector_store %arg15[%c0_103, %c0_104, %c0_105], %128 {strides = array<i32>} : memref<4x32x512xf32, #tpu.memory_space<vmem>>, vector<1x32x512xf32>,
    %c0_106 = arith.constant 0 : index
    %c0_107 = arith.constant 0 : index
    %c0_108 = arith.constant 0 : index
    %129 = vector.load %arg15[%c0_106, %c0_107, %c0_108] : memref<4x32x512xf32, #tpu.memory_space<vmem>>, vector<1x32x512xf32>
    %130 = vector.shape_cast %129 : vector<1x32x512xf32> to vector<32x512xf32>
    %c0_109 = arith.constant 0 : index
    %c0_110 = arith.constant 0 : index
    %131 = vector.load %arg2[%c0_109, %c0_110] : memref<512x1024xf32, #tpu.memory_space<vmem>>, vector<512x256xf32>
    %cst_111 = arith.constant dense<0.000000e+00> : vector<32x256xf32>
    %132 = tpu.matmul %130, %131, %cst_111 {dimension_numbers = #tpu.dot_dimension_numbers<[1], [0], [0], [1], [0, 0, 1, 1], [], []>} : vector<32x512xf32>, vector<512x256xf32>, vector<32x256xf32> -> vector<32x256xf32>
    %c0_112 = arith.constant 0 : index
    %c0_113 = arith.constant 0 : index
    %c0_114 = arith.constant 0 : index
    %133 = vector.load %arg17[%c0_112, %c0_113, %c0_114] : memref<8x32x1024xf32, #tpu.memory_space<vmem>>, vector<1x32x256xf32>
    %134 = vector.shape_cast %133 : vector<1x32x256xf32> to vector<32x256xf32>
    %135 = vector.shape_cast %132 : vector<32x256xf32> to vector<1x32x256xf32>
    tpu.vector_store %arg17[%c0_112, %c0_113, %c0_114], %135 {strides = array<i32>} : memref<8x32x1024xf32, #tpu.memory_space<vmem>>, vector<1x32x256xf32>,
    %c0_115 = arith.constant 0 : index
    %c256 = arith.constant 256 : index
    %136 = vector.load %arg2[%c0_115, %c256] : memref<512x1024xf32, #tpu.memory_space<vmem>>, vector<512x256xf32>
    %cst_116 = arith.constant dense<0.000000e+00> : vector<32x256xf32>
    %137 = tpu.matmul %130, %136, %cst_116 {dimension_numbers = #tpu.dot_dimension_numbers<[1], [0], [0], [1], [0, 0, 1, 1], [], []>} : vector<32x512xf32>, vector<512x256xf32>, vector<32x256xf32> -> vector<32x256xf32>
    %c0_117 = arith.constant 0 : index
    %c0_118 = arith.constant 0 : index
    %c256_119 = arith.constant 256 : index
    %138 = vector.load %arg17[%c0_117, %c0_118, %c256_119] : memref<8x32x1024xf32, #tpu.memory_space<vmem>>, vector<1x32x256xf32>
    %139 = vector.shape_cast %138 : vector<1x32x256xf32> to vector<32x256xf32>
    %140 = vector.shape_cast %137 : vector<32x256xf32> to vector<1x32x256xf32>
    tpu.vector_store %arg17[%c0_117, %c0_118, %c256_119], %140 {strides = array<i32>} : memref<8x32x1024xf32, #tpu.memory_space<vmem>>, vector<1x32x256xf32>,
    %c0_120 = arith.constant 0 : index
    %c512 = arith.constant 512 : index
    %141 = vector.load %arg2[%c0_120, %c512] : memref<512x1024xf32, #tpu.memory_space<vmem>>, vector<512x256xf32>
    %cst_121 = arith.constant dense<0.000000e+00> : vector<32x256xf32>
    %142 = tpu.matmul %130, %141, %cst_121 {dimension_numbers = #tpu.dot_dimension_numbers<[1], [0], [0], [1], [0, 0, 1, 1], [], []>} : vector<32x512xf32>, vector<512x256xf32>, vector<32x256xf32> -> vector<32x256xf32>
    %c0_122 = arith.constant 0 : index
    %c0_123 = arith.constant 0 : index
    %c512_124 = arith.constant 512 : index
    %143 = vector.load %arg17[%c0_122, %c0_123, %c512_124] : memref<8x32x1024xf32, #tpu.memory_space<vmem>>, vector<1x32x256xf32>
    %144 = vector.shape_cast %143 : vector<1x32x256xf32> to vector<32x256xf32>
    %145 = vector.shape_cast %142 : vector<32x256xf32> to vector<1x32x256xf32>
    tpu.vector_store %arg17[%c0_122, %c0_123, %c512_124], %145 {strides = array<i32>} : memref<8x32x1024xf32, #tpu.memory_space<vmem>>, vector<1x32x256xf32>,
    %c0_125 = arith.constant 0 : index
    %c768 = arith.constant 768 : index
    %146 = vector.load %arg2[%c0_125, %c768] : memref<512x1024xf32, #tpu.memory_space<vmem>>, vector<512x256xf32>
    %cst_126 = arith.constant dense<0.000000e+00> : vector<32x256xf32>
    %147 = tpu.matmul %130, %146, %cst_126 {dimension_numbers = #tpu.dot_dimension_numbers<[1], [0], [0], [1], [0, 0, 1, 1], [], []>} : vector<32x512xf32>, vector<512x256xf32>, vector<32x256xf32> -> vector<32x256xf32>
    %c0_127 = arith.constant 0 : index
    %c0_128 = arith.constant 0 : index
    %c768_129 = arith.constant 768 : index
    %148 = vector.load %arg17[%c0_127, %c0_128, %c768_129] : memref<8x32x1024xf32, #tpu.memory_space<vmem>>, vector<1x32x256xf32>
    %149 = vector.shape_cast %148 : vector<1x32x256xf32> to vector<32x256xf32>
    %150 = vector.shape_cast %147 : vector<32x256xf32> to vector<1x32x256xf32>
    tpu.vector_store %arg17[%c0_127, %c0_128, %c768_129], %150 {strides = array<i32>} : memref<8x32x1024xf32, #tpu.memory_space<vmem>>, vector<1x32x256xf32>,
    %cst_130 = arith.constant 0.000000e+00 : f32
    %151 = vector.broadcast %cst_130 : f32 to vector<2x256xf32>
    %c0_131 = arith.constant 0 : index
    %c0_132 = arith.constant 0 : index
    %152 = vector.load %arg18[%c0_131, %c0_132] : memref<32x256xf32, #tpu.memory_space<vmem>>, vector<2x256xf32>
    tpu.vector_store %arg18[%c0_131, %c0_132], %151 {strides = array<i32>} : memref<32x256xf32, #tpu.memory_space<vmem>>, vector<2x256xf32>,
    %c0_133 = arith.constant 0 : index
    %c0_134 = arith.constant 0 : index
    %c768_135 = arith.constant 768 : index
    %153 = vector.load %arg17[%c0_133, %c0_134, %c768_135] : memref<8x32x1024xf32, #tpu.memory_space<vmem>>, vector<1x30x256xf32>
    %154 = vector.shape_cast %153 : vector<1x30x256xf32> to vector<30x256xf32>
    %c2_136 = arith.constant 2 : index
    %c0_137 = arith.constant 0 : index
    %155 = vector.load %arg18[%c2_136, %c0_137] : memref<32x256xf32, #tpu.memory_space<vmem>>, vector<30x256xf32>
    tpu.vector_store %arg18[%c2_136, %c0_137], %154 {strides = array<i32>} : memref<32x256xf32, #tpu.memory_space<vmem>>, vector<30x256xf32>,
    %c0_138 = arith.constant 0 : index
    %c2_139 = arith.constant 2 : index
    %c0_140 = arith.constant 0 : index
    %156 = vector.load %arg17[%c0_138, %c2_139, %c0_140] : memref<8x32x1024xf32, #tpu.memory_space<vmem>>, vector<1x30x256xf32>
    %157 = vector.shape_cast %156 : vector<1x30x256xf32> to vector<30x256xf32>
    %c0_141 = arith.constant 0 : index
    %c0_142 = arith.constant 0 : index
    %158 = vector.load %arg19[%c0_141, %c0_142] : memref<32x256xf32, #tpu.memory_space<vmem>>, vector<30x256xf32>
    tpu.vector_store %arg19[%c0_141, %c0_142], %157 {strides = array<i32>} : memref<32x256xf32, #tpu.memory_space<vmem>>, vector<30x256xf32>,
    %cst_143 = arith.constant 0.000000e+00 : f32
    %159 = vector.broadcast %cst_143 : f32 to vector<2x256xf32>
    %c30_144 = arith.constant 30 : index
    %c0_145 = arith.constant 0 : index
    %160 = vector.load %arg19[%c30_144, %c0_145] : memref<32x256xf32, #tpu.memory_space<vmem>>, vector<2x256xf32>
    tpu.vector_store %arg19[%c30_144, %c0_145], %159 {strides = array<i32>} : memref<32x256xf32, #tpu.memory_space<vmem>>, vector<2x256xf32>,
    %cst_146 = arith.constant 0.000000e+00 : f32
    %161 = vector.broadcast %cst_146 : f32 to vector<1x256xf32>
    %cst_147 = arith.constant 0.000000e+00 : f32
    %162 = vector.broadcast %cst_147 : f32 to vector<1x256xf32>
    %c0_148 = arith.constant 0 : index
    %c0_149 = arith.constant 0 : index
    %c256_150 = arith.constant 256 : index
    %163 = vector.load %arg17[%c0_148, %c0_149, %c256_150] : memref<8x32x1024xf32, #tpu.memory_space<vmem>>, vector<1x32x256xf32>
    %164 = vector.shape_cast %163 : vector<1x32x256xf32> to vector<32x256xf32>
    %c0_151 = arith.constant 0 : index
    %c0_152 = arith.constant 0 : index
    %c512_153 = arith.constant 512 : index
    %165 = vector.load %arg17[%c0_151, %c0_152, %c512_153] : memref<8x32x1024xf32, #tpu.memory_space<vmem>>, vector<1x32x256xf32>
    %166 = vector.shape_cast %165 : vector<1x32x256xf32> to vector<32x256xf32>
    %c0_154 = arith.constant 0 : index
    %c0_155 = arith.constant 0 : index
    %167 = vector.load %arg18[%c0_154, %c0_155] : memref<32x256xf32, #tpu.memory_space<vmem>>, vector<32x256xf32>
    %c0_156 = arith.constant 0 : index
    %c0_157 = arith.constant 0 : index
    %168 = vector.load %arg19[%c0_156, %c0_157] : memref<32x256xf32, #tpu.memory_space<vmem>>, vector<32x256xf32>
    %169 = arith.addf %164, %167 : vector<32x256xf32>
    %170 = arith.addf %166, %168 : vector<32x256xf32>
    %cst_158 = arith.constant dense<0.000000e+00> : vector<256xf32>
    %171 = vector.multi_reduction <add>, %169, %cst_158 [0] : vector<32x256xf32> to vector<256xf32>
    %172 = vector.shape_cast %171 : vector<256xf32> to vector<1x256xf32>
    %173 = arith.addf %161, %172 : vector<1x256xf32>
    %cst_159 = arith.constant dense<0.000000e+00> : vector<256xf32>
    %174 = vector.multi_reduction <add>, %170, %cst_159 [0] : vector<32x256xf32> to vector<256xf32>
    %175 = vector.shape_cast %174 : vector<256xf32> to vector<1x256xf32>
    %176 = arith.addf %173, %175 : vector<1x256xf32>
    %177 = arith.mulf %169, %169 : vector<32x256xf32>
    %cst_160 = arith.constant dense<0.000000e+00> : vector<256xf32>
    %178 = vector.multi_reduction <add>, %177, %cst_160 [0] : vector<32x256xf32> to vector<256xf32>
    %179 = vector.shape_cast %178 : vector<256xf32> to vector<1x256xf32>
    %180 = arith.addf %162, %179 : vector<1x256xf32>
    %181 = arith.mulf %170, %170 : vector<32x256xf32>
    %cst_161 = arith.constant dense<0.000000e+00> : vector<256xf32>
    %182 = vector.multi_reduction <add>, %181, %cst_161 [0] : vector<32x256xf32> to vector<256xf32>
    %183 = vector.shape_cast %182 : vector<256xf32> to vector<1x256xf32>
    %184 = arith.addf %180, %183 : vector<1x256xf32>
    %c0_162 = arith.constant 0 : index
    %c0_163 = arith.constant 0 : index
    %c0_164 = arith.constant 0 : index
    %185 = vector.load %arg16[%c0_162, %c0_163, %c0_164] : memref<8x32x256xf32, #tpu.memory_space<vmem>>, vector<1x32x256xf32>
    %186 = vector.shape_cast %185 : vector<1x32x256xf32> to vector<32x256xf32>
    %187 = vector.shape_cast %169 : vector<32x256xf32> to vector<1x32x256xf32>
    tpu.vector_store %arg16[%c0_162, %c0_163, %c0_164], %187 {strides = array<i32>} : memref<8x32x256xf32, #tpu.memory_space<vmem>>, vector<1x32x256xf32>,
    %c1_165 = arith.constant 1 : index
    %c0_166 = arith.constant 0 : index
    %c0_167 = arith.constant 0 : index
    %188 = vector.load %arg16[%c1_165, %c0_166, %c0_167] : memref<8x32x256xf32, #tpu.memory_space<vmem>>, vector<1x32x256xf32>
    %189 = vector.shape_cast %188 : vector<1x32x256xf32> to vector<32x256xf32>
    %190 = vector.shape_cast %170 : vector<32x256xf32> to vector<1x32x256xf32>
    tpu.vector_store %arg16[%c1_165, %c0_166, %c0_167], %190 {strides = array<i32>} : memref<8x32x256xf32, #tpu.memory_space<vmem>>, vector<1x32x256xf32>,
    %cst_168 = arith.constant 6.400000e+01 : f32
    %191 = vector.broadcast %cst_168 : f32 to vector<1x256xf32>
    %192 = arith.divf %176, %191 : vector<1x256xf32>
    %cst_169 = arith.constant 6.400000e+01 : f32
    %193 = vector.broadcast %cst_169 : f32 to vector<1x256xf32>
    %194 = arith.divf %184, %193 : vector<1x256xf32>
    %195 = arith.mulf %192, %192 : vector<1x256xf32>
    %196 = arith.subf %194, %195 : vector<1x256xf32>
    %cst_170 = arith.constant 0.000000e+00 : f32
    %197 = vector.broadcast %cst_170 : f32 to vector<1x256xf32>
    %198 = arith.maximumf %196, %197 : vector<1x256xf32>
    %cst_171 = arith.constant 9.99999974E-6 : f32
    %199 = vector.broadcast %cst_171 : f32 to vector<1x256xf32>
    %200 = arith.addf %198, %199 : vector<1x256xf32>
    %201 = math.rsqrt %200 : vector<1x256xf32>
    %c0_172 = arith.constant 0 : index
    %c0_173 = arith.constant 0 : index
    %202 = vector.load %arg8[%c0_172, %c0_173] : memref<1x256xf32, #tpu.memory_space<vmem>>, vector<1x256xf32>
    %203 = arith.mulf %201, %202 : vector<1x256xf32>
    %c0_174 = arith.constant 0 : index
    %c0_175 = arith.constant 0 : index
    %204 = vector.load %arg9[%c0_174, %c0_175] : memref<1x256xf32, #tpu.memory_space<vmem>>, vector<1x256xf32>
    %205 = arith.mulf %192, %203 : vector<1x256xf32>
    %206 = arith.subf %204, %205 : vector<1x256xf32>
    %c0_176 = arith.constant 0 : index
    %c0_177 = arith.constant 0 : index
    %c0_178 = arith.constant 0 : index
    %207 = vector.load %arg16[%c0_176, %c0_177, %c0_178] : memref<8x32x256xf32, #tpu.memory_space<vmem>>, vector<1x32x256xf32>
    %208 = vector.shape_cast %207 : vector<1x32x256xf32> to vector<32x256xf32>
    %209 = vector.broadcast %203 : vector<1x256xf32> to vector<32x256xf32>
    %210 = arith.mulf %208, %209 : vector<32x256xf32>
    %211 = vector.broadcast %206 : vector<1x256xf32> to vector<32x256xf32>
    %212 = arith.addf %210, %211 : vector<32x256xf32>
    %cst_179 = arith.constant 0.000000e+00 : f32
    %213 = vector.broadcast %cst_179 : f32 to vector<32x256xf32>
    %214 = arith.maximumf %212, %213 : vector<32x256xf32>
    %c0_180 = arith.constant 0 : index
    %c0_181 = arith.constant 0 : index
    %c0_182 = arith.constant 0 : index
    %215 = vector.load %arg16[%c0_180, %c0_181, %c0_182] : memref<8x32x256xf32, #tpu.memory_space<vmem>>, vector<1x32x256xf32>
    %216 = vector.shape_cast %215 : vector<1x32x256xf32> to vector<32x256xf32>
    %217 = vector.shape_cast %214 : vector<32x256xf32> to vector<1x32x256xf32>
    tpu.vector_store %arg16[%c0_180, %c0_181, %c0_182], %217 {strides = array<i32>} : memref<8x32x256xf32, #tpu.memory_space<vmem>>, vector<1x32x256xf32>,
    %c1_183 = arith.constant 1 : index
    %c0_184 = arith.constant 0 : index
    %c0_185 = arith.constant 0 : index
    %218 = vector.load %arg16[%c1_183, %c0_184, %c0_185] : memref<8x32x256xf32, #tpu.memory_space<vmem>>, vector<1x32x256xf32>
    %219 = vector.shape_cast %218 : vector<1x32x256xf32> to vector<32x256xf32>
    %220 = vector.broadcast %203 : vector<1x256xf32> to vector<32x256xf32>
    %221 = arith.mulf %219, %220 : vector<32x256xf32>
    %222 = vector.broadcast %206 : vector<1x256xf32> to vector<32x256xf32>
    %223 = arith.addf %221, %222 : vector<32x256xf32>
    %cst_186 = arith.constant 0.000000e+00 : f32
    %224 = vector.broadcast %cst_186 : f32 to vector<32x256xf32>
    %225 = arith.maximumf %223, %224 : vector<32x256xf32>
    %c1_187 = arith.constant 1 : index
    %c0_188 = arith.constant 0 : index
    %c0_189 = arith.constant 0 : index
    %226 = vector.load %arg16[%c1_187, %c0_188, %c0_189] : memref<8x32x256xf32, #tpu.memory_space<vmem>>, vector<1x32x256xf32>
    %227 = vector.shape_cast %226 : vector<1x32x256xf32> to vector<32x256xf32>
    %228 = vector.shape_cast %225 : vector<32x256xf32> to vector<1x32x256xf32>
    tpu.vector_store %arg16[%c1_187, %c0_188, %c0_189], %228 {strides = array<i32>} : memref<8x32x256xf32, #tpu.memory_space<vmem>>, vector<1x32x256xf32>,
    %c0_190 = arith.constant 0 : index
    %c0_191 = arith.constant 0 : index
    %c0_192 = arith.constant 0 : index
    %229 = vector.load %arg16[%c0_190, %c0_191, %c0_192] : memref<8x32x256xf32, #tpu.memory_space<vmem>>, vector<1x32x256xf32>
    %230 = vector.shape_cast %229 : vector<1x32x256xf32> to vector<32x256xf32>
    %c0_193 = arith.constant 0 : index
    %c0_194 = arith.constant 0 : index
    %231 = vector.load %arg3[%c0_193, %c0_194] : memref<256x512xf32, #tpu.memory_space<vmem>>, vector<256x256xf32>
    %cst_195 = arith.constant dense<0.000000e+00> : vector<32x256xf32>
    %232 = tpu.matmul %230, %231, %cst_195 {dimension_numbers = #tpu.dot_dimension_numbers<[1], [0], [0], [1], [0, 0, 1, 1], [], []>} : vector<32x256xf32>, vector<256x256xf32>, vector<32x256xf32> -> vector<32x256xf32>
    %c0_196 = arith.constant 0 : index
    %c0_197 = arith.constant 0 : index
    %c0_198 = arith.constant 0 : index
    %233 = vector.load %arg17[%c0_196, %c0_197, %c0_198] : memref<8x32x1024xf32, #tpu.memory_space<vmem>>, vector<1x32x256xf32>
    %234 = vector.shape_cast %233 : vector<1x32x256xf32> to vector<32x256xf32>
    %235 = vector.shape_cast %232 : vector<32x256xf32> to vector<1x32x256xf32>
    tpu.vector_store %arg17[%c0_196, %c0_197, %c0_198], %235 {strides = array<i32>} : memref<8x32x1024xf32, #tpu.memory_space<vmem>>, vector<1x32x256xf32>,
    %c0_199 = arith.constant 0 : index
    %c256_200 = arith.constant 256 : index
    %236 = vector.load %arg3[%c0_199, %c256_200] : memref<256x512xf32, #tpu.memory_space<vmem>>, vector<256x256xf32>
    %cst_201 = arith.constant dense<0.000000e+00> : vector<32x256xf32>
    %237 = tpu.matmul %230, %236, %cst_201 {dimension_numbers = #tpu.dot_dimension_numbers<[1], [0], [0], [1], [0, 0, 1, 1], [], []>} : vector<32x256xf32>, vector<256x256xf32>, vector<32x256xf32> -> vector<32x256xf32>
    %c0_202 = arith.constant 0 : index
    %c0_203 = arith.constant 0 : index
    %c256_204 = arith.constant 256 : index
    %238 = vector.load %arg17[%c0_202, %c0_203, %c256_204] : memref<8x32x1024xf32, #tpu.memory_space<vmem>>, vector<1x32x256xf32>
    %239 = vector.shape_cast %238 : vector<1x32x256xf32> to vector<32x256xf32>
    %240 = vector.shape_cast %237 : vector<32x256xf32> to vector<1x32x256xf32>
    tpu.vector_store %arg17[%c0_202, %c0_203, %c256_204], %240 {strides = array<i32>} : memref<8x32x1024xf32, #tpu.memory_space<vmem>>, vector<1x32x256xf32>,
    %c1_205 = arith.constant 1 : index
    %c0_206 = arith.constant 0 : index
    %c0_207 = arith.constant 0 : index
    %241 = vector.load %arg16[%c1_205, %c0_206, %c0_207] : memref<8x32x256xf32, #tpu.memory_space<vmem>>, vector<1x32x256xf32>
    %242 = vector.shape_cast %241 : vector<1x32x256xf32> to vector<32x256xf32>
    %c0_208 = arith.constant 0 : index
    %c0_209 = arith.constant 0 : index
    %243 = vector.load %arg3[%c0_208, %c0_209] : memref<256x512xf32, #tpu.memory_space<vmem>>, vector<256x256xf32>
    %cst_210 = arith.constant dense<0.000000e+00> : vector<32x256xf32>
    %244 = tpu.matmul %242, %243, %cst_210 {dimension_numbers = #tpu.dot_dimension_numbers<[1], [0], [0], [1], [0, 0, 1, 1], [], []>} : vector<32x256xf32>, vector<256x256xf32>, vector<32x256xf32> -> vector<32x256xf32>
    %c1_211 = arith.constant 1 : index
    %c0_212 = arith.constant 0 : index
    %c0_213 = arith.constant 0 : index
    %245 = vector.load %arg17[%c1_211, %c0_212, %c0_213] : memref<8x32x1024xf32, #tpu.memory_space<vmem>>, vector<1x32x256xf32>
    %246 = vector.shape_cast %245 : vector<1x32x256xf32> to vector<32x256xf32>
    %247 = vector.shape_cast %244 : vector<32x256xf32> to vector<1x32x256xf32>
    tpu.vector_store %arg17[%c1_211, %c0_212, %c0_213], %247 {strides = array<i32>} : memref<8x32x1024xf32, #tpu.memory_space<vmem>>, vector<1x32x256xf32>,
    %c0_214 = arith.constant 0 : index
    %c256_215 = arith.constant 256 : index
    %248 = vector.load %arg3[%c0_214, %c256_215] : memref<256x512xf32, #tpu.memory_space<vmem>>, vector<256x256xf32>
    %cst_216 = arith.constant dense<0.000000e+00> : vector<32x256xf32>
    %249 = tpu.matmul %242, %248, %cst_216 {dimension_numbers = #tpu.dot_dimension_numbers<[1], [0], [0], [1], [0, 0, 1, 1], [], []>} : vector<32x256xf32>, vector<256x256xf32>, vector<32x256xf32> -> vector<32x256xf32>
    %c1_217 = arith.constant 1 : index
    %c0_218 = arith.constant 0 : index
    %c256_219 = arith.constant 256 : index
    %250 = vector.load %arg17[%c1_217, %c0_218, %c256_219] : memref<8x32x1024xf32, #tpu.memory_space<vmem>>, vector<1x32x256xf32>
    %251 = vector.shape_cast %250 : vector<1x32x256xf32> to vector<32x256xf32>
    %252 = vector.shape_cast %249 : vector<32x256xf32> to vector<1x32x256xf32>
    tpu.vector_store %arg17[%c1_217, %c0_218, %c256_219], %252 {strides = array<i32>} : memref<8x32x1024xf32, #tpu.memory_space<vmem>>, vector<1x32x256xf32>,
    %cst_220 = arith.constant 0.000000e+00 : f32
    %253 = vector.broadcast %cst_220 : f32 to vector<2x128xf32>
    %c0_221 = arith.constant 0 : index
    %c0_222 = arith.constant 0 : index
    %254 = vector.load %arg18[%c0_221, %c0_222] : memref<32x256xf32, #tpu.memory_space<vmem>>, vector<2x128xf32>
    tpu.vector_store %arg18[%c0_221, %c0_222], %253 {strides = array<i32>} : memref<32x256xf32, #tpu.memory_space<vmem>>, vector<2x128xf32>,
    %c1_223 = arith.constant 1 : index
    %c0_224 = arith.constant 0 : index
    %c384 = arith.constant 384 : index
    %255 = vector.load %arg17[%c1_223, %c0_224, %c384] : memref<8x32x1024xf32, #tpu.memory_space<vmem>>, vector<1x30x128xf32>
    %256 = vector.shape_cast %255 : vector<1x30x128xf32> to vector<30x128xf32>
    %c2_225 = arith.constant 2 : index
    %c0_226 = arith.constant 0 : index
    %257 = vector.load %arg18[%c2_225, %c0_226] : memref<32x256xf32, #tpu.memory_space<vmem>>, vector<30x128xf32>
    tpu.vector_store %arg18[%c2_225, %c0_226], %256 {strides = array<i32>} : memref<32x256xf32, #tpu.memory_space<vmem>>, vector<30x128xf32>,
    %c0_227 = arith.constant 0 : index
    %c2_228 = arith.constant 2 : index
    %c0_229 = arith.constant 0 : index
    %258 = vector.load %arg17[%c0_227, %c2_228, %c0_229] : memref<8x32x1024xf32, #tpu.memory_space<vmem>>, vector<1x30x128xf32>
    %259 = vector.shape_cast %258 : vector<1x30x128xf32> to vector<30x128xf32>
    %c0_230 = arith.constant 0 : index
    %c0_231 = arith.constant 0 : index
    %260 = vector.load %arg19[%c0_230, %c0_231] : memref<32x256xf32, #tpu.memory_space<vmem>>, vector<30x128xf32>
    tpu.vector_store %arg19[%c0_230, %c0_231], %259 {strides = array<i32>} : memref<32x256xf32, #tpu.memory_space<vmem>>, vector<30x128xf32>,
    %cst_232 = arith.constant 0.000000e+00 : f32
    %261 = vector.broadcast %cst_232 : f32 to vector<2x128xf32>
    %c30_233 = arith.constant 30 : index
    %c0_234 = arith.constant 0 : index
    %262 = vector.load %arg19[%c30_233, %c0_234] : memref<32x256xf32, #tpu.memory_space<vmem>>, vector<2x128xf32>
    tpu.vector_store %arg19[%c30_233, %c0_234], %261 {strides = array<i32>} : memref<32x256xf32, #tpu.memory_space<vmem>>, vector<2x128xf32>,
    %cst_235 = arith.constant 0.000000e+00 : f32
    %263 = vector.broadcast %cst_235 : f32 to vector<1x128xf32>
    %cst_236 = arith.constant 0.000000e+00 : f32
    %264 = vector.broadcast %cst_236 : f32 to vector<1x128xf32>
    %c0_237 = arith.constant 0 : index
    %c0_238 = arith.constant 0 : index
    %c128 = arith.constant 128 : index
    %265 = vector.load %arg17[%c0_237, %c0_238, %c128] : memref<8x32x1024xf32, #tpu.memory_space<vmem>>, vector<1x32x128xf32>
    %266 = vector.shape_cast %265 : vector<1x32x128xf32> to vector<32x128xf32>
    %c0_239 = arith.constant 0 : index
    %c0_240 = arith.constant 0 : index
    %c256_241 = arith.constant 256 : index
    %267 = vector.load %arg17[%c0_239, %c0_240, %c256_241] : memref<8x32x1024xf32, #tpu.memory_space<vmem>>, vector<1x32x128xf32>
    %268 = vector.shape_cast %267 : vector<1x32x128xf32> to vector<32x128xf32>
    %c0_242 = arith.constant 0 : index
    %c0_243 = arith.constant 0 : index
    %269 = vector.load %arg18[%c0_242, %c0_243] : memref<32x256xf32, #tpu.memory_space<vmem>>, vector<32x128xf32>
    %c1_244 = arith.constant 1 : index
    %c0_245 = arith.constant 0 : index
    %c0_246 = arith.constant 0 : index
    %270 = vector.load %arg17[%c1_244, %c0_245, %c0_246] : memref<8x32x1024xf32, #tpu.memory_space<vmem>>, vector<1x32x128xf32>
    %271 = vector.shape_cast %270 : vector<1x32x128xf32> to vector<32x128xf32>
    %272 = arith.addf %266, %269 : vector<32x128xf32>
    %273 = arith.addf %268, %271 : vector<32x128xf32>
    %cst_247 = arith.constant dense<0.000000e+00> : vector<128xf32>
    %274 = vector.multi_reduction <add>, %272, %cst_247 [0] : vector<32x128xf32> to vector<128xf32>
    %275 = vector.shape_cast %274 : vector<128xf32> to vector<1x128xf32>
    %276 = arith.addf %263, %275 : vector<1x128xf32>
    %cst_248 = arith.constant dense<0.000000e+00> : vector<128xf32>
    %277 = vector.multi_reduction <add>, %273, %cst_248 [0] : vector<32x128xf32> to vector<128xf32>
    %278 = vector.shape_cast %277 : vector<128xf32> to vector<1x128xf32>
    %279 = arith.addf %276, %278 : vector<1x128xf32>
    %280 = arith.mulf %272, %272 : vector<32x128xf32>
    %cst_249 = arith.constant dense<0.000000e+00> : vector<128xf32>
    %281 = vector.multi_reduction <add>, %280, %cst_249 [0] : vector<32x128xf32> to vector<128xf32>
    %282 = vector.shape_cast %281 : vector<128xf32> to vector<1x128xf32>
    %283 = arith.addf %264, %282 : vector<1x128xf32>
    %284 = arith.mulf %273, %273 : vector<32x128xf32>
    %cst_250 = arith.constant dense<0.000000e+00> : vector<128xf32>
    %285 = vector.multi_reduction <add>, %284, %cst_250 [0] : vector<32x128xf32> to vector<128xf32>
    %286 = vector.shape_cast %285 : vector<128xf32> to vector<1x128xf32>
    %287 = arith.addf %283, %286 : vector<1x128xf32>
    %c0_251 = arith.constant 0 : index
    %c0_252 = arith.constant 0 : index
    %c0_253 = arith.constant 0 : index
    %288 = vector.load %arg15[%c0_251, %c0_252, %c0_253] : memref<4x32x512xf32, #tpu.memory_space<vmem>>, vector<1x32x128xf32>
    %289 = vector.shape_cast %288 : vector<1x32x128xf32> to vector<32x128xf32>
    %290 = vector.shape_cast %272 : vector<32x128xf32> to vector<1x32x128xf32>
    tpu.vector_store %arg15[%c0_251, %c0_252, %c0_253], %290 {strides = array<i32>} : memref<4x32x512xf32, #tpu.memory_space<vmem>>, vector<1x32x128xf32>,
    %c1_254 = arith.constant 1 : index
    %c0_255 = arith.constant 0 : index
    %c0_256 = arith.constant 0 : index
    %291 = vector.load %arg15[%c1_254, %c0_255, %c0_256] : memref<4x32x512xf32, #tpu.memory_space<vmem>>, vector<1x32x128xf32>
    %292 = vector.shape_cast %291 : vector<1x32x128xf32> to vector<32x128xf32>
    %293 = vector.shape_cast %273 : vector<32x128xf32> to vector<1x32x128xf32>
    tpu.vector_store %arg15[%c1_254, %c0_255, %c0_256], %293 {strides = array<i32>} : memref<4x32x512xf32, #tpu.memory_space<vmem>>, vector<1x32x128xf32>,
    %c1_257 = arith.constant 1 : index
    %c0_258 = arith.constant 0 : index
    %c128_259 = arith.constant 128 : index
    %294 = vector.load %arg17[%c1_257, %c0_258, %c128_259] : memref<8x32x1024xf32, #tpu.memory_space<vmem>>, vector<1x32x128xf32>
    %295 = vector.shape_cast %294 : vector<1x32x128xf32> to vector<32x128xf32>
    %c1_260 = arith.constant 1 : index
    %c0_261 = arith.constant 0 : index
    %c256_262 = arith.constant 256 : index
    %296 = vector.load %arg17[%c1_260, %c0_261, %c256_262] : memref<8x32x1024xf32, #tpu.memory_space<vmem>>, vector<1x32x128xf32>
    %297 = vector.shape_cast %296 : vector<1x32x128xf32> to vector<32x128xf32>
    %c0_263 = arith.constant 0 : index
    %c0_264 = arith.constant 0 : index
    %c384_265 = arith.constant 384 : index
    %298 = vector.load %arg17[%c0_263, %c0_264, %c384_265] : memref<8x32x1024xf32, #tpu.memory_space<vmem>>, vector<1x32x128xf32>
    %299 = vector.shape_cast %298 : vector<1x32x128xf32> to vector<32x128xf32>
    %c0_266 = arith.constant 0 : index
    %c0_267 = arith.constant 0 : index
    %300 = vector.load %arg19[%c0_266, %c0_267] : memref<32x256xf32, #tpu.memory_space<vmem>>, vector<32x128xf32>
    %301 = arith.addf %295, %299 : vector<32x128xf32>
    %302 = arith.addf %297, %300 : vector<32x128xf32>
    %cst_268 = arith.constant dense<0.000000e+00> : vector<128xf32>
    %303 = vector.multi_reduction <add>, %301, %cst_268 [0] : vector<32x128xf32> to vector<128xf32>
    %304 = vector.shape_cast %303 : vector<128xf32> to vector<1x128xf32>
    %305 = arith.addf %279, %304 : vector<1x128xf32>
    %cst_269 = arith.constant dense<0.000000e+00> : vector<128xf32>
    %306 = vector.multi_reduction <add>, %302, %cst_269 [0] : vector<32x128xf32> to vector<128xf32>
    %307 = vector.shape_cast %306 : vector<128xf32> to vector<1x128xf32>
    %308 = arith.addf %305, %307 : vector<1x128xf32>
    %309 = arith.mulf %301, %301 : vector<32x128xf32>
    %cst_270 = arith.constant dense<0.000000e+00> : vector<128xf32>
    %310 = vector.multi_reduction <add>, %309, %cst_270 [0] : vector<32x128xf32> to vector<128xf32>
    %311 = vector.shape_cast %310 : vector<128xf32> to vector<1x128xf32>
    %312 = arith.addf %287, %311 : vector<1x128xf32>
    %313 = arith.mulf %302, %302 : vector<32x128xf32>
    %cst_271 = arith.constant dense<0.000000e+00> : vector<128xf32>
    %314 = vector.multi_reduction <add>, %313, %cst_271 [0] : vector<32x128xf32> to vector<128xf32>
    %315 = vector.shape_cast %314 : vector<128xf32> to vector<1x128xf32>
    %316 = arith.addf %312, %315 : vector<1x128xf32>
    %c2_272 = arith.constant 2 : index
    %c0_273 = arith.constant 0 : index
    %c0_274 = arith.constant 0 : index
    %317 = vector.load %arg15[%c2_272, %c0_273, %c0_274] : memref<4x32x512xf32, #tpu.memory_space<vmem>>, vector<1x32x128xf32>
    %318 = vector.shape_cast %317 : vector<1x32x128xf32> to vector<32x128xf32>
    %319 = vector.shape_cast %301 : vector<32x128xf32> to vector<1x32x128xf32>
    tpu.vector_store %arg15[%c2_272, %c0_273, %c0_274], %319 {strides = array<i32>} : memref<4x32x512xf32, #tpu.memory_space<vmem>>, vector<1x32x128xf32>,
    %c3_275 = arith.constant 3 : index
    %c0_276 = arith.constant 0 : index
    %c0_277 = arith.constant 0 : index
    %320 = vector.load %arg15[%c3_275, %c0_276, %c0_277] : memref<4x32x512xf32, #tpu.memory_space<vmem>>, vector<1x32x128xf32>
    %321 = vector.shape_cast %320 : vector<1x32x128xf32> to vector<32x128xf32>
    %322 = vector.shape_cast %302 : vector<32x128xf32> to vector<1x32x128xf32>
    tpu.vector_store %arg15[%c3_275, %c0_276, %c0_277], %322 {strides = array<i32>} : memref<4x32x512xf32, #tpu.memory_space<vmem>>, vector<1x32x128xf32>,
    %cst_278 = arith.constant 1.280000e+02 : f32
    %323 = vector.broadcast %cst_278 : f32 to vector<1x128xf32>
    %324 = arith.divf %308, %323 : vector<1x128xf32>
    %cst_279 = arith.constant 1.280000e+02 : f32
    %325 = vector.broadcast %cst_279 : f32 to vector<1x128xf32>
    %326 = arith.divf %316, %325 : vector<1x128xf32>
    %327 = arith.mulf %324, %324 : vector<1x128xf32>
    %328 = arith.subf %326, %327 : vector<1x128xf32>
    %cst_280 = arith.constant 0.000000e+00 : f32
    %329 = vector.broadcast %cst_280 : f32 to vector<1x128xf32>
    %330 = arith.maximumf %328, %329 : vector<1x128xf32>
    %cst_281 = arith.constant 9.99999974E-6 : f32
    %331 = vector.broadcast %cst_281 : f32 to vector<1x128xf32>
    %332 = arith.addf %330, %331 : vector<1x128xf32>
    %333 = math.rsqrt %332 : vector<1x128xf32>
    %c0_282 = arith.constant 0 : index
    %c0_283 = arith.constant 0 : index
    %334 = vector.load %arg10[%c0_282, %c0_283] : memref<1x128xf32, #tpu.memory_space<vmem>>, vector<1x128xf32>
    %335 = arith.mulf %333, %334 : vector<1x128xf32>
    %c0_284 = arith.constant 0 : index
    %c0_285 = arith.constant 0 : index
    %336 = vector.load %arg11[%c0_284, %c0_285] : memref<1x128xf32, #tpu.memory_space<vmem>>, vector<1x128xf32>
    %337 = arith.mulf %324, %335 : vector<1x128xf32>
    %338 = arith.subf %336, %337 : vector<1x128xf32>
    %c0_286 = arith.constant 0 : index
    %c0_287 = arith.constant 0 : index
    %c0_288 = arith.constant 0 : index
    %339 = vector.load %arg15[%c0_286, %c0_287, %c0_288] : memref<4x32x512xf32, #tpu.memory_space<vmem>>, vector<1x32x128xf32>
    %340 = vector.shape_cast %339 : vector<1x32x128xf32> to vector<32x128xf32>
    %341 = vector.broadcast %335 : vector<1x128xf32> to vector<32x128xf32>
    %342 = arith.mulf %340, %341 : vector<32x128xf32>
    %343 = vector.broadcast %338 : vector<1x128xf32> to vector<32x128xf32>
    %344 = arith.addf %342, %343 : vector<32x128xf32>
    %cst_289 = arith.constant 0.000000e+00 : f32
    %345 = vector.broadcast %cst_289 : f32 to vector<32x128xf32>
    %346 = arith.maximumf %344, %345 : vector<32x128xf32>
    %c0_290 = arith.constant 0 : index
    %c0_291 = arith.constant 0 : index
    %c0_292 = arith.constant 0 : index
    %347 = vector.load %arg15[%c0_290, %c0_291, %c0_292] : memref<4x32x512xf32, #tpu.memory_space<vmem>>, vector<1x32x128xf32>
    %348 = vector.shape_cast %347 : vector<1x32x128xf32> to vector<32x128xf32>
    %349 = vector.shape_cast %346 : vector<32x128xf32> to vector<1x32x128xf32>
    tpu.vector_store %arg15[%c0_290, %c0_291, %c0_292], %349 {strides = array<i32>} : memref<4x32x512xf32, #tpu.memory_space<vmem>>, vector<1x32x128xf32>,
    %c1_293 = arith.constant 1 : index
    %c0_294 = arith.constant 0 : index
    %c0_295 = arith.constant 0 : index
    %350 = vector.load %arg15[%c1_293, %c0_294, %c0_295] : memref<4x32x512xf32, #tpu.memory_space<vmem>>, vector<1x32x128xf32>
    %351 = vector.shape_cast %350 : vector<1x32x128xf32> to vector<32x128xf32>
    %352 = vector.broadcast %335 : vector<1x128xf32> to vector<32x128xf32>
    %353 = arith.mulf %351, %352 : vector<32x128xf32>
    %354 = vector.broadcast %338 : vector<1x128xf32> to vector<32x128xf32>
    %355 = arith.addf %353, %354 : vector<32x128xf32>
    %cst_296 = arith.constant 0.000000e+00 : f32
    %356 = vector.broadcast %cst_296 : f32 to vector<32x128xf32>
    %357 = arith.maximumf %355, %356 : vector<32x128xf32>
    %c1_297 = arith.constant 1 : index
    %c0_298 = arith.constant 0 : index
    %c0_299 = arith.constant 0 : index
    %358 = vector.load %arg15[%c1_297, %c0_298, %c0_299] : memref<4x32x512xf32, #tpu.memory_space<vmem>>, vector<1x32x128xf32>
    %359 = vector.shape_cast %358 : vector<1x32x128xf32> to vector<32x128xf32>
    %360 = vector.shape_cast %357 : vector<32x128xf32> to vector<1x32x128xf32>
    tpu.vector_store %arg15[%c1_297, %c0_298, %c0_299], %360 {strides = array<i32>} : memref<4x32x512xf32, #tpu.memory_space<vmem>>, vector<1x32x128xf32>,
    %c2_300 = arith.constant 2 : index
    %c0_301 = arith.constant 0 : index
    %c0_302 = arith.constant 0 : index
    %361 = vector.load %arg15[%c2_300, %c0_301, %c0_302] : memref<4x32x512xf32, #tpu.memory_space<vmem>>, vector<1x32x128xf32>
    %362 = vector.shape_cast %361 : vector<1x32x128xf32> to vector<32x128xf32>
    %363 = vector.broadcast %335 : vector<1x128xf32> to vector<32x128xf32>
    %364 = arith.mulf %362, %363 : vector<32x128xf32>
    %365 = vector.broadcast %338 : vector<1x128xf32> to vector<32x128xf32>
    %366 = arith.addf %364, %365 : vector<32x128xf32>
    %cst_303 = arith.constant 0.000000e+00 : f32
    %367 = vector.broadcast %cst_303 : f32 to vector<32x128xf32>
    %368 = arith.maximumf %366, %367 : vector<32x128xf32>
    %c2_304 = arith.constant 2 : index
    %c0_305 = arith.constant 0 : index
    %c0_306 = arith.constant 0 : index
    %369 = vector.load %arg15[%c2_304, %c0_305, %c0_306] : memref<4x32x512xf32, #tpu.memory_space<vmem>>, vector<1x32x128xf32>
    %370 = vector.shape_cast %369 : vector<1x32x128xf32> to vector<32x128xf32>
    %371 = vector.shape_cast %368 : vector<32x128xf32> to vector<1x32x128xf32>
    tpu.vector_store %arg15[%c2_304, %c0_305, %c0_306], %371 {strides = array<i32>} : memref<4x32x512xf32, #tpu.memory_space<vmem>>, vector<1x32x128xf32>,
    %c3_307 = arith.constant 3 : index
    %c0_308 = arith.constant 0 : index
    %c0_309 = arith.constant 0 : index
    %372 = vector.load %arg15[%c3_307, %c0_308, %c0_309] : memref<4x32x512xf32, #tpu.memory_space<vmem>>, vector<1x32x128xf32>
    %373 = vector.shape_cast %372 : vector<1x32x128xf32> to vector<32x128xf32>
    %374 = vector.broadcast %335 : vector<1x128xf32> to vector<32x128xf32>
    %375 = arith.mulf %373, %374 : vector<32x128xf32>
    %376 = vector.broadcast %338 : vector<1x128xf32> to vector<32x128xf32>
    %377 = arith.addf %375, %376 : vector<32x128xf32>
    %cst_310 = arith.constant 0.000000e+00 : f32
    %378 = vector.broadcast %cst_310 : f32 to vector<32x128xf32>
    %379 = arith.maximumf %377, %378 : vector<32x128xf32>
    %c3_311 = arith.constant 3 : index
    %c0_312 = arith.constant 0 : index
    %c0_313 = arith.constant 0 : index
    %380 = vector.load %arg15[%c3_311, %c0_312, %c0_313] : memref<4x32x512xf32, #tpu.memory_space<vmem>>, vector<1x32x128xf32>
    %381 = vector.shape_cast %380 : vector<1x32x128xf32> to vector<32x128xf32>
    %382 = vector.shape_cast %379 : vector<32x128xf32> to vector<1x32x128xf32>
    tpu.vector_store %arg15[%c3_311, %c0_312, %c0_313], %382 {strides = array<i32>} : memref<4x32x512xf32, #tpu.memory_space<vmem>>, vector<1x32x128xf32>,
    %c0_314 = arith.constant 0 : index
    %c0_315 = arith.constant 0 : index
    %c0_316 = arith.constant 0 : index
    %383 = vector.load %arg15[%c0_314, %c0_315, %c0_316] : memref<4x32x512xf32, #tpu.memory_space<vmem>>, vector<1x32x128xf32>
    %384 = vector.shape_cast %383 : vector<1x32x128xf32> to vector<32x128xf32>
    %c0_317 = arith.constant 0 : index
    %c0_318 = arith.constant 0 : index
    %385 = vector.load %arg4[%c0_317, %c0_318] : memref<128x512xf32, #tpu.memory_space<vmem>>, vector<128x256xf32>
    %cst_319 = arith.constant dense<0.000000e+00> : vector<32x256xf32>
    %386 = tpu.matmul %384, %385, %cst_319 {dimension_numbers = #tpu.dot_dimension_numbers<[1], [0], [0], [1], [0, 0, 1, 1], [], []>} : vector<32x128xf32>, vector<128x256xf32>, vector<32x256xf32> -> vector<32x256xf32>
    %c0_320 = arith.constant 0 : index
    %c0_321 = arith.constant 0 : index
    %c0_322 = arith.constant 0 : index
    %387 = vector.load %arg17[%c0_320, %c0_321, %c0_322] : memref<8x32x1024xf32, #tpu.memory_space<vmem>>, vector<1x32x256xf32>
    %388 = vector.shape_cast %387 : vector<1x32x256xf32> to vector<32x256xf32>
    %389 = vector.shape_cast %386 : vector<32x256xf32> to vector<1x32x256xf32>
    tpu.vector_store %arg17[%c0_320, %c0_321, %c0_322], %389 {strides = array<i32>} : memref<8x32x1024xf32, #tpu.memory_space<vmem>>, vector<1x32x256xf32>,
    %c0_323 = arith.constant 0 : index
    %c256_324 = arith.constant 256 : index
    %390 = vector.load %arg4[%c0_323, %c256_324] : memref<128x512xf32, #tpu.memory_space<vmem>>, vector<128x256xf32>
    %cst_325 = arith.constant dense<0.000000e+00> : vector<32x256xf32>
    %391 = tpu.matmul %384, %390, %cst_325 {dimension_numbers = #tpu.dot_dimension_numbers<[1], [0], [0], [1], [0, 0, 1, 1], [], []>} : vector<32x128xf32>, vector<128x256xf32>, vector<32x256xf32> -> vector<32x256xf32>
    %c0_326 = arith.constant 0 : index
    %c0_327 = arith.constant 0 : index
    %c256_328 = arith.constant 256 : index
    %392 = vector.load %arg17[%c0_326, %c0_327, %c256_328] : memref<8x32x1024xf32, #tpu.memory_space<vmem>>, vector<1x32x256xf32>
    %393 = vector.shape_cast %392 : vector<1x32x256xf32> to vector<32x256xf32>
    %394 = vector.shape_cast %391 : vector<32x256xf32> to vector<1x32x256xf32>
    tpu.vector_store %arg17[%c0_326, %c0_327, %c256_328], %394 {strides = array<i32>} : memref<8x32x1024xf32, #tpu.memory_space<vmem>>, vector<1x32x256xf32>,
    %c1_329 = arith.constant 1 : index
    %c0_330 = arith.constant 0 : index
    %c0_331 = arith.constant 0 : index
    %395 = vector.load %arg15[%c1_329, %c0_330, %c0_331] : memref<4x32x512xf32, #tpu.memory_space<vmem>>, vector<1x32x128xf32>
    %396 = vector.shape_cast %395 : vector<1x32x128xf32> to vector<32x128xf32>
    %c0_332 = arith.constant 0 : index
    %c0_333 = arith.constant 0 : index
    %397 = vector.load %arg4[%c0_332, %c0_333] : memref<128x512xf32, #tpu.memory_space<vmem>>, vector<128x256xf32>
    %cst_334 = arith.constant dense<0.000000e+00> : vector<32x256xf32>
    %398 = tpu.matmul %396, %397, %cst_334 {dimension_numbers = #tpu.dot_dimension_numbers<[1], [0], [0], [1], [0, 0, 1, 1], [], []>} : vector<32x128xf32>, vector<128x256xf32>, vector<32x256xf32> -> vector<32x256xf32>
    %c1_335 = arith.constant 1 : index
    %c0_336 = arith.constant 0 : index
    %c0_337 = arith.constant 0 : index
    %399 = vector.load %arg17[%c1_335, %c0_336, %c0_337] : memref<8x32x1024xf32, #tpu.memory_space<vmem>>, vector<1x32x256xf32>
    %400 = vector.shape_cast %399 : vector<1x32x256xf32> to vector<32x256xf32>
    %401 = vector.shape_cast %398 : vector<32x256xf32> to vector<1x32x256xf32>
    tpu.vector_store %arg17[%c1_335, %c0_336, %c0_337], %401 {strides = array<i32>} : memref<8x32x1024xf32, #tpu.memory_space<vmem>>, vector<1x32x256xf32>,
    %c0_338 = arith.constant 0 : index
    %c256_339 = arith.constant 256 : index
    %402 = vector.load %arg4[%c0_338, %c256_339] : memref<128x512xf32, #tpu.memory_space<vmem>>, vector<128x256xf32>
    %cst_340 = arith.constant dense<0.000000e+00> : vector<32x256xf32>
    %403 = tpu.matmul %396, %402, %cst_340 {dimension_numbers = #tpu.dot_dimension_numbers<[1], [0], [0], [1], [0, 0, 1, 1], [], []>} : vector<32x128xf32>, vector<128x256xf32>, vector<32x256xf32> -> vector<32x256xf32>
    %c1_341 = arith.constant 1 : index
    %c0_342 = arith.constant 0 : index
    %c256_343 = arith.constant 256 : index
    %404 = vector.load %arg17[%c1_341, %c0_342, %c256_343] : memref<8x32x1024xf32, #tpu.memory_space<vmem>>, vector<1x32x256xf32>
    %405 = vector.shape_cast %404 : vector<1x32x256xf32> to vector<32x256xf32>
    %406 = vector.shape_cast %403 : vector<32x256xf32> to vector<1x32x256xf32>
    tpu.vector_store %arg17[%c1_341, %c0_342, %c256_343], %406 {strides = array<i32>} : memref<8x32x1024xf32, #tpu.memory_space<vmem>>, vector<1x32x256xf32>,
    %c2_344 = arith.constant 2 : index
    %c0_345 = arith.constant 0 : index
    %c0_346 = arith.constant 0 : index
    %407 = vector.load %arg15[%c2_344, %c0_345, %c0_346] : memref<4x32x512xf32, #tpu.memory_space<vmem>>, vector<1x32x128xf32>
    %408 = vector.shape_cast %407 : vector<1x32x128xf32> to vector<32x128xf32>
    %c0_347 = arith.constant 0 : index
    %c0_348 = arith.constant 0 : index
    %409 = vector.load %arg4[%c0_347, %c0_348] : memref<128x512xf32, #tpu.memory_space<vmem>>, vector<128x256xf32>
    %cst_349 = arith.constant dense<0.000000e+00> : vector<32x256xf32>
    %410 = tpu.matmul %408, %409, %cst_349 {dimension_numbers = #tpu.dot_dimension_numbers<[1], [0], [0], [1], [0, 0, 1, 1], [], []>} : vector<32x128xf32>, vector<128x256xf32>, vector<32x256xf32> -> vector<32x256xf32>
    %c2_350 = arith.constant 2 : index
    %c0_351 = arith.constant 0 : index
    %c0_352 = arith.constant 0 : index
    %411 = vector.load %arg17[%c2_350, %c0_351, %c0_352] : memref<8x32x1024xf32, #tpu.memory_space<vmem>>, vector<1x32x256xf32>
    %412 = vector.shape_cast %411 : vector<1x32x256xf32> to vector<32x256xf32>
    %413 = vector.shape_cast %410 : vector<32x256xf32> to vector<1x32x256xf32>
    tpu.vector_store %arg17[%c2_350, %c0_351, %c0_352], %413 {strides = array<i32>} : memref<8x32x1024xf32, #tpu.memory_space<vmem>>, vector<1x32x256xf32>,
    %c0_353 = arith.constant 0 : index
    %c256_354 = arith.constant 256 : index
    %414 = vector.load %arg4[%c0_353, %c256_354] : memref<128x512xf32, #tpu.memory_space<vmem>>, vector<128x256xf32>
    %cst_355 = arith.constant dense<0.000000e+00> : vector<32x256xf32>
    %415 = tpu.matmul %408, %414, %cst_355 {dimension_numbers = #tpu.dot_dimension_numbers<[1], [0], [0], [1], [0, 0, 1, 1], [], []>} : vector<32x128xf32>, vector<128x256xf32>, vector<32x256xf32> -> vector<32x256xf32>
    %c2_356 = arith.constant 2 : index
    %c0_357 = arith.constant 0 : index
    %c256_358 = arith.constant 256 : index
    %416 = vector.load %arg17[%c2_356, %c0_357, %c256_358] : memref<8x32x1024xf32, #tpu.memory_space<vmem>>, vector<1x32x256xf32>
    %417 = vector.shape_cast %416 : vector<1x32x256xf32> to vector<32x256xf32>
    %418 = vector.shape_cast %415 : vector<32x256xf32> to vector<1x32x256xf32>
    tpu.vector_store %arg17[%c2_356, %c0_357, %c256_358], %418 {strides = array<i32>} : memref<8x32x1024xf32, #tpu.memory_space<vmem>>, vector<1x32x256xf32>,
    %c3_359 = arith.constant 3 : index
    %c0_360 = arith.constant 0 : index
    %c0_361 = arith.constant 0 : index
    %419 = vector.load %arg15[%c3_359, %c0_360, %c0_361] : memref<4x32x512xf32, #tpu.memory_space<vmem>>, vector<1x32x128xf32>
    %420 = vector.shape_cast %419 : vector<1x32x128xf32> to vector<32x128xf32>
    %c0_362 = arith.constant 0 : index
    %c0_363 = arith.constant 0 : index
    %421 = vector.load %arg4[%c0_362, %c0_363] : memref<128x512xf32, #tpu.memory_space<vmem>>, vector<128x256xf32>
    %cst_364 = arith.constant dense<0.000000e+00> : vector<32x256xf32>
    %422 = tpu.matmul %420, %421, %cst_364 {dimension_numbers = #tpu.dot_dimension_numbers<[1], [0], [0], [1], [0, 0, 1, 1], [], []>} : vector<32x128xf32>, vector<128x256xf32>, vector<32x256xf32> -> vector<32x256xf32>
    %c3_365 = arith.constant 3 : index
    %c0_366 = arith.constant 0 : index
    %c0_367 = arith.constant 0 : index
    %423 = vector.load %arg17[%c3_365, %c0_366, %c0_367] : memref<8x32x1024xf32, #tpu.memory_space<vmem>>, vector<1x32x256xf32>
    %424 = vector.shape_cast %423 : vector<1x32x256xf32> to vector<32x256xf32>
    %425 = vector.shape_cast %422 : vector<32x256xf32> to vector<1x32x256xf32>
    tpu.vector_store %arg17[%c3_365, %c0_366, %c0_367], %425 {strides = array<i32>} : memref<8x32x1024xf32, #tpu.memory_space<vmem>>, vector<1x32x256xf32>,
    %c0_368 = arith.constant 0 : index
    %c256_369 = arith.constant 256 : index
    %426 = vector.load %arg4[%c0_368, %c256_369] : memref<128x512xf32, #tpu.memory_space<vmem>>, vector<128x256xf32>
    %cst_370 = arith.constant dense<0.000000e+00> : vector<32x256xf32>
    %427 = tpu.matmul %420, %426, %cst_370 {dimension_numbers = #tpu.dot_dimension_numbers<[1], [0], [0], [1], [0, 0, 1, 1], [], []>} : vector<32x128xf32>, vector<128x256xf32>, vector<32x256xf32> -> vector<32x256xf32>
    %c3_371 = arith.constant 3 : index
    %c0_372 = arith.constant 0 : index
    %c256_373 = arith.constant 256 : index
    %428 = vector.load %arg17[%c3_371, %c0_372, %c256_373] : memref<8x32x1024xf32, #tpu.memory_space<vmem>>, vector<1x32x256xf32>
    %429 = vector.shape_cast %428 : vector<1x32x256xf32> to vector<32x256xf32>
    %430 = vector.shape_cast %427 : vector<32x256xf32> to vector<1x32x256xf32>
    tpu.vector_store %arg17[%c3_371, %c0_372, %c256_373], %430 {strides = array<i32>} : memref<8x32x1024xf32, #tpu.memory_space<vmem>>, vector<1x32x256xf32>,
    %cst_374 = arith.constant 0.000000e+00 : f32
    %431 = vector.broadcast %cst_374 : f32 to vector<2x64xf32>
    %c0_375 = arith.constant 0 : index
    %c0_376 = arith.constant 0 : index
    %432 = vector.load %arg18[%c0_375, %c0_376] : memref<32x256xf32, #tpu.memory_space<vmem>>, vector<2x64xf32>
    tpu.vector_store %arg18[%c0_375, %c0_376], %431 {strides = array<i32>} : memref<32x256xf32, #tpu.memory_space<vmem>>, vector<2x64xf32>,
    %c3_377 = arith.constant 3 : index
    %c0_378 = arith.constant 0 : index
    %c384_379 = arith.constant 384 : index
    %433 = vector.load %arg17[%c3_377, %c0_378, %c384_379] : memref<8x32x1024xf32, #tpu.memory_space<vmem>>, vector<1x30x64xf32>
    %434 = vector.shape_cast %433 : vector<1x30x64xf32> to vector<30x64xf32>
    %c2_380 = arith.constant 2 : index
    %c0_381 = arith.constant 0 : index
    %435 = vector.load %arg18[%c2_380, %c0_381] : memref<32x256xf32, #tpu.memory_space<vmem>>, vector<30x64xf32>
    tpu.vector_store %arg18[%c2_380, %c0_381], %434 {strides = array<i32>} : memref<32x256xf32, #tpu.memory_space<vmem>>, vector<30x64xf32>,
    %c0_382 = arith.constant 0 : index
    %c2_383 = arith.constant 2 : index
    %c0_384 = arith.constant 0 : index
    %436 = vector.load %arg17[%c0_382, %c2_383, %c0_384] : memref<8x32x1024xf32, #tpu.memory_space<vmem>>, vector<1x30x64xf32>
    %437 = vector.shape_cast %436 : vector<1x30x64xf32> to vector<30x64xf32>
    %c0_385 = arith.constant 0 : index
    %c0_386 = arith.constant 0 : index
    %438 = vector.load %arg19[%c0_385, %c0_386] : memref<32x256xf32, #tpu.memory_space<vmem>>, vector<30x64xf32>
    tpu.vector_store %arg19[%c0_385, %c0_386], %437 {strides = array<i32>} : memref<32x256xf32, #tpu.memory_space<vmem>>, vector<30x64xf32>,
    %cst_387 = arith.constant 0.000000e+00 : f32
    %439 = vector.broadcast %cst_387 : f32 to vector<2x64xf32>
    %c30_388 = arith.constant 30 : index
    %c0_389 = arith.constant 0 : index
    %440 = vector.load %arg19[%c30_388, %c0_389] : memref<32x256xf32, #tpu.memory_space<vmem>>, vector<2x64xf32>
    tpu.vector_store %arg19[%c30_388, %c0_389], %439 {strides = array<i32>} : memref<32x256xf32, #tpu.memory_space<vmem>>, vector<2x64xf32>,
    %cst_390 = arith.constant 0.000000e+00 : f32
    %441 = vector.broadcast %cst_390 : f32 to vector<1x64xf32>
    %cst_391 = arith.constant 0.000000e+00 : f32
    %442 = vector.broadcast %cst_391 : f32 to vector<1x64xf32>
    %c0_392 = arith.constant 0 : index
    %c0_393 = arith.constant 0 : index
    %c128_394 = arith.constant 128 : index
    %443 = vector.load %arg17[%c0_392, %c0_393, %c128_394] : memref<8x32x1024xf32, #tpu.memory_space<vmem>>, vector<1x32x64xf32>
    %444 = vector.shape_cast %443 : vector<1x32x64xf32> to vector<32x64xf32>
    %c0_395 = arith.constant 0 : index
    %c0_396 = arith.constant 0 : index
    %c256_397 = arith.constant 256 : index
    %445 = vector.load %arg17[%c0_395, %c0_396, %c256_397] : memref<8x32x1024xf32, #tpu.memory_space<vmem>>, vector<1x32x64xf32>
    %446 = vector.shape_cast %445 : vector<1x32x64xf32> to vector<32x64xf32>
    %c0_398 = arith.constant 0 : index
    %c0_399 = arith.constant 0 : index
    %447 = vector.load %arg18[%c0_398, %c0_399] : memref<32x256xf32, #tpu.memory_space<vmem>>, vector<32x64xf32>
    %c1_400 = arith.constant 1 : index
    %c0_401 = arith.constant 0 : index
    %c0_402 = arith.constant 0 : index
    %448 = vector.load %arg17[%c1_400, %c0_401, %c0_402] : memref<8x32x1024xf32, #tpu.memory_space<vmem>>, vector<1x32x64xf32>
    %449 = vector.shape_cast %448 : vector<1x32x64xf32> to vector<32x64xf32>
    %450 = arith.addf %444, %447 : vector<32x64xf32>
    %451 = arith.addf %446, %449 : vector<32x64xf32>
    %cst_403 = arith.constant dense<0.000000e+00> : vector<64xf32>
    %452 = vector.multi_reduction <add>, %450, %cst_403 [0] : vector<32x64xf32> to vector<64xf32>
    %453 = vector.shape_cast %452 : vector<64xf32> to vector<1x64xf32>
    %454 = arith.addf %441, %453 : vector<1x64xf32>
    %cst_404 = arith.constant dense<0.000000e+00> : vector<64xf32>
    %455 = vector.multi_reduction <add>, %451, %cst_404 [0] : vector<32x64xf32> to vector<64xf32>
    %456 = vector.shape_cast %455 : vector<64xf32> to vector<1x64xf32>
    %457 = arith.addf %454, %456 : vector<1x64xf32>
    %458 = arith.mulf %450, %450 : vector<32x64xf32>
    %cst_405 = arith.constant dense<0.000000e+00> : vector<64xf32>
    %459 = vector.multi_reduction <add>, %458, %cst_405 [0] : vector<32x64xf32> to vector<64xf32>
    %460 = vector.shape_cast %459 : vector<64xf32> to vector<1x64xf32>
    %461 = arith.addf %442, %460 : vector<1x64xf32>
    %462 = arith.mulf %451, %451 : vector<32x64xf32>
    %cst_406 = arith.constant dense<0.000000e+00> : vector<64xf32>
    %463 = vector.multi_reduction <add>, %462, %cst_406 [0] : vector<32x64xf32> to vector<64xf32>
    %464 = vector.shape_cast %463 : vector<64xf32> to vector<1x64xf32>
    %465 = arith.addf %461, %464 : vector<1x64xf32>
    %c0_407 = arith.constant 0 : index
    %c0_408 = arith.constant 0 : index
    %c0_409 = arith.constant 0 : index
    %466 = vector.load %arg16[%c0_407, %c0_408, %c0_409] : memref<8x32x256xf32, #tpu.memory_space<vmem>>, vector<1x32x64xf32>
    %467 = vector.shape_cast %466 : vector<1x32x64xf32> to vector<32x64xf32>
    %468 = vector.shape_cast %450 : vector<32x64xf32> to vector<1x32x64xf32>
    tpu.vector_store %arg16[%c0_407, %c0_408, %c0_409], %468 {strides = array<i32>} : memref<8x32x256xf32, #tpu.memory_space<vmem>>, vector<1x32x64xf32>,
    %c1_410 = arith.constant 1 : index
    %c0_411 = arith.constant 0 : index
    %c0_412 = arith.constant 0 : index
    %469 = vector.load %arg16[%c1_410, %c0_411, %c0_412] : memref<8x32x256xf32, #tpu.memory_space<vmem>>, vector<1x32x64xf32>
    %470 = vector.shape_cast %469 : vector<1x32x64xf32> to vector<32x64xf32>
    %471 = vector.shape_cast %451 : vector<32x64xf32> to vector<1x32x64xf32>
    tpu.vector_store %arg16[%c1_410, %c0_411, %c0_412], %471 {strides = array<i32>} : memref<8x32x256xf32, #tpu.memory_space<vmem>>, vector<1x32x64xf32>,
    %c1_413 = arith.constant 1 : index
    %c0_414 = arith.constant 0 : index
    %c128_415 = arith.constant 128 : index
    %472 = vector.load %arg17[%c1_413, %c0_414, %c128_415] : memref<8x32x1024xf32, #tpu.memory_space<vmem>>, vector<1x32x64xf32>
    %473 = vector.shape_cast %472 : vector<1x32x64xf32> to vector<32x64xf32>
    %c1_416 = arith.constant 1 : index
    %c0_417 = arith.constant 0 : index
    %c256_418 = arith.constant 256 : index
    %474 = vector.load %arg17[%c1_416, %c0_417, %c256_418] : memref<8x32x1024xf32, #tpu.memory_space<vmem>>, vector<1x32x64xf32>
    %475 = vector.shape_cast %474 : vector<1x32x64xf32> to vector<32x64xf32>
    %c0_419 = arith.constant 0 : index
    %c0_420 = arith.constant 0 : index
    %c384_421 = arith.constant 384 : index
    %476 = vector.load %arg17[%c0_419, %c0_420, %c384_421] : memref<8x32x1024xf32, #tpu.memory_space<vmem>>, vector<1x32x64xf32>
    %477 = vector.shape_cast %476 : vector<1x32x64xf32> to vector<32x64xf32>
    %c2_422 = arith.constant 2 : index
    %c0_423 = arith.constant 0 : index
    %c0_424 = arith.constant 0 : index
    %478 = vector.load %arg17[%c2_422, %c0_423, %c0_424] : memref<8x32x1024xf32, #tpu.memory_space<vmem>>, vector<1x32x64xf32>
    %479 = vector.shape_cast %478 : vector<1x32x64xf32> to vector<32x64xf32>
    %480 = arith.addf %473, %477 : vector<32x64xf32>
    %481 = arith.addf %475, %479 : vector<32x64xf32>
    %cst_425 = arith.constant dense<0.000000e+00> : vector<64xf32>
    %482 = vector.multi_reduction <add>, %480, %cst_425 [0] : vector<32x64xf32> to vector<64xf32>
    %483 = vector.shape_cast %482 : vector<64xf32> to vector<1x64xf32>
    %484 = arith.addf %457, %483 : vector<1x64xf32>
    %cst_426 = arith.constant dense<0.000000e+00> : vector<64xf32>
    %485 = vector.multi_reduction <add>, %481, %cst_426 [0] : vector<32x64xf32> to vector<64xf32>
    %486 = vector.shape_cast %485 : vector<64xf32> to vector<1x64xf32>
    %487 = arith.addf %484, %486 : vector<1x64xf32>
    %488 = arith.mulf %480, %480 : vector<32x64xf32>
    %cst_427 = arith.constant dense<0.000000e+00> : vector<64xf32>
    %489 = vector.multi_reduction <add>, %488, %cst_427 [0] : vector<32x64xf32> to vector<64xf32>
    %490 = vector.shape_cast %489 : vector<64xf32> to vector<1x64xf32>
    %491 = arith.addf %465, %490 : vector<1x64xf32>
    %492 = arith.mulf %481, %481 : vector<32x64xf32>
    %cst_428 = arith.constant dense<0.000000e+00> : vector<64xf32>
    %493 = vector.multi_reduction <add>, %492, %cst_428 [0] : vector<32x64xf32> to vector<64xf32>
    %494 = vector.shape_cast %493 : vector<64xf32> to vector<1x64xf32>
    %495 = arith.addf %491, %494 : vector<1x64xf32>
    %c2_429 = arith.constant 2 : index
    %c0_430 = arith.constant 0 : index
    %c0_431 = arith.constant 0 : index
    %496 = vector.load %arg16[%c2_429, %c0_430, %c0_431] : memref<8x32x256xf32, #tpu.memory_space<vmem>>, vector<1x32x64xf32>
    %497 = vector.shape_cast %496 : vector<1x32x64xf32> to vector<32x64xf32>
    %498 = vector.shape_cast %480 : vector<32x64xf32> to vector<1x32x64xf32>
    tpu.vector_store %arg16[%c2_429, %c0_430, %c0_431], %498 {strides = array<i32>} : memref<8x32x256xf32, #tpu.memory_space<vmem>>, vector<1x32x64xf32>,
    %c3_432 = arith.constant 3 : index
    %c0_433 = arith.constant 0 : index
    %c0_434 = arith.constant 0 : index
    %499 = vector.load %arg16[%c3_432, %c0_433, %c0_434] : memref<8x32x256xf32, #tpu.memory_space<vmem>>, vector<1x32x64xf32>
    %500 = vector.shape_cast %499 : vector<1x32x64xf32> to vector<32x64xf32>
    %501 = vector.shape_cast %481 : vector<32x64xf32> to vector<1x32x64xf32>
    tpu.vector_store %arg16[%c3_432, %c0_433, %c0_434], %501 {strides = array<i32>} : memref<8x32x256xf32, #tpu.memory_space<vmem>>, vector<1x32x64xf32>,
    %c2_435 = arith.constant 2 : index
    %c0_436 = arith.constant 0 : index
    %c128_437 = arith.constant 128 : index
    %502 = vector.load %arg17[%c2_435, %c0_436, %c128_437] : memref<8x32x1024xf32, #tpu.memory_space<vmem>>, vector<1x32x64xf32>
    %503 = vector.shape_cast %502 : vector<1x32x64xf32> to vector<32x64xf32>
    %c2_438 = arith.constant 2 : index
    %c0_439 = arith.constant 0 : index
    %c256_440 = arith.constant 256 : index
    %504 = vector.load %arg17[%c2_438, %c0_439, %c256_440] : memref<8x32x1024xf32, #tpu.memory_space<vmem>>, vector<1x32x64xf32>
    %505 = vector.shape_cast %504 : vector<1x32x64xf32> to vector<32x64xf32>
    %c1_441 = arith.constant 1 : index
    %c0_442 = arith.constant 0 : index
    %c384_443 = arith.constant 384 : index
    %506 = vector.load %arg17[%c1_441, %c0_442, %c384_443] : memref<8x32x1024xf32, #tpu.memory_space<vmem>>, vector<1x32x64xf32>
    %507 = vector.shape_cast %506 : vector<1x32x64xf32> to vector<32x64xf32>
    %c3_444 = arith.constant 3 : index
    %c0_445 = arith.constant 0 : index
    %c0_446 = arith.constant 0 : index
    %508 = vector.load %arg17[%c3_444, %c0_445, %c0_446] : memref<8x32x1024xf32, #tpu.memory_space<vmem>>, vector<1x32x64xf32>
    %509 = vector.shape_cast %508 : vector<1x32x64xf32> to vector<32x64xf32>
    %510 = arith.addf %503, %507 : vector<32x64xf32>
    %511 = arith.addf %505, %509 : vector<32x64xf32>
    %cst_447 = arith.constant dense<0.000000e+00> : vector<64xf32>
    %512 = vector.multi_reduction <add>, %510, %cst_447 [0] : vector<32x64xf32> to vector<64xf32>
    %513 = vector.shape_cast %512 : vector<64xf32> to vector<1x64xf32>
    %514 = arith.addf %487, %513 : vector<1x64xf32>
    %cst_448 = arith.constant dense<0.000000e+00> : vector<64xf32>
    %515 = vector.multi_reduction <add>, %511, %cst_448 [0] : vector<32x64xf32> to vector<64xf32>
    %516 = vector.shape_cast %515 : vector<64xf32> to vector<1x64xf32>
    %517 = arith.addf %514, %516 : vector<1x64xf32>
    %518 = arith.mulf %510, %510 : vector<32x64xf32>
    %cst_449 = arith.constant dense<0.000000e+00> : vector<64xf32>
    %519 = vector.multi_reduction <add>, %518, %cst_449 [0] : vector<32x64xf32> to vector<64xf32>
    %520 = vector.shape_cast %519 : vector<64xf32> to vector<1x64xf32>
    %521 = arith.addf %495, %520 : vector<1x64xf32>
    %522 = arith.mulf %511, %511 : vector<32x64xf32>
    %cst_450 = arith.constant dense<0.000000e+00> : vector<64xf32>
    %523 = vector.multi_reduction <add>, %522, %cst_450 [0] : vector<32x64xf32> to vector<64xf32>
    %524 = vector.shape_cast %523 : vector<64xf32> to vector<1x64xf32>
    %525 = arith.addf %521, %524 : vector<1x64xf32>
    %c4_451 = arith.constant 4 : index
    %c0_452 = arith.constant 0 : index
    %c0_453 = arith.constant 0 : index
    %526 = vector.load %arg16[%c4_451, %c0_452, %c0_453] : memref<8x32x256xf32, #tpu.memory_space<vmem>>, vector<1x32x64xf32>
    %527 = vector.shape_cast %526 : vector<1x32x64xf32> to vector<32x64xf32>
    %528 = vector.shape_cast %510 : vector<32x64xf32> to vector<1x32x64xf32>
    tpu.vector_store %arg16[%c4_451, %c0_452, %c0_453], %528 {strides = array<i32>} : memref<8x32x256xf32, #tpu.memory_space<vmem>>, vector<1x32x64xf32>,
    %c5_454 = arith.constant 5 : index
    %c0_455 = arith.constant 0 : index
    %c0_456 = arith.constant 0 : index
    %529 = vector.load %arg16[%c5_454, %c0_455, %c0_456] : memref<8x32x256xf32, #tpu.memory_space<vmem>>, vector<1x32x64xf32>
    %530 = vector.shape_cast %529 : vector<1x32x64xf32> to vector<32x64xf32>
    %531 = vector.shape_cast %511 : vector<32x64xf32> to vector<1x32x64xf32>
    tpu.vector_store %arg16[%c5_454, %c0_455, %c0_456], %531 {strides = array<i32>} : memref<8x32x256xf32, #tpu.memory_space<vmem>>, vector<1x32x64xf32>,
    %c3_457 = arith.constant 3 : index
    %c0_458 = arith.constant 0 : index
    %c128_459 = arith.constant 128 : index
    %532 = vector.load %arg17[%c3_457, %c0_458, %c128_459] : memref<8x32x1024xf32, #tpu.memory_space<vmem>>, vector<1x32x64xf32>
    %533 = vector.shape_cast %532 : vector<1x32x64xf32> to vector<32x64xf32>
    %c3_460 = arith.constant 3 : index
    %c0_461 = arith.constant 0 : index
    %c256_462 = arith.constant 256 : index
    %534 = vector.load %arg17[%c3_460, %c0_461, %c256_462] : memref<8x32x1024xf32, #tpu.memory_space<vmem>>, vector<1x32x64xf32>
    %535 = vector.shape_cast %534 : vector<1x32x64xf32> to vector<32x64xf32>
    %c2_463 = arith.constant 2 : index
    %c0_464 = arith.constant 0 : index
    %c384_465 = arith.constant 384 : index
    %536 = vector.load %arg17[%c2_463, %c0_464, %c384_465] : memref<8x32x1024xf32, #tpu.memory_space<vmem>>, vector<1x32x64xf32>
    %537 = vector.shape_cast %536 : vector<1x32x64xf32> to vector<32x64xf32>
    %c0_466 = arith.constant 0 : index
    %c0_467 = arith.constant 0 : index
    %538 = vector.load %arg19[%c0_466, %c0_467] : memref<32x256xf32, #tpu.memory_space<vmem>>, vector<32x64xf32>
    %539 = arith.addf %533, %537 : vector<32x64xf32>
    %540 = arith.addf %535, %538 : vector<32x64xf32>
    %cst_468 = arith.constant dense<0.000000e+00> : vector<64xf32>
    %541 = vector.multi_reduction <add>, %539, %cst_468 [0] : vector<32x64xf32> to vector<64xf32>
    %542 = vector.shape_cast %541 : vector<64xf32> to vector<1x64xf32>
    %543 = arith.addf %517, %542 : vector<1x64xf32>
    %cst_469 = arith.constant dense<0.000000e+00> : vector<64xf32>
    %544 = vector.multi_reduction <add>, %540, %cst_469 [0] : vector<32x64xf32> to vector<64xf32>
    %545 = vector.shape_cast %544 : vector<64xf32> to vector<1x64xf32>
    %546 = arith.addf %543, %545 : vector<1x64xf32>
    %547 = arith.mulf %539, %539 : vector<32x64xf32>
    %cst_470 = arith.constant dense<0.000000e+00> : vector<64xf32>
    %548 = vector.multi_reduction <add>, %547, %cst_470 [0] : vector<32x64xf32> to vector<64xf32>
    %549 = vector.shape_cast %548 : vector<64xf32> to vector<1x64xf32>
    %550 = arith.addf %525, %549 : vector<1x64xf32>
    %551 = arith.mulf %540, %540 : vector<32x64xf32>
    %cst_471 = arith.constant dense<0.000000e+00> : vector<64xf32>
    %552 = vector.multi_reduction <add>, %551, %cst_471 [0] : vector<32x64xf32> to vector<64xf32>
    %553 = vector.shape_cast %552 : vector<64xf32> to vector<1x64xf32>
    %554 = arith.addf %550, %553 : vector<1x64xf32>
    %c6_472 = arith.constant 6 : index
    %c0_473 = arith.constant 0 : index
    %c0_474 = arith.constant 0 : index
    %555 = vector.load %arg16[%c6_472, %c0_473, %c0_474] : memref<8x32x256xf32, #tpu.memory_space<vmem>>, vector<1x32x64xf32>
    %556 = vector.shape_cast %555 : vector<1x32x64xf32> to vector<32x64xf32>
    %557 = vector.shape_cast %539 : vector<32x64xf32> to vector<1x32x64xf32>
    tpu.vector_store %arg16[%c6_472, %c0_473, %c0_474], %557 {strides = array<i32>} : memref<8x32x256xf32, #tpu.memory_space<vmem>>, vector<1x32x64xf32>,
    %c7_475 = arith.constant 7 : index
    %c0_476 = arith.constant 0 : index
    %c0_477 = arith.constant 0 : index
    %558 = vector.load %arg16[%c7_475, %c0_476, %c0_477] : memref<8x32x256xf32, #tpu.memory_space<vmem>>, vector<1x32x64xf32>
    %559 = vector.shape_cast %558 : vector<1x32x64xf32> to vector<32x64xf32>
    %560 = vector.shape_cast %540 : vector<32x64xf32> to vector<1x32x64xf32>
    tpu.vector_store %arg16[%c7_475, %c0_476, %c0_477], %560 {strides = array<i32>} : memref<8x32x256xf32, #tpu.memory_space<vmem>>, vector<1x32x64xf32>,
    %cst_478 = arith.constant 2.560000e+02 : f32
    %561 = vector.broadcast %cst_478 : f32 to vector<1x64xf32>
    %562 = arith.divf %546, %561 : vector<1x64xf32>
    %cst_479 = arith.constant 2.560000e+02 : f32
    %563 = vector.broadcast %cst_479 : f32 to vector<1x64xf32>
    %564 = arith.divf %554, %563 : vector<1x64xf32>
    %565 = arith.mulf %562, %562 : vector<1x64xf32>
    %566 = arith.subf %564, %565 : vector<1x64xf32>
    %cst_480 = arith.constant 0.000000e+00 : f32
    %567 = vector.broadcast %cst_480 : f32 to vector<1x64xf32>
    %568 = arith.maximumf %566, %567 : vector<1x64xf32>
    %cst_481 = arith.constant 9.99999974E-6 : f32
    %569 = vector.broadcast %cst_481 : f32 to vector<1x64xf32>
    %570 = arith.addf %568, %569 : vector<1x64xf32>
    %571 = math.rsqrt %570 : vector<1x64xf32>
    %c0_482 = arith.constant 0 : index
    %c0_483 = arith.constant 0 : index
    %572 = vector.load %arg12[%c0_482, %c0_483] : memref<1x64xf32, #tpu.memory_space<vmem>>, vector<1x64xf32>
    %573 = arith.mulf %571, %572 : vector<1x64xf32>
    %c0_484 = arith.constant 0 : index
    %c0_485 = arith.constant 0 : index
    %574 = vector.load %arg13[%c0_484, %c0_485] : memref<1x64xf32, #tpu.memory_space<vmem>>, vector<1x64xf32>
    %575 = arith.mulf %562, %573 : vector<1x64xf32>
    %576 = arith.subf %574, %575 : vector<1x64xf32>
    %c0_486 = arith.constant 0 : index
    %c0_487 = arith.constant 0 : index
    %c0_488 = arith.constant 0 : index
    %577 = vector.load %arg16[%c0_486, %c0_487, %c0_488] : memref<8x32x256xf32, #tpu.memory_space<vmem>>, vector<1x32x64xf32>
    %578 = vector.shape_cast %577 : vector<1x32x64xf32> to vector<32x64xf32>
    %579 = vector.broadcast %573 : vector<1x64xf32> to vector<32x64xf32>
    %580 = arith.mulf %578, %579 : vector<32x64xf32>
    %581 = vector.broadcast %576 : vector<1x64xf32> to vector<32x64xf32>
    %582 = arith.addf %580, %581 : vector<32x64xf32>
    %cst_489 = arith.constant 0.000000e+00 : f32
    %583 = vector.broadcast %cst_489 : f32 to vector<32x64xf32>
    %584 = arith.maximumf %582, %583 : vector<32x64xf32>
    %c0_490 = arith.constant 0 : index
    %c0_491 = arith.constant 0 : index
    %c0_492 = arith.constant 0 : index
    %585 = vector.load %arg16[%c0_490, %c0_491, %c0_492] : memref<8x32x256xf32, #tpu.memory_space<vmem>>, vector<1x32x64xf32>
    %586 = vector.shape_cast %585 : vector<1x32x64xf32> to vector<32x64xf32>
    %587 = vector.shape_cast %584 : vector<32x64xf32> to vector<1x32x64xf32>
    tpu.vector_store %arg16[%c0_490, %c0_491, %c0_492], %587 {strides = array<i32>} : memref<8x32x256xf32, #tpu.memory_space<vmem>>, vector<1x32x64xf32>,
    %c1_493 = arith.constant 1 : index
    %c0_494 = arith.constant 0 : index
    %c0_495 = arith.constant 0 : index
    %588 = vector.load %arg16[%c1_493, %c0_494, %c0_495] : memref<8x32x256xf32, #tpu.memory_space<vmem>>, vector<1x32x64xf32>
    %589 = vector.shape_cast %588 : vector<1x32x64xf32> to vector<32x64xf32>
    %590 = vector.broadcast %573 : vector<1x64xf32> to vector<32x64xf32>
    %591 = arith.mulf %589, %590 : vector<32x64xf32>
    %592 = vector.broadcast %576 : vector<1x64xf32> to vector<32x64xf32>
    %593 = arith.addf %591, %592 : vector<32x64xf32>
    %cst_496 = arith.constant 0.000000e+00 : f32
    %594 = vector.broadcast %cst_496 : f32 to vector<32x64xf32>
    %595 = arith.maximumf %593, %594 : vector<32x64xf32>
    %c1_497 = arith.constant 1 : index
    %c0_498 = arith.constant 0 : index
    %c0_499 = arith.constant 0 : index
    %596 = vector.load %arg16[%c1_497, %c0_498, %c0_499] : memref<8x32x256xf32, #tpu.memory_space<vmem>>, vector<1x32x64xf32>
    %597 = vector.shape_cast %596 : vector<1x32x64xf32> to vector<32x64xf32>
    %598 = vector.shape_cast %595 : vector<32x64xf32> to vector<1x32x64xf32>
    tpu.vector_store %arg16[%c1_497, %c0_498, %c0_499], %598 {strides = array<i32>} : memref<8x32x256xf32, #tpu.memory_space<vmem>>, vector<1x32x64xf32>,
    %c2_500 = arith.constant 2 : index
    %c0_501 = arith.constant 0 : index
    %c0_502 = arith.constant 0 : index
    %599 = vector.load %arg16[%c2_500, %c0_501, %c0_502] : memref<8x32x256xf32, #tpu.memory_space<vmem>>, vector<1x32x64xf32>
    %600 = vector.shape_cast %599 : vector<1x32x64xf32> to vector<32x64xf32>
    %601 = vector.broadcast %573 : vector<1x64xf32> to vector<32x64xf32>
    %602 = arith.mulf %600, %601 : vector<32x64xf32>
    %603 = vector.broadcast %576 : vector<1x64xf32> to vector<32x64xf32>
    %604 = arith.addf %602, %603 : vector<32x64xf32>
    %cst_503 = arith.constant 0.000000e+00 : f32
    %605 = vector.broadcast %cst_503 : f32 to vector<32x64xf32>
    %606 = arith.maximumf %604, %605 : vector<32x64xf32>
    %c2_504 = arith.constant 2 : index
    %c0_505 = arith.constant 0 : index
    %c0_506 = arith.constant 0 : index
    %607 = vector.load %arg16[%c2_504, %c0_505, %c0_506] : memref<8x32x256xf32, #tpu.memory_space<vmem>>, vector<1x32x64xf32>
    %608 = vector.shape_cast %607 : vector<1x32x64xf32> to vector<32x64xf32>
    %609 = vector.shape_cast %606 : vector<32x64xf32> to vector<1x32x64xf32>
    tpu.vector_store %arg16[%c2_504, %c0_505, %c0_506], %609 {strides = array<i32>} : memref<8x32x256xf32, #tpu.memory_space<vmem>>, vector<1x32x64xf32>,
    %c3_507 = arith.constant 3 : index
    %c0_508 = arith.constant 0 : index
    %c0_509 = arith.constant 0 : index
    %610 = vector.load %arg16[%c3_507, %c0_508, %c0_509] : memref<8x32x256xf32, #tpu.memory_space<vmem>>, vector<1x32x64xf32>
    %611 = vector.shape_cast %610 : vector<1x32x64xf32> to vector<32x64xf32>
    %612 = vector.broadcast %573 : vector<1x64xf32> to vector<32x64xf32>
    %613 = arith.mulf %611, %612 : vector<32x64xf32>
    %614 = vector.broadcast %576 : vector<1x64xf32> to vector<32x64xf32>
    %615 = arith.addf %613, %614 : vector<32x64xf32>
    %cst_510 = arith.constant 0.000000e+00 : f32
    %616 = vector.broadcast %cst_510 : f32 to vector<32x64xf32>
    %617 = arith.maximumf %615, %616 : vector<32x64xf32>
    %c3_511 = arith.constant 3 : index
    %c0_512 = arith.constant 0 : index
    %c0_513 = arith.constant 0 : index
    %618 = vector.load %arg16[%c3_511, %c0_512, %c0_513] : memref<8x32x256xf32, #tpu.memory_space<vmem>>, vector<1x32x64xf32>
    %619 = vector.shape_cast %618 : vector<1x32x64xf32> to vector<32x64xf32>
    %620 = vector.shape_cast %617 : vector<32x64xf32> to vector<1x32x64xf32>
    tpu.vector_store %arg16[%c3_511, %c0_512, %c0_513], %620 {strides = array<i32>} : memref<8x32x256xf32, #tpu.memory_space<vmem>>, vector<1x32x64xf32>,
    %c4_514 = arith.constant 4 : index
    %c0_515 = arith.constant 0 : index
    %c0_516 = arith.constant 0 : index
    %621 = vector.load %arg16[%c4_514, %c0_515, %c0_516] : memref<8x32x256xf32, #tpu.memory_space<vmem>>, vector<1x32x64xf32>
    %622 = vector.shape_cast %621 : vector<1x32x64xf32> to vector<32x64xf32>
    %623 = vector.broadcast %573 : vector<1x64xf32> to vector<32x64xf32>
    %624 = arith.mulf %622, %623 : vector<32x64xf32>
    %625 = vector.broadcast %576 : vector<1x64xf32> to vector<32x64xf32>
    %626 = arith.addf %624, %625 : vector<32x64xf32>
    %cst_517 = arith.constant 0.000000e+00 : f32
    %627 = vector.broadcast %cst_517 : f32 to vector<32x64xf32>
    %628 = arith.maximumf %626, %627 : vector<32x64xf32>
    %c4_518 = arith.constant 4 : index
    %c0_519 = arith.constant 0 : index
    %c0_520 = arith.constant 0 : index
    %629 = vector.load %arg16[%c4_518, %c0_519, %c0_520] : memref<8x32x256xf32, #tpu.memory_space<vmem>>, vector<1x32x64xf32>
    %630 = vector.shape_cast %629 : vector<1x32x64xf32> to vector<32x64xf32>
    %631 = vector.shape_cast %628 : vector<32x64xf32> to vector<1x32x64xf32>
    tpu.vector_store %arg16[%c4_518, %c0_519, %c0_520], %631 {strides = array<i32>} : memref<8x32x256xf32, #tpu.memory_space<vmem>>, vector<1x32x64xf32>,
    %c5_521 = arith.constant 5 : index
    %c0_522 = arith.constant 0 : index
    %c0_523 = arith.constant 0 : index
    %632 = vector.load %arg16[%c5_521, %c0_522, %c0_523] : memref<8x32x256xf32, #tpu.memory_space<vmem>>, vector<1x32x64xf32>
    %633 = vector.shape_cast %632 : vector<1x32x64xf32> to vector<32x64xf32>
    %634 = vector.broadcast %573 : vector<1x64xf32> to vector<32x64xf32>
    %635 = arith.mulf %633, %634 : vector<32x64xf32>
    %636 = vector.broadcast %576 : vector<1x64xf32> to vector<32x64xf32>
    %637 = arith.addf %635, %636 : vector<32x64xf32>
    %cst_524 = arith.constant 0.000000e+00 : f32
    %638 = vector.broadcast %cst_524 : f32 to vector<32x64xf32>
    %639 = arith.maximumf %637, %638 : vector<32x64xf32>
    %c5_525 = arith.constant 5 : index
    %c0_526 = arith.constant 0 : index
    %c0_527 = arith.constant 0 : index
    %640 = vector.load %arg16[%c5_525, %c0_526, %c0_527] : memref<8x32x256xf32, #tpu.memory_space<vmem>>, vector<1x32x64xf32>
    %641 = vector.shape_cast %640 : vector<1x32x64xf32> to vector<32x64xf32>
    %642 = vector.shape_cast %639 : vector<32x64xf32> to vector<1x32x64xf32>
    tpu.vector_store %arg16[%c5_525, %c0_526, %c0_527], %642 {strides = array<i32>} : memref<8x32x256xf32, #tpu.memory_space<vmem>>, vector<1x32x64xf32>,
    %c6_528 = arith.constant 6 : index
    %c0_529 = arith.constant 0 : index
    %c0_530 = arith.constant 0 : index
    %643 = vector.load %arg16[%c6_528, %c0_529, %c0_530] : memref<8x32x256xf32, #tpu.memory_space<vmem>>, vector<1x32x64xf32>
    %644 = vector.shape_cast %643 : vector<1x32x64xf32> to vector<32x64xf32>
    %645 = vector.broadcast %573 : vector<1x64xf32> to vector<32x64xf32>
    %646 = arith.mulf %644, %645 : vector<32x64xf32>
    %647 = vector.broadcast %576 : vector<1x64xf32> to vector<32x64xf32>
    %648 = arith.addf %646, %647 : vector<32x64xf32>
    %cst_531 = arith.constant 0.000000e+00 : f32
    %649 = vector.broadcast %cst_531 : f32 to vector<32x64xf32>
    %650 = arith.maximumf %648, %649 : vector<32x64xf32>
    %c6_532 = arith.constant 6 : index
    %c0_533 = arith.constant 0 : index
    %c0_534 = arith.constant 0 : index
    %651 = vector.load %arg16[%c6_532, %c0_533, %c0_534] : memref<8x32x256xf32, #tpu.memory_space<vmem>>, vector<1x32x64xf32>
    %652 = vector.shape_cast %651 : vector<1x32x64xf32> to vector<32x64xf32>
    %653 = vector.shape_cast %650 : vector<32x64xf32> to vector<1x32x64xf32>
    tpu.vector_store %arg16[%c6_532, %c0_533, %c0_534], %653 {strides = array<i32>} : memref<8x32x256xf32, #tpu.memory_space<vmem>>, vector<1x32x64xf32>,
    %c7_535 = arith.constant 7 : index
    %c0_536 = arith.constant 0 : index
    %c0_537 = arith.constant 0 : index
    %654 = vector.load %arg16[%c7_535, %c0_536, %c0_537] : memref<8x32x256xf32, #tpu.memory_space<vmem>>, vector<1x32x64xf32>
    %655 = vector.shape_cast %654 : vector<1x32x64xf32> to vector<32x64xf32>
    %656 = vector.broadcast %573 : vector<1x64xf32> to vector<32x64xf32>
    %657 = arith.mulf %655, %656 : vector<32x64xf32>
    %658 = vector.broadcast %576 : vector<1x64xf32> to vector<32x64xf32>
    %659 = arith.addf %657, %658 : vector<32x64xf32>
    %cst_538 = arith.constant 0.000000e+00 : f32
    %660 = vector.broadcast %cst_538 : f32 to vector<32x64xf32>
    %661 = arith.maximumf %659, %660 : vector<32x64xf32>
    %c7_539 = arith.constant 7 : index
    %c0_540 = arith.constant 0 : index
    %c0_541 = arith.constant 0 : index
    %662 = vector.load %arg16[%c7_539, %c0_540, %c0_541] : memref<8x32x256xf32, #tpu.memory_space<vmem>>, vector<1x32x64xf32>
    %663 = vector.shape_cast %662 : vector<1x32x64xf32> to vector<32x64xf32>
    %664 = vector.shape_cast %661 : vector<32x64xf32> to vector<1x32x64xf32>
    tpu.vector_store %arg16[%c7_539, %c0_540, %c0_541], %664 {strides = array<i32>} : memref<8x32x256xf32, #tpu.memory_space<vmem>>, vector<1x32x64xf32>,
    %c0_542 = arith.constant 0 : index
    %c0_543 = arith.constant 0 : index
    %c0_544 = arith.constant 0 : index
    %665 = vector.load %arg16[%c0_542, %c0_543, %c0_544] : memref<8x32x256xf32, #tpu.memory_space<vmem>>, vector<1x32x64xf32>
    %666 = vector.shape_cast %665 : vector<1x32x64xf32> to vector<32x64xf32>
    %c0_545 = arith.constant 0 : index
    %c0_546 = arith.constant 0 : index
    %667 = vector.load %arg5[%c0_545, %c0_546] : memref<64x512xf32, #tpu.memory_space<vmem>>, vector<64x256xf32>
    %cst_547 = arith.constant dense<0.000000e+00> : vector<32x256xf32>
    %668 = tpu.matmul %666, %667, %cst_547 {dimension_numbers = #tpu.dot_dimension_numbers<[1], [0], [0], [1], [0, 0, 1, 1], [], []>} : vector<32x64xf32>, vector<64x256xf32>, vector<32x256xf32> -> vector<32x256xf32>
    %c0_548 = arith.constant 0 : index
    %c0_549 = arith.constant 0 : index
    %c0_550 = arith.constant 0 : index
    %669 = vector.load %arg17[%c0_548, %c0_549, %c0_550] : memref<8x32x1024xf32, #tpu.memory_space<vmem>>, vector<1x32x256xf32>
    %670 = vector.shape_cast %669 : vector<1x32x256xf32> to vector<32x256xf32>
    %671 = vector.shape_cast %668 : vector<32x256xf32> to vector<1x32x256xf32>
    tpu.vector_store %arg17[%c0_548, %c0_549, %c0_550], %671 {strides = array<i32>} : memref<8x32x1024xf32, #tpu.memory_space<vmem>>, vector<1x32x256xf32>,
    %c0_551 = arith.constant 0 : index
    %c256_552 = arith.constant 256 : index
    %672 = vector.load %arg5[%c0_551, %c256_552] : memref<64x512xf32, #tpu.memory_space<vmem>>, vector<64x256xf32>
    %cst_553 = arith.constant dense<0.000000e+00> : vector<32x256xf32>
    %673 = tpu.matmul %666, %672, %cst_553 {dimension_numbers = #tpu.dot_dimension_numbers<[1], [0], [0], [1], [0, 0, 1, 1], [], []>} : vector<32x64xf32>, vector<64x256xf32>, vector<32x256xf32> -> vector<32x256xf32>
    %c0_554 = arith.constant 0 : index
    %c0_555 = arith.constant 0 : index
    %c256_556 = arith.constant 256 : index
    %674 = vector.load %arg17[%c0_554, %c0_555, %c256_556] : memref<8x32x1024xf32, #tpu.memory_space<vmem>>, vector<1x32x256xf32>
    %675 = vector.shape_cast %674 : vector<1x32x256xf32> to vector<32x256xf32>
    %676 = vector.shape_cast %673 : vector<32x256xf32> to vector<1x32x256xf32>
    tpu.vector_store %arg17[%c0_554, %c0_555, %c256_556], %676 {strides = array<i32>} : memref<8x32x1024xf32, #tpu.memory_space<vmem>>, vector<1x32x256xf32>,
    %c1_557 = arith.constant 1 : index
    %c0_558 = arith.constant 0 : index
    %c0_559 = arith.constant 0 : index
    %677 = vector.load %arg16[%c1_557, %c0_558, %c0_559] : memref<8x32x256xf32, #tpu.memory_space<vmem>>, vector<1x32x64xf32>
    %678 = vector.shape_cast %677 : vector<1x32x64xf32> to vector<32x64xf32>
    %c0_560 = arith.constant 0 : index
    %c0_561 = arith.constant 0 : index
    %679 = vector.load %arg5[%c0_560, %c0_561] : memref<64x512xf32, #tpu.memory_space<vmem>>, vector<64x256xf32>
    %cst_562 = arith.constant dense<0.000000e+00> : vector<32x256xf32>
    %680 = tpu.matmul %678, %679, %cst_562 {dimension_numbers = #tpu.dot_dimension_numbers<[1], [0], [0], [1], [0, 0, 1, 1], [], []>} : vector<32x64xf32>, vector<64x256xf32>, vector<32x256xf32> -> vector<32x256xf32>
    %c1_563 = arith.constant 1 : index
    %c0_564 = arith.constant 0 : index
    %c0_565 = arith.constant 0 : index
    %681 = vector.load %arg17[%c1_563, %c0_564, %c0_565] : memref<8x32x1024xf32, #tpu.memory_space<vmem>>, vector<1x32x256xf32>
    %682 = vector.shape_cast %681 : vector<1x32x256xf32> to vector<32x256xf32>
    %683 = vector.shape_cast %680 : vector<32x256xf32> to vector<1x32x256xf32>
    tpu.vector_store %arg17[%c1_563, %c0_564, %c0_565], %683 {strides = array<i32>} : memref<8x32x1024xf32, #tpu.memory_space<vmem>>, vector<1x32x256xf32>,
    %c0_566 = arith.constant 0 : index
    %c256_567 = arith.constant 256 : index
    %684 = vector.load %arg5[%c0_566, %c256_567] : memref<64x512xf32, #tpu.memory_space<vmem>>, vector<64x256xf32>
    %cst_568 = arith.constant dense<0.000000e+00> : vector<32x256xf32>
    %685 = tpu.matmul %678, %684, %cst_568 {dimension_numbers = #tpu.dot_dimension_numbers<[1], [0], [0], [1], [0, 0, 1, 1], [], []>} : vector<32x64xf32>, vector<64x256xf32>, vector<32x256xf32> -> vector<32x256xf32>
    %c1_569 = arith.constant 1 : index
    %c0_570 = arith.constant 0 : index
    %c256_571 = arith.constant 256 : index
    %686 = vector.load %arg17[%c1_569, %c0_570, %c256_571] : memref<8x32x1024xf32, #tpu.memory_space<vmem>>, vector<1x32x256xf32>
    %687 = vector.shape_cast %686 : vector<1x32x256xf32> to vector<32x256xf32>
    %688 = vector.shape_cast %685 : vector<32x256xf32> to vector<1x32x256xf32>
    tpu.vector_store %arg17[%c1_569, %c0_570, %c256_571], %688 {strides = array<i32>} : memref<8x32x1024xf32, #tpu.memory_space<vmem>>, vector<1x32x256xf32>,
    %c2_572 = arith.constant 2 : index
    %c0_573 = arith.constant 0 : index
    %c0_574 = arith.constant 0 : index
    %689 = vector.load %arg16[%c2_572, %c0_573, %c0_574] : memref<8x32x256xf32, #tpu.memory_space<vmem>>, vector<1x32x64xf32>
    %690 = vector.shape_cast %689 : vector<1x32x64xf32> to vector<32x64xf32>
    %c0_575 = arith.constant 0 : index
    %c0_576 = arith.constant 0 : index
    %691 = vector.load %arg5[%c0_575, %c0_576] : memref<64x512xf32, #tpu.memory_space<vmem>>, vector<64x256xf32>
    %cst_577 = arith.constant dense<0.000000e+00> : vector<32x256xf32>
    %692 = tpu.matmul %690, %691, %cst_577 {dimension_numbers = #tpu.dot_dimension_numbers<[1], [0], [0], [1], [0, 0, 1, 1], [], []>} : vector<32x64xf32>, vector<64x256xf32>, vector<32x256xf32> -> vector<32x256xf32>
    %c2_578 = arith.constant 2 : index
    %c0_579 = arith.constant 0 : index
    %c0_580 = arith.constant 0 : index
    %693 = vector.load %arg17[%c2_578, %c0_579, %c0_580] : memref<8x32x1024xf32, #tpu.memory_space<vmem>>, vector<1x32x256xf32>
    %694 = vector.shape_cast %693 : vector<1x32x256xf32> to vector<32x256xf32>
    %695 = vector.shape_cast %692 : vector<32x256xf32> to vector<1x32x256xf32>
    tpu.vector_store %arg17[%c2_578, %c0_579, %c0_580], %695 {strides = array<i32>} : memref<8x32x1024xf32, #tpu.memory_space<vmem>>, vector<1x32x256xf32>,
    %c0_581 = arith.constant 0 : index
    %c256_582 = arith.constant 256 : index
    %696 = vector.load %arg5[%c0_581, %c256_582] : memref<64x512xf32, #tpu.memory_space<vmem>>, vector<64x256xf32>
    %cst_583 = arith.constant dense<0.000000e+00> : vector<32x256xf32>
    %697 = tpu.matmul %690, %696, %cst_583 {dimension_numbers = #tpu.dot_dimension_numbers<[1], [0], [0], [1], [0, 0, 1, 1], [], []>} : vector<32x64xf32>, vector<64x256xf32>, vector<32x256xf32> -> vector<32x256xf32>
    %c2_584 = arith.constant 2 : index
    %c0_585 = arith.constant 0 : index
    %c256_586 = arith.constant 256 : index
    %698 = vector.load %arg17[%c2_584, %c0_585, %c256_586] : memref<8x32x1024xf32, #tpu.memory_space<vmem>>, vector<1x32x256xf32>
    %699 = vector.shape_cast %698 : vector<1x32x256xf32> to vector<32x256xf32>
    %700 = vector.shape_cast %697 : vector<32x256xf32> to vector<1x32x256xf32>
    tpu.vector_store %arg17[%c2_584, %c0_585, %c256_586], %700 {strides = array<i32>} : memref<8x32x1024xf32, #tpu.memory_space<vmem>>, vector<1x32x256xf32>,
    %c3_587 = arith.constant 3 : index
    %c0_588 = arith.constant 0 : index
    %c0_589 = arith.constant 0 : index
    %701 = vector.load %arg16[%c3_587, %c0_588, %c0_589] : memref<8x32x256xf32, #tpu.memory_space<vmem>>, vector<1x32x64xf32>
    %702 = vector.shape_cast %701 : vector<1x32x64xf32> to vector<32x64xf32>
    %c0_590 = arith.constant 0 : index
    %c0_591 = arith.constant 0 : index
    %703 = vector.load %arg5[%c0_590, %c0_591] : memref<64x512xf32, #tpu.memory_space<vmem>>, vector<64x256xf32>
    %cst_592 = arith.constant dense<0.000000e+00> : vector<32x256xf32>
    %704 = tpu.matmul %702, %703, %cst_592 {dimension_numbers = #tpu.dot_dimension_numbers<[1], [0], [0], [1], [0, 0, 1, 1], [], []>} : vector<32x64xf32>, vector<64x256xf32>, vector<32x256xf32> -> vector<32x256xf32>
    %c3_593 = arith.constant 3 : index
    %c0_594 = arith.constant 0 : index
    %c0_595 = arith.constant 0 : index
    %705 = vector.load %arg17[%c3_593, %c0_594, %c0_595] : memref<8x32x1024xf32, #tpu.memory_space<vmem>>, vector<1x32x256xf32>
    %706 = vector.shape_cast %705 : vector<1x32x256xf32> to vector<32x256xf32>
    %707 = vector.shape_cast %704 : vector<32x256xf32> to vector<1x32x256xf32>
    tpu.vector_store %arg17[%c3_593, %c0_594, %c0_595], %707 {strides = array<i32>} : memref<8x32x1024xf32, #tpu.memory_space<vmem>>, vector<1x32x256xf32>,
    %c0_596 = arith.constant 0 : index
    %c256_597 = arith.constant 256 : index
    %708 = vector.load %arg5[%c0_596, %c256_597] : memref<64x512xf32, #tpu.memory_space<vmem>>, vector<64x256xf32>
    %cst_598 = arith.constant dense<0.000000e+00> : vector<32x256xf32>
    %709 = tpu.matmul %702, %708, %cst_598 {dimension_numbers = #tpu.dot_dimension_numbers<[1], [0], [0], [1], [0, 0, 1, 1], [], []>} : vector<32x64xf32>, vector<64x256xf32>, vector<32x256xf32> -> vector<32x256xf32>
    %c3_599 = arith.constant 3 : index
    %c0_600 = arith.constant 0 : index
    %c256_601 = arith.constant 256 : index
    %710 = vector.load %arg17[%c3_599, %c0_600, %c256_601] : memref<8x32x1024xf32, #tpu.memory_space<vmem>>, vector<1x32x256xf32>
    %711 = vector.shape_cast %710 : vector<1x32x256xf32> to vector<32x256xf32>
    %712 = vector.shape_cast %709 : vector<32x256xf32> to vector<1x32x256xf32>
    tpu.vector_store %arg17[%c3_599, %c0_600, %c256_601], %712 {strides = array<i32>} : memref<8x32x1024xf32, #tpu.memory_space<vmem>>, vector<1x32x256xf32>,
    %c4_602 = arith.constant 4 : index
    %c0_603 = arith.constant 0 : index
    %c0_604 = arith.constant 0 : index
    %713 = vector.load %arg16[%c4_602, %c0_603, %c0_604] : memref<8x32x256xf32, #tpu.memory_space<vmem>>, vector<1x32x64xf32>
    %714 = vector.shape_cast %713 : vector<1x32x64xf32> to vector<32x64xf32>
    %c0_605 = arith.constant 0 : index
    %c0_606 = arith.constant 0 : index
    %715 = vector.load %arg5[%c0_605, %c0_606] : memref<64x512xf32, #tpu.memory_space<vmem>>, vector<64x256xf32>
    %cst_607 = arith.constant dense<0.000000e+00> : vector<32x256xf32>
    %716 = tpu.matmul %714, %715, %cst_607 {dimension_numbers = #tpu.dot_dimension_numbers<[1], [0], [0], [1], [0, 0, 1, 1], [], []>} : vector<32x64xf32>, vector<64x256xf32>, vector<32x256xf32> -> vector<32x256xf32>
    %c4_608 = arith.constant 4 : index
    %c0_609 = arith.constant 0 : index
    %c0_610 = arith.constant 0 : index
    %717 = vector.load %arg17[%c4_608, %c0_609, %c0_610] : memref<8x32x1024xf32, #tpu.memory_space<vmem>>, vector<1x32x256xf32>
    %718 = vector.shape_cast %717 : vector<1x32x256xf32> to vector<32x256xf32>
    %719 = vector.shape_cast %716 : vector<32x256xf32> to vector<1x32x256xf32>
    tpu.vector_store %arg17[%c4_608, %c0_609, %c0_610], %719 {strides = array<i32>} : memref<8x32x1024xf32, #tpu.memory_space<vmem>>, vector<1x32x256xf32>,
    %c0_611 = arith.constant 0 : index
    %c256_612 = arith.constant 256 : index
    %720 = vector.load %arg5[%c0_611, %c256_612] : memref<64x512xf32, #tpu.memory_space<vmem>>, vector<64x256xf32>
    %cst_613 = arith.constant dense<0.000000e+00> : vector<32x256xf32>
    %721 = tpu.matmul %714, %720, %cst_613 {dimension_numbers = #tpu.dot_dimension_numbers<[1], [0], [0], [1], [0, 0, 1, 1], [], []>} : vector<32x64xf32>, vector<64x256xf32>, vector<32x256xf32> -> vector<32x256xf32>
    %c4_614 = arith.constant 4 : index
    %c0_615 = arith.constant 0 : index
    %c256_616 = arith.constant 256 : index
    %722 = vector.load %arg17[%c4_614, %c0_615, %c256_616] : memref<8x32x1024xf32, #tpu.memory_space<vmem>>, vector<1x32x256xf32>
    %723 = vector.shape_cast %722 : vector<1x32x256xf32> to vector<32x256xf32>
    %724 = vector.shape_cast %721 : vector<32x256xf32> to vector<1x32x256xf32>
    tpu.vector_store %arg17[%c4_614, %c0_615, %c256_616], %724 {strides = array<i32>} : memref<8x32x1024xf32, #tpu.memory_space<vmem>>, vector<1x32x256xf32>,
    %c5_617 = arith.constant 5 : index
    %c0_618 = arith.constant 0 : index
    %c0_619 = arith.constant 0 : index
    %725 = vector.load %arg16[%c5_617, %c0_618, %c0_619] : memref<8x32x256xf32, #tpu.memory_space<vmem>>, vector<1x32x64xf32>
    %726 = vector.shape_cast %725 : vector<1x32x64xf32> to vector<32x64xf32>
    %c0_620 = arith.constant 0 : index
    %c0_621 = arith.constant 0 : index
    %727 = vector.load %arg5[%c0_620, %c0_621] : memref<64x512xf32, #tpu.memory_space<vmem>>, vector<64x256xf32>
    %cst_622 = arith.constant dense<0.000000e+00> : vector<32x256xf32>
    %728 = tpu.matmul %726, %727, %cst_622 {dimension_numbers = #tpu.dot_dimension_numbers<[1], [0], [0], [1], [0, 0, 1, 1], [], []>} : vector<32x64xf32>, vector<64x256xf32>, vector<32x256xf32> -> vector<32x256xf32>
    %c5_623 = arith.constant 5 : index
    %c0_624 = arith.constant 0 : index
    %c0_625 = arith.constant 0 : index
    %729 = vector.load %arg17[%c5_623, %c0_624, %c0_625] : memref<8x32x1024xf32, #tpu.memory_space<vmem>>, vector<1x32x256xf32>
    %730 = vector.shape_cast %729 : vector<1x32x256xf32> to vector<32x256xf32>
    %731 = vector.shape_cast %728 : vector<32x256xf32> to vector<1x32x256xf32>
    tpu.vector_store %arg17[%c5_623, %c0_624, %c0_625], %731 {strides = array<i32>} : memref<8x32x1024xf32, #tpu.memory_space<vmem>>, vector<1x32x256xf32>,
    %c0_626 = arith.constant 0 : index
    %c256_627 = arith.constant 256 : index
    %732 = vector.load %arg5[%c0_626, %c256_627] : memref<64x512xf32, #tpu.memory_space<vmem>>, vector<64x256xf32>
    %cst_628 = arith.constant dense<0.000000e+00> : vector<32x256xf32>
    %733 = tpu.matmul %726, %732, %cst_628 {dimension_numbers = #tpu.dot_dimension_numbers<[1], [0], [0], [1], [0, 0, 1, 1], [], []>} : vector<32x64xf32>, vector<64x256xf32>, vector<32x256xf32> -> vector<32x256xf32>
    %c5_629 = arith.constant 5 : index
    %c0_630 = arith.constant 0 : index
    %c256_631 = arith.constant 256 : index
    %734 = vector.load %arg17[%c5_629, %c0_630, %c256_631] : memref<8x32x1024xf32, #tpu.memory_space<vmem>>, vector<1x32x256xf32>
    %735 = vector.shape_cast %734 : vector<1x32x256xf32> to vector<32x256xf32>
    %736 = vector.shape_cast %733 : vector<32x256xf32> to vector<1x32x256xf32>
    tpu.vector_store %arg17[%c5_629, %c0_630, %c256_631], %736 {strides = array<i32>} : memref<8x32x1024xf32, #tpu.memory_space<vmem>>, vector<1x32x256xf32>,
    %c6_632 = arith.constant 6 : index
    %c0_633 = arith.constant 0 : index
    %c0_634 = arith.constant 0 : index
    %737 = vector.load %arg16[%c6_632, %c0_633, %c0_634] : memref<8x32x256xf32, #tpu.memory_space<vmem>>, vector<1x32x64xf32>
    %738 = vector.shape_cast %737 : vector<1x32x64xf32> to vector<32x64xf32>
    %c0_635 = arith.constant 0 : index
    %c0_636 = arith.constant 0 : index
    %739 = vector.load %arg5[%c0_635, %c0_636] : memref<64x512xf32, #tpu.memory_space<vmem>>, vector<64x256xf32>
    %cst_637 = arith.constant dense<0.000000e+00> : vector<32x256xf32>
    %740 = tpu.matmul %738, %739, %cst_637 {dimension_numbers = #tpu.dot_dimension_numbers<[1], [0], [0], [1], [0, 0, 1, 1], [], []>} : vector<32x64xf32>, vector<64x256xf32>, vector<32x256xf32> -> vector<32x256xf32>
    %c6_638 = arith.constant 6 : index
    %c0_639 = arith.constant 0 : index
    %c0_640 = arith.constant 0 : index
    %741 = vector.load %arg17[%c6_638, %c0_639, %c0_640] : memref<8x32x1024xf32, #tpu.memory_space<vmem>>, vector<1x32x256xf32>
    %742 = vector.shape_cast %741 : vector<1x32x256xf32> to vector<32x256xf32>
    %743 = vector.shape_cast %740 : vector<32x256xf32> to vector<1x32x256xf32>
    tpu.vector_store %arg17[%c6_638, %c0_639, %c0_640], %743 {strides = array<i32>} : memref<8x32x1024xf32, #tpu.memory_space<vmem>>, vector<1x32x256xf32>,
    %c0_641 = arith.constant 0 : index
    %c256_642 = arith.constant 256 : index
    %744 = vector.load %arg5[%c0_641, %c256_642] : memref<64x512xf32, #tpu.memory_space<vmem>>, vector<64x256xf32>
    %cst_643 = arith.constant dense<0.000000e+00> : vector<32x256xf32>
    %745 = tpu.matmul %738, %744, %cst_643 {dimension_numbers = #tpu.dot_dimension_numbers<[1], [0], [0], [1], [0, 0, 1, 1], [], []>} : vector<32x64xf32>, vector<64x256xf32>, vector<32x256xf32> -> vector<32x256xf32>
    %c6_644 = arith.constant 6 : index
    %c0_645 = arith.constant 0 : index
    %c256_646 = arith.constant 256 : index
    %746 = vector.load %arg17[%c6_644, %c0_645, %c256_646] : memref<8x32x1024xf32, #tpu.memory_space<vmem>>, vector<1x32x256xf32>
    %747 = vector.shape_cast %746 : vector<1x32x256xf32> to vector<32x256xf32>
    %748 = vector.shape_cast %745 : vector<32x256xf32> to vector<1x32x256xf32>
    tpu.vector_store %arg17[%c6_644, %c0_645, %c256_646], %748 {strides = array<i32>} : memref<8x32x1024xf32, #tpu.memory_space<vmem>>, vector<1x32x256xf32>,
    %c7_647 = arith.constant 7 : index
    %c0_648 = arith.constant 0 : index
    %c0_649 = arith.constant 0 : index
    %749 = vector.load %arg16[%c7_647, %c0_648, %c0_649] : memref<8x32x256xf32, #tpu.memory_space<vmem>>, vector<1x32x64xf32>
    %750 = vector.shape_cast %749 : vector<1x32x64xf32> to vector<32x64xf32>
    %c0_650 = arith.constant 0 : index
    %c0_651 = arith.constant 0 : index
    %751 = vector.load %arg5[%c0_650, %c0_651] : memref<64x512xf32, #tpu.memory_space<vmem>>, vector<64x256xf32>
    %cst_652 = arith.constant dense<0.000000e+00> : vector<32x256xf32>
    %752 = tpu.matmul %750, %751, %cst_652 {dimension_numbers = #tpu.dot_dimension_numbers<[1], [0], [0], [1], [0, 0, 1, 1], [], []>} : vector<32x64xf32>, vector<64x256xf32>, vector<32x256xf32> -> vector<32x256xf32>
    %c7_653 = arith.constant 7 : index
    %c0_654 = arith.constant 0 : index
    %c0_655 = arith.constant 0 : index
    %753 = vector.load %arg17[%c7_653, %c0_654, %c0_655] : memref<8x32x1024xf32, #tpu.memory_space<vmem>>, vector<1x32x256xf32>
    %754 = vector.shape_cast %753 : vector<1x32x256xf32> to vector<32x256xf32>
    %755 = vector.shape_cast %752 : vector<32x256xf32> to vector<1x32x256xf32>
    tpu.vector_store %arg17[%c7_653, %c0_654, %c0_655], %755 {strides = array<i32>} : memref<8x32x1024xf32, #tpu.memory_space<vmem>>, vector<1x32x256xf32>,
    %c0_656 = arith.constant 0 : index
    %c256_657 = arith.constant 256 : index
    %756 = vector.load %arg5[%c0_656, %c256_657] : memref<64x512xf32, #tpu.memory_space<vmem>>, vector<64x256xf32>
    %cst_658 = arith.constant dense<0.000000e+00> : vector<32x256xf32>
    %757 = tpu.matmul %750, %756, %cst_658 {dimension_numbers = #tpu.dot_dimension_numbers<[1], [0], [0], [1], [0, 0, 1, 1], [], []>} : vector<32x64xf32>, vector<64x256xf32>, vector<32x256xf32> -> vector<32x256xf32>
    %c7_659 = arith.constant 7 : index
    %c0_660 = arith.constant 0 : index
    %c256_661 = arith.constant 256 : index
    %758 = vector.load %arg17[%c7_659, %c0_660, %c256_661] : memref<8x32x1024xf32, #tpu.memory_space<vmem>>, vector<1x32x256xf32>
    %759 = vector.shape_cast %758 : vector<1x32x256xf32> to vector<32x256xf32>
    %760 = vector.shape_cast %757 : vector<32x256xf32> to vector<1x32x256xf32>
    tpu.vector_store %arg17[%c7_659, %c0_660, %c256_661], %760 {strides = array<i32>} : memref<8x32x1024xf32, #tpu.memory_space<vmem>>, vector<1x32x256xf32>,
    %cst_662 = arith.constant 0.000000e+00 : f32
    %761 = vector.broadcast %cst_662 : f32 to vector<2x3xf32>
    %c0_663 = arith.constant 0 : index
    %c0_664 = arith.constant 0 : index
    %762 = vector.load %arg18[%c0_663, %c0_664] : memref<32x256xf32, #tpu.memory_space<vmem>>, vector<2x3xf32>
    tpu.vector_store %arg18[%c0_663, %c0_664], %761 {strides = array<i32>} : memref<32x256xf32, #tpu.memory_space<vmem>>, vector<2x3xf32>,
    %c7_665 = arith.constant 7 : index
    %c0_666 = arith.constant 0 : index
    %c384_667 = arith.constant 384 : index
    %763 = vector.load %arg17[%c7_665, %c0_666, %c384_667] : memref<8x32x1024xf32, #tpu.memory_space<vmem>>, vector<1x30x3xf32>
    %764 = vector.shape_cast %763 : vector<1x30x3xf32> to vector<30x3xf32>
    %c2_668 = arith.constant 2 : index
    %c0_669 = arith.constant 0 : index
    %765 = vector.load %arg18[%c2_668, %c0_669] : memref<32x256xf32, #tpu.memory_space<vmem>>, vector<30x3xf32>
    tpu.vector_store %arg18[%c2_668, %c0_669], %764 {strides = array<i32>} : memref<32x256xf32, #tpu.memory_space<vmem>>, vector<30x3xf32>,
    %c0_670 = arith.constant 0 : index
    %c2_671 = arith.constant 2 : index
    %c0_672 = arith.constant 0 : index
    %766 = vector.load %arg17[%c0_670, %c2_671, %c0_672] : memref<8x32x1024xf32, #tpu.memory_space<vmem>>, vector<1x30x3xf32>
    %767 = vector.shape_cast %766 : vector<1x30x3xf32> to vector<30x3xf32>
    %c0_673 = arith.constant 0 : index
    %c0_674 = arith.constant 0 : index
    %768 = vector.load %arg19[%c0_673, %c0_674] : memref<32x256xf32, #tpu.memory_space<vmem>>, vector<30x3xf32>
    tpu.vector_store %arg19[%c0_673, %c0_674], %767 {strides = array<i32>} : memref<32x256xf32, #tpu.memory_space<vmem>>, vector<30x3xf32>,
    %cst_675 = arith.constant 0.000000e+00 : f32
    %769 = vector.broadcast %cst_675 : f32 to vector<2x3xf32>
    %c30_676 = arith.constant 30 : index
    %c0_677 = arith.constant 0 : index
    %770 = vector.load %arg19[%c30_676, %c0_677] : memref<32x256xf32, #tpu.memory_space<vmem>>, vector<2x3xf32>
    tpu.vector_store %arg19[%c30_676, %c0_677], %769 {strides = array<i32>} : memref<32x256xf32, #tpu.memory_space<vmem>>, vector<2x3xf32>,
    %c0_678 = arith.constant 0 : index
    %c0_679 = arith.constant 0 : index
    %c128_680 = arith.constant 128 : index
    %771 = vector.load %arg17[%c0_678, %c0_679, %c128_680] : memref<8x32x1024xf32, #tpu.memory_space<vmem>>, vector<1x32x3xf32>
    %772 = vector.shape_cast %771 : vector<1x32x3xf32> to vector<32x3xf32>
    %c0_681 = arith.constant 0 : index
    %c0_682 = arith.constant 0 : index
    %c256_683 = arith.constant 256 : index
    %773 = vector.load %arg17[%c0_681, %c0_682, %c256_683] : memref<8x32x1024xf32, #tpu.memory_space<vmem>>, vector<1x32x3xf32>
    %774 = vector.shape_cast %773 : vector<1x32x3xf32> to vector<32x3xf32>
    %c0_684 = arith.constant 0 : index
    %c0_685 = arith.constant 0 : index
    %775 = vector.load %arg18[%c0_684, %c0_685] : memref<32x256xf32, #tpu.memory_space<vmem>>, vector<32x3xf32>
    %c1_686 = arith.constant 1 : index
    %c0_687 = arith.constant 0 : index
    %c0_688 = arith.constant 0 : index
    %776 = vector.load %arg17[%c1_686, %c0_687, %c0_688] : memref<8x32x1024xf32, #tpu.memory_space<vmem>>, vector<1x32x3xf32>
    %777 = vector.shape_cast %776 : vector<1x32x3xf32> to vector<32x3xf32>
    %778 = arith.addf %772, %775 : vector<32x3xf32>
    %779 = arith.addf %774, %777 : vector<32x3xf32>
    %780 = math.tanh %778 : vector<32x3xf32>
    %c0_689 = arith.constant 0 : index
    %c0_690 = arith.constant 0 : index
    %c0_691 = arith.constant 0 : index
    %781 = vector.load %arg14[%c0_689, %c0_690, %c0_691] : memref<16x32x3xf32, #tpu.memory_space<vmem>>, vector<1x32x3xf32>
    %782 = vector.shape_cast %781 : vector<1x32x3xf32> to vector<32x3xf32>
    %783 = vector.shape_cast %780 : vector<32x3xf32> to vector<1x32x3xf32>
    tpu.vector_store %arg14[%c0_689, %c0_690, %c0_691], %783 {strides = array<i32>} : memref<16x32x3xf32, #tpu.memory_space<vmem>>, vector<1x32x3xf32>,
    %784 = math.tanh %779 : vector<32x3xf32>
    %c1_692 = arith.constant 1 : index
    %c0_693 = arith.constant 0 : index
    %c0_694 = arith.constant 0 : index
    %785 = vector.load %arg14[%c1_692, %c0_693, %c0_694] : memref<16x32x3xf32, #tpu.memory_space<vmem>>, vector<1x32x3xf32>
    %786 = vector.shape_cast %785 : vector<1x32x3xf32> to vector<32x3xf32>
    %787 = vector.shape_cast %784 : vector<32x3xf32> to vector<1x32x3xf32>
    tpu.vector_store %arg14[%c1_692, %c0_693, %c0_694], %787 {strides = array<i32>} : memref<16x32x3xf32, #tpu.memory_space<vmem>>, vector<1x32x3xf32>,
    %c1_695 = arith.constant 1 : index
    %c0_696 = arith.constant 0 : index
    %c128_697 = arith.constant 128 : index
    %788 = vector.load %arg17[%c1_695, %c0_696, %c128_697] : memref<8x32x1024xf32, #tpu.memory_space<vmem>>, vector<1x32x3xf32>
    %789 = vector.shape_cast %788 : vector<1x32x3xf32> to vector<32x3xf32>
    %c1_698 = arith.constant 1 : index
    %c0_699 = arith.constant 0 : index
    %c256_700 = arith.constant 256 : index
    %790 = vector.load %arg17[%c1_698, %c0_699, %c256_700] : memref<8x32x1024xf32, #tpu.memory_space<vmem>>, vector<1x32x3xf32>
    %791 = vector.shape_cast %790 : vector<1x32x3xf32> to vector<32x3xf32>
    %c0_701 = arith.constant 0 : index
    %c0_702 = arith.constant 0 : index
    %c384_703 = arith.constant 384 : index
    %792 = vector.load %arg17[%c0_701, %c0_702, %c384_703] : memref<8x32x1024xf32, #tpu.memory_space<vmem>>, vector<1x32x3xf32>
    %793 = vector.shape_cast %792 : vector<1x32x3xf32> to vector<32x3xf32>
    %c2_704 = arith.constant 2 : index
    %c0_705 = arith.constant 0 : index
    %c0_706 = arith.constant 0 : index
    %794 = vector.load %arg17[%c2_704, %c0_705, %c0_706] : memref<8x32x1024xf32, #tpu.memory_space<vmem>>, vector<1x32x3xf32>
    %795 = vector.shape_cast %794 : vector<1x32x3xf32> to vector<32x3xf32>
    %796 = arith.addf %789, %793 : vector<32x3xf32>
    %797 = arith.addf %791, %795 : vector<32x3xf32>
    %798 = math.tanh %796 : vector<32x3xf32>
    %c2_707 = arith.constant 2 : index
    %c0_708 = arith.constant 0 : index
    %c0_709 = arith.constant 0 : index
    %799 = vector.load %arg14[%c2_707, %c0_708, %c0_709] : memref<16x32x3xf32, #tpu.memory_space<vmem>>, vector<1x32x3xf32>
    %800 = vector.shape_cast %799 : vector<1x32x3xf32> to vector<32x3xf32>
    %801 = vector.shape_cast %798 : vector<32x3xf32> to vector<1x32x3xf32>
    tpu.vector_store %arg14[%c2_707, %c0_708, %c0_709], %801 {strides = array<i32>} : memref<16x32x3xf32, #tpu.memory_space<vmem>>, vector<1x32x3xf32>,
    %802 = math.tanh %797 : vector<32x3xf32>
    %c3_710 = arith.constant 3 : index
    %c0_711 = arith.constant 0 : index
    %c0_712 = arith.constant 0 : index
    %803 = vector.load %arg14[%c3_710, %c0_711, %c0_712] : memref<16x32x3xf32, #tpu.memory_space<vmem>>, vector<1x32x3xf32>
    %804 = vector.shape_cast %803 : vector<1x32x3xf32> to vector<32x3xf32>
    %805 = vector.shape_cast %802 : vector<32x3xf32> to vector<1x32x3xf32>
    tpu.vector_store %arg14[%c3_710, %c0_711, %c0_712], %805 {strides = array<i32>} : memref<16x32x3xf32, #tpu.memory_space<vmem>>, vector<1x32x3xf32>,
    %c2_713 = arith.constant 2 : index
    %c0_714 = arith.constant 0 : index
    %c128_715 = arith.constant 128 : index
    %806 = vector.load %arg17[%c2_713, %c0_714, %c128_715] : memref<8x32x1024xf32, #tpu.memory_space<vmem>>, vector<1x32x3xf32>
    %807 = vector.shape_cast %806 : vector<1x32x3xf32> to vector<32x3xf32>
    %c2_716 = arith.constant 2 : index
    %c0_717 = arith.constant 0 : index
    %c256_718 = arith.constant 256 : index
    %808 = vector.load %arg17[%c2_716, %c0_717, %c256_718] : memref<8x32x1024xf32, #tpu.memory_space<vmem>>, vector<1x32x3xf32>
    %809 = vector.shape_cast %808 : vector<1x32x3xf32> to vector<32x3xf32>
    %c1_719 = arith.constant 1 : index
    %c0_720 = arith.constant 0 : index
    %c384_721 = arith.constant 384 : index
    %810 = vector.load %arg17[%c1_719, %c0_720, %c384_721] : memref<8x32x1024xf32, #tpu.memory_space<vmem>>, vector<1x32x3xf32>
    %811 = vector.shape_cast %810 : vector<1x32x3xf32> to vector<32x3xf32>
    %c3_722 = arith.constant 3 : index
    %c0_723 = arith.constant 0 : index
    %c0_724 = arith.constant 0 : index
    %812 = vector.load %arg17[%c3_722, %c0_723, %c0_724] : memref<8x32x1024xf32, #tpu.memory_space<vmem>>, vector<1x32x3xf32>
    %813 = vector.shape_cast %812 : vector<1x32x3xf32> to vector<32x3xf32>
    %814 = arith.addf %807, %811 : vector<32x3xf32>
    %815 = arith.addf %809, %813 : vector<32x3xf32>
    %816 = math.tanh %814 : vector<32x3xf32>
    %c4_725 = arith.constant 4 : index
    %c0_726 = arith.constant 0 : index
    %c0_727 = arith.constant 0 : index
    %817 = vector.load %arg14[%c4_725, %c0_726, %c0_727] : memref<16x32x3xf32, #tpu.memory_space<vmem>>, vector<1x32x3xf32>
    %818 = vector.shape_cast %817 : vector<1x32x3xf32> to vector<32x3xf32>
    %819 = vector.shape_cast %816 : vector<32x3xf32> to vector<1x32x3xf32>
    tpu.vector_store %arg14[%c4_725, %c0_726, %c0_727], %819 {strides = array<i32>} : memref<16x32x3xf32, #tpu.memory_space<vmem>>, vector<1x32x3xf32>,
    %820 = math.tanh %815 : vector<32x3xf32>
    %c5_728 = arith.constant 5 : index
    %c0_729 = arith.constant 0 : index
    %c0_730 = arith.constant 0 : index
    %821 = vector.load %arg14[%c5_728, %c0_729, %c0_730] : memref<16x32x3xf32, #tpu.memory_space<vmem>>, vector<1x32x3xf32>
    %822 = vector.shape_cast %821 : vector<1x32x3xf32> to vector<32x3xf32>
    %823 = vector.shape_cast %820 : vector<32x3xf32> to vector<1x32x3xf32>
    tpu.vector_store %arg14[%c5_728, %c0_729, %c0_730], %823 {strides = array<i32>} : memref<16x32x3xf32, #tpu.memory_space<vmem>>, vector<1x32x3xf32>,
    %c3_731 = arith.constant 3 : index
    %c0_732 = arith.constant 0 : index
    %c128_733 = arith.constant 128 : index
    %824 = vector.load %arg17[%c3_731, %c0_732, %c128_733] : memref<8x32x1024xf32, #tpu.memory_space<vmem>>, vector<1x32x3xf32>
    %825 = vector.shape_cast %824 : vector<1x32x3xf32> to vector<32x3xf32>
    %c3_734 = arith.constant 3 : index
    %c0_735 = arith.constant 0 : index
    %c256_736 = arith.constant 256 : index
    %826 = vector.load %arg17[%c3_734, %c0_735, %c256_736] : memref<8x32x1024xf32, #tpu.memory_space<vmem>>, vector<1x32x3xf32>
    %827 = vector.shape_cast %826 : vector<1x32x3xf32> to vector<32x3xf32>
    %c2_737 = arith.constant 2 : index
    %c0_738 = arith.constant 0 : index
    %c384_739 = arith.constant 384 : index
    %828 = vector.load %arg17[%c2_737, %c0_738, %c384_739] : memref<8x32x1024xf32, #tpu.memory_space<vmem>>, vector<1x32x3xf32>
    %829 = vector.shape_cast %828 : vector<1x32x3xf32> to vector<32x3xf32>
    %c4_740 = arith.constant 4 : index
    %c0_741 = arith.constant 0 : index
    %c0_742 = arith.constant 0 : index
    %830 = vector.load %arg17[%c4_740, %c0_741, %c0_742] : memref<8x32x1024xf32, #tpu.memory_space<vmem>>, vector<1x32x3xf32>
    %831 = vector.shape_cast %830 : vector<1x32x3xf32> to vector<32x3xf32>
    %832 = arith.addf %825, %829 : vector<32x3xf32>
    %833 = arith.addf %827, %831 : vector<32x3xf32>
    %834 = math.tanh %832 : vector<32x3xf32>
    %c6_743 = arith.constant 6 : index
    %c0_744 = arith.constant 0 : index
    %c0_745 = arith.constant 0 : index
    %835 = vector.load %arg14[%c6_743, %c0_744, %c0_745] : memref<16x32x3xf32, #tpu.memory_space<vmem>>, vector<1x32x3xf32>
    %836 = vector.shape_cast %835 : vector<1x32x3xf32> to vector<32x3xf32>
    %837 = vector.shape_cast %834 : vector<32x3xf32> to vector<1x32x3xf32>
    tpu.vector_store %arg14[%c6_743, %c0_744, %c0_745], %837 {strides = array<i32>} : memref<16x32x3xf32, #tpu.memory_space<vmem>>, vector<1x32x3xf32>,
    %838 = math.tanh %833 : vector<32x3xf32>
    %c7_746 = arith.constant 7 : index
    %c0_747 = arith.constant 0 : index
    %c0_748 = arith.constant 0 : index
    %839 = vector.load %arg14[%c7_746, %c0_747, %c0_748] : memref<16x32x3xf32, #tpu.memory_space<vmem>>, vector<1x32x3xf32>
    %840 = vector.shape_cast %839 : vector<1x32x3xf32> to vector<32x3xf32>
    %841 = vector.shape_cast %838 : vector<32x3xf32> to vector<1x32x3xf32>
    tpu.vector_store %arg14[%c7_746, %c0_747, %c0_748], %841 {strides = array<i32>} : memref<16x32x3xf32, #tpu.memory_space<vmem>>, vector<1x32x3xf32>,
    %c4_749 = arith.constant 4 : index
    %c0_750 = arith.constant 0 : index
    %c128_751 = arith.constant 128 : index
    %842 = vector.load %arg17[%c4_749, %c0_750, %c128_751] : memref<8x32x1024xf32, #tpu.memory_space<vmem>>, vector<1x32x3xf32>
    %843 = vector.shape_cast %842 : vector<1x32x3xf32> to vector<32x3xf32>
    %c4_752 = arith.constant 4 : index
    %c0_753 = arith.constant 0 : index
    %c256_754 = arith.constant 256 : index
    %844 = vector.load %arg17[%c4_752, %c0_753, %c256_754] : memref<8x32x1024xf32, #tpu.memory_space<vmem>>, vector<1x32x3xf32>
    %845 = vector.shape_cast %844 : vector<1x32x3xf32> to vector<32x3xf32>
    %c3_755 = arith.constant 3 : index
    %c0_756 = arith.constant 0 : index
    %c384_757 = arith.constant 384 : index
    %846 = vector.load %arg17[%c3_755, %c0_756, %c384_757] : memref<8x32x1024xf32, #tpu.memory_space<vmem>>, vector<1x32x3xf32>
    %847 = vector.shape_cast %846 : vector<1x32x3xf32> to vector<32x3xf32>
    %c5_758 = arith.constant 5 : index
    %c0_759 = arith.constant 0 : index
    %c0_760 = arith.constant 0 : index
    %848 = vector.load %arg17[%c5_758, %c0_759, %c0_760] : memref<8x32x1024xf32, #tpu.memory_space<vmem>>, vector<1x32x3xf32>
    %849 = vector.shape_cast %848 : vector<1x32x3xf32> to vector<32x3xf32>
    %850 = arith.addf %843, %847 : vector<32x3xf32>
    %851 = arith.addf %845, %849 : vector<32x3xf32>
    %852 = math.tanh %850 : vector<32x3xf32>
    %c8_761 = arith.constant 8 : index
    %c0_762 = arith.constant 0 : index
    %c0_763 = arith.constant 0 : index
    %853 = vector.load %arg14[%c8_761, %c0_762, %c0_763] : memref<16x32x3xf32, #tpu.memory_space<vmem>>, vector<1x32x3xf32>
    %854 = vector.shape_cast %853 : vector<1x32x3xf32> to vector<32x3xf32>
    %855 = vector.shape_cast %852 : vector<32x3xf32> to vector<1x32x3xf32>
    tpu.vector_store %arg14[%c8_761, %c0_762, %c0_763], %855 {strides = array<i32>} : memref<16x32x3xf32, #tpu.memory_space<vmem>>, vector<1x32x3xf32>,
    %856 = math.tanh %851 : vector<32x3xf32>
    %c9_764 = arith.constant 9 : index
    %c0_765 = arith.constant 0 : index
    %c0_766 = arith.constant 0 : index
    %857 = vector.load %arg14[%c9_764, %c0_765, %c0_766] : memref<16x32x3xf32, #tpu.memory_space<vmem>>, vector<1x32x3xf32>
    %858 = vector.shape_cast %857 : vector<1x32x3xf32> to vector<32x3xf32>
    %859 = vector.shape_cast %856 : vector<32x3xf32> to vector<1x32x3xf32>
    tpu.vector_store %arg14[%c9_764, %c0_765, %c0_766], %859 {strides = array<i32>} : memref<16x32x3xf32, #tpu.memory_space<vmem>>, vector<1x32x3xf32>,
    %c5_767 = arith.constant 5 : index
    %c0_768 = arith.constant 0 : index
    %c128_769 = arith.constant 128 : index
    %860 = vector.load %arg17[%c5_767, %c0_768, %c128_769] : memref<8x32x1024xf32, #tpu.memory_space<vmem>>, vector<1x32x3xf32>
    %861 = vector.shape_cast %860 : vector<1x32x3xf32> to vector<32x3xf32>
    %c5_770 = arith.constant 5 : index
    %c0_771 = arith.constant 0 : index
    %c256_772 = arith.constant 256 : index
    %862 = vector.load %arg17[%c5_770, %c0_771, %c256_772] : memref<8x32x1024xf32, #tpu.memory_space<vmem>>, vector<1x32x3xf32>
    %863 = vector.shape_cast %862 : vector<1x32x3xf32> to vector<32x3xf32>
    %c4_773 = arith.constant 4 : index
    %c0_774 = arith.constant 0 : index
    %c384_775 = arith.constant 384 : index
    %864 = vector.load %arg17[%c4_773, %c0_774, %c384_775] : memref<8x32x1024xf32, #tpu.memory_space<vmem>>, vector<1x32x3xf32>
    %865 = vector.shape_cast %864 : vector<1x32x3xf32> to vector<32x3xf32>
    %c6_776 = arith.constant 6 : index
    %c0_777 = arith.constant 0 : index
    %c0_778 = arith.constant 0 : index
    %866 = vector.load %arg17[%c6_776, %c0_777, %c0_778] : memref<8x32x1024xf32, #tpu.memory_space<vmem>>, vector<1x32x3xf32>
    %867 = vector.shape_cast %866 : vector<1x32x3xf32> to vector<32x3xf32>
    %868 = arith.addf %861, %865 : vector<32x3xf32>
    %869 = arith.addf %863, %867 : vector<32x3xf32>
    %870 = math.tanh %868 : vector<32x3xf32>
    %c10_779 = arith.constant 10 : index
    %c0_780 = arith.constant 0 : index
    %c0_781 = arith.constant 0 : index
    %871 = vector.load %arg14[%c10_779, %c0_780, %c0_781] : memref<16x32x3xf32, #tpu.memory_space<vmem>>, vector<1x32x3xf32>
    %872 = vector.shape_cast %871 : vector<1x32x3xf32> to vector<32x3xf32>
    %873 = vector.shape_cast %870 : vector<32x3xf32> to vector<1x32x3xf32>
    tpu.vector_store %arg14[%c10_779, %c0_780, %c0_781], %873 {strides = array<i32>} : memref<16x32x3xf32, #tpu.memory_space<vmem>>, vector<1x32x3xf32>,
    %874 = math.tanh %869 : vector<32x3xf32>
    %c11_782 = arith.constant 11 : index
    %c0_783 = arith.constant 0 : index
    %c0_784 = arith.constant 0 : index
    %875 = vector.load %arg14[%c11_782, %c0_783, %c0_784] : memref<16x32x3xf32, #tpu.memory_space<vmem>>, vector<1x32x3xf32>
    %876 = vector.shape_cast %875 : vector<1x32x3xf32> to vector<32x3xf32>
    %877 = vector.shape_cast %874 : vector<32x3xf32> to vector<1x32x3xf32>
    tpu.vector_store %arg14[%c11_782, %c0_783, %c0_784], %877 {strides = array<i32>} : memref<16x32x3xf32, #tpu.memory_space<vmem>>, vector<1x32x3xf32>,
    %c6_785 = arith.constant 6 : index
    %c0_786 = arith.constant 0 : index
    %c128_787 = arith.constant 128 : index
    %878 = vector.load %arg17[%c6_785, %c0_786, %c128_787] : memref<8x32x1024xf32, #tpu.memory_space<vmem>>, vector<1x32x3xf32>
    %879 = vector.shape_cast %878 : vector<1x32x3xf32> to vector<32x3xf32>
    %c6_788 = arith.constant 6 : index
    %c0_789 = arith.constant 0 : index
    %c256_790 = arith.constant 256 : index
    %880 = vector.load %arg17[%c6_788, %c0_789, %c256_790] : memref<8x32x1024xf32, #tpu.memory_space<vmem>>, vector<1x32x3xf32>
    %881 = vector.shape_cast %880 : vector<1x32x3xf32> to vector<32x3xf32>
    %c5_791 = arith.constant 5 : index
    %c0_792 = arith.constant 0 : index
    %c384_793 = arith.constant 384 : index
    %882 = vector.load %arg17[%c5_791, %c0_792, %c384_793] : memref<8x32x1024xf32, #tpu.memory_space<vmem>>, vector<1x32x3xf32>
    %883 = vector.shape_cast %882 : vector<1x32x3xf32> to vector<32x3xf32>
    %c7_794 = arith.constant 7 : index
    %c0_795 = arith.constant 0 : index
    %c0_796 = arith.constant 0 : index
    %884 = vector.load %arg17[%c7_794, %c0_795, %c0_796] : memref<8x32x1024xf32, #tpu.memory_space<vmem>>, vector<1x32x3xf32>
    %885 = vector.shape_cast %884 : vector<1x32x3xf32> to vector<32x3xf32>
    %886 = arith.addf %879, %883 : vector<32x3xf32>
    %887 = arith.addf %881, %885 : vector<32x3xf32>
    %888 = math.tanh %886 : vector<32x3xf32>
    %c12_797 = arith.constant 12 : index
    %c0_798 = arith.constant 0 : index
    %c0_799 = arith.constant 0 : index
    %889 = vector.load %arg14[%c12_797, %c0_798, %c0_799] : memref<16x32x3xf32, #tpu.memory_space<vmem>>, vector<1x32x3xf32>
    %890 = vector.shape_cast %889 : vector<1x32x3xf32> to vector<32x3xf32>
    %891 = vector.shape_cast %888 : vector<32x3xf32> to vector<1x32x3xf32>
    tpu.vector_store %arg14[%c12_797, %c0_798, %c0_799], %891 {strides = array<i32>} : memref<16x32x3xf32, #tpu.memory_space<vmem>>, vector<1x32x3xf32>,
    %892 = math.tanh %887 : vector<32x3xf32>
    %c13_800 = arith.constant 13 : index
    %c0_801 = arith.constant 0 : index
    %c0_802 = arith.constant 0 : index
    %893 = vector.load %arg14[%c13_800, %c0_801, %c0_802] : memref<16x32x3xf32, #tpu.memory_space<vmem>>, vector<1x32x3xf32>
    %894 = vector.shape_cast %893 : vector<1x32x3xf32> to vector<32x3xf32>
    %895 = vector.shape_cast %892 : vector<32x3xf32> to vector<1x32x3xf32>
    tpu.vector_store %arg14[%c13_800, %c0_801, %c0_802], %895 {strides = array<i32>} : memref<16x32x3xf32, #tpu.memory_space<vmem>>, vector<1x32x3xf32>,
    %c7_803 = arith.constant 7 : index
    %c0_804 = arith.constant 0 : index
    %c128_805 = arith.constant 128 : index
    %896 = vector.load %arg17[%c7_803, %c0_804, %c128_805] : memref<8x32x1024xf32, #tpu.memory_space<vmem>>, vector<1x32x3xf32>
    %897 = vector.shape_cast %896 : vector<1x32x3xf32> to vector<32x3xf32>
    %c7_806 = arith.constant 7 : index
    %c0_807 = arith.constant 0 : index
    %c256_808 = arith.constant 256 : index
    %898 = vector.load %arg17[%c7_806, %c0_807, %c256_808] : memref<8x32x1024xf32, #tpu.memory_space<vmem>>, vector<1x32x3xf32>
    %899 = vector.shape_cast %898 : vector<1x32x3xf32> to vector<32x3xf32>
    %c6_809 = arith.constant 6 : index
    %c0_810 = arith.constant 0 : index
    %c384_811 = arith.constant 384 : index
    %900 = vector.load %arg17[%c6_809, %c0_810, %c384_811] : memref<8x32x1024xf32, #tpu.memory_space<vmem>>, vector<1x32x3xf32>
    %901 = vector.shape_cast %900 : vector<1x32x3xf32> to vector<32x3xf32>
    %c0_812 = arith.constant 0 : index
    %c0_813 = arith.constant 0 : index
    %902 = vector.load %arg19[%c0_812, %c0_813] : memref<32x256xf32, #tpu.memory_space<vmem>>, vector<32x3xf32>
    %903 = arith.addf %897, %901 : vector<32x3xf32>
    %904 = arith.addf %899, %902 : vector<32x3xf32>
    %905 = math.tanh %903 : vector<32x3xf32>
    %c14_814 = arith.constant 14 : index
    %c0_815 = arith.constant 0 : index
    %c0_816 = arith.constant 0 : index
    %906 = vector.load %arg14[%c14_814, %c0_815, %c0_816] : memref<16x32x3xf32, #tpu.memory_space<vmem>>, vector<1x32x3xf32>
    %907 = vector.shape_cast %906 : vector<1x32x3xf32> to vector<32x3xf32>
    %908 = vector.shape_cast %905 : vector<32x3xf32> to vector<1x32x3xf32>
    tpu.vector_store %arg14[%c14_814, %c0_815, %c0_816], %908 {strides = array<i32>} : memref<16x32x3xf32, #tpu.memory_space<vmem>>, vector<1x32x3xf32>,
    %909 = math.tanh %904 : vector<32x3xf32>
    %c15_817 = arith.constant 15 : index
    %c0_818 = arith.constant 0 : index
    %c0_819 = arith.constant 0 : index
    %910 = vector.load %arg14[%c15_817, %c0_818, %c0_819] : memref<16x32x3xf32, #tpu.memory_space<vmem>>, vector<1x32x3xf32>
    %911 = vector.shape_cast %910 : vector<1x32x3xf32> to vector<32x3xf32>
    %912 = vector.shape_cast %909 : vector<32x3xf32> to vector<1x32x3xf32>
    tpu.vector_store %arg14[%c15_817, %c0_818, %c0_819], %912 {strides = array<i32>} : memref<16x32x3xf32, #tpu.memory_space<vmem>>, vector<1x32x3xf32>,
    return
  }
}

</mosaic_0001>

<bundles_post_ra>
// kernel: generator_forward.1
= control target key start
LH: loop header
LB: loop body
LE: loop exit
PB: predicated region body
PF: predicated region fallthrough
CT: control target
= control target key end

     0   :  { %19 = vsyncpa [#allocation8], 0  ;;  %s14285_s0 = inlined_call_operand.hbm [shape: f32[2,16], index: 0, kind: input, shape index: {}]   ;;  %s14286_s1 = inlined_call_operand.hbm [shape: f32[16,16,512], index: 1, kind: input, shape index: {}]   ;;  %s14287_s2 = inlined_call_operand.hbm [shape: f32[512,1024], index: 2, kind: input, shape index: {}]   ;;  %s14288_s3 = inlined_call_operand.hbm [shape: f32[256,512], index: 3, kind: input, shape index: {}]   ;;  %s14289_s4 = inlined_call_operand.hbm [shape: f32[128,512], index: 4, kind: input, shape index: {}]   ;;  %s14290_s5 = inlined_call_operand.hbm [shape: f32[64,512], index: 5, kind: input, shape index: {}]   ;;  %s14291_s6 = inlined_call_operand.hbm [shape: f32[1,512], index: 6, kind: input, shape index: {}]   ;;  %s14292_s7 = inlined_call_operand.hbm [shape: f32[1,512], index: 7, kind: input, shape index: {}]   ;;  %s14293_s8 = inlined_call_operand.hbm [shape: f32[1,256], index: 8, kind: input, shape index: {}]   ;;  %s14294_s9 = inlined_call_operand.hbm [shape: f32[1,256], index: 9, kind: input, shape index: {}]   ;;  %s14295_s10 = inlined_call_operand.hbm [shape: f32[1,128], index: 10, kind: input, shape index: {}]   ;;  %s14296_s11 = inlined_call_operand.hbm [shape: f32[1,128], index: 11, kind: input, shape index: {}]   ;;  %s14297_s12 = inlined_call_operand.hbm [shape: f32[1,64], index: 12, kind: input, shape index: {}]   ;;  %s14298_s13 = inlined_call_operand.hbm [shape: f32[1,64], index: 13, kind: input, shape index: {}]   ;;  %s14299_s14 = inlined_call_operand.vmem [shape: f32[16,32,3], index: 14, kind: output, shape index: {}]  }
   0x1   :  { %20 = vsyncpa [#allocation10], 0 }
   0x2   :  { %21 = vsyncpa [#allocation13], 0 }
   0x3   :  { %22 = vsyncpa [#allocation16], 0 }
   0x4   :  { %23 = vsyncpa [#allocation19], 0 }
   0x5   :  { %24 = vsyncpa [#allocation22], 0 }
   0x6   :  { %25 = vsyncpa [#allocation25], 0 }
   0x7   :  { %26 = vsyncpa [#allocation28], 0  ;;  %s11991_s29 = smov [#allocation9]   ;;  %s11667_s17 = scalar_lea.hbm %s14286_s1, 16384 }
   0x8   :  { %s42_s30 = sshll.u32 %s11991_s29, 4  ;;  %p11668_p0 = scmp.ne.s32.totalorder %s14286_s1, %s11667_s17  ;;  %s43_s30 = int_to_ptr.vmem [resolvable:$true] %s42_s30 }
   0x9   :  { %p11671_p1 = scmp.lt.u32.totalorder %s11667_s17, %s14286_s1 }
   0xb   :  { %p11673_p2 = pnand %p11671_p1, %p11668_p0 }
   0xd   :  { %11676 = shalt.err (!%p11673_p2)
}
   0xe   :  { %s11677_s22 = scalar_lea.vmem %s43_s30, 16384  ;;  %p11682_p4 = scmp.lt.s32.totalorder %s43_s30, %s43_s30 }
   0xf   :  { %p11678_p3 = scmp.ne.s32.totalorder %s43_s30, %s11677_s22  ;;  %p11683_p5 = scmp.lt.s32.totalorder %s11677_s22, %s11677_s22 }
  0x11   :  { %p11684_p6 = por %p11683_p5, %p11682_p4 }
  0x13   :  { %p11685_p7 = pnand %p11684_p6, %p11678_p3 }
  0x15   :  { %11688 = shalt.err (!%p11685_p7)
}
  0x16   :  { %s11992_s23 = smov 512   ;;  %s11993_s24 = smov 32  }
  0x17   :  { %48 = dma.hbm_to_vmem [thread:$0]  %s14286_s1, 16384, %s43_s30, [#allocation10], %s11992_s23, %s11992_s23, %s11993_s24  }
  0x18   :  { %s11994_s27 = smov [#allocation12]   ;;  %s11995_s29 = smov [#allocation15]  }
  0x19   :  { %s66_s28 = sshll.u32 %s11994_s27, 4  ;;  %s90_s15 = sshll.u32 %s11995_s29, 4  ;;  %s67_s28 = int_to_ptr.vmem [resolvable:$true] %s66_s28  ;;  %s91_s15 = int_to_ptr.vmem [resolvable:$true] %s90_s15 }
  0x1a   :  { %s11689_s18 = scalar_lea.hbm %s14288_s3, 16384 }
  0x1b   :  { %p11690_p8 = scmp.ne.s32.totalorder %s14288_s3, %s11689_s18  ;;  %p11693_p9 = scmp.lt.u32.totalorder %s11689_s18, %s14288_s3 }
  0x1d   :  { %p11695_p10 = pnand %p11693_p9, %p11690_p8 }
  0x1f   :  { %11698 = shalt.err (!%p11695_p10)
}
  0x20   :  { %s11699_s1 = scalar_lea.vmem %s67_s28, 16384  ;;  %p11704_p12 = scmp.lt.s32.totalorder %s67_s28, %s67_s28 }
  0x21   :  { %p11700_p11 = scmp.ne.s32.totalorder %s67_s28, %s11699_s1  ;;  %p11705_p13 = scmp.lt.s32.totalorder %s11699_s1, %s11699_s1 }
  0x23   :  { %p11706_p0 = por %p11705_p13, %p11704_p12 }
  0x25   :  { %p11707_p1 = pnand %p11706_p0, %p11700_p11 }
  0x27   :  { %11710 = shalt.err (!%p11707_p1)
}
  0x28   :  { %72 = dma.hbm_to_vmem [thread:$0]  %s14288_s3, 16384, %s67_s28, [#allocation13], %s11992_s23, %s11992_s23, %s11993_s24  }
  0x29   :  { %s11711_s29 = scalar_lea.hbm %s14290_s5, 4096 }
  0x2a   :  { %p11712_p2 = scmp.ne.s32.totalorder %s14290_s5, %s11711_s29  ;;  %p11715_p3 = scmp.lt.u32.totalorder %s11711_s29, %s14290_s5 }
  0x2c   :  { %p11717_p4 = pnand %p11715_p3, %p11712_p2 }
  0x2e   :  { %11720 = shalt.err (!%p11717_p4)
}
  0x2f   :  { %s11721_s20 = scalar_lea.vmem %s91_s15, 4096  ;;  %p11726_p6 = scmp.lt.s32.totalorder %s91_s15, %s91_s15 }
  0x30   :  { %p11722_p5 = scmp.ne.s32.totalorder %s91_s15, %s11721_s20  ;;  %p11727_p7 = scmp.lt.s32.totalorder %s11721_s20, %s11721_s20 }
  0x32   :  { %p11728_p8 = por %p11727_p7, %p11726_p6 }
  0x34   :  { %p11729_p9 = pnand %p11728_p8, %p11722_p5 }
  0x36   :  { %11732 = shalt.err (!%p11729_p9)
}
  0x37   :  { %96 = dma.hbm_to_vmem [thread:$0]  %s14290_s5, 4096, %s91_s15, [#allocation16], %s11992_s23, %s11992_s23, %s11993_s24  }
  0x38   :  { %s11996_s21 = smov [#allocation18]   ;;  %s11997_s1 = smov [#allocation21]  }
  0x39   :  { %s113_s22 = sshll.u32 %s11996_s21, 4  ;;  %s133_s30 = sshll.u32 %s11997_s1, 4  ;;  %s114_s22 = int_to_ptr.vmem [resolvable:$true] %s113_s22  ;;  %s134_s30 = int_to_ptr.vmem [resolvable:$true] %s133_s30 }
  0x3a   :  { %s11733_s27 = scalar_lea.hbm %s14292_s7, 64 }
  0x3b   :  { %p11734_p10 = scmp.ne.s32.totalorder %s14292_s7, %s11733_s27  ;;  %p11737_p11 = scmp.lt.u32.totalorder %s11733_s27, %s14292_s7 }
  0x3d   :  { %p11739_p12 = pnand %p11737_p11, %p11734_p10 }
  0x3f   :  { %11742 = shalt.err (!%p11739_p12)
}
  0x40   :  { %s11743_s5 = scalar_lea.vmem %s114_s22, 64  ;;  %p11748_p0 = scmp.lt.s32.totalorder %s114_s22, %s114_s22 }
  0x41   :  { %p11744_p13 = scmp.ne.s32.totalorder %s114_s22, %s11743_s5  ;;  %p11749_p1 = scmp.lt.s32.totalorder %s11743_s5, %s11743_s5 }
  0x43   :  { %p11750_p2 = por %p11749_p1, %p11748_p0 }
  0x45   :  { %p11751_p3 = pnand %p11750_p2, %p11744_p13 }
  0x47   :  { %11754 = shalt.err (!%p11751_p3)
}
  0x48   :  { %116 = dma.hbm_to_vmem [thread:$0]  %s14292_s7, 64, %s114_s22, [#allocation19]  }
  0x49   :  { %s11755_s28 = scalar_lea.hbm %s14294_s9, 32 }
  0x4a   :  { %p11756_p4 = scmp.ne.s32.totalorder %s14294_s9, %s11755_s28  ;;  %p11759_p5 = scmp.lt.u32.totalorder %s11755_s28, %s14294_s9 }
  0x4c   :  { %p11761_p6 = pnand %p11759_p5, %p11756_p4 }
  0x4e   :  { %11764 = shalt.err (!%p11761_p6)
}
  0x4f   :  { %s11765_s27 = scalar_lea.vmem %s134_s30, 32  ;;  %p11770_p8 = scmp.lt.s32.totalorder %s134_s30, %s134_s30 }
  0x50   :  { %p11766_p7 = scmp.ne.s32.totalorder %s134_s30, %s11765_s27  ;;  %p11771_p9 = scmp.lt.s32.totalorder %s11765_s27, %s11765_s27 }
  0x52   :  { %p11772_p10 = por %p11771_p9, %p11770_p8 }
  0x54   :  { %p11773_p11 = pnand %p11772_p10, %p11766_p7 }
  0x56   :  { %11776 = shalt.err (!%p11773_p11)
}
  0x57   :  { %136 = dma.hbm_to_vmem [thread:$0]  %s14294_s9, 32, %s134_s30, [#allocation22]  }
  0x58   :  { %s11998_s29 = smov [#allocation24]   ;;  %s11999_s17 = smov [#allocation7]  }
  0x59   :  { %s153_s16 = sshll.u32 %s11998_s29, 4  ;;  %s33_s18 = sshll.u32 %s11999_s17, 4  ;;  %s154_s16 = int_to_ptr.vmem [resolvable:$true] %s153_s16  ;;  %s34_s18 = int_to_ptr.vmem [resolvable:$true] %s33_s18 }
  0x5a   :  { %s11777_s19 = scalar_lea.hbm %s14296_s11, 16 }
  0x5b   :  { %p11778_p12 = scmp.ne.s32.totalorder %s14296_s11, %s11777_s19  ;;  %p11781_p13 = scmp.lt.u32.totalorder %s11777_s19, %s14296_s11 }
  0x5d   :  { %p11783_p0 = pnand %p11781_p13, %p11778_p12 }
  0x5f   :  { %11786 = shalt.err (!%p11783_p0)
}
  0x60   :  { %s11787_s9 = scalar_lea.vmem %s154_s16, 16  ;;  %s11791_s30 = scalar_lea.vmem %s154_s16, 32 }
  0x61   :  { %p11788_p1 = scmp.ne.s32.totalorder %s154_s16, %s11787_s9  ;;  %p11792_p2 = scmp.lt.s32.totalorder %s154_s16, %s154_s16 }
  0x62   :  { %p11793_p3 = scmp.lt.s32.totalorder %s11791_s30, %s11787_s9 }
  0x64   :  { %p11794_p4 = por %p11793_p3, %p11792_p2 }
  0x66   :  { %p11795_p5 = pnand %p11794_p4, %p11788_p1 }
  0x68   :  { %11798 = shalt.err (!%p11795_p5)
}
  0x69   :  { %156 = dma.hbm_to_vmem [thread:$0]  %s14296_s11, 16, %s154_s16, [#allocation25]  }
  0x6a   :  { %s11799_s7 = scalar_lea.hbm %s14285_s0, 32 }
  0x6b   :  { %p11800_p6 = scmp.ne.s32.totalorder %s14285_s0, %s11799_s7  ;;  %p11803_p7 = scmp.lt.u32.totalorder %s11799_s7, %s14285_s0 }
  0x6d   :  { %p11805_p8 = pnand %p11803_p7, %p11800_p6 }
  0x6f   :  { %11808 = shalt.err (!%p11805_p8)
}
  0x70   :  { %s11809_s15 = scalar_lea.vmem %s34_s18, 32  ;;  %p11814_p10 = scmp.lt.s32.totalorder %s34_s18, %s34_s18 }
  0x71   :  { %p11810_p9 = scmp.ne.s32.totalorder %s34_s18, %s11809_s15  ;;  %p11815_p11 = scmp.lt.s32.totalorder %s11809_s15, %s11809_s15 }
  0x73   :  { %p11816_p12 = por %p11815_p11, %p11814_p10 }
  0x75   :  { %p11817_p13 = pnand %p11816_p12, %p11810_p9 }
  0x77   :  { %11820 = shalt.err (!%p11817_p13)
}
  0x78   :  { %36 = dma.hbm_to_vmem [thread:$0]  %s14285_s0, 32, %s34_s18, [#allocation8]  }
  0x79   :  { %s12000_s19 = smov [#allocation11]   ;;  %s11821_s21 = scalar_lea.hbm %s14287_s2, 65536 }
  0x7a   :  { %s54_s20 = sshll.u32 %s12000_s19, 4  ;;  %p11822_p0 = scmp.ne.s32.totalorder %s14287_s2, %s11821_s21  ;;  %s55_s20 = int_to_ptr.vmem [resolvable:$true] %s54_s20 }
  0x7b   :  { %p11825_p1 = scmp.lt.u32.totalorder %s11821_s21, %s14287_s2 }
  0x7d   :  { %p11827_p2 = pnand %p11825_p1, %p11822_p0 }
  0x7f   :  { %11830 = shalt.err (!%p11827_p2)
}
  0x80   :  { %s11831_s26 = scalar_lea.vmem %s55_s20, 65536  ;;  %p11836_p4 = scmp.lt.s32.totalorder %s55_s20, %s55_s20 }
  0x81   :  { %p11832_p3 = scmp.ne.s32.totalorder %s55_s20, %s11831_s26  ;;  %p11837_p5 = scmp.lt.s32.totalorder %s11831_s26, %s11831_s26 }
  0x83   :  { %p11838_p6 = por %p11837_p5, %p11836_p4 }
  0x85   :  { %p11839_p7 = pnand %p11838_p6, %p11832_p3 }
  0x87   :  { %11842 = shalt.err (!%p11839_p7)
}
  0x88   :  { %s12001_s0 = smov 1024   ;;  %s12002_s18 = smov 64  }
  0x89   :  { %60 = dma.hbm_to_vmem [thread:$0]  %s14287_s2, 65536, %s55_s20, [#allocation10], %s12001_s0, %s12001_s0, %s12002_s18  }
  0x8a   :  { %s12003_s22 = smov [#allocation14]   ;;  %s12004_s17 = smov [#allocation17]  }
  0x8b   :  { %s78_s29 = sshll.u32 %s12003_s22, 4  ;;  %s103_s5 = sshll.u32 %s12004_s17, 4  ;;  %s79_s29 = int_to_ptr.vmem [resolvable:$true] %s78_s29  ;;  %s104_s5 = int_to_ptr.vmem [resolvable:$true] %s103_s5 }
  0x8c   :  { %s11843_s16 = scalar_lea.hbm %s14289_s4, 8192 }
  0x8d   :  { %p11844_p8 = scmp.ne.s32.totalorder %s14289_s4, %s11843_s16  ;;  %p11847_p9 = scmp.lt.u32.totalorder %s11843_s16, %s14289_s4 }
  0x8f   :  { %p11849_p10 = pnand %p11847_p9, %p11844_p8 }
  0x91   :  { %11852 = shalt.err (!%p11849_p10)
}
  0x92   :  { %s11853_s2 = scalar_lea.vmem %s79_s29, 8192  ;;  %p11858_p12 = scmp.lt.s32.totalorder %s79_s29, %s79_s29 }
  0x93   :  { %p11854_p11 = scmp.ne.s32.totalorder %s79_s29, %s11853_s2  ;;  %p11859_p13 = scmp.lt.s32.totalorder %s11853_s2, %s11853_s2 }
  0x95   :  { %p11860_p0 = por %p11859_p13, %p11858_p12 }
  0x97   :  { %p11861_p1 = pnand %p11860_p0, %p11854_p11 }
  0x99   :  { %11864 = shalt.err (!%p11861_p1)
}
  0x9a   :  { %84 = dma.hbm_to_vmem [thread:$0]  %s14289_s4, 8192, %s79_s29, [#allocation13], %s11992_s23, %s11992_s23, %s11993_s24  }
  0x9b   :  { %s11865_s25 = scalar_lea.hbm %s14291_s6, 64 }
  0x9c   :  { %p11866_p2 = scmp.ne.s32.totalorder %s14291_s6, %s11865_s25  ;;  %p11869_p3 = scmp.lt.u32.totalorder %s11865_s25, %s14291_s6 }
  0x9e   :  { %p11871_p4 = pnand %p11869_p3, %p11866_p2 }
  0xa0   :  { %11874 = shalt.err (!%p11871_p4)
}
  0xa1   :  { %s11875_s7 = scalar_lea.vmem %s104_s5, 64  ;;  %p11880_p6 = scmp.lt.s32.totalorder %s104_s5, %s104_s5 }
  0xa2   :  { %p11876_p5 = scmp.ne.s32.totalorder %s104_s5, %s11875_s7  ;;  %p11881_p7 = scmp.lt.s32.totalorder %s11875_s7, %s11875_s7 }
  0xa4   :  { %p11882_p8 = por %p11881_p7, %p11880_p6 }
  0xa6   :  { %p11883_p9 = pnand %p11882_p8, %p11876_p5 }
  0xa8   :  { %11886 = shalt.err (!%p11883_p9)
}
  0xa9   :  { %106 = dma.hbm_to_vmem [thread:$0]  %s14291_s6, 64, %s104_s5, [#allocation16]  }
  0xaa   :  { %s12005_s24 = smov [#allocation20]   ;;  %s12006_s29 = smov [#allocation23]  }
  0xab   :  { %s123_s22 = sshll.u32 %s12005_s24, 4  ;;  %s143_s17 = sshll.u32 %s12006_s29, 4  ;;  %s124_s22 = int_to_ptr.vmem [resolvable:$true] %s123_s22  ;;  %s144_s17 = int_to_ptr.vmem [resolvable:$true] %s143_s17 }
  0xac   :  { %s11887_s16 = scalar_lea.hbm %s14293_s8, 32 }
  0xad   :  { %p11888_p10 = scmp.ne.s32.totalorder %s14293_s8, %s11887_s16  ;;  %p11891_p11 = scmp.lt.u32.totalorder %s11887_s16, %s14293_s8 }
  0xaf   :  { %p11893_p12 = pnand %p11891_p11, %p11888_p10 }
  0xb1   :  { %11896 = shalt.err (!%p11893_p12)
}
  0xb2   :  { %s11897_s6 = scalar_lea.vmem %s124_s22, 32  ;;  %p11902_p0 = scmp.lt.s32.totalorder %s124_s22, %s124_s22 }
  0xb3   :  { %p11898_p13 = scmp.ne.s32.totalorder %s124_s22, %s11897_s6  ;;  %p11903_p1 = scmp.lt.s32.totalorder %s11897_s6, %s11897_s6 }
  0xb5   :  { %p11904_p2 = por %p11903_p1, %p11902_p0 }
  0xb7   :  { %p11905_p3 = pnand %p11904_p2, %p11898_p13 }
  0xb9   :  { %11908 = shalt.err (!%p11905_p3)
}
  0xba   :  { %126 = dma.hbm_to_vmem [thread:$0]  %s14293_s8, 32, %s124_s22, [#allocation19]  }
  0xbb   :  { %s11909_s30 = scalar_lea.hbm %s14295_s10, 16 }
  0xbc   :  { %p11910_p4 = scmp.ne.s32.totalorder %s14295_s10, %s11909_s30  ;;  %p11913_p5 = scmp.lt.u32.totalorder %s11909_s30, %s14295_s10 }
  0xbe   :  { %p11915_p6 = pnand %p11913_p5, %p11910_p4 }
  0xc0   :  { %11918 = shalt.err (!%p11915_p6)
}
  0xc1   :  { %s11919_s18 = scalar_lea.vmem %s144_s17, 16  ;;  %s11923_s27 = scalar_lea.vmem %s144_s17, 32 }
  0xc2   :  { %p11920_p7 = scmp.ne.s32.totalorder %s144_s17, %s11919_s18  ;;  %p11924_p8 = scmp.lt.s32.totalorder %s144_s17, %s144_s17 }
  0xc3   :  { %p11925_p9 = scmp.lt.s32.totalorder %s11923_s27, %s11919_s18 }
  0xc5   :  { %p11926_p10 = por %p11925_p9, %p11924_p8 }
  0xc7   :  { %p11927_p11 = pnand %p11926_p10, %p11920_p7 }
  0xc9   :  { %11930 = shalt.err (!%p11927_p11)
}
  0xca   :  { %146 = dma.hbm_to_vmem [thread:$0]  %s14295_s10, 16, %s144_s17, [#allocation22]  }
  0xcb   :  { %s12007_s4 = smov [#allocation26]   ;;  %s12008_s24 = smov [#allocation27]  }
  0xcc   :  { %s163_s23 = sshll.u32 %s12007_s4, 4  ;;  %s173_s22 = sshll.u32 %s12008_s24, 4  ;;  %s164_s23 = int_to_ptr.vmem [resolvable:$true] %s163_s23  ;;  %s174_s22 = int_to_ptr.vmem [resolvable:$true] %s173_s22 }
  0xcd   :  { %s11931_s11 = scalar_lea.hbm %s14297_s12, 16 }
  0xce   :  { %p11932_p12 = scmp.ne.s32.totalorder %s14297_s12, %s11931_s11  ;;  %p11935_p13 = scmp.lt.u32.totalorder %s11931_s11, %s14297_s12 }
  0xd0   :  { %p11937_p0 = pnand %p11935_p13, %p11932_p12 }
  0xd2   :  { %11940 = shalt.err (!%p11937_p0)
}
  0xd3   :  { %s11941_s10 = scalar_lea.vmem %s164_s23, 16  ;;  %s11945_s17 = scalar_lea.vmem %s164_s23, 32 }
  0xd4   :  { %p11942_p1 = scmp.ne.s32.totalorder %s164_s23, %s11941_s10  ;;  %p11946_p2 = scmp.lt.s32.totalorder %s164_s23, %s164_s23 }
  0xd5   :  { %p11947_p3 = scmp.lt.s32.totalorder %s11945_s17, %s11941_s10 }
  0xd7   :  { %p11948_p4 = por %p11947_p3, %p11946_p2 }
  0xd9   :  { %p11949_p5 = pnand %p11948_p4, %p11942_p1 }
  0xdb   :  { %11952 = shalt.err (!%p11949_p5)
}
  0xdc   :  { %166 = dma.hbm_to_vmem [thread:$0]  %s14297_s12, 16, %s164_s23, [#allocation25]  }
  0xdd   :  { %s11953_s20 = scalar_lea.hbm %s14298_s13, 16 }
  0xde   :  { %p11954_p6 = scmp.ne.s32.totalorder %s14298_s13, %s11953_s20  ;;  %p11957_p7 = scmp.lt.u32.totalorder %s11953_s20, %s14298_s13 }
  0xe0   :  { %p11959_p8 = pnand %p11957_p7, %p11954_p6 }
  0xe2   :  { %11962 = shalt.err (!%p11959_p8)
}
  0xe3   :  { %s11963_s26 = scalar_lea.vmem %s174_s22, 16  ;;  %s11967_s0 = scalar_lea.vmem %s174_s22, 32 }
  0xe4   :  { %p11964_p9 = scmp.ne.s32.totalorder %s174_s22, %s11963_s26  ;;  %p11968_p10 = scmp.lt.s32.totalorder %s174_s22, %s174_s22 }
  0xe5   :  { %p11969_p11 = scmp.lt.s32.totalorder %s11967_s0, %s11963_s26 }
  0xe7   :  { %p11970_p12 = por %p11969_p11, %p11968_p10 }
  0xe9   :  { %p11971_p13 = pnand %p11970_p12, %p11964_p9 }
  0xeb   :  { %11974 = shalt.err (!%p11971_p13)
}
  0xec   :  { %176 = dma.hbm_to_vmem [thread:$0]  %s14298_s13, 16, %s174_s22, [#allocation28]  }
  0xed   :  { %11975 = dma.done.wait [#allocation8], 32  }
  0xee   :  { %11976 = vsyncadd [#allocation8], 4294967264 }
  0xef   :  { %11977 = dma.done.wait [#allocation10], 81920  }
  0xf0   :  { %11978 = vsyncadd [#allocation10], 4294885376 }
  0xf1   :  { %11979 = dma.done.wait [#allocation13], 24576  }
  0xf2   :  { %11980 = vsyncadd [#allocation13], 4294942720 }
  0xf3   :  { %11981 = dma.done.wait [#allocation16], 4160  }
  0xf4   :  { %11982 = vsyncadd [#allocation16], 4294963136 }
  0xf5   :  { %11983 = dma.done.wait [#allocation19], 96  }
  0xf6   :  { %11984 = vsyncadd [#allocation19], 4294967200 }
  0xf7   :  { %11985 = dma.done.wait [#allocation22], 48  }
  0xf8   :  { %11986 = vsyncadd [#allocation22], 4294967248 }
  0xf9   :  { %11987 = dma.done.wait [#allocation25], 32  }
  0xfa   :  { %11988 = vsyncadd [#allocation25], 4294967264 }
  0xfb   :  { %11989 = dma.done.wait [#allocation28], 16  }
  0xfc   :  { %11990 = vsyncadd [#allocation28], 4294967280  ;;  %v14300_v0 = vmov 0.0   ;;  %v221_v1 = vld [vmem:[#allocation9 + $0x8] sm:$0xff]  ;;  %v223_v3 = vld [vmem:[#allocation9 + $0x18] sm:$0xff]  ;;  %vm228_vm0 = vcmask 130048  }
  0xfd   :  { %296 = vmatprep.mubr.f32.mxu0 %v14300_v0  ;;  %4414 = vst [vmem:[#allocation5] sm:$0x3] %v14300_v0  ;;  %4415 = vst [vmem:[#allocation5 + $0x8] sm:$0x3] %v14300_v0  ;;  %367 = vmatprep.mubr.f32.mxu1 %v14300_v0  ;;  %v225_v2 = vld [vmem:[#allocation9 + $0x28] sm:$0xff]  ;;  %v227_v5 = vld [vmem:[#allocation9 + $0x38] sm:$0xff] }
  0xfe   :  { %4510 = vst [vmem:[#allocation6 + $0x30] sm:$0xc0] %v14300_v0  ;;  %4511 = vst [vmem:[#allocation6 + $0x38] sm:$0xc0] %v14300_v0  ;;  %v9970_v4 = vpack.c.bf16 %v225_v2, %v221_v1  ;;  %v220_v6 = vld [vmem:[#allocation9] sm:$0xff]  ;;  %v9974_v8 = vpack.c.bf16 %v227_v5, %v223_v3  ;;  %v222_v10 = vld [vmem:[#allocation9 + $0x10] sm:$0xff] }
  0xff   :  { %v224_v7 = vld [vmem:[#allocation9 + $0x20] sm:$0xff]  ;;  %v226_v11 = vld [vmem:[#allocation9 + $0x30] sm:$0xff]  ;;  %v12272_v12 = vld [vmem:[#allocation7] sm:$0x3]  ;;  %vm4479_vm1 = vcmask 1045504   ;;  %vm4432_vm2 = vcmask 1041408  }
 0x100   :  { %v9972_v9 = vpack.c.bf16 %v224_v7, %v220_v6  ;;  %9971 = vmatprep.subr.bf16.mxu0 %v9970_v4  ;;  %v9976_v13 = vpack.c.bf16 %v226_v11, %v222_v10  ;;  %v380_v14 = vld [vmem:[#allocation9 + $0x48] sm:$0xff]  ;;  %v382_v16 = vld [vmem:[#allocation9 + $0x58] sm:$0xff]  ;;  %9975 = vmatprep.subr.bf16.mxu1 %v9974_v8  ;;  %v379_v19 = vld [vmem:[#allocation9 + $0x40] sm:$0xff]  ;;  %vm6899_vm3 = vcmask 523270   ;;  %vm6848_vm4 = vcmask 517120  }
 0x101   :  { %v384_v15 = vld [vmem:[#allocation9 + $0x68] sm:$0xff]  ;;  %v386_v18 = vld [vmem:[#allocation9 + $0x78] sm:$0xff]  ;;  %v383_v20 = vld [vmem:[#allocation9 + $0x60] sm:$0xff]  ;;  %vm6871_vm5 = vcmask 523264   ;;  %vm6897_vm6 = vcmask 521216   ;;  %vm9465_vm7 = vcmask 23558  }
 0x102   :  { %9973 = vmatpush1.bf16.msra.mxu0 %v9972_v9  ;;  %v9978_v17 = vpack.c.bf16 %v384_v15, %v380_v14  ;;  %9977 = vmatpush1.bf16.msra.mxu1 %v9976_v13  ;;  %v9982_v21 = vpack.c.bf16 %v386_v18, %v382_v16  ;;  %v9980_v22 = vpack.c.bf16 %v383_v20, %v379_v19  ;;  %v381_v23 = vld [vmem:[#allocation9 + $0x50] sm:$0xff]  ;;  %v547_v25 = vld [vmem:[#allocation9 + $0x88] sm:$0xff]  ;;  %v549_v28 = vld [vmem:[#allocation9 + $0x98] sm:$0xff]  ;;  %vm6869_vm8 = vcmask 523266  }
 0x103   :  { %v385_v24 = vld [vmem:[#allocation9 + $0x70] sm:$0xff]  ;;  %v551_v27 = vld [vmem:[#allocation9 + $0xa8] sm:$0xff]  ;;  %v553_v29 = vld [vmem:[#allocation9 + $0xb8] sm:$0xff]  ;;  %vm9414_vm9 = vcmask 17408   ;;  %vm9437_vm10 = vcmask 23552   ;;  %vm9463_vm11 = vcmask 21504  }
 0x104   :  { %9979 = vmatprep.subr.bf16.mxu0 %v9978_v17  ;;  %v9984_v26 = vpack.c.bf16 %v385_v24, %v381_v23  ;;  %9983 = vmatprep.subr.bf16.mxu1 %v9982_v21  ;;  %v9986_v30 = vpack.c.bf16 %v551_v27, %v547_v25  ;;  %v9990_v31 = vpack.c.bf16 %v553_v29, %v549_v28  ;;  %v546_v32 = vld [vmem:[#allocation9 + $0x80] sm:$0xff]  ;;  %v548_v34 = vld [vmem:[#allocation9 + $0x90] sm:$0xff]  ;;  %v714_v37 = vld [vmem:[#allocation9 + $0xc8] sm:$0xff]  ;;  %vm9435_vm12 = vcmask 23554  }
 0x105   :  { %9814 = vmatmul.mubr.msk.f32.vlgmr.msra.gmra.mrb[0].mxu0 %vm228_vm0, %v12272_v12  ;;  %v550_v33 = vld [vmem:[#allocation9 + $0xa0] sm:$0xff]  ;;  %9815 = vmatmul.mubr.msk.f32.vlgmr.msra.gmra.mrb[0].mxu1 %vm228_vm0, %v12272_v12  ;;  %v552_v36 = vld [vmem:[#allocation9 + $0xb0] sm:$0xff]  ;;  %v718_v38 = vld [vmem:[#allocation9 + $0xe8] sm:$0xff] }
 0x106   :  { %9981 = vmatpush1.bf16.msra.mxu0 %v9980_v22  ;;  %v9988_v35 = vpack.c.bf16 %v550_v33, %v546_v32  ;;  %9985 = vmatpush1.bf16.msra.mxu1 %v9984_v26  ;;  %v9992_v39 = vpack.c.bf16 %v552_v36, %v548_v34  ;;  %v716_v40 = vld [vmem:[#allocation9 + $0xd8] sm:$0xff]  ;;  %v713_v42 = vld [vmem:[#allocation9 + $0xc0] sm:$0xff]  ;;  %v9994_v43 = vpack.c.bf16 %v718_v38, %v714_v37  ;;  %v715_v45 = vld [vmem:[#allocation9 + $0xd0] sm:$0xff] }
 0x107   :  { %451 = vmatprep.mubr.f32.mxu0 %v14300_v0  ;;  %v720_v41 = vld [vmem:[#allocation9 + $0xf8] sm:$0xff]  ;;  %522 = vmatprep.mubr.f32.mxu1 %v14300_v0  ;;  %v717_v44 = vld [vmem:[#allocation9 + $0xe0] sm:$0xff]  ;;  %v719_v46 = vld [vmem:[#allocation9 + $0xf0] sm:$0xff] }
 0x108   :  { %9987 = vmatprep.subr.bf16.mxu0 %v9986_v30  ;;  %9991 = vmatprep.subr.bf16.mxu1 %v9990_v31  ;;  %v9998_v47 = vpack.c.bf16 %v720_v41, %v716_v40  ;;  %v881_v48 = vld [vmem:[#allocation9 + $0x108] sm:$0xff]  ;;  %v9996_v50 = vpack.c.bf16 %v717_v44, %v713_v42  ;;  %v883_v51 = vld [vmem:[#allocation9 + $0x118] sm:$0xff]  ;;  %v10000_v53 = vpack.c.bf16 %v719_v46, %v715_v45  ;;  %v880_v54 = vld [vmem:[#allocation9 + $0x100] sm:$0xff] }
 0x109   :  { %9816 = vmatmul.mubr.msk.f32.vlgmr.msra.gmra.mrb[2].mxu0 %vm228_vm0, %v12272_v12  ;;  %v885_v49 = vld [vmem:[#allocation9 + $0x128] sm:$0xff]  ;;  %9817 = vmatmul.mubr.msk.f32.vlgmr.msra.gmra.mrb[2].mxu1 %vm228_vm0, %v12272_v12  ;;  %v887_v52 = vld [vmem:[#allocation9 + $0x138] sm:$0xff]  ;;  %v884_v55 = vld [vmem:[#allocation9 + $0x120] sm:$0xff] }
 0x10a   :  { %9989 = vmatpush1.bf16.msra.mxu0 %v9988_v35  ;;  %9993 = vmatpush1.bf16.msra.mxu1 %v9992_v39  ;;  %v10002_v56 = vpack.c.bf16 %v885_v49, %v881_v48  ;;  %v882_v57 = vld [vmem:[#allocation9 + $0x110] sm:$0xff]  ;;  %v10006_v59 = vpack.c.bf16 %v887_v52, %v883_v51  ;;  %v1036_v60 = vld [vmem:[#allocation9 + $0x148] sm:$0xff]  ;;  %v10004_v62 = vpack.c.bf16 %v884_v55, %v880_v54  ;;  %v1038_v63 = vld [vmem:[#allocation9 + $0x158] sm:$0xff] }
 0x10b   :  { %618 = vmatprep.mubr.f32.mxu0 %v14300_v0  ;;  %689 = vmatprep.mubr.f32.mxu1 %v14300_v0  ;;  %v886_v58 = vld [vmem:[#allocation9 + $0x130] sm:$0xff]  ;;  %v1040_v61 = vld [vmem:[#allocation9 + $0x168] sm:$0xff]  ;;  %v1042_v1 = vld [vmem:[#allocation9 + $0x178] sm:$0xff] }
 0x10c   :  { %9995 = vmatprep.subr.bf16.mxu0 %v9994_v43  ;;  %9999 = vmatprep.subr.bf16.mxu1 %v9998_v47  ;;  %v10008_v2 = vpack.c.bf16 %v886_v58, %v882_v57  ;;  %v1035_v3 = vld [vmem:[#allocation9 + $0x140] sm:$0xff]  ;;  %v10010_v5 = vpack.c.bf16 %v1040_v61, %v1036_v60  ;;  %v1037_v6 = vld [vmem:[#allocation9 + $0x150] sm:$0xff]  ;;  %v10014_v8 = vpack.c.bf16 %v1042_v1, %v1038_v63  ;;  %v1203_v9 = vld [vmem:[#allocation9 + $0x188] sm:$0xff] }
 0x10d   :  { %9818 = vmatmul.mubr.msk.f32.vlgmr.msra.gmra.mrb[4].mxu0 %vm228_vm0, %v12272_v12  ;;  %9819 = vmatmul.mubr.msk.f32.vlgmr.msra.gmra.mrb[4].mxu1 %vm228_vm0, %v12272_v12  ;;  %v1039_v4 = vld [vmem:[#allocation9 + $0x160] sm:$0xff]  ;;  %v1041_v7 = vld [vmem:[#allocation9 + $0x170] sm:$0xff]  ;;  %v1207_v10 = vld [vmem:[#allocation9 + $0x1a8] sm:$0xff] }
 0x10e   :  { %9997 = vmatpush1.bf16.msra.mxu0 %v9996_v50  ;;  %10001 = vmatpush1.bf16.msra.mxu1 %v10000_v53  ;;  %v10012_v11 = vpack.c.bf16 %v1039_v4, %v1035_v3  ;;  %v1205_v13 = vld [vmem:[#allocation9 + $0x198] sm:$0xff]  ;;  %v10016_v15 = vpack.c.bf16 %v1041_v7, %v1037_v6  ;;  %v1202_v16 = vld [vmem:[#allocation9 + $0x180] sm:$0xff]  ;;  %v10018_v18 = vpack.c.bf16 %v1207_v10, %v1203_v9  ;;  %v1204_v19 = vld [vmem:[#allocation9 + $0x190] sm:$0xff] }
 0x10f   :  { %785 = vmatprep.mubr.f32.mxu0 %v14300_v0  ;;  %856 = vmatprep.mubr.f32.mxu1 %v14300_v0  ;;  %v1209_v14 = vld [vmem:[#allocation9 + $0x1b8] sm:$0xff]  ;;  %v1206_v17 = vld [vmem:[#allocation9 + $0x1a0] sm:$0xff]  ;;  %v1208_v20 = vld [vmem:[#allocation9 + $0x1b0] sm:$0xff] }
 0x110   :  { %10003 = vmatprep.subr.bf16.mxu0 %v10002_v56  ;;  %10007 = vmatprep.subr.bf16.mxu1 %v10006_v59  ;;  %v10022_v21 = vpack.c.bf16 %v1209_v14, %v1205_v13  ;;  %v1370_v22 = vld [vmem:[#allocation9 + $0x1c8] sm:$0xff]  ;;  %v10020_v24 = vpack.c.bf16 %v1206_v17, %v1202_v16  ;;  %v1372_v25 = vld [vmem:[#allocation9 + $0x1d8] sm:$0xff]  ;;  %v10024_v27 = vpack.c.bf16 %v1208_v20, %v1204_v19  ;;  %v1369_v28 = vld [vmem:[#allocation9 + $0x1c0] sm:$0xff] }
 0x111   :  { %9820 = vmatmul.mubr.msk.f32.vlgmr.msra.gmra.mrb[6].mxu0 %vm228_vm0, %v12272_v12  ;;  %9821 = vmatmul.mubr.msk.f32.vlgmr.msra.gmra.mrb[6].mxu1 %vm228_vm0, %v12272_v12  ;;  %v1374_v23 = vld [vmem:[#allocation9 + $0x1e8] sm:$0xff]  ;;  %v1376_v26 = vld [vmem:[#allocation9 + $0x1f8] sm:$0xff]  ;;  %v1373_v29 = vld [vmem:[#allocation9 + $0x1e0] sm:$0xff] }
 0x112   :  { %10005 = vmatpush1.bf16.msra.mxu0 %v10004_v62  ;;  %10009 = vmatpush1.bf16.msra.mxu1 %v10008_v2  ;;  %v10026_v30 = vpack.c.bf16 %v1374_v23, %v1370_v22  ;;  %v1371_v31 = vld [vmem:[#allocation9 + $0x1d0] sm:$0xff]  ;;  %v10030_v33 = vpack.c.bf16 %v1376_v26, %v1372_v25  ;;  %v1537_v34 = vld [vmem:[#allocation9 + $0x208] sm:$0xff]  ;;  %v10028_v36 = vpack.c.bf16 %v1373_v29, %v1369_v28  ;;  %v1539_v37 = vld [vmem:[#allocation9 + $0x218] sm:$0xff] }
 0x113   :  { %952 = vmatprep.mubr.f32.mxu0 %v14300_v0  ;;  %1023 = vmatprep.mubr.f32.mxu1 %v14300_v0  ;;  %v1375_v32 = vld [vmem:[#allocation9 + $0x1f0] sm:$0xff]  ;;  %v1541_v35 = vld [vmem:[#allocation9 + $0x228] sm:$0xff]  ;;  %v1543_v38 = vld [vmem:[#allocation9 + $0x238] sm:$0xff] }
 0x114   :  { %10011 = vmatprep.subr.bf16.mxu0 %v10010_v5  ;;  %10015 = vmatprep.subr.bf16.mxu1 %v10014_v8  ;;  %v10032_v39 = vpack.c.bf16 %v1375_v32, %v1371_v31  ;;  %v1536_v40 = vld [vmem:[#allocation9 + $0x200] sm:$0xff]  ;;  %v10034_v42 = vpack.c.bf16 %v1541_v35, %v1537_v34  ;;  %v1538_v43 = vld [vmem:[#allocation9 + $0x210] sm:$0xff]  ;;  %v10038_v45 = vpack.c.bf16 %v1543_v38, %v1539_v37  ;;  %v1692_v46 = vld [vmem:[#allocation9 + $0x248] sm:$0xff] }
 0x115   :  { %9822 = vmatmul.mubr.msk.f32.vlgmr.msra.gmra.mrb[8].mxu0 %vm228_vm0, %v12272_v12  ;;  %9823 = vmatmul.mubr.msk.f32.vlgmr.msra.gmra.mrb[8].mxu1 %vm228_vm0, %v12272_v12  ;;  %v1540_v41 = vld [vmem:[#allocation9 + $0x220] sm:$0xff]  ;;  %v1542_v44 = vld [vmem:[#allocation9 + $0x230] sm:$0xff]  ;;  %v1696_v47 = vld [vmem:[#allocation9 + $0x268] sm:$0xff] }
 0x116   :  { %10013 = vmatpush1.bf16.msra.mxu0 %v10012_v11  ;;  %10017 = vmatpush1.bf16.msra.mxu1 %v10016_v15  ;;  %v10036_v48 = vpack.c.bf16 %v1540_v41, %v1536_v40  ;;  %v1694_v49 = vld [vmem:[#allocation9 + $0x258] sm:$0xff]  ;;  %v10040_v51 = vpack.c.bf16 %v1542_v44, %v1538_v43  ;;  %v1691_v52 = vld [vmem:[#allocation9 + $0x240] sm:$0xff]  ;;  %v10042_v54 = vpack.c.bf16 %v1696_v47, %v1692_v46  ;;  %v1693_v55 = vld [vmem:[#allocation9 + $0x250] sm:$0xff] }
 0x117   :  { %1107 = vmatprep.mubr.f32.mxu0 %v14300_v0  ;;  %1178 = vmatprep.mubr.f32.mxu1 %v14300_v0  ;;  %v1698_v50 = vld [vmem:[#allocation9 + $0x278] sm:$0xff]  ;;  %v1695_v53 = vld [vmem:[#allocation9 + $0x260] sm:$0xff]  ;;  %v1697_v56 = vld [vmem:[#allocation9 + $0x270] sm:$0xff] }
 0x118   :  { %10019 = vmatprep.subr.bf16.mxu0 %v10018_v18  ;;  %10023 = vmatprep.subr.bf16.mxu1 %v10022_v21  ;;  %v10046_v57 = vpack.c.bf16 %v1698_v50, %v1694_v49  ;;  %v1859_v58 = vld [vmem:[#allocation9 + $0x288] sm:$0xff]  ;;  %v10044_v60 = vpack.c.bf16 %v1695_v53, %v1691_v52  ;;  %v1861_v61 = vld [vmem:[#allocation9 + $0x298] sm:$0xff]  ;;  %v10048_v63 = vpack.c.bf16 %v1697_v56, %v1693_v55  ;;  %v1858_v1 = vld [vmem:[#allocation9 + $0x280] sm:$0xff] }
 0x119   :  { %9824 = vmatmul.mubr.msk.f32.vlgmr.msra.gmra.mrb[10].mxu0 %vm228_vm0, %v12272_v12  ;;  %9825 = vmatmul.mubr.msk.f32.vlgmr.msra.gmra.mrb[10].mxu1 %vm228_vm0, %v12272_v12  ;;  %v1863_v59 = vld [vmem:[#allocation9 + $0x2a8] sm:$0xff]  ;;  %v1865_v62 = vld [vmem:[#allocation9 + $0x2b8] sm:$0xff]  ;;  %v1862_v2 = vld [vmem:[#allocation9 + $0x2a0] sm:$0xff] }
 0x11a   :  { %10021 = vmatpush1.bf16.msra.mxu0 %v10020_v24  ;;  %10025 = vmatpush1.bf16.msra.mxu1 %v10024_v27  ;;  %v10050_v3 = vpack.c.bf16 %v1863_v59, %v1859_v58  ;;  %v1860_v4 = vld [vmem:[#allocation9 + $0x290] sm:$0xff]  ;;  %v10054_v6 = vpack.c.bf16 %v1865_v62, %v1861_v61  ;;  %v2026_v7 = vld [vmem:[#allocation9 + $0x2c8] sm:$0xff]  ;;  %v10052_v9 = vpack.c.bf16 %v1862_v2, %v1858_v1  ;;  %v2028_v10 = vld [vmem:[#allocation9 + $0x2d8] sm:$0xff] }
 0x11b   :  { %1274 = vmatprep.mubr.f32.mxu0 %v14300_v0  ;;  %1345 = vmatprep.mubr.f32.mxu1 %v14300_v0  ;;  %v1864_v5 = vld [vmem:[#allocation9 + $0x2b0] sm:$0xff]  ;;  %v2030_v8 = vld [vmem:[#allocation9 + $0x2e8] sm:$0xff]  ;;  %v2032_v11 = vld [vmem:[#allocation9 + $0x2f8] sm:$0xff] }
 0x11c   :  { %10027 = vmatprep.subr.bf16.mxu0 %v10026_v30  ;;  %10031 = vmatprep.subr.bf16.mxu1 %v10030_v33  ;;  %v10056_v13 = vpack.c.bf16 %v1864_v5, %v1860_v4  ;;  %v2025_v14 = vld [vmem:[#allocation9 + $0x2c0] sm:$0xff]  ;;  %v10058_v16 = vpack.c.bf16 %v2030_v8, %v2026_v7  ;;  %v2027_v17 = vld [vmem:[#allocation9 + $0x2d0] sm:$0xff]  ;;  %v10062_v19 = vpack.c.bf16 %v2032_v11, %v2028_v10  ;;  %v2193_v20 = vld [vmem:[#allocation9 + $0x308] sm:$0xff] }
 0x11d   :  { %9826 = vmatmul.mubr.msk.f32.vlgmr.msra.gmra.mrb[12].mxu0 %vm228_vm0, %v12272_v12  ;;  %9827 = vmatmul.mubr.msk.f32.vlgmr.msra.gmra.mrb[12].mxu1 %vm228_vm0, %v12272_v12  ;;  %v2029_v15 = vld [vmem:[#allocation9 + $0x2e0] sm:$0xff]  ;;  %v2031_v18 = vld [vmem:[#allocation9 + $0x2f0] sm:$0xff]  ;;  %v2197_v21 = vld [vmem:[#allocation9 + $0x328] sm:$0xff] }
 0x11e   :  { %10029 = vmatpush1.bf16.msra.mxu0 %v10028_v36  ;;  %10033 = vmatpush1.bf16.msra.mxu1 %v10032_v39  ;;  %v10060_v22 = vpack.c.bf16 %v2029_v15, %v2025_v14  ;;  %v2195_v23 = vld [vmem:[#allocation9 + $0x318] sm:$0xff]  ;;  %v10064_v25 = vpack.c.bf16 %v2031_v18, %v2027_v17  ;;  %v2192_v26 = vld [vmem:[#allocation9 + $0x300] sm:$0xff]  ;;  %v10066_v28 = vpack.c.bf16 %v2197_v21, %v2193_v20  ;;  %v2194_v29 = vld [vmem:[#allocation9 + $0x310] sm:$0xff] }
 0x11f   :  { %1441 = vmatprep.mubr.f32.mxu0 %v14300_v0  ;;  %1512 = vmatprep.mubr.f32.mxu1 %v14300_v0  ;;  %v2199_v24 = vld [vmem:[#allocation9 + $0x338] sm:$0xff]  ;;  %v2196_v27 = vld [vmem:[#allocation9 + $0x320] sm:$0xff]  ;;  %v2198_v30 = vld [vmem:[#allocation9 + $0x330] sm:$0xff] }
 0x120   :  { %10035 = vmatprep.subr.bf16.mxu0 %v10034_v42  ;;  %10039 = vmatprep.subr.bf16.mxu1 %v10038_v45  ;;  %v10070_v31 = vpack.c.bf16 %v2199_v24, %v2195_v23  ;;  %v2348_v32 = vld [vmem:[#allocation9 + $0x348] sm:$0xff]  ;;  %v10068_v34 = vpack.c.bf16 %v2196_v27, %v2192_v26  ;;  %v2350_v35 = vld [vmem:[#allocation9 + $0x358] sm:$0xff]  ;;  %v10072_v37 = vpack.c.bf16 %v2198_v30, %v2194_v29  ;;  %v2347_v38 = vld [vmem:[#allocation9 + $0x340] sm:$0xff] }
 0x121   :  { %9828 = vmatmul.mubr.msk.f32.vlgmr.msra.gmra.mrb[14].mxu0 %vm228_vm0, %v12272_v12  ;;  %9829 = vmatmul.mubr.msk.f32.vlgmr.msra.gmra.mrb[14].mxu1 %vm228_vm0, %v12272_v12  ;;  %v2352_v33 = vld [vmem:[#allocation9 + $0x368] sm:$0xff]  ;;  %v2354_v36 = vld [vmem:[#allocation9 + $0x378] sm:$0xff]  ;;  %v2351_v39 = vld [vmem:[#allocation9 + $0x360] sm:$0xff] }
 0x122   :  { %10037 = vmatpush1.bf16.msra.mxu0 %v10036_v48  ;;  %10041 = vmatpush1.bf16.msra.mxu1 %v10040_v51  ;;  %v10074_v40 = vpack.c.bf16 %v2352_v33, %v2348_v32  ;;  %v2349_v41 = vld [vmem:[#allocation9 + $0x350] sm:$0xff]  ;;  %v10078_v43 = vpack.c.bf16 %v2354_v36, %v2350_v35  ;;  %v2515_v44 = vld [vmem:[#allocation9 + $0x388] sm:$0xff]  ;;  %v10076_v46 = vpack.c.bf16 %v2351_v39, %v2347_v38  ;;  %v2517_v47 = vld [vmem:[#allocation9 + $0x398] sm:$0xff] }
 0x123   :  { %1608 = vmatprep.mubr.f32.mxu0 %v14300_v0  ;;  %1679 = vmatprep.mubr.f32.mxu1 %v14300_v0  ;;  %v2353_v42 = vld [vmem:[#allocation9 + $0x370] sm:$0xff]  ;;  %v2519_v45 = vld [vmem:[#allocation9 + $0x3a8] sm:$0xff]  ;;  %v2521_v48 = vld [vmem:[#allocation9 + $0x3b8] sm:$0xff] }
 0x124   :  { %10043 = vmatprep.subr.bf16.mxu0 %v10042_v54  ;;  %10047 = vmatprep.subr.bf16.mxu1 %v10046_v57  ;;  %v10080_v49 = vpack.c.bf16 %v2353_v42, %v2349_v41  ;;  %v2514_v50 = vld [vmem:[#allocation9 + $0x380] sm:$0xff]  ;;  %v10082_v52 = vpack.c.bf16 %v2519_v45, %v2515_v44  ;;  %v2516_v53 = vld [vmem:[#allocation9 + $0x390] sm:$0xff]  ;;  %v10086_v55 = vpack.c.bf16 %v2521_v48, %v2517_v47  ;;  %v2682_v56 = vld [vmem:[#allocation9 + $0x3c8] sm:$0xff] }
 0x125   :  { %9830 = vmatmul.mubr.msk.f32.vlgmr.msra.gmra.mrb[16].mxu0 %vm228_vm0, %v12272_v12  ;;  %9831 = vmatmul.mubr.msk.f32.vlgmr.msra.gmra.mrb[16].mxu1 %vm228_vm0, %v12272_v12  ;;  %v2518_v51 = vld [vmem:[#allocation9 + $0x3a0] sm:$0xff]  ;;  %v2520_v54 = vld [vmem:[#allocation9 + $0x3b0] sm:$0xff]  ;;  %v2686_v57 = vld [vmem:[#allocation9 + $0x3e8] sm:$0xff] }
 0x126   :  { %10045 = vmatpush1.bf16.msra.mxu0 %v10044_v60  ;;  %10049 = vmatpush1.bf16.msra.mxu1 %v10048_v63  ;;  %v10084_v58 = vpack.c.bf16 %v2518_v51, %v2514_v50  ;;  %v2684_v59 = vld [vmem:[#allocation9 + $0x3d8] sm:$0xff]  ;;  %v10088_v61 = vpack.c.bf16 %v2520_v54, %v2516_v53  ;;  %v2681_v62 = vld [vmem:[#allocation9 + $0x3c0] sm:$0xff]  ;;  %v10090_v1 = vpack.c.bf16 %v2686_v57, %v2682_v56  ;;  %v2683_v2 = vld [vmem:[#allocation9 + $0x3d0] sm:$0xff] }
 0x127   :  { %1763 = vmatprep.mubr.f32.mxu0 %v14300_v0  ;;  %1834 = vmatprep.mubr.f32.mxu1 %v14300_v0  ;;  %v2688_v60 = vld [vmem:[#allocation9 + $0x3f8] sm:$0xff]  ;;  %v2685_v63 = vld [vmem:[#allocation9 + $0x3e0] sm:$0xff]  ;;  %v3159_v7 = vld [vmem:[#allocation11 + $0x8] sm:$0xff] }
 0x128   :  { %10051 = vmatprep.subr.bf16.mxu0 %v10050_v3  ;;  %10055 = vmatprep.subr.bf16.mxu1 %v10054_v6  ;;  %v2687_v3 = vld [vmem:[#allocation9 + $0x3f0] sm:$0xff]  ;;  %v10094_v4 = vpack.c.bf16 %v2688_v60, %v2684_v59  ;;  %v10092_v5 = vpack.c.bf16 %v2685_v63, %v2681_v62  ;;  %v3161_v8 = vld [vmem:[#allocation11 + $0x48] sm:$0xff]  ;;  %v3475_v11 = vld [vmem:[#allocation11 + $0x58] sm:$0xff] }
 0x129   :  { %9832 = vmatmul.mubr.msk.f32.vlgmr.msra.gmra.mrb[18].mxu0 %vm228_vm0, %v12272_v12  ;;  %9833 = vmatmul.mubr.msk.f32.vlgmr.msra.gmra.mrb[18].mxu1 %vm228_vm0, %v12272_v12  ;;  %v10096_v6 = vpack.c.bf16 %v2687_v3, %v2683_v2  ;;  %v10098_v10 = vpack.c.bf16 %v3161_v8, %v3159_v7  ;;  %v3160_v14 = vld [vmem:[#allocation11 + $0x40] sm:$0xff]  ;;  %v3472_v17 = vld [vmem:[#allocation11 + $0x10] sm:$0xff]  ;;  %v3163_v20 = vld [vmem:[#allocation11 + $0x88] sm:$0xff] }
 0x12a   :  { %10053 = vmatpush1.bf16.msra.mxu0 %v10052_v9  ;;  %10057 = vmatpush1.bf16.msra.mxu1 %v10056_v13  ;;  %v3473_v9 = vld [vmem:[#allocation11 + $0x18] sm:$0xff]  ;;  %v3158_v13 = vld [vmem:[#allocation11] sm:$0xff]  ;;  %v3474_v18 = vld [vmem:[#allocation11 + $0x50] sm:$0xff] }
 0x12b   :  { %1930 = vmatprep.mubr.f32.mxu0 %v14300_v0  ;;  %2001 = vmatprep.mubr.f32.mxu1 %v14300_v0  ;;  %v10226_v15 = vpack.c.bf16 %v3475_v11, %v3473_v9  ;;  %v3165_v21 = vld [vmem:[#allocation11 + $0xc8] sm:$0xff]  ;;  %v3479_v23 = vld [vmem:[#allocation11 + $0xd8] sm:$0xff]  ;;  %v3162_v24 = vld [vmem:[#allocation11 + $0x80] sm:$0xff] }
 0x12c   :  { %10059 = vmatprep.subr.bf16.mxu0 %v10058_v16  ;;  %10063 = vmatprep.subr.bf16.mxu1 %v10062_v19  ;;  %v10100_v16 = vpack.c.bf16 %v3160_v14, %v3158_v13  ;;  %v10228_v19 = vpack.c.bf16 %v3474_v18, %v3472_v17  ;;  %v3478_v29 = vld [vmem:[#allocation11 + $0xd0] sm:$0xff]  ;;  %v3169_v32 = vld [vmem:[#allocation11 + $0x148] sm:$0xff]  ;;  %v3481_v33 = vld [vmem:[#allocation11 + $0x118] sm:$0xff] }
 0x12d   :  { %9834 = vmatmul.mubr.msk.f32.vlgmr.msra.gmra.mrb[20].mxu0 %vm228_vm0, %v12272_v12  ;;  %9835 = vmatmul.mubr.msk.f32.vlgmr.msra.gmra.mrb[20].mxu1 %vm228_vm0, %v12272_v12  ;;  %v3483_v35 = vld [vmem:[#allocation11 + $0x158] sm:$0xff]  ;;  %v3166_v36 = vld [vmem:[#allocation11 + $0x100] sm:$0xff]  ;;  %v3482_v41 = vld [vmem:[#allocation11 + $0x150] sm:$0xff] }
 0x12e   :  { %10061 = vmatpush1.bf16.msra.mxu0 %v10060_v22  ;;  %10065 = vmatpush1.bf16.msra.mxu1 %v10064_v25  ;;  %v3477_v22 = vld [vmem:[#allocation11 + $0x98] sm:$0xff]  ;;  %v3164_v25 = vld [vmem:[#allocation11 + $0xc0] sm:$0xff]  ;;  %v10234_v38 = vpack.c.bf16 %v3483_v35, %v3481_v33  ;;  %v3173_v44 = vld [vmem:[#allocation11 + $0x1c8] sm:$0xff] }
 0x12f   :  { %2097 = vmatprep.mubr.f32.mxu0 %v14300_v0  ;;  %2168 = vmatprep.mubr.f32.mxu1 %v14300_v0  ;;  %v10230_v26 = vpack.c.bf16 %v3479_v23, %v3477_v22  ;;  %v10104_v27 = vpack.c.bf16 %v3164_v25, %v3162_v24  ;;  %v3485_v45 = vld [vmem:[#allocation11 + $0x198] sm:$0xff]  ;;  %v3170_v48 = vld [vmem:[#allocation11 + $0x180] sm:$0xff]  ;;  %v3486_v53 = vld [vmem:[#allocation11 + $0x1d0] sm:$0xff] }
 0x130   :  { %10067 = vmatprep.subr.bf16.mxu0 %v10066_v28  ;;  %10071 = vmatprep.subr.bf16.mxu1 %v10070_v31  ;;  %v3476_v28 = vld [vmem:[#allocation11 + $0x90] sm:$0xff]  ;;  %v3167_v31 = vld [vmem:[#allocation11 + $0x108] sm:$0xff]  ;;  %v3487_v47 = vld [vmem:[#allocation11 + $0x1d8] sm:$0xff] }
 0x131   :  { %9836 = vmatmul.mubr.msk.f32.vlgmr.msra.gmra.mrb[22].mxu0 %vm228_vm0, %v12272_v12  ;;  %9837 = vmatmul.mubr.msk.f32.vlgmr.msra.gmra.mrb[22].mxu1 %vm228_vm0, %v12272_v12  ;;  %v10232_v30 = vpack.c.bf16 %v3478_v29, %v3476_v28  ;;  %v10238_v50 = vpack.c.bf16 %v3487_v47, %v3485_v45  ;;  %v3177_v56 = vld [vmem:[#allocation11 + $0x248] sm:$0xff]  ;;  %v3489_v57 = vld [vmem:[#allocation11 + $0x218] sm:$0xff]  ;;  %v3174_v60 = vld [vmem:[#allocation11 + $0x200] sm:$0xff] }
 0x132   :  { %10069 = vmatpush1.bf16.msra.mxu0 %v10068_v34  ;;  %10073 = vmatpush1.bf16.msra.mxu1 %v10072_v37  ;;  %v10106_v34 = vpack.c.bf16 %v3169_v32, %v3167_v31  ;;  %v3168_v37 = vld [vmem:[#allocation11 + $0x140] sm:$0xff]  ;;  %v3491_v59 = vld [vmem:[#allocation11 + $0x258] sm:$0xff]  ;;  %v3490_v2 = vld [vmem:[#allocation11 + $0x250] sm:$0xff] }
 0x133   :  { %2264 = vmatprep.mubr.f32.mxu0 %v14300_v0  ;;  %2335 = vmatprep.mubr.f32.mxu1 %v14300_v0  ;;  %v10108_v39 = vpack.c.bf16 %v3168_v37, %v3166_v36  ;;  %v10242_v62 = vpack.c.bf16 %v3491_v59, %v3489_v57  ;;  %v3495_v8 = vld [vmem:[#allocation11 + $0x2d8] sm:$0xff]  ;;  %v3178_v9 = vld [vmem:[#allocation11 + $0x280] sm:$0xff]  ;;  %v3492_v14 = vld [vmem:[#allocation11 + $0x290] sm:$0xff] }
 0x134   :  { %10075 = vmatprep.subr.bf16.mxu0 %v10074_v40  ;;  %10079 = vmatprep.subr.bf16.mxu1 %v10078_v43  ;;  %v3480_v40 = vld [vmem:[#allocation11 + $0x110] sm:$0xff]  ;;  %v3171_v43 = vld [vmem:[#allocation11 + $0x188] sm:$0xff]  ;;  %v3182_v22 = vld [vmem:[#allocation11 + $0x300] sm:$0xff] }
 0x135   :  { %9838 = vmatmul.mubr.msk.f32.vlgmr.msra.gmra.mrb[24].mxu0 %vm228_vm0, %v12272_v12  ;;  %9839 = vmatmul.mubr.msk.f32.vlgmr.msra.gmra.mrb[24].mxu1 %vm228_vm0, %v12272_v12  ;;  %v10236_v42 = vpack.c.bf16 %v3482_v41, %v3480_v40  ;;  %v3183_v17 = vld [vmem:[#allocation11 + $0x308] sm:$0xff]  ;;  %v3496_v25 = vld [vmem:[#allocation11 + $0x310] sm:$0xff]  ;;  %v3503_v32 = vld [vmem:[#allocation11 + $0x3d8] sm:$0xff] }
 0x136   :  { %10077 = vmatpush1.bf16.msra.mxu0 %v10076_v46  ;;  %10081 = vmatpush1.bf16.msra.mxu1 %v10080_v49  ;;  %v10110_v46 = vpack.c.bf16 %v3173_v44, %v3171_v43  ;;  %v3172_v49 = vld [vmem:[#allocation11 + $0x1c0] sm:$0xff]  ;;  %v3185_v18 = vld [vmem:[#allocation11 + $0x348] sm:$0xff]  ;;  %v3500_v37 = vld [vmem:[#allocation11 + $0x390] sm:$0xff] }
 0x137   :  { %2419 = vmatprep.mubr.f32.mxu0 %v14300_v0  ;;  %2490 = vmatprep.mubr.f32.mxu1 %v14300_v0  ;;  %v10112_v51 = vpack.c.bf16 %v3172_v49, %v3170_v48  ;;  %v3187_v28 = vld [vmem:[#allocation11 + $0x388] sm:$0xff]  ;;  %v3186_v33 = vld [vmem:[#allocation11 + $0x380] sm:$0xff]  ;;  %v3507_v44 = vld [vmem:[#allocation11 + $0x458] sm:$0xff] }
 0x138   :  { %10083 = vmatprep.subr.bf16.mxu0 %v10082_v52  ;;  %10087 = vmatprep.subr.bf16.mxu1 %v10086_v55  ;;  %v3484_v52 = vld [vmem:[#allocation11 + $0x190] sm:$0xff]  ;;  %v3175_v55 = vld [vmem:[#allocation11 + $0x208] sm:$0xff]  ;;  %v3190_v45 = vld [vmem:[#allocation11 + $0x400] sm:$0xff] }
 0x139   :  { %9840 = vmatmul.mubr.msk.f32.vlgmr.msra.gmra.mrb[26].mxu0 %vm228_vm0, %v12272_v12  ;;  %9841 = vmatmul.mubr.msk.f32.vlgmr.msra.gmra.mrb[26].mxu1 %vm228_vm0, %v12272_v12  ;;  %v10240_v54 = vpack.c.bf16 %v3486_v53, %v3484_v52  ;;  %v3189_v29 = vld [vmem:[#allocation11 + $0x3c8] sm:$0xff]  ;;  %v3504_v49 = vld [vmem:[#allocation11 + $0x410] sm:$0xff]  ;;  %v3194_v57 = vld [vmem:[#allocation11 + $0x480] sm:$0xff] }
 0x13a   :  { %10085 = vmatpush1.bf16.msra.mxu0 %v10084_v58  ;;  %10089 = vmatpush1.bf16.msra.mxu1 %v10088_v61  ;;  %v10114_v58 = vpack.c.bf16 %v3177_v56, %v3175_v55  ;;  %v3176_v61 = vld [vmem:[#allocation11 + $0x240] sm:$0xff]  ;;  %v10126_v31 = vpack.c.bf16 %v3189_v29, %v3187_v28  ;;  %v3191_v40 = vld [vmem:[#allocation11 + $0x408] sm:$0xff]  ;;  %v3511_v56 = vld [vmem:[#allocation11 + $0x4d8] sm:$0xff] }
 0x13b   :  { %2586 = vmatprep.mubr.f32.mxu0 %v14300_v0  ;;  %2657 = vmatprep.mubr.f32.mxu1 %v14300_v0  ;;  %v10116_v63 = vpack.c.bf16 %v3176_v61, %v3174_v60  ;;  %v3193_v41 = vld [vmem:[#allocation11 + $0x448] sm:$0xff]  ;;  %v3508_v61 = vld [vmem:[#allocation11 + $0x490] sm:$0xff]  ;;  %v3523_v29 = vld [vmem:[#allocation11 + $0x658] sm:$0xff] }
 0x13c   :  { %10091 = vmatprep.subr.bf16.mxu0 %v10090_v1  ;;  %10095 = vmatprep.subr.bf16.mxu1 %v10094_v4  ;;  %v3488_v1 = vld [vmem:[#allocation11 + $0x210] sm:$0xff]  ;;  %v3179_v4 = vld [vmem:[#allocation11 + $0x288] sm:$0xff]  ;;  %v10130_v43 = vpack.c.bf16 %v3193_v41, %v3191_v40  ;;  %v3527_v41 = vld [vmem:[#allocation11 + $0x6d8] sm:$0xff] }
 0x13d   :  { %9842 = vmatmul.mubr.msk.f32.vlgmr.msra.gmra.mrb[28].mxu0 %vm228_vm0, %v12272_v12  ;;  %9843 = vmatmul.mubr.msk.f32.vlgmr.msra.gmra.mrb[28].mxu1 %vm228_vm0, %v12272_v12  ;;  %v10244_v3 = vpack.c.bf16 %v3490_v2, %v3488_v1  ;;  %v3195_v52 = vld [vmem:[#allocation11 + $0x488] sm:$0xff] }
 0x13e   :  { %10093 = vmatpush1.bf16.msra.mxu0 %v10092_v5  ;;  %10097 = vmatpush1.bf16.msra.mxu1 %v10096_v6  ;;  %v3181_v5 = vld [vmem:[#allocation11 + $0x2c8] sm:$0xff]  ;;  %v3493_v6 = vld [vmem:[#allocation11 + $0x298] sm:$0xff] }
 0x13f   :  { %2753 = vmatprep.mubr.f32.mxu0 %v14300_v0  ;;  %2824 = vmatprep.mubr.f32.mxu1 %v14300_v0  ;;  %v10118_v7 = vpack.c.bf16 %v3181_v5, %v3179_v4  ;;  %v10246_v11 = vpack.c.bf16 %v3495_v8, %v3493_v6  ;;  %v3197_v53 = vld [vmem:[#allocation11 + $0x4c8] sm:$0xff]  ;;  %v3515_v5 = vld [vmem:[#allocation11 + $0x558] sm:$0xff]  ;;  %v3198_v6 = vld [vmem:[#allocation11 + $0x500] sm:$0xff] }
 0x140   :  { %10099 = vmatprep.subr.bf16.mxu0 %v10098_v10  ;;  %10227 = vmatprep.subr.bf16.mxu1 %v10226_v15  ;;  %v3180_v10 = vld [vmem:[#allocation11 + $0x2c0] sm:$0xff]  ;;  %v3494_v15 = vld [vmem:[#allocation11 + $0x2d0] sm:$0xff]  ;;  %v10134_v55 = vpack.c.bf16 %v3197_v53, %v3195_v52  ;;  %v3199_v1 = vld [vmem:[#allocation11 + $0x508] sm:$0xff] }
 0x141   :  { %9844 = vmatmul.mubr.msk.f32.vlgmr.msra.gmra.mrb[30].mxu0 %vm228_vm0, %v12272_v12  ;;  %9845 = vmatmul.mubr.msk.f32.vlgmr.msra.gmra.mrb[30].mxu1 %vm228_vm0, %v12272_v12  ;;  %v10102_v12 = vpack.c.bf16 %v3165_v21, %v3163_v20  ;;  %v10120_v13 = vpack.c.bf16 %v3180_v10, %v3178_v9  ;;  %v10122_v20 = vpack.c.bf16 %v3185_v18, %v3183_v17  ;;  %v3499_v21 = vld [vmem:[#allocation11 + $0x358] sm:$0xff]  ;;  %v3201_v2 = vld [vmem:[#allocation11 + $0x548] sm:$0xff]  ;;  %v3512_v10 = vld [vmem:[#allocation11 + $0x510] sm:$0xff] }
 0x142   :  { %10101 = vmatpush1.bf16.msra.mxu0 %v10100_v16  ;;  %10229 = vmatpush1.bf16.msra.mxu1 %v10228_v19  ;;  %v10248_v16 = vpack.c.bf16 %v3494_v15, %v3492_v14  ;;  %v3497_v19 = vld [vmem:[#allocation11 + $0x318] sm:$0xff]  ;;  %v10138_v4 = vpack.c.bf16 %v3201_v2, %v3199_v1  ;;  %v3203_v14 = vld [vmem:[#allocation11 + $0x588] sm:$0xff] }
 0x143   :  { %10103 = vmatprep.subr.bf16.mxu0 %v10102_v12  ;;  %10231 = vmatprep.subr.bf16.mxu1 %v10230_v26  ;;  %v3184_v12 = vld [vmem:[#allocation11 + $0x340] sm:$0xff]  ;;  %v10250_v23 = vpack.c.bf16 %v3499_v21, %v3497_v19  ;;  %v3498_v26 = vld [vmem:[#allocation11 + $0x350] sm:$0xff]  ;;  %v3205_v15 = vld [vmem:[#allocation11 + $0x5c8] sm:$0xff] }
 0x144   :  { %v10124_v24 = vpack.c.bf16 %v3184_v12, %v3182_v22  ;;  %v10142_v17 = vpack.c.bf16 %v3205_v15, %v3203_v14  ;;  %v3519_v18 = vld [vmem:[#allocation11 + $0x5d8] sm:$0xff]  ;;  %v3202_v19 = vld [vmem:[#allocation11 + $0x580] sm:$0xff]  ;;  %v3516_v12 = vld [vmem:[#allocation11 + $0x590] sm:$0xff] }
 0x145   :  { %v3531_v53 = vld [vmem:[#allocation11 + $0x758] sm:$0xff]  ;;  %v3223_v14 = vld [vmem:[#allocation11 + $0x808] sm:$0xff] }
 0x146   :  { %10105 = vmatpush1.bf16.msra.mxu0 %v10104_v27  ;;  %10233 = vmatpush1.bf16.msra.mxu1 %v10232_v30  ;;  %v10252_v27 = vpack.c.bf16 %v3498_v26, %v3496_v25  ;;  %v3501_v30 = vld [vmem:[#allocation11 + $0x398] sm:$0xff]  ;;  %v3207_v25 = vld [vmem:[#allocation11 + $0x608] sm:$0xff] }
 0x147   :  { %10107 = vmatprep.subr.bf16.mxu0 %v10106_v34  ;;  %10235 = vmatprep.subr.bf16.mxu1 %v10234_v38  ;;  %v3188_v34 = vld [vmem:[#allocation11 + $0x3c0] sm:$0xff]  ;;  %v10254_v35 = vpack.c.bf16 %v3503_v32, %v3501_v30  ;;  %v3502_v38 = vld [vmem:[#allocation11 + $0x3d0] sm:$0xff]  ;;  %v3209_v26 = vld [vmem:[#allocation11 + $0x648] sm:$0xff] }
 0x148   :  { %v10128_v36 = vpack.c.bf16 %v3188_v34, %v3186_v33  ;;  %v10146_v28 = vpack.c.bf16 %v3209_v26, %v3207_v25  ;;  %v3206_v30 = vld [vmem:[#allocation11 + $0x600] sm:$0xff]  ;;  %v3520_v34 = vld [vmem:[#allocation11 + $0x610] sm:$0xff]  ;;  %v3535_v2 = vld [vmem:[#allocation11 + $0x7d8] sm:$0xff] }
 0x149   :  { %v3225_v15 = vld [vmem:[#allocation11 + $0x848] sm:$0xff] }
 0x14a   :  { %10109 = vmatpush1.bf16.msra.mxu0 %v10108_v39  ;;  %10237 = vmatpush1.bf16.msra.mxu1 %v10236_v42  ;;  %v10256_v39 = vpack.c.bf16 %v3502_v38, %v3500_v37  ;;  %v3505_v42 = vld [vmem:[#allocation11 + $0x418] sm:$0xff]  ;;  %v3211_v37 = vld [vmem:[#allocation11 + $0x688] sm:$0xff] }
 0x14b   :  { %10111 = vmatprep.subr.bf16.mxu0 %v10110_v46  ;;  %10239 = vmatprep.subr.bf16.mxu1 %v10238_v50  ;;  %v3192_v46 = vld [vmem:[#allocation11 + $0x440] sm:$0xff]  ;;  %v10258_v47 = vpack.c.bf16 %v3507_v44, %v3505_v42  ;;  %v3506_v50 = vld [vmem:[#allocation11 + $0x450] sm:$0xff]  ;;  %v3213_v38 = vld [vmem:[#allocation11 + $0x6c8] sm:$0xff] }
 0x14c   :  { %v10132_v48 = vpack.c.bf16 %v3192_v46, %v3190_v45  ;;  %v10150_v40 = vpack.c.bf16 %v3213_v38, %v3211_v37  ;;  %v3210_v42 = vld [vmem:[#allocation11 + $0x680] sm:$0xff]  ;;  %v3524_v46 = vld [vmem:[#allocation11 + $0x690] sm:$0xff] }
 0x14e   :  { %10113 = vmatpush1.bf16.msra.mxu0 %v10112_v51  ;;  %10241 = vmatpush1.bf16.msra.mxu1 %v10240_v54  ;;  %v10260_v51 = vpack.c.bf16 %v3506_v50, %v3504_v49  ;;  %v3509_v54 = vld [vmem:[#allocation11 + $0x498] sm:$0xff]  ;;  %v3215_v49 = vld [vmem:[#allocation11 + $0x708] sm:$0xff] }
 0x14f   :  { %10115 = vmatprep.subr.bf16.mxu0 %v10114_v58  ;;  %10243 = vmatprep.subr.bf16.mxu1 %v10242_v62  ;;  %v3196_v58 = vld [vmem:[#allocation11 + $0x4c0] sm:$0xff]  ;;  %v10262_v59 = vpack.c.bf16 %v3511_v56, %v3509_v54  ;;  %v3510_v62 = vld [vmem:[#allocation11 + $0x4d0] sm:$0xff]  ;;  %v3217_v50 = vld [vmem:[#allocation11 + $0x748] sm:$0xff] }
 0x150   :  { %v10136_v60 = vpack.c.bf16 %v3196_v58, %v3194_v57  ;;  %v10154_v52 = vpack.c.bf16 %v3217_v50, %v3215_v49  ;;  %v3214_v54 = vld [vmem:[#allocation11 + $0x700] sm:$0xff]  ;;  %v3528_v58 = vld [vmem:[#allocation11 + $0x710] sm:$0xff] }
 0x152   :  { %10117 = vmatpush1.bf16.msra.mxu0 %v10116_v63  ;;  %10245 = vmatpush1.bf16.msra.mxu1 %v10244_v3  ;;  %v10264_v63 = vpack.c.bf16 %v3510_v62, %v3508_v61  ;;  %v3513_v3 = vld [vmem:[#allocation11 + $0x518] sm:$0xff]  ;;  %v3219_v61 = vld [vmem:[#allocation11 + $0x788] sm:$0xff] }
 0x153   :  { %10119 = vmatprep.subr.bf16.mxu0 %v10118_v7  ;;  %10247 = vmatprep.subr.bf16.mxu1 %v10246_v11  ;;  %v3200_v7 = vld [vmem:[#allocation11 + $0x540] sm:$0xff]  ;;  %v10266_v8 = vpack.c.bf16 %v3515_v5, %v3513_v3  ;;  %v3514_v11 = vld [vmem:[#allocation11 + $0x550] sm:$0xff]  ;;  %v3221_v62 = vld [vmem:[#allocation11 + $0x7c8] sm:$0xff] }
 0x154   :  { %v10140_v9 = vpack.c.bf16 %v3200_v7, %v3198_v6  ;;  %v10158_v1 = vpack.c.bf16 %v3221_v62, %v3219_v61  ;;  %v3218_v3 = vld [vmem:[#allocation11 + $0x780] sm:$0xff]  ;;  %v3532_v7 = vld [vmem:[#allocation11 + $0x790] sm:$0xff] }
 0x156   :  { %10121 = vmatpush1.bf16.msra.mxu0 %v10120_v13  ;;  %10249 = vmatpush1.bf16.msra.mxu1 %v10248_v16  ;;  %v10268_v13 = vpack.c.bf16 %v3514_v11, %v3512_v10  ;;  %v3517_v16 = vld [vmem:[#allocation11 + $0x598] sm:$0xff] }
 0x157   :  { %10123 = vmatprep.subr.bf16.mxu0 %v10122_v20  ;;  %10251 = vmatprep.subr.bf16.mxu1 %v10250_v23  ;;  %v3204_v20 = vld [vmem:[#allocation11 + $0x5c0] sm:$0xff]  ;;  %v10270_v21 = vpack.c.bf16 %v3519_v18, %v3517_v16  ;;  %v3518_v23 = vld [vmem:[#allocation11 + $0x5d0] sm:$0xff]  ;;  %v3537_v16 = vld [vmem:[#allocation11 + $0x818] sm:$0xff]  ;;  %v10162_v18 = vpack.c.bf16 %v3225_v15, %v3223_v14 }
 0x158   :  { %v10144_v22 = vpack.c.bf16 %v3204_v20, %v3202_v19  ;;  %v3539_v19 = vld [vmem:[#allocation11 + $0x858] sm:$0xff] }
 0x159   :  { %v10290_v20 = vpack.c.bf16 %v3539_v19, %v3537_v16 }
 0x15a   :  { %10125 = vmatpush1.bf16.msra.mxu0 %v10124_v24  ;;  %10253 = vmatpush1.bf16.msra.mxu1 %v10252_v27  ;;  %v10272_v24 = vpack.c.bf16 %v3518_v23, %v3516_v12  ;;  %v3521_v27 = vld [vmem:[#allocation11 + $0x618] sm:$0xff] }
 0x15b   :  { %10127 = vmatprep.subr.bf16.mxu0 %v10126_v31  ;;  %10255 = vmatprep.subr.bf16.mxu1 %v10254_v35  ;;  %v3208_v31 = vld [vmem:[#allocation11 + $0x640] sm:$0xff]  ;;  %v10274_v32 = vpack.c.bf16 %v3523_v29, %v3521_v27  ;;  %v3522_v35 = vld [vmem:[#allocation11 + $0x650] sm:$0xff] }
 0x15c   :  { %v10148_v33 = vpack.c.bf16 %v3208_v31, %v3206_v30 }
 0x15e   :  { %10129 = vmatpush1.bf16.msra.mxu0 %v10128_v36  ;;  %10257 = vmatpush1.bf16.msra.mxu1 %v10256_v39  ;;  %v10276_v36 = vpack.c.bf16 %v3522_v35, %v3520_v34  ;;  %v3525_v39 = vld [vmem:[#allocation11 + $0x698] sm:$0xff] }
 0x15f   :  { %10131 = vmatprep.subr.bf16.mxu0 %v10130_v43  ;;  %10259 = vmatprep.subr.bf16.mxu1 %v10258_v47  ;;  %v3212_v43 = vld [vmem:[#allocation11 + $0x6c0] sm:$0xff]  ;;  %v10278_v44 = vpack.c.bf16 %v3527_v41, %v3525_v39  ;;  %v3526_v47 = vld [vmem:[#allocation11 + $0x6d0] sm:$0xff] }
 0x160   :  { %v10152_v45 = vpack.c.bf16 %v3212_v43, %v3210_v42 }
 0x162   :  { %10133 = vmatpush1.bf16.msra.mxu0 %v10132_v48  ;;  %10261 = vmatpush1.bf16.msra.mxu1 %v10260_v51  ;;  %v10280_v48 = vpack.c.bf16 %v3526_v47, %v3524_v46  ;;  %v3529_v51 = vld [vmem:[#allocation11 + $0x718] sm:$0xff] }
 0x163   :  { %10135 = vmatprep.subr.bf16.mxu0 %v10134_v55  ;;  %10263 = vmatprep.subr.bf16.mxu1 %v10262_v59  ;;  %v3216_v55 = vld [vmem:[#allocation11 + $0x740] sm:$0xff]  ;;  %v10282_v56 = vpack.c.bf16 %v3531_v53, %v3529_v51  ;;  %v3530_v59 = vld [vmem:[#allocation11 + $0x750] sm:$0xff] }
 0x164   :  { %v10156_v57 = vpack.c.bf16 %v3216_v55, %v3214_v54 }
 0x166   :  { %10137 = vmatpush1.bf16.msra.mxu0 %v10136_v60  ;;  %10265 = vmatpush1.bf16.msra.mxu1 %v10264_v63  ;;  %v10284_v60 = vpack.c.bf16 %v3530_v59, %v3528_v58  ;;  %v3533_v63 = vld [vmem:[#allocation11 + $0x798] sm:$0xff] }
 0x167   :  { %10139 = vmatprep.subr.bf16.mxu0 %v10138_v4  ;;  %10267 = vmatprep.subr.bf16.mxu1 %v10266_v8  ;;  %v3220_v4 = vld [vmem:[#allocation11 + $0x7c0] sm:$0xff]  ;;  %v10286_v5 = vpack.c.bf16 %v3535_v2, %v3533_v63  ;;  %v3534_v8 = vld [vmem:[#allocation11 + $0x7d0] sm:$0xff] }
 0x168   :  { %v10160_v6 = vpack.c.bf16 %v3220_v4, %v3218_v3  ;;  %v10288_v10 = vpack.c.bf16 %v3534_v8, %v3532_v7 }
 0x16a   :  { %10141 = vmatpush1.bf16.msra.mxu0 %v10140_v9  ;;  %10269 = vmatpush1.bf16.msra.mxu1 %v10268_v13 }
 0x16b   :  { %10143 = vmatprep.subr.bf16.mxu0 %v10142_v17  ;;  %10271 = vmatprep.subr.bf16.mxu1 %v10270_v21 }
 0x16e   :  { %10145 = vmatpush1.bf16.msra.mxu0 %v10144_v22  ;;  %10273 = vmatpush1.bf16.msra.mxu1 %v10272_v24 }
 0x16f   :  { %10147 = vmatprep.subr.bf16.mxu0 %v10146_v28  ;;  %10275 = vmatprep.subr.bf16.mxu1 %v10274_v32 }
 0x172   :  { %10149 = vmatpush1.bf16.msra.mxu0 %v10148_v33  ;;  %10277 = vmatpush1.bf16.msra.mxu1 %v10276_v36 }
 0x173   :  { %10151 = vmatprep.subr.bf16.mxu0 %v10150_v40  ;;  %10279 = vmatprep.subr.bf16.mxu1 %v10278_v44 }
 0x176   :  { %10153 = vmatpush1.bf16.msra.mxu0 %v10152_v45  ;;  %10281 = vmatpush1.bf16.msra.mxu1 %v10280_v48 }
 0x177   :  { %10155 = vmatprep.subr.bf16.mxu0 %v10154_v52  ;;  %10283 = vmatprep.subr.bf16.mxu1 %v10282_v56 }
 0x17a   :  { %10157 = vmatpush1.bf16.msra.mxu0 %v10156_v57  ;;  %10285 = vmatpush1.bf16.msra.mxu1 %v10284_v60 }
 0x17b   :  { %10159 = vmatprep.subr.bf16.mxu0 %v10158_v1  ;;  %10287 = vmatprep.subr.bf16.mxu1 %v10286_v5 }
 0x17e   :  { %10161 = vmatpush1.bf16.msra.mxu0 %v10160_v6  ;;  %10289 = vmatpush1.bf16.msra.mxu1 %v10288_v10 }
 0x17f   :  { %10163 = vmatprep.subr.bf16.mxu0 %v10162_v18  ;;  %10291 = vmatprep.subr.bf16.mxu1 %v10290_v20 }
 0x1d8   :  { %v298_v9 = vpop.f32.mrb[0].mxu0  ;;  %v369_v11 = vpop.f32.mrb[0].mxu1 }
 0x1d9   :  { %374 = vst [vmem:[#allocation2] sm:$0x3] %v298_v9  ;;  %v300_v13 = vpop.f32.mrb[1].mxu0  ;;  %376 = vst [vmem:[#allocation2 + $0x10] sm:$0x3] %v369_v11  ;;  %v371_v17 = vpop.f32.mrb[1].mxu1 }
 0x1da   :  { %375 = vst [vmem:[#allocation2 + $0x8] sm:$0x3] %v300_v13  ;;  %377 = vst [vmem:[#allocation2 + $0x18] sm:$0x3] %v371_v17 }
 0x1dc   :  { %v453_v21 = vpop.f32.mrb[2].mxu0  ;;  %v524_v12 = vpop.f32.mrb[2].mxu1 }
 0x1dd   :  { %v533_v22 = vrot.slane %v453_v21, 6  ;;  %v455_v23 = vpop.f32.mrb[3].mxu0  ;;  %v535_v24 = vrot.slane %v524_v12, 6  ;;  %v526_v26 = vpop.f32.mrb[3].mxu1 }
 0x1de   :  { %v534_v25 = vrot.slane %v455_v23, 6  ;;  %v536_v27 = vrot.slane %v526_v26, 6 }
 0x1df   :  { %541 = vst [vmem:[#allocation2] sm:$0xc] %v533_v22  ;;  %543 = vst [vmem:[#allocation2 + $0x10] sm:$0xc] %v535_v24 }
 0x1e0   :  { %542 = vst [vmem:[#allocation2 + $0x8] sm:$0xc] %v534_v25  ;;  %v620_v28 = vpop.f32.mrb[4].mxu0  ;;  %544 = vst [vmem:[#allocation2 + $0x18] sm:$0xc] %v536_v27  ;;  %v691_v30 = vpop.f32.mrb[4].mxu1 }
 0x1e1   :  { %v700_v29 = vrot.slane %v620_v28, 4  ;;  %v622_v31 = vpop.f32.mrb[5].mxu0  ;;  %v702_v32 = vrot.slane %v691_v30, 4  ;;  %v693_v34 = vpop.f32.mrb[5].mxu1 }
 0x1e2   :  { %v701_v33 = vrot.slane %v622_v31, 4  ;;  %v703_v35 = vrot.slane %v693_v34, 4 }
 0x1e3   :  { %708 = vst [vmem:[#allocation2] sm:$0x30] %v700_v29  ;;  %710 = vst [vmem:[#allocation2 + $0x10] sm:$0x30] %v702_v32 }
 0x1e4   :  { %709 = vst [vmem:[#allocation2 + $0x8] sm:$0x30] %v701_v33  ;;  %v787_v36 = vpop.f32.mrb[6].mxu0  ;;  %711 = vst [vmem:[#allocation2 + $0x18] sm:$0x30] %v703_v35  ;;  %v858_v38 = vpop.f32.mrb[6].mxu1 }
 0x1e5   :  { %v867_v37 = vrot.slane %v787_v36, 2  ;;  %v789_v39 = vpop.f32.mrb[7].mxu0  ;;  %v869_v40 = vrot.slane %v858_v38, 2  ;;  %v860_v42 = vpop.f32.mrb[7].mxu1 }
 0x1e6   :  { %v868_v41 = vrot.slane %v789_v39, 2  ;;  %v870_v43 = vrot.slane %v860_v42, 2 }
 0x1e7   :  { %875 = vst [vmem:[#allocation2] sm:$0xc0] %v867_v37  ;;  %877 = vst [vmem:[#allocation2 + $0x10] sm:$0xc0] %v869_v40 }
 0x1e8   :  { %876 = vst [vmem:[#allocation2 + $0x8] sm:$0xc0] %v868_v41  ;;  %v954_v44 = vpop.f32.mrb[8].mxu0  ;;  %878 = vst [vmem:[#allocation2 + $0x18] sm:$0xc0] %v870_v43  ;;  %v1025_v45 = vpop.f32.mrb[8].mxu1 }
 0x1e9   :  { %1030 = vst [vmem:[#allocation2 + $0x20] sm:$0x3] %v954_v44  ;;  %v956_v46 = vpop.f32.mrb[9].mxu0  ;;  %1032 = vst [vmem:[#allocation2 + $0x30] sm:$0x3] %v1025_v45  ;;  %v1027_v47 = vpop.f32.mrb[9].mxu1 }
 0x1ea   :  { %1031 = vst [vmem:[#allocation2 + $0x28] sm:$0x3] %v956_v46  ;;  %1033 = vst [vmem:[#allocation2 + $0x38] sm:$0x3] %v1027_v47 }
 0x1ec   :  { %v1109_v48 = vpop.f32.mrb[10].mxu0  ;;  %v1180_v50 = vpop.f32.mrb[10].mxu1 }
 0x1ed   :  { %v1189_v49 = vrot.slane %v1109_v48, 6  ;;  %v1111_v51 = vpop.f32.mrb[11].mxu0  ;;  %v1191_v52 = vrot.slane %v1180_v50, 6  ;;  %v1182_v54 = vpop.f32.mrb[11].mxu1 }
 0x1ee   :  { %v1190_v53 = vrot.slane %v1111_v51, 6  ;;  %v1192_v55 = vrot.slane %v1182_v54, 6 }
 0x1ef   :  { %1197 = vst [vmem:[#allocation2 + $0x20] sm:$0xc] %v1189_v49  ;;  %1199 = vst [vmem:[#allocation2 + $0x30] sm:$0xc] %v1191_v52 }
 0x1f0   :  { %1198 = vst [vmem:[#allocation2 + $0x28] sm:$0xc] %v1190_v53  ;;  %v1276_v56 = vpop.f32.mrb[12].mxu0  ;;  %1200 = vst [vmem:[#allocation2 + $0x38] sm:$0xc] %v1192_v55  ;;  %v1347_v58 = vpop.f32.mrb[12].mxu1 }
 0x1f1   :  { %v1356_v57 = vrot.slane %v1276_v56, 4  ;;  %v1278_v59 = vpop.f32.mrb[13].mxu0  ;;  %v1358_v60 = vrot.slane %v1347_v58, 4  ;;  %v1349_v62 = vpop.f32.mrb[13].mxu1 }
 0x1f2   :  { %v1357_v61 = vrot.slane %v1278_v59, 4  ;;  %v1359_v63 = vrot.slane %v1349_v62, 4  ;;  %v12370_v59 = vld [vmem:[#allocation2 + $0x10] sm:$0xff] }
 0x1f3   :  { %1364 = vst [vmem:[#allocation2 + $0x20] sm:$0x30] %v1356_v57  ;;  %1366 = vst [vmem:[#allocation2 + $0x30] sm:$0x30] %v1358_v60  ;;  %v12368_v57 = vld [vmem:[#allocation2] sm:$0xff] }
 0x1f4   :  { %1365 = vst [vmem:[#allocation2 + $0x28] sm:$0x30] %v1357_v61  ;;  %v1443_v1 = vpop.f32.mrb[14].mxu0  ;;  %1367 = vst [vmem:[#allocation2 + $0x38] sm:$0x30] %v1359_v63  ;;  %v1514_v3 = vpop.f32.mrb[14].mxu1 }
 0x1f5   :  { %v1523_v2 = vrot.slane %v1443_v1, 2  ;;  %v1445_v4 = vpop.f32.mrb[15].mxu0  ;;  %v1525_v5 = vrot.slane %v1514_v3, 2  ;;  %v1516_v7 = vpop.f32.mrb[15].mxu1 }
 0x1f6   :  { %v1524_v6 = vrot.slane %v1445_v4, 2  ;;  %v1526_v8 = vrot.slane %v1516_v7, 2 }
 0x1f7   :  { %1531 = vst [vmem:[#allocation2 + $0x20] sm:$0xc0] %v1523_v2  ;;  %1533 = vst [vmem:[#allocation2 + $0x30] sm:$0xc0] %v1525_v5  ;;  %v12376_v2 = vld [vmem:[#allocation2 + $0x8] sm:$0xff] }
 0x1f8   :  { %1532 = vst [vmem:[#allocation2 + $0x28] sm:$0xc0] %v1524_v6  ;;  %v1610_v9 = vpop.f32.mrb[16].mxu0  ;;  %1534 = vst [vmem:[#allocation2 + $0x38] sm:$0xc0] %v1526_v8  ;;  %v1681_v10 = vpop.f32.mrb[16].mxu1 }
 0x1f9   :  { %1686 = vst [vmem:[#allocation2 + $0x40] sm:$0x3] %v1610_v9  ;;  %v1612_v11 = vpop.f32.mrb[17].mxu0  ;;  %1688 = vst [vmem:[#allocation2 + $0x50] sm:$0x3] %v1681_v10  ;;  %v1683_v13 = vpop.f32.mrb[17].mxu1 }
 0x1fa   :  { %1687 = vst [vmem:[#allocation2 + $0x48] sm:$0x3] %v1612_v11  ;;  %1689 = vst [vmem:[#allocation2 + $0x58] sm:$0x3] %v1683_v13  ;;  %v12382_v8 = vld [vmem:[#allocation2 + $0x18] sm:$0xff] }
 0x1fc   :  { %v1765_v14 = vpop.f32.mrb[18].mxu0  ;;  %v1836_v16 = vpop.f32.mrb[18].mxu1 }
 0x1fd   :  { %v1845_v15 = vrot.slane %v1765_v14, 6  ;;  %v1767_v17 = vpop.f32.mrb[19].mxu0  ;;  %v1847_v18 = vrot.slane %v1836_v16, 6  ;;  %v1838_v20 = vpop.f32.mrb[19].mxu1 }
 0x1fe   :  { %v1846_v19 = vrot.slane %v1767_v17, 6  ;;  %v1848_v21 = vrot.slane %v1838_v20, 6  ;;  %v12372_v60 = vld [vmem:[#allocation2 + $0x20] sm:$0xff]  ;;  %v12374_v61 = vld [vmem:[#allocation2 + $0x30] sm:$0xff]  ;;  %v2899_v17 = vmul.f32 %v12368_v57, %v12368_v57 }
 0x1ff   :  { %1853 = vst [vmem:[#allocation2 + $0x40] sm:$0xc] %v1845_v15  ;;  %1855 = vst [vmem:[#allocation2 + $0x50] sm:$0xc] %v1847_v18  ;;  %v12378_v3 = vld [vmem:[#allocation2 + $0x28] sm:$0xff]  ;;  %v12380_v4 = vld [vmem:[#allocation2 + $0x38] sm:$0xff]  ;;  %v2903_v13 = vmul.f32 %v12372_v60, %v12372_v60  ;;  %v2905_v14 = vmul.f32 %v12374_v61, %v12374_v61  ;;  %v2901_v18 = vmul.f32 %v12370_v59, %v12370_v59 }
 0x200   :  { %1854 = vst [vmem:[#allocation2 + $0x48] sm:$0xc] %v1846_v19  ;;  %v1932_v22 = vpop.f32.mrb[20].mxu0  ;;  %1856 = vst [vmem:[#allocation2 + $0x58] sm:$0xc] %v1848_v21  ;;  %v2003_v23 = vpop.f32.mrb[20].mxu1  ;;  %v2904_v19 = vmul.f32 %v12378_v3, %v12378_v3  ;;  %v2906_v20 = vmul.f32 %v12380_v4, %v12380_v4  ;;  %v2900_v21 = vmul.f32 %v12376_v2, %v12376_v2 }
 0x201   :  { %v2012_v12 = vrot.slane %v1932_v22, 4  ;;  %v1934_v24 = vpop.f32.mrb[21].mxu0  ;;  %v2014_v25 = vrot.slane %v2003_v23, 4  ;;  %v2005_v27 = vpop.f32.mrb[21].mxu1  ;;  %v2902_v22 = vmul.f32 %v12382_v8, %v12382_v8 }
 0x202   :  { %v2013_v26 = vrot.slane %v1934_v24, 4  ;;  %v2015_v28 = vrot.slane %v2005_v27, 4  ;;  %v2863_v24 = vadd.f32 %v12372_v60, %v12368_v57 }
 0x203   :  { %2020 = vst [vmem:[#allocation2 + $0x40] sm:$0x30] %v2012_v12  ;;  %2022 = vst [vmem:[#allocation2 + $0x50] sm:$0x30] %v2014_v25  ;;  %v2881_v25 = vadd.f32 %v12374_v61, %v12370_v59 }
 0x204   :  { %2021 = vst [vmem:[#allocation2 + $0x48] sm:$0x30] %v2013_v26  ;;  %v2099_v29 = vpop.f32.mrb[22].mxu0  ;;  %2023 = vst [vmem:[#allocation2 + $0x58] sm:$0x30] %v2015_v28  ;;  %v2170_v31 = vpop.f32.mrb[22].mxu1  ;;  %v2915_v28 = vadd.f32 %v2903_v13, %v2899_v17 }
 0x205   :  { %v2179_v30 = vrot.slane %v2099_v29, 2  ;;  %v2101_v32 = vpop.f32.mrb[23].mxu0  ;;  %v2181_v33 = vrot.slane %v2170_v31, 2  ;;  %v2172_v35 = vpop.f32.mrb[23].mxu1  ;;  %v2933_v29 = vadd.f32 %v2905_v14, %v2901_v18  ;;  %v2890_v31 = vadd.f32 %v12380_v4, %v12382_v8 }
 0x206   :  { %v2180_v34 = vrot.slane %v2101_v32, 2  ;;  %v2182_v36 = vrot.slane %v2172_v35, 2  ;;  %v2924_v32 = vadd.f32 %v2904_v19, %v2900_v21  ;;  %v2942_v35 = vadd.f32 %v2906_v20, %v2902_v22 }
 0x207   :  { %2187 = vst [vmem:[#allocation2 + $0x40] sm:$0xc0] %v2179_v30  ;;  %2189 = vst [vmem:[#allocation2 + $0x50] sm:$0xc0] %v2181_v33  ;;  %v2872_v30 = vadd.f32 %v12378_v3, %v12376_v2 }
 0x208   :  { %2188 = vst [vmem:[#allocation2 + $0x48] sm:$0xc0] %v2180_v34  ;;  %v2266_v37 = vpop.f32.mrb[24].mxu0  ;;  %2190 = vst [vmem:[#allocation2 + $0x58] sm:$0xc0] %v2182_v36  ;;  %v2337_v38 = vpop.f32.mrb[24].mxu1 }
 0x209   :  { %2342 = vst [vmem:[#allocation2 + $0x60] sm:$0x3] %v2266_v37  ;;  %v2268_v39 = vpop.f32.mrb[25].mxu0  ;;  %2344 = vst [vmem:[#allocation2 + $0x70] sm:$0x3] %v2337_v38  ;;  %v2339_v40 = vpop.f32.mrb[25].mxu1 }
 0x20a   :  { %2343 = vst [vmem:[#allocation2 + $0x68] sm:$0x3] %v2268_v39  ;;  %2345 = vst [vmem:[#allocation2 + $0x78] sm:$0x3] %v2339_v40 }
 0x20c   :  { %v2421_v41 = vpop.f32.mrb[26].mxu0  ;;  %v2492_v43 = vpop.f32.mrb[26].mxu1 }
 0x20d   :  { %v2501_v42 = vrot.slane %v2421_v41, 6  ;;  %v2423_v44 = vpop.f32.mrb[27].mxu0  ;;  %v2503_v45 = vrot.slane %v2492_v43, 6  ;;  %v2494_v47 = vpop.f32.mrb[27].mxu1 }
 0x20e   :  { %v2502_v46 = vrot.slane %v2423_v44, 6  ;;  %v2504_v48 = vrot.slane %v2494_v47, 6  ;;  %v12384_v9 = vld [vmem:[#allocation2 + $0x40] sm:$0xff]  ;;  %v12386_v10 = vld [vmem:[#allocation2 + $0x50] sm:$0xff] }
 0x20f   :  { %2509 = vst [vmem:[#allocation2 + $0x60] sm:$0xc] %v2501_v42  ;;  %2511 = vst [vmem:[#allocation2 + $0x70] sm:$0xc] %v2503_v45  ;;  %v12392_v15 = vld [vmem:[#allocation2 + $0x48] sm:$0xff]  ;;  %v12394_v16 = vld [vmem:[#allocation2 + $0x58] sm:$0xff]  ;;  %v2907_v12 = vmul.f32 %v12384_v9, %v12384_v9  ;;  %v2909_v23 = vmul.f32 %v12386_v10, %v12386_v10  ;;  %v2864_v33 = vadd.f32 %v2863_v24, %v12384_v9 }
 0x210   :  { %2510 = vst [vmem:[#allocation2 + $0x68] sm:$0xc] %v2502_v46  ;;  %v2588_v49 = vpop.f32.mrb[28].mxu0  ;;  %2512 = vst [vmem:[#allocation2 + $0x78] sm:$0xc] %v2504_v48  ;;  %v2659_v51 = vpop.f32.mrb[28].mxu1  ;;  %v2908_v26 = vmul.f32 %v12392_v15, %v12392_v15  ;;  %v2910_v27 = vmul.f32 %v12394_v16, %v12394_v16  ;;  %v2882_v34 = vadd.f32 %v2881_v25, %v12386_v10 }
 0x211   :  { %v2668_v50 = vrot.slane %v2588_v49, 4  ;;  %v2590_v52 = vpop.f32.mrb[29].mxu0  ;;  %v2670_v53 = vrot.slane %v2659_v51, 4  ;;  %v2661_v55 = vpop.f32.mrb[29].mxu1  ;;  %v2916_v36 = vadd.f32 %v2915_v28, %v2907_v12  ;;  %v2934_v37 = vadd.f32 %v2933_v29, %v2909_v23 }
 0x212   :  { %v2669_v54 = vrot.slane %v2590_v52, 4  ;;  %v2671_v56 = vrot.slane %v2661_v55, 4  ;;  %v2873_v38 = vadd.f32 %v2872_v30, %v12392_v15  ;;  %v2891_v40 = vadd.f32 %v2890_v31, %v12394_v16 }
 0x213   :  { %2676 = vst [vmem:[#allocation2 + $0x60] sm:$0x30] %v2668_v50  ;;  %2678 = vst [vmem:[#allocation2 + $0x70] sm:$0x30] %v2670_v53  ;;  %v2925_v41 = vadd.f32 %v2924_v32, %v2908_v26  ;;  %v2943_v46 = vadd.f32 %v2942_v35, %v2910_v27 }
 0x214   :  { %2677 = vst [vmem:[#allocation2 + $0x68] sm:$0x30] %v2669_v54  ;;  %v2755_v58 = vpop.f32.mrb[30].mxu0  ;;  %2679 = vst [vmem:[#allocation2 + $0x78] sm:$0x30] %v2671_v56  ;;  %v2826_v63 = vpop.f32.mrb[30].mxu1 }
 0x215   :  { %v2835_v62 = vrot.slane %v2755_v58, 2  ;;  %v2757_v1 = vpop.f32.mrb[31].mxu0  ;;  %v2837_v5 = vrot.slane %v2826_v63, 2  ;;  %v2828_v7 = vpop.f32.mrb[31].mxu1 }
 0x216   :  { %v2836_v6 = vrot.slane %v2757_v1, 2  ;;  %v2838_v11 = vrot.slane %v2828_v7, 2 }
 0x217   :  { %2843 = vst [vmem:[#allocation2 + $0x60] sm:$0xc0] %v2835_v62  ;;  %2845 = vst [vmem:[#allocation2 + $0x70] sm:$0xc0] %v2837_v5 }
 0x218   :  { %2844 = vst [vmem:[#allocation2 + $0x68] sm:$0xc0] %v2836_v6  ;;  %2846 = vst [vmem:[#allocation2 + $0x78] sm:$0xc0] %v2838_v11 }
 0x21e   :  { %v12427_v39 = vld [vmem:[#allocation2 + $0x60] sm:$0xff]  ;;  %v12433_v44 = vld [vmem:[#allocation2 + $0x70] sm:$0xff] }
 0x21f   :  { %v2865_v42 = vadd.f32 %v2864_v33, %v12427_v39  ;;  %v2911_v43 = vmul.f32 %v12427_v39, %v12427_v39  ;;  %v12435_v45 = vld [vmem:[#allocation2 + $0x68] sm:$0xff]  ;;  %v2883_v47 = vadd.f32 %v2882_v34, %v12433_v44  ;;  %v2913_v48 = vmul.f32 %v12433_v44, %v12433_v44  ;;  %v12443_v51 = vld [vmem:[#allocation2 + $0x78] sm:$0xff] }
 0x220   :  { %v2874_v49 = vadd.f32 %v2873_v38, %v12435_v45  ;;  %v2912_v50 = vmul.f32 %v12435_v45, %v12435_v45  ;;  %v2892_v54 = vadd.f32 %v2891_v40, %v12443_v51  ;;  %v2914_v55 = vmul.f32 %v12443_v51, %v12443_v51 }
 0x221   :  { %v2866_v52 = vrot.slane %v2865_v42, 4  ;;  %v2917_v53 = vadd.f32 %v2916_v36, %v2911_v43  ;;  %v2884_v56 = vrot.slane %v2883_v47, 4  ;;  %v2935_v58 = vadd.f32 %v2934_v37, %v2913_v48 }
 0x222   :  { %v2875_v62 = vrot.slane %v2874_v49, 4  ;;  %v2926_v63 = vadd.f32 %v2925_v41, %v2912_v50  ;;  %v2893_v6 = vrot.slane %v2892_v54, 4  ;;  %v2944_v7 = vadd.f32 %v2943_v46, %v2914_v55 }
 0x223   :  { %v2867_v1 = vadd.f32 %v2866_v52, %v2865_v42  ;;  %v2918_v5 = vrot.slane %v2917_v53, 4  ;;  %v2885_v11 = vadd.f32 %v2884_v56, %v2883_v47  ;;  %v2936_v13 = vrot.slane %v2935_v58, 4 }
 0x224   :  { %v2876_v14 = vadd.f32 %v2875_v62, %v2874_v49  ;;  %v2927_v17 = vrot.slane %v2926_v63, 4  ;;  %v2894_v20 = vadd.f32 %v2893_v6, %v2892_v54  ;;  %v2945_v21 = vrot.slane %v2944_v7, 4 }
 0x225   :  { %v2868_v18 = vrot.slane %v2867_v1, 2  ;;  %v2919_v19 = vadd.f32 %v2918_v5, %v2917_v53  ;;  %v2886_v22 = vrot.slane %v2885_v11, 2  ;;  %v2937_v12 = vadd.f32 %v2936_v13, %v2935_v58 }
 0x226   :  { %v2877_v23 = vrot.slane %v2876_v14, 2  ;;  %v2928_v24 = vadd.f32 %v2927_v17, %v2926_v63  ;;  %v2895_v27 = vrot.slane %v2894_v20, 2  ;;  %v2946_v28 = vadd.f32 %v2945_v21, %v2944_v7 }
 0x227   :  { %v2869_v25 = vadd.f32 %v2868_v18, %v2867_v1  ;;  %v2920_v26 = vrot.slane %v2919_v19, 2  ;;  %v2887_v29 = vadd.f32 %v2886_v22, %v2885_v11  ;;  %v2938_v30 = vrot.slane %v2937_v12, 2 }
 0x228   :  { %v2878_v31 = vadd.f32 %v2877_v23, %v2876_v14  ;;  %v2929_v32 = vrot.slane %v2928_v24, 2  ;;  %v2896_v35 = vadd.f32 %v2895_v27, %v2894_v20  ;;  %v2947_v36 = vrot.slane %v2946_v28, 2 }
 0x229   :  { %v2870_v33 = vrot.slane %v2869_v25, 1  ;;  %v2921_v34 = vadd.f32 %v2920_v26, %v2919_v19  ;;  %v2888_v37 = vrot.slane %v2887_v29, 1  ;;  %v2939_v38 = vadd.f32 %v2938_v30, %v2937_v12 }
 0x22a   :  { %v2879_v40 = vrot.slane %v2878_v31, 1  ;;  %v2930_v41 = vadd.f32 %v2929_v32, %v2928_v24  ;;  %v2897_v46 = vrot.slane %v2896_v35, 1  ;;  %v2948_v47 = vadd.f32 %v2947_v36, %v2946_v28 }
 0x22b   :  { %v2871_v42 = vadd.f32 %v2870_v33, %v2869_v25  ;;  %v2922_v43 = vrot.slane %v2921_v34, 1  ;;  %v2889_v48 = vadd.f32 %v2888_v37, %v2887_v29  ;;  %v2940_v49 = vrot.slane %v2939_v38, 1 }
 0x22c   :  { %v2880_v50 = vadd.f32 %v2879_v40, %v2878_v31  ;;  %v2931_v52 = vrot.slane %v2930_v41, 1  ;;  %v2898_v55 = vadd.f32 %v2897_v46, %v2896_v35  ;;  %v2949_v56 = vrot.slane %v2948_v47, 1  ;;  %v2980_v35 = vld [vmem:[#allocation17] sm:$0xf] }
 0x22d   :  { %v2923_v53 = vadd.f32 %v2922_v43, %v2921_v34  ;;  %v2952_v54 = vmul.f32 0.03125, %v2871_v42  ;;  %v2941_v58 = vadd.f32 %v2940_v49, %v2939_v38  ;;  %v2954_v62 = vmul.f32 0.03125, %v2889_v48 }
 0x22e   :  { %v2932_v63 = vadd.f32 %v2931_v52, %v2930_v41  ;;  %v2953_v1 = vmul.f32 0.03125, %v2880_v50  ;;  %v2950_v7 = vadd.f32 %v2949_v56, %v2948_v47  ;;  %v2955_v11 = vmul.f32 0.03125, %v2898_v55 }
 0x22f   :  { %v2956_v5 = vmul.f32 0.03125, %v2923_v53  ;;  %v2960_v6 = vmul.f32 %v2952_v54, %v2952_v54  ;;  %v2958_v13 = vmul.f32 0.03125, %v2941_v58  ;;  %v2962_v14 = vmul.f32 %v2954_v62, %v2954_v62 }
 0x230   :  { %v2957_v17 = vmul.f32 0.03125, %v2932_v63  ;;  %v2961_v18 = vmul.f32 %v2953_v1, %v2953_v1  ;;  %v2959_v20 = vmul.f32 0.03125, %v2950_v7  ;;  %v2963_v21 = vmul.f32 %v2955_v11, %v2955_v11 }
 0x231   :  { %v2964_v19 = vsub.f32 %v2956_v5, %v2960_v6  ;;  %v2982_v22 = vlaneseq  ;;  %v2966_v12 = vsub.f32 %v2958_v13, %v2962_v14  ;;  %v12010_v43 = vmov 1966171168  }
 0x232   :  { %v2965_v23 = vsub.f32 %v2957_v17, %v2961_v18  ;;  %v2967_v25 = vsub.f32 %v2959_v20, %v2963_v21  ;;  %v3018_v46 = vunpack.c.l.s4 %v12010_v43  ;;  %v12466_v20 = vld [vmem:[#allocation11 + $0x800] sm:$0xff] }
 0x233   :  { %v2968_v24 = vmax.f32 %v2964_v19, 0.0  ;;  %v2970_v26 = vmax.f32 %v2966_v12, 0.0  ;;  %v12448_v30 = vshrl.u32 %v2982_v22, 7  ;;  %v12469_v22 = vld [vmem:[#allocation11 + $0x840] sm:$0xff]  ;;  %v12471_v12 = vld [vmem:[#allocation11 + $0x810] sm:$0xff] }
 0x234   :  { %v2969_v27 = vmax.f32 %v2965_v23, 0.0  ;;  %v2971_v29 = vmax.f32 %v2967_v25, 0.0  ;;  %v3019_v58 = vunpack.c.0.s8 %v3018_v46  ;;  %v12473_v23 = vld [vmem:[#allocation11 + $0x850] sm:$0xff] }
 0x235   :  { %v2972_v28 = vadd.f32 1e-05, %v2968_v24  ;;  %v2974_v31 = vadd.f32 1e-05, %v2970_v26  ;;  %v12451_v34 = vsub.s32 0, %v12448_v30  ;;  %v2992_v36 = vsub.s32 2, %v12448_v30 }
 0x236   :  { %v2973_v32 = vadd.f32 1e-05, %v2969_v27  ;;  %v2975_v33 = vadd.f32 1e-05, %v2971_v29  ;;  %v12455_v37 = vsub.s32 1, %v12448_v30  ;;  %v2996_v38 = vsub.s32 3, %v12448_v30 }
 0x237   :  { %11514 = vrsqrt.f32 %v2972_v28  ;;  %v2985_v40 = vrot.slane %v2980_v35, %v12451_v34  ;;  %v2993_v41 = vrot.slane %v2980_v35, %v2992_v36  ;;  %v12463_v14 = vsub.s32 %v3019_v58, %v12448_v30  ;;  %v12485_v26 = vld [vmem:[#allocation11 + $0x8d8] sm:$0xff]  ;;  %v12487_v27 = vld [vmem:[#allocation11 + $0x880] sm:$0xff] }
 0x238   :  { %11516 = vrsqrt.f32 %v2974_v31  ;;  %v2989_v42 = vrot.slane %v2980_v35, %v12455_v37  ;;  %v2997_v48 = vrot.slane %v2980_v35, %v2996_v38  ;;  %v12489_v28 = vld [vmem:[#allocation11 + $0x8c0] sm:$0xff]  ;;  %v10292_v35 = vpack.c.bf16 %v12473_v23, %v12471_v12 }
 0x239   :  { %11518 = vrsqrt.f32 %v2973_v32  ;;  %v3006_v29 = vld [vmem:[#allocation18] sm:$0xf]  ;;  %v10168_v43 = vpack.c.bf16 %v12489_v28, %v12487_v27  ;;  %v3239_v28 = vld [vmem:[#allocation11 + $0xa08] sm:$0xff] }
 0x23a   :  { %11520 = vrsqrt.f32 %v2975_v33  ;;  %v10164_v33 = vpack.c.bf16 %v12469_v22, %v12466_v20  ;;  %v3232_v22 = vld [vmem:[#allocation11 + $0x940] sm:$0xff] }
 0x241   :  { %v11515_v47 = vpop.eup %11514 }
 0x242   :  { %v11517_v49 = vpop.eup %11516  ;;  %v3002_v50 = vmul.f32 %v11515_v47, %v2985_v40 }
 0x243   :  { %v11519_v52 = vpop.eup %11518  ;;  %v3004_v53 = vmul.f32 %v11517_v49, %v2993_v41 }
 0x244   :  { %v11521_v55 = vpop.eup %11520  ;;  %v3003_v56 = vmul.f32 %v11519_v52, %v2989_v42  ;;  %v3007_v5 = vmul.f32 %v3002_v50, %v2952_v54  ;;  %v12475_v54 = vld [vmem:[#allocation11 + $0x888] sm:$0xff] }
 0x245   :  { %v3005_v63 = vmul.f32 %v11521_v55, %v2997_v48  ;;  %v3009_v6 = vmul.f32 %v3004_v53, %v2954_v62  ;;  %v12477_v62 = vld [vmem:[#allocation11 + $0x8c8] sm:$0xff]  ;;  %v3052_v24 = vrot.slane %v3004_v53, %v12451_v34 }
 0x246   :  { %v3008_v7 = vmul.f32 %v3003_v56, %v2953_v1  ;;  %v12479_v1 = vld [vmem:[#allocation11 + $0x898] sm:$0xff]  ;;  %v3048_v40 = vrot.slane %v3003_v56, %v12451_v34  ;;  %v10166_v41 = vpack.c.bf16 %v12477_v62, %v12475_v54  ;;  %v3237_v54 = vld [vmem:[#allocation11 + $0x9c8] sm:$0xff] }
 0x247   :  { %v3010_v13 = vmul.f32 %v3005_v63, %v2955_v11  ;;  %v12482_v11 = vrot.slane %v3002_v50, %v12451_v34  ;;  %v3056_v31 = vrot.slane %v3005_v63, %v12451_v34  ;;  %v10294_v42 = vpack.c.bf16 %v12485_v26, %v12479_v1  ;;  %v3549_v62 = vld [vmem:[#allocation11 + $0x998] sm:$0xff] }
 0x248   :  { %v3015_v17 = vcombine.low %v3007_v5, %v3008_v7  ;;  %v3059_v48 = vmul.f32 %v3052_v24, %v12370_v59  ;;  %v3063_v50 = vmul.f32 %v3052_v24, %v12374_v61  ;;  %v3062_v59 = vmul.f32 %v3048_v40, %v12378_v3  ;;  %v3551_v1 = vld [vmem:[#allocation11 + $0x9d8] sm:$0xff] }
 0x249   :  { %v3016_v18 = vcombine.low %v3009_v6, %v3010_v13  ;;  %v3057_v46 = vmul.f32 %v12482_v11, %v12368_v57  ;;  %v3061_v47 = vmul.f32 %v12482_v11, %v12372_v60  ;;  %v3060_v52 = vmul.f32 %v3056_v31, %v12382_v8 }
 0x24a   :  { %v3023_v19 = vrot.slane %v3015_v17, %v12463_v14  ;;  %v3064_v53 = vmul.f32 %v3056_v31, %v12380_v4  ;;  %v3068_v55 = vmul.f32 %v3056_v31, %v12394_v16  ;;  %v3072_v56 = vmul.f32 %v3056_v31, %v12443_v51 }
 0x24b   :  { %v3030_v21 = vrot.slane %v3016_v18, %v12463_v14  ;;  %v3058_v60 = vmul.f32 %v3048_v40, %v12376_v2  ;;  %v3066_v61 = vmul.f32 %v3048_v40, %v12392_v15  ;;  %v3070_v8 = vmul.f32 %v3048_v40, %v12435_v45 }
 0x24c   :  { %v3067_v15 = vmul.f32 %v3052_v24, %v12386_v10  ;;  %v3071_v30 = vmul.f32 %v3052_v24, %v12433_v44  ;;  %v3231_v10 = vld [vmem:[#allocation11 + $0x908] sm:$0xff]  ;;  %v3065_v24 = vmul.f32 %v12482_v11, %v12384_v9  ;;  %v10302_v27 = vpack.c.bf16 %v3551_v1, %v3549_v62 }
 0x24d   :  { %v3031_v25 = vcombine.low %v3023_v19, %v3030_v21 }
 0x24f   :  { %v3038_v32 = vrot.slane %v3031_v25, %v12463_v14  ;;  %v3540_v25 = vld [vmem:[#allocation11 + $0x890] sm:$0xff] }
 0x251   :  { %v3040_v49 = vsub.f32 %v3006_v29, %v3038_v32  ;;  %v3542_v29 = vld [vmem:[#allocation11 + $0x8d0] sm:$0xff] }
 0x253   :  { %v12515_v58 = vrot.slane %v3040_v49, %v12451_v34  ;;  %v3081_v57 = vrot.slane %v3040_v49, %v12455_v37  ;;  %v3089_v63 = vrot.slane %v3040_v49, %v2996_v38  ;;  %v3085_v51 = vrot.slane %v3040_v49, %v2992_v36 }
 0x255   :  { %v3097_v5 = vadd.f32 %v3089_v63, %v3060_v52  ;;  %v3101_v4 = vadd.f32 %v3089_v63, %v3064_v53  ;;  %v3105_v6 = vadd.f32 %v3089_v63, %v3068_v55  ;;  %v3109_v16 = vadd.f32 %v3089_v63, %v3072_v56  ;;  %v3233_v52 = vld [vmem:[#allocation11 + $0x948] sm:$0xff]  ;;  %v3545_v53 = vld [vmem:[#allocation11 + $0x918] sm:$0xff] }
 0x256   :  { %v3095_v7 = vadd.f32 %v3081_v57, %v3058_v60  ;;  %v3094_v13 = vadd.f32 %v12515_v58, %v3057_v46  ;;  %v3099_v17 = vadd.f32 %v3081_v57, %v3062_v59  ;;  %v3098_v36 = vadd.f32 %v12515_v58, %v3061_v47  ;;  %v3547_v55 = vld [vmem:[#allocation11 + $0x958] sm:$0xff]  ;;  %v3546_v59 = vld [vmem:[#allocation11 + $0x950] sm:$0xff] }
 0x257   :  { %v12525_v38 = vmax.f32 %v3097_v5, 0.0  ;;  %v3117_v2 = vmax.f32 %v3101_v4, 0.0  ;;  %v3121_v18 = vmax.f32 %v3105_v6, 0.0  ;;  %v3125_v3 = vmax.f32 %v3109_v16, 0.0  ;;  %v3236_v5 = vld [vmem:[#allocation11 + $0x9c0] sm:$0xff]  ;;  %v3548_v4 = vld [vmem:[#allocation11 + $0x990] sm:$0xff] }
 0x258   :  { %v12528_v19 = vmax.f32 %v3095_v7, 0.0  ;;  %v12530_v45 = vmax.f32 %v3094_v13, 0.0  ;;  %v3115_v21 = vmax.f32 %v3099_v17, 0.0  ;;  %v3103_v31 = vadd.f32 %v3081_v57, %v3066_v61  ;;  %v3550_v6 = vld [vmem:[#allocation11 + $0x9d0] sm:$0xff]  ;;  %v3555_v7 = vld [vmem:[#allocation11 + $0xa58] sm:$0xff] }
 0x259   :  { %3141 = vst [vmem:[#allocation2 + $0x78] sm:$0xff] %v3125_v3  ;;  %3129 = vst [vmem:[#allocation2 + $0x18] sm:$0xff] %v12525_v38  ;;  %v3107_v32 = vadd.f32 %v3081_v57, %v3070_v8  ;;  %v3096_v40 = vadd.f32 %v3085_v51, %v3059_v48  ;;  %v3100_v46 = vadd.f32 %v3085_v51, %v3063_v50  ;;  %v3230_v48 = vld [vmem:[#allocation11 + $0x900] sm:$0xff]  ;;  %v12554_v60 = vmax.f32 %v3098_v36, 0.0  ;;  %v3552_v3 = vld [vmem:[#allocation11 + $0xa10] sm:$0xff] }
 0x25a   :  { %3133 = vst [vmem:[#allocation2 + $0x38] sm:$0xff] %v3117_v2  ;;  %3137 = vst [vmem:[#allocation2 + $0x58] sm:$0xff] %v3121_v18  ;;  %3350 = vmatprep.mubr.f32.mxu0 %v12528_v19  ;;  %3664 = vmatprep.mubr.f32.mxu1 %v12528_v19  ;;  %v3104_v44 = vadd.f32 %v3085_v51, %v3067_v15  ;;  %v10296_v47 = vpack.c.bf16 %v3542_v29, %v3540_v25  ;;  %v3119_v49 = vmax.f32 %v3103_v31, 0.0  ;;  %v3240_v2 = vld [vmem:[#allocation11 + $0xa40] sm:$0xff]  ;;  %v3554_v15 = vld [vmem:[#allocation11 + $0xa50] sm:$0xff] }
 0x25b   :  { %3127 = vst [vmem:[#allocation2 + $0x8] sm:$0xff] %v12528_v19  ;;  %3131 = vst [vmem:[#allocation2 + $0x28] sm:$0xff] %v3115_v21  ;;  %3351 = vmatmul.mubr.f32.vlgmr.msra.gmra.mrb[32].mxu0 %v12530_v45  ;;  %3665 = vmatmul.mubr.f32.vlgmr.msra.gmra.mrb[32].mxu1 %v12530_v45  ;;  %v3123_v56 = vmax.f32 %v3107_v32, 0.0  ;;  %v12548_v9 = vmax.f32 %v3096_v40, 0.0  ;;  %v12550_v50 = vmax.f32 %v3100_v46, 0.0  ;;  %v3108_v63 = vadd.f32 %v3085_v51, %v3071_v30  ;;  %v3553_v51 = vld [vmem:[#allocation11 + $0xa18] sm:$0xff] }
 0x25c   :  { %10165 = vmatpush1.bf16.msra.mxu0 %v10164_v33  ;;  %10293 = vmatpush1.bf16.msra.mxu1 %v10292_v35  ;;  %v12552_v57 = vmax.f32 %v3104_v44, 0.0  ;;  %3135 = vst [vmem:[#allocation2 + $0x48] sm:$0xff] %v3119_v49  ;;  %v3102_v20 = vadd.f32 %v12515_v58, %v3065_v24  ;;  %v3544_v33 = vld [vmem:[#allocation11 + $0x910] sm:$0xff]  ;;  %v10170_v12 = vpack.c.bf16 %v3233_v52, %v3231_v10  ;;  %v3235_v35 = vld [vmem:[#allocation11 + $0x988] sm:$0xff]  ;;  %v3557_v36 = vld [vmem:[#allocation11 + $0xa98] sm:$0xff] }
 0x25d   :  { %3356 = vmatprep.mubr.f32.mxu0 %v3115_v21  ;;  %3670 = vmatprep.mubr.f32.mxu1 %v3115_v21  ;;  %3139 = vst [vmem:[#allocation2 + $0x68] sm:$0xff] %v3123_v56  ;;  %v10298_v23 = vpack.c.bf16 %v3547_v55, %v3545_v53  ;;  %3128 = vst [vmem:[#allocation2 + $0x10] sm:$0xff] %v12548_v9  ;;  %v12566_v61 = vmax.f32 %v3108_v63, 0.0  ;;  %v3069_v8 = vmul.f32 %v12482_v11, %v12427_v39  ;;  %v3243_v21 = vld [vmem:[#allocation11 + $0xa88] sm:$0xff]  ;;  %v3559_v31 = vld [vmem:[#allocation11 + $0xad8] sm:$0xff] }
 0x25e   :  { %10167 = vmatprep.subr.bf16.mxu0 %v10166_v41  ;;  %10295 = vmatprep.subr.bf16.mxu1 %v10294_v42  ;;  %3132 = vst [vmem:[#allocation2 + $0x30] sm:$0xff] %v12550_v50  ;;  %3136 = vst [vmem:[#allocation2 + $0x50] sm:$0xff] %v12552_v57  ;;  %v10172_v26 = vpack.c.bf16 %v3232_v22, %v3230_v48  ;;  %v10300_v41 = vpack.c.bf16 %v3546_v59, %v3544_v33  ;;  %v3234_v42 = vld [vmem:[#allocation11 + $0x980] sm:$0xff]  ;;  %v12576_v39 = vmax.f32 %v3102_v20, 0.0  ;;  %v3245_v30 = vld [vmem:[#allocation11 + $0xac8] sm:$0xff] }
 0x25f   :  { %3357 = vmatmul.mubr.f32.gmra.mrb[34].mxu0 %v12554_v60  ;;  %3671 = vmatmul.mubr.f32.gmra.mrb[34].mxu1 %v12554_v60  ;;  %3140 = vst [vmem:[#allocation2 + $0x70] sm:$0xff] %v12566_v61  ;;  %v3106_v11 = vadd.f32 %v12515_v58, %v3069_v8  ;;  %v10174_v16 = vpack.c.bf16 %v3237_v54, %v3235_v35  ;;  %v3238_v58 = vld [vmem:[#allocation11 + $0xa00] sm:$0xff]  ;;  %v3247_v52 = vld [vmem:[#allocation11 + $0xb08] sm:$0xff]  ;;  %v3561_v55 = vld [vmem:[#allocation11 + $0xb18] sm:$0xff] }
 0x260   :  { %10169 = vmatpush1.bf16.msra.mxu0 %v10168_v43  ;;  %10297 = vmatpush1.bf16.msra.mxu1 %v10296_v47  ;;  %v3241_v43 = vld [vmem:[#allocation11 + $0xa48] sm:$0xff]  ;;  %v10176_v13 = vpack.c.bf16 %v3236_v5, %v3234_v42  ;;  %v10304_v17 = vpack.c.bf16 %v3550_v6, %v3548_v4  ;;  %v10306_v29 = vpack.c.bf16 %v3555_v7, %v3553_v51  ;;  %v3242_v40 = vld [vmem:[#allocation11 + $0xa80] sm:$0xff]  ;;  %v3556_v47 = vld [vmem:[#allocation11 + $0xa90] sm:$0xff] }
 0x261   :  { %3362 = vmatprep.mubr.f32.mxu0 %v3119_v49  ;;  %3676 = vmatprep.mubr.f32.mxu1 %v3119_v49  ;;  %v12581_v18 = vmax.f32 %v3106_v11, 0.0  ;;  %v10178_v25 = vpack.c.bf16 %v3241_v43, %v3239_v28  ;;  %v10180_v32 = vpack.c.bf16 %v3240_v2, %v3238_v58  ;;  %v10308_v10 = vpack.c.bf16 %v3554_v15, %v3552_v3  ;;  %v3244_v46 = vld [vmem:[#allocation11 + $0xac0] sm:$0xff]  ;;  %v3558_v49 = vld [vmem:[#allocation11 + $0xad0] sm:$0xff]  ;;  %v3249_v53 = vld [vmem:[#allocation11 + $0xb48] sm:$0xff] }
 0x262   :  { %10171 = vmatprep.subr.bf16.mxu0 %v10170_v12  ;;  %10299 = vmatprep.subr.bf16.mxu1 %v10298_v23  ;;  %v10182_v44 = vpack.c.bf16 %v3245_v30, %v3243_v21  ;;  %v10310_v24 = vpack.c.bf16 %v3559_v31, %v3557_v36  ;;  %v10184_v48 = vpack.c.bf16 %v3244_v46, %v3242_v40  ;;  %v3246_v20 = vld [vmem:[#allocation11 + $0xb00] sm:$0xff]  ;;  %v3560_v59 = vld [vmem:[#allocation11 + $0xb10] sm:$0xff]  ;;  %v3251_v23 = vld [vmem:[#allocation11 + $0xb88] sm:$0xff] }
 0x263   :  { %3363 = vmatmul.mubr.f32.gmra.mrb[36].mxu0 %v12576_v39  ;;  %3677 = vmatmul.mubr.f32.gmra.mrb[36].mxu1 %v12576_v39  ;;  %v10312_v63 = vpack.c.bf16 %v3558_v49, %v3556_v47  ;;  %v3248_v22 = vld [vmem:[#allocation11 + $0xb40] sm:$0xff]  ;;  %v10186_v33 = vpack.c.bf16 %v3249_v53, %v3247_v52  ;;  %v3562_v12 = vld [vmem:[#allocation11 + $0xb50] sm:$0xff]  ;;  %v3253_v35 = vld [vmem:[#allocation11 + $0xbc8] sm:$0xff] }
 0x264   :  { %10173 = vmatpush1.bf16.msra.mxu0 %v10172_v26  ;;  %10301 = vmatpush1.bf16.msra.mxu1 %v10300_v41  ;;  %v3565_v8 = vld [vmem:[#allocation11 + $0xb98] sm:$0xff]  ;;  %v10188_v62 = vpack.c.bf16 %v3248_v22, %v3246_v20  ;;  %v10316_v1 = vpack.c.bf16 %v3562_v12, %v3560_v59  ;;  %v3250_v26 = vld [vmem:[#allocation11 + $0xb80] sm:$0xff]  ;;  %v10190_v42 = vpack.c.bf16 %v3253_v35, %v3251_v23  ;;  %v3564_v5 = vld [vmem:[#allocation11 + $0xb90] sm:$0xff] }
 0x265   :  { %3368 = vmatprep.mubr.f32.mxu0 %v3123_v56  ;;  %3682 = vmatprep.mubr.f32.mxu1 %v3123_v56  ;;  %v3563_v56 = vld [vmem:[#allocation11 + $0xb58] sm:$0xff]  ;;  %v3252_v41 = vld [vmem:[#allocation11 + $0xbc0] sm:$0xff]  ;;  %v3566_v4 = vld [vmem:[#allocation11 + $0xbd0] sm:$0xff] }
 0x266   :  { %10175 = vmatprep.subr.bf16.mxu0 %v10174_v16  ;;  %10303 = vmatprep.subr.bf16.mxu1 %v10302_v27  ;;  %v3567_v54 = vld [vmem:[#allocation11 + $0xbd8] sm:$0xff]  ;;  %v3255_v6 = vld [vmem:[#allocation11 + $0xc08] sm:$0xff]  ;;  %v10192_v43 = vpack.c.bf16 %v3252_v41, %v3250_v26  ;;  %v10320_v51 = vpack.c.bf16 %v3566_v4, %v3564_v5  ;;  %v3254_v7 = vld [vmem:[#allocation11 + $0xc00] sm:$0xff] }
 0x267   :  { %3369 = vmatmul.mubr.f32.gmra.mrb[38].mxu0 %v12581_v18  ;;  %3683 = vmatmul.mubr.f32.gmra.mrb[38].mxu1 %v12581_v18  ;;  %v10318_v11 = vpack.c.bf16 %v3567_v54, %v3565_v8  ;;  %v3257_v16 = vld [vmem:[#allocation11 + $0xc48] sm:$0xff]  ;;  %v3569_v27 = vld [vmem:[#allocation11 + $0xc18] sm:$0xff]  ;;  %v3568_v2 = vld [vmem:[#allocation11 + $0xc10] sm:$0xff] }
 0x268   :  { %10177 = vmatpush1.bf16.msra.mxu0 %v10176_v13  ;;  %10305 = vmatpush1.bf16.msra.mxu1 %v10304_v17  ;;  %v3571_v28 = vld [vmem:[#allocation11 + $0xc58] sm:$0xff]  ;;  %v3256_v13 = vld [vmem:[#allocation11 + $0xc40] sm:$0xff]  ;;  %v10194_v17 = vpack.c.bf16 %v3257_v16, %v3255_v6  ;;  %v3570_v3 = vld [vmem:[#allocation11 + $0xc50] sm:$0xff] }
 0x269   :  { %3439 = vmatprep.mubr.f32.mxu0 %v12525_v38  ;;  %3753 = vmatprep.mubr.f32.mxu1 %v12525_v38  ;;  %v10314_v38 = vpack.c.bf16 %v3563_v56, %v3561_v55  ;;  %v10322_v58 = vpack.c.bf16 %v3571_v28, %v3569_v27  ;;  %v3259_v15 = vld [vmem:[#allocation11 + $0xc88] sm:$0xff]  ;;  %v10196_v30 = vpack.c.bf16 %v3256_v13, %v3254_v7  ;;  %v3258_v31 = vld [vmem:[#allocation11 + $0xc80] sm:$0xff]  ;;  %v3572_v46 = vld [vmem:[#allocation11 + $0xc90] sm:$0xff] }
 0x26a   :  { %10179 = vmatprep.subr.bf16.mxu0 %v10178_v25  ;;  %10307 = vmatprep.subr.bf16.mxu1 %v10306_v29  ;;  %v3261_v21 = vld [vmem:[#allocation11 + $0xcc8] sm:$0xff]  ;;  %v3573_v25 = vld [vmem:[#allocation11 + $0xc98] sm:$0xff]  ;;  %v10324_v36 = vpack.c.bf16 %v3570_v3, %v3568_v2  ;;  %v3262_v56 = vld [vmem:[#allocation11 + $0xd00] sm:$0xff] }
 0x26b   :  { %v3575_v29 = vld [vmem:[#allocation11 + $0xcd8] sm:$0xff]  ;;  %v3265_v47 = vld [vmem:[#allocation11 + $0xd48] sm:$0xff]  ;;  %v3576_v22 = vld [vmem:[#allocation11 + $0xd10] sm:$0xff] }
 0x26c   :  { %10181 = vmatpush1.bf16.msra.mxu0 %v10180_v32  ;;  %10309 = vmatpush1.bf16.msra.mxu1 %v10308_v10  ;;  %v3260_v32 = vld [vmem:[#allocation11 + $0xcc0] sm:$0xff]  ;;  %v10198_v10 = vpack.c.bf16 %v3261_v21, %v3259_v15  ;;  %v10326_v40 = vpack.c.bf16 %v3575_v29, %v3573_v25  ;;  %v3577_v49 = vld [vmem:[#allocation11 + $0xd18] sm:$0xff]  ;;  %v3269_v59 = vld [vmem:[#allocation11 + $0xdc8] sm:$0xff] }
 0x26d   :  { %10183 = vmatprep.subr.bf16.mxu0 %v10182_v44  ;;  %10311 = vmatprep.subr.bf16.mxu1 %v10310_v24  ;;  %v3574_v44 = vld [vmem:[#allocation11 + $0xcd0] sm:$0xff]  ;;  %v3263_v24 = vld [vmem:[#allocation11 + $0xd08] sm:$0xff]  ;;  %v3579_v52 = vld [vmem:[#allocation11 + $0xd58] sm:$0xff]  ;;  %v10200_v53 = vpack.c.bf16 %v3260_v32, %v3258_v31 }
 0x26e   :  { %v10328_v55 = vpack.c.bf16 %v3574_v44, %v3572_v46  ;;  %v10330_v20 = vpack.c.bf16 %v3579_v52, %v3577_v49  ;;  %v3581_v12 = vld [vmem:[#allocation11 + $0xd98] sm:$0xff]  ;;  %v3266_v54 = vld [vmem:[#allocation11 + $0xd80] sm:$0xff]  ;;  %v3580_v41 = vld [vmem:[#allocation11 + $0xd90] sm:$0xff] }
 0x26f   :  { %v3583_v23 = vld [vmem:[#allocation11 + $0xdd8] sm:$0xff]  ;;  %v3273_v5 = vld [vmem:[#allocation11 + $0xe48] sm:$0xff]  ;;  %v3270_v28 = vld [vmem:[#allocation11 + $0xe00] sm:$0xff] }
 0x270   :  { %10185 = vmatpush1.bf16.msra.mxu0 %v10184_v48  ;;  %10313 = vmatpush1.bf16.msra.mxu1 %v10312_v63  ;;  %v3264_v48 = vld [vmem:[#allocation11 + $0xd40] sm:$0xff]  ;;  %v10202_v63 = vpack.c.bf16 %v3265_v47, %v3263_v24  ;;  %v10334_v26 = vpack.c.bf16 %v3583_v23, %v3581_v12  ;;  %v3585_v4 = vld [vmem:[#allocation11 + $0xe18] sm:$0xff]  ;;  %v3584_v13 = vld [vmem:[#allocation11 + $0xe10] sm:$0xff] }
 0x271   :  { %10187 = vmatprep.subr.bf16.mxu0 %v10186_v33  ;;  %10315 = vmatprep.subr.bf16.mxu1 %v10314_v38  ;;  %v3578_v33 = vld [vmem:[#allocation11 + $0xd50] sm:$0xff]  ;;  %v3267_v38 = vld [vmem:[#allocation11 + $0xd88] sm:$0xff]  ;;  %v10204_v35 = vpack.c.bf16 %v3264_v48, %v3262_v56  ;;  %v3587_v6 = vld [vmem:[#allocation11 + $0xe58] sm:$0xff] }
 0x272   :  { %v10332_v8 = vpack.c.bf16 %v3578_v33, %v3576_v22  ;;  %v10338_v7 = vpack.c.bf16 %v3587_v6, %v3585_v4  ;;  %v3277_v2 = vld [vmem:[#allocation11 + $0xec8] sm:$0xff]  ;;  %v3589_v3 = vld [vmem:[#allocation11 + $0xe98] sm:$0xff]  ;;  %v3274_v29 = vld [vmem:[#allocation11 + $0xe80] sm:$0xff] }
 0x273   :  { %v3591_v15 = vld [vmem:[#allocation11 + $0xed8] sm:$0xff]  ;;  %v3588_v32 = vld [vmem:[#allocation11 + $0xe90] sm:$0xff]  ;;  %v3281_v46 = vld [vmem:[#allocation11 + $0xf48] sm:$0xff] }
 0x274   :  { %10189 = vmatpush1.bf16.msra.mxu0 %v10188_v62  ;;  %10317 = vmatpush1.bf16.msra.mxu1 %v10316_v1  ;;  %v3268_v62 = vld [vmem:[#allocation11 + $0xdc0] sm:$0xff]  ;;  %v10206_v1 = vpack.c.bf16 %v3269_v59, %v3267_v38  ;;  %v10342_v31 = vpack.c.bf16 %v3591_v15, %v3589_v3  ;;  %v3593_v44 = vld [vmem:[#allocation11 + $0xf18] sm:$0xff]  ;;  %v3592_v48 = vld [vmem:[#allocation11 + $0xf10] sm:$0xff] }
 0x275   :  { %10191 = vmatprep.subr.bf16.mxu0 %v10190_v42  ;;  %10319 = vmatprep.subr.bf16.mxu1 %v10318_v11  ;;  %v3582_v42 = vld [vmem:[#allocation11 + $0xdd0] sm:$0xff]  ;;  %v3271_v11 = vld [vmem:[#allocation11 + $0xe08] sm:$0xff]  ;;  %v10208_v16 = vpack.c.bf16 %v3268_v62, %v3266_v54  ;;  %v3595_v24 = vld [vmem:[#allocation11 + $0xf58] sm:$0xff] }
 0x276   :  { %v10336_v27 = vpack.c.bf16 %v3582_v42, %v3580_v41  ;;  %v3278_v52 = vld [vmem:[#allocation11 + $0xf00] sm:$0xff]  ;;  %v10346_v56 = vpack.c.bf16 %v3595_v24, %v3593_v44  ;;  %v3285_v22 = vld [vmem:[#allocation11 + $0xfc8] sm:$0xff]  ;;  %v3597_v33 = vld [vmem:[#allocation11 + $0xf98] sm:$0xff] }
 0x277   :  { %v3599_v38 = vld [vmem:[#allocation11 + $0xfd8] sm:$0xff]  ;;  %v3282_v23 = vld [vmem:[#allocation11 + $0xf80] sm:$0xff]  ;;  %v3596_v62 = vld [vmem:[#allocation11 + $0xf90] sm:$0xff] }
 0x278   :  { %10193 = vmatpush1.bf16.msra.mxu0 %v10192_v43  ;;  %10321 = vmatpush1.bf16.msra.mxu1 %v10320_v51  ;;  %v3272_v43 = vld [vmem:[#allocation11 + $0xe40] sm:$0xff]  ;;  %v10210_v51 = vpack.c.bf16 %v3273_v5, %v3271_v11  ;;  %v10350_v54 = vpack.c.bf16 %v3599_v38, %v3597_v33  ;;  %v3789_v41 = vld [vmem:[#allocation11 + $0x68] sm:$0xff]  ;;  %v4101_v42 = vld [vmem:[#allocation11 + $0x38] sm:$0xff] }
 0x279   :  { %10195 = vmatprep.subr.bf16.mxu0 %v10194_v17  ;;  %10323 = vmatprep.subr.bf16.mxu1 %v10322_v58  ;;  %v3586_v17 = vld [vmem:[#allocation11 + $0xe50] sm:$0xff]  ;;  %v3275_v58 = vld [vmem:[#allocation11 + $0xe88] sm:$0xff]  ;;  %v10212_v21 = vpack.c.bf16 %v3272_v43, %v3270_v28  ;;  %v4103_v11 = vld [vmem:[#allocation11 + $0x78] sm:$0xff] }
 0x27a   :  { %v10340_v25 = vpack.c.bf16 %v3586_v17, %v3584_v13  ;;  %v3788_v28 = vld [vmem:[#allocation11 + $0x60] sm:$0xff]  ;;  %v4100_v43 = vld [vmem:[#allocation11 + $0x30] sm:$0xff]  ;;  %v3793_v13 = vld [vmem:[#allocation11 + $0xe8] sm:$0xff] }
 0x27b   :  { %v4105_v17 = vld [vmem:[#allocation11 + $0xb8] sm:$0xff]  ;;  %v3790_v15 = vld [vmem:[#allocation11 + $0xa0] sm:$0xff] }
 0x27c   :  { %10197 = vmatpush1.bf16.msra.mxu0 %v10196_v30  ;;  %10325 = vmatpush1.bf16.msra.mxu1 %v10324_v36  ;;  %v3276_v30 = vld [vmem:[#allocation11 + $0xec0] sm:$0xff]  ;;  %v10214_v36 = vpack.c.bf16 %v3277_v2, %v3275_v58  ;;  %v4107_v58 = vld [vmem:[#allocation11 + $0xf8] sm:$0xff] }
 0x27d   :  { %10199 = vmatprep.subr.bf16.mxu0 %v10198_v10  ;;  %10327 = vmatprep.subr.bf16.mxu1 %v10326_v40  ;;  %v3590_v10 = vld [vmem:[#allocation11 + $0xed0] sm:$0xff]  ;;  %v3279_v40 = vld [vmem:[#allocation11 + $0xf08] sm:$0xff]  ;;  %v10216_v47 = vpack.c.bf16 %v3276_v30, %v3274_v29  ;;  %v10486_v30 = vpack.c.bf16 %v4107_v58, %v4105_v17  ;;  %v3806_v58 = vld [vmem:[#allocation11 + $0x2a0] sm:$0xff] }
 0x27e   :  { %v10344_v49 = vpack.c.bf16 %v3590_v10, %v3588_v32  ;;  %v3797_v32 = vld [vmem:[#allocation11 + $0x168] sm:$0xff]  ;;  %v3149_v10 = vld [vmem:[#allocation2 + $0x38] sm:$0xff] }
 0x280   :  { %10201 = vmatpush1.bf16.msra.mxu0 %v10200_v53  ;;  %10329 = vmatpush1.bf16.msra.mxu1 %v10328_v55  ;;  %v3280_v53 = vld [vmem:[#allocation11 + $0xf40] sm:$0xff]  ;;  %v10218_v55 = vpack.c.bf16 %v3281_v46, %v3279_v40  ;;  %v4109_v40 = vld [vmem:[#allocation11 + $0x138] sm:$0xff] }
 0x281   :  { %10203 = vmatprep.subr.bf16.mxu0 %v10202_v63  ;;  %10331 = vmatprep.subr.bf16.mxu1 %v10330_v20  ;;  %v3594_v63 = vld [vmem:[#allocation11 + $0xf50] sm:$0xff]  ;;  %v3283_v20 = vld [vmem:[#allocation11 + $0xf88] sm:$0xff]  ;;  %v10220_v59 = vpack.c.bf16 %v3280_v53, %v3278_v52  ;;  %v4111_v46 = vld [vmem:[#allocation11 + $0x178] sm:$0xff] }
 0x282   :  { %v10348_v12 = vpack.c.bf16 %v3594_v63, %v3592_v48  ;;  %v4108_v52 = vld [vmem:[#allocation11 + $0x130] sm:$0xff]  ;;  %v3799_v48 = vld [vmem:[#allocation11 + $0x1a8] sm:$0xff] }
 0x283   :  { %v3801_v63 = vld [vmem:[#allocation11 + $0x1e8] sm:$0xff] }
 0x284   :  { %10205 = vmatpush1.bf16.msra.mxu0 %v10204_v35  ;;  %10333 = vmatpush1.bf16.msra.mxu1 %v10332_v8  ;;  %v3284_v35 = vld [vmem:[#allocation11 + $0xfc0] sm:$0xff]  ;;  %v10222_v8 = vpack.c.bf16 %v3285_v22, %v3283_v20  ;;  %v4113_v20 = vld [vmem:[#allocation11 + $0x1b8] sm:$0xff] }
 0x285   :  { %10207 = vmatprep.subr.bf16.mxu0 %v10206_v1  ;;  %10335 = vmatprep.subr.bf16.mxu1 %v10334_v26  ;;  %v3598_v1 = vld [vmem:[#allocation11 + $0xfd0] sm:$0xff]  ;;  %v3787_v26 = vld [vmem:[#allocation11 + $0x28] sm:$0xff]  ;;  %v10224_v5 = vpack.c.bf16 %v3284_v35, %v3282_v23  ;;  %v4115_v22 = vld [vmem:[#allocation11 + $0x1f8] sm:$0xff]  ;;  %v10366_v35 = vpack.c.bf16 %v3801_v63, %v3799_v48 }
 0x286   :  { %v10352_v4 = vpack.c.bf16 %v3598_v1, %v3596_v62  ;;  %v10354_v6 = vpack.c.bf16 %v3789_v41, %v3787_v26  ;;  %v4112_v23 = vld [vmem:[#allocation11 + $0x1b0] sm:$0xff]  ;;  %v3805_v62 = vld [vmem:[#allocation11 + $0x268] sm:$0xff]  ;;  %v4117_v26 = vld [vmem:[#allocation11 + $0x238] sm:$0xff] }
 0x287   :  { %v12597_v1 = vld [vmem:[#allocation2 + $0x78] sm:$0xff]  ;;  %v3814_v48 = vld [vmem:[#allocation11 + $0x3a0] sm:$0xff] }
 0x288   :  { %10209 = vmatpush1.bf16.msra.mxu0 %v10208_v16  ;;  %10337 = vmatpush1.bf16.msra.mxu1 %v10336_v27  ;;  %v10482_v16 = vpack.c.bf16 %v4103_v11, %v4101_v42  ;;  %v3786_v27 = vld [vmem:[#allocation11 + $0x20] sm:$0xff]  ;;  %v4119_v41 = vld [vmem:[#allocation11 + $0x278] sm:$0xff] }
 0x289   :  { %10211 = vmatprep.subr.bf16.mxu0 %v10210_v51  ;;  %10339 = vmatprep.subr.bf16.mxu1 %v10338_v7  ;;  %v4102_v51 = vld [vmem:[#allocation11 + $0x70] sm:$0xff]  ;;  %v3791_v7 = vld [vmem:[#allocation11 + $0xa8] sm:$0xff]  ;;  %v10356_v2 = vpack.c.bf16 %v3788_v28, %v3786_v27  ;;  %v3816_v63 = vld [vmem:[#allocation11 + $0x3e0] sm:$0xff] }
 0x28a   :  { %v10484_v3 = vpack.c.bf16 %v4102_v51, %v4100_v43  ;;  %v10358_v29 = vpack.c.bf16 %v3793_v13, %v3791_v7  ;;  %v4116_v27 = vld [vmem:[#allocation11 + $0x230] sm:$0xff]  ;;  %v3807_v28 = vld [vmem:[#allocation11 + $0x2a8] sm:$0xff]  ;;  %v4121_v51 = vld [vmem:[#allocation11 + $0x2b8] sm:$0xff] }
 0x28b   :  { %v3809_v43 = vld [vmem:[#allocation11 + $0x2e8] sm:$0xff]  ;;  %v4123_v7 = vld [vmem:[#allocation11 + $0x2f8] sm:$0xff] }
 0x28c   :  { %10213 = vmatpush1.bf16.msra.mxu0 %v10212_v21  ;;  %10341 = vmatpush1.bf16.msra.mxu1 %v10340_v25  ;;  %v3792_v21 = vld [vmem:[#allocation11 + $0xe0] sm:$0xff]  ;;  %v4104_v25 = vld [vmem:[#allocation11 + $0xb0] sm:$0xff] }
 0x28d   :  { %10215 = vmatprep.subr.bf16.mxu0 %v10214_v36  ;;  %10343 = vmatprep.subr.bf16.mxu1 %v10342_v31  ;;  %v4106_v36 = vld [vmem:[#allocation11 + $0xf0] sm:$0xff]  ;;  %v3795_v31 = vld [vmem:[#allocation11 + $0x128] sm:$0xff]  ;;  %v10360_v44 = vpack.c.bf16 %v3792_v21, %v3790_v15  ;;  %v10502_v15 = vpack.c.bf16 %v4123_v7, %v4121_v51 }
 0x28e   :  { %v10488_v24 = vpack.c.bf16 %v4106_v36, %v4104_v25  ;;  %v10362_v53 = vpack.c.bf16 %v3797_v32, %v3795_v31  ;;  %v4120_v21 = vld [vmem:[#allocation11 + $0x2b0] sm:$0xff]  ;;  %v4127_v36 = vld [vmem:[#allocation11 + $0x378] sm:$0xff]  ;;  %v3810_v32 = vld [vmem:[#allocation11 + $0x320] sm:$0xff] }
 0x28f   :  { %v4122_v25 = vld [vmem:[#allocation11 + $0x2f0] sm:$0xff] }
 0x290   :  { %10217 = vmatpush1.bf16.msra.mxu0 %v10216_v47  ;;  %10345 = vmatpush1.bf16.msra.mxu1 %v10344_v49  ;;  %v3794_v47 = vld [vmem:[#allocation11 + $0x120] sm:$0xff] }
 0x291   :  { %10219 = vmatprep.subr.bf16.mxu0 %v10218_v55  ;;  %10347 = vmatprep.subr.bf16.mxu1 %v10346_v56  ;;  %v3796_v49 = vld [vmem:[#allocation11 + $0x160] sm:$0xff]  ;;  %v10490_v55 = vpack.c.bf16 %v4111_v46, %v4109_v40  ;;  %v4110_v56 = vld [vmem:[#allocation11 + $0x170] sm:$0xff] }
 0x292   :  { %v10364_v33 = vpack.c.bf16 %v3796_v49, %v3794_v47  ;;  %v10492_v38 = vpack.c.bf16 %v4110_v56, %v4108_v52  ;;  %v3815_v47 = vld [vmem:[#allocation11 + $0x3a8] sm:$0xff]  ;;  %v4129_v52 = vld [vmem:[#allocation11 + $0x3b8] sm:$0xff] }
 0x293   :  { %v3817_v49 = vld [vmem:[#allocation11 + $0x3e8] sm:$0xff] }
 0x294   :  { %10221 = vmatpush1.bf16.msra.mxu0 %v10220_v59  ;;  %10349 = vmatpush1.bf16.msra.mxu1 %v10348_v12  ;;  %v3798_v59 = vld [vmem:[#allocation11 + $0x1a0] sm:$0xff] }
 0x295   :  { %10223 = vmatprep.subr.bf16.mxu0 %v10222_v8  ;;  %10351 = vmatprep.subr.bf16.mxu1 %v10350_v54  ;;  %v3800_v12 = vld [vmem:[#allocation11 + $0x1e0] sm:$0xff]  ;;  %v10494_v8 = vpack.c.bf16 %v4115_v22, %v4113_v20  ;;  %v3803_v54 = vld [vmem:[#allocation11 + $0x228] sm:$0xff]  ;;  %v10382_v20 = vpack.c.bf16 %v3817_v49, %v3815_v47 }
 0x296   :  { %v10368_v42 = vpack.c.bf16 %v3800_v12, %v3798_v59  ;;  %v3819_v59 = vld [vmem:[#allocation11 + $0x428] sm:$0xff]  ;;  %v3830_v47 = vld [vmem:[#allocation11 + $0x5a0] sm:$0xff] }
 0x297   :  { %v3821_v12 = vld [vmem:[#allocation11 + $0x468] sm:$0xff]  ;;  %v3832_v49 = vld [vmem:[#allocation11 + $0x5e0] sm:$0xff] }
 0x298   :  { %10225 = vmatpush1.bf16.msra.mxu0 %v10224_v5  ;;  %10353 = vmatpush1.bf16.msra.mxu1 %v10352_v4  ;;  %v3802_v5 = vld [vmem:[#allocation11 + $0x220] sm:$0xff] }
 0x299   :  { %10355 = vmatprep.subr.bf16.mxu0 %v10354_v6  ;;  %10483 = vmatprep.subr.bf16.mxu1 %v10482_v16  ;;  %v3804_v4 = vld [vmem:[#allocation11 + $0x260] sm:$0xff]  ;;  %v10370_v6 = vpack.c.bf16 %v3805_v62, %v3803_v54  ;;  %v10498_v16 = vpack.c.bf16 %v4119_v41, %v4117_v26  ;;  %v10386_v26 = vpack.c.bf16 %v3821_v12, %v3819_v59 }
 0x29a   :  { %v10372_v13 = vpack.c.bf16 %v3804_v4, %v3802_v5  ;;  %v3818_v54 = vld [vmem:[#allocation11 + $0x420] sm:$0xff]  ;;  %v3823_v5 = vld [vmem:[#allocation11 + $0x4a8] sm:$0xff] }
 0x29b   :  { %3440 = vmatmul.mubr.f32.vlgmr.msra.gmra.mrb[32].mxu0 %v12548_v9  ;;  %3754 = vmatmul.mubr.f32.vlgmr.msra.gmra.mrb[32].mxu1 %v12548_v9  ;;  %v12591_v9 = vld [vmem:[#allocation2 + $0x58] sm:$0xff]  ;;  %v3820_v62 = vld [vmem:[#allocation11 + $0x460] sm:$0xff]  ;;  %v3825_v4 = vld [vmem:[#allocation11 + $0x4e8] sm:$0xff] }
 0x29c   :  { %3445 = vmatprep.mubr.f32.mxu0 %v3149_v10  ;;  %3759 = vmatprep.mubr.f32.mxu1 %v3149_v10  ;;  %v3812_v10 = vld [vmem:[#allocation11 + $0x360] sm:$0xff]  ;;  %v10390_v51 = vpack.c.bf16 %v3825_v4, %v3823_v5 }
 0x29d   :  { %10357 = vmatpush1.bf16.msra.mxu0 %v10356_v2  ;;  %10485 = vmatpush1.bf16.msra.mxu1 %v10484_v3  ;;  %v3808_v2 = vld [vmem:[#allocation11 + $0x2e0] sm:$0xff]  ;;  %v10374_v3 = vpack.c.bf16 %v3809_v43, %v3807_v28 }
 0x29e   :  { %10359 = vmatprep.subr.bf16.mxu0 %v10358_v29  ;;  %10487 = vmatprep.subr.bf16.mxu1 %v10486_v30  ;;  %v3813_v29 = vld [vmem:[#allocation11 + $0x368] sm:$0xff]  ;;  %v4125_v30 = vld [vmem:[#allocation11 + $0x338] sm:$0xff]  ;;  %v10376_v31 = vpack.c.bf16 %v3808_v2, %v3806_v58  ;;  %v3822_v28 = vld [vmem:[#allocation11 + $0x4a0] sm:$0xff] }
 0x29f   :  { %3446 = vmatmul.mubr.f32.gmra.mrb[34].mxu0 %v12550_v50  ;;  %3760 = vmatmul.mubr.f32.gmra.mrb[34].mxu1 %v12550_v50  ;;  %v4114_v50 = vld [vmem:[#allocation11 + $0x1f0] sm:$0xff]  ;;  %v10506_v46 = vpack.c.bf16 %v4127_v36, %v4125_v30  ;;  %v3824_v43 = vld [vmem:[#allocation11 + $0x4e0] sm:$0xff]  ;;  %v3827_v58 = vld [vmem:[#allocation11 + $0x528] sm:$0xff] }
 0x2a0   :  { %3451 = vmatprep.mubr.f32.mxu0 %v12591_v9  ;;  %3765 = vmatprep.mubr.f32.mxu1 %v12591_v9  ;;  %v10496_v11 = vpack.c.bf16 %v4114_v50, %v4112_v23  ;;  %v4133_v23 = vld [vmem:[#allocation11 + $0x438] sm:$0xff]  ;;  %v3829_v2 = vld [vmem:[#allocation11 + $0x568] sm:$0xff]  ;;  %v3834_v59 = vld [vmem:[#allocation11 + $0x620] sm:$0xff] }
 0x2a1   :  { %10361 = vmatpush1.bf16.msra.mxu0 %v10360_v44  ;;  %10489 = vmatpush1.bf16.msra.mxu1 %v10488_v24  ;;  %v4124_v44 = vld [vmem:[#allocation11 + $0x330] sm:$0xff]  ;;  %v10394_v30 = vpack.c.bf16 %v3829_v2, %v3827_v58  ;;  %v3836_v12 = vld [vmem:[#allocation11 + $0x660] sm:$0xff] }
 0x2a2   :  { %10363 = vmatprep.subr.bf16.mxu0 %v10362_v53  ;;  %10491 = vmatprep.subr.bf16.mxu1 %v10490_v55  ;;  %v4126_v24 = vld [vmem:[#allocation11 + $0x370] sm:$0xff]  ;;  %v4131_v53 = vld [vmem:[#allocation11 + $0x3f8] sm:$0xff]  ;;  %v10380_v55 = vpack.c.bf16 %v3812_v10, %v3810_v32  ;;  %v3831_v32 = vld [vmem:[#allocation11 + $0x5a8] sm:$0xff] }
 0x2a3   :  { %3452 = vmatmul.mubr.f32.gmra.mrb[36].mxu0 %v12552_v57  ;;  %3766 = vmatmul.mubr.f32.gmra.mrb[36].mxu1 %v12552_v57  ;;  %v4118_v57 = vld [vmem:[#allocation11 + $0x270] sm:$0xff]  ;;  %v10508_v56 = vpack.c.bf16 %v4126_v24, %v4124_v44  ;;  %v10510_v22 = vpack.c.bf16 %v4131_v53, %v4129_v52  ;;  %v3833_v10 = vld [vmem:[#allocation11 + $0x5e8] sm:$0xff]  ;;  %v3838_v5 = vld [vmem:[#allocation11 + $0x6a0] sm:$0xff] }
 0x2a4   :  { %3457 = vmatprep.mubr.f32.mxu0 %v12597_v1  ;;  %3771 = vmatprep.mubr.f32.mxu1 %v12597_v1  ;;  %v10500_v17 = vpack.c.bf16 %v4118_v57, %v4116_v27  ;;  %v10388_v27 = vpack.c.bf16 %v3820_v62, %v3818_v54  ;;  %v10398_v52 = vpack.c.bf16 %v3833_v10, %v3831_v32  ;;  %v3839_v54 = vld [vmem:[#allocation11 + $0x6a8] sm:$0xff]  ;;  %v3840_v4 = vld [vmem:[#allocation11 + $0x6e0] sm:$0xff] }
 0x2a5   :  { %10365 = vmatpush1.bf16.msra.mxu0 %v10364_v33  ;;  %10493 = vmatpush1.bf16.msra.mxu1 %v10492_v38  ;;  %v4128_v33 = vld [vmem:[#allocation11 + $0x3b0] sm:$0xff]  ;;  %v3841_v62 = vld [vmem:[#allocation11 + $0x6e8] sm:$0xff]  ;;  %v3842_v58 = vld [vmem:[#allocation11 + $0x720] sm:$0xff] }
 0x2a6   :  { %10367 = vmatprep.subr.bf16.mxu0 %v10366_v35  ;;  %10495 = vmatprep.subr.bf16.mxu1 %v10494_v8  ;;  %v4130_v38 = vld [vmem:[#allocation11 + $0x3f0] sm:$0xff]  ;;  %v4135_v35 = vld [vmem:[#allocation11 + $0x478] sm:$0xff]  ;;  %v10384_v8 = vpack.c.bf16 %v3816_v63, %v3814_v48  ;;  %v3835_v48 = vld [vmem:[#allocation11 + $0x628] sm:$0xff] }
 0x2a7   :  { %3458 = vmatmul.mubr.f32.gmra.mrb[38].mxu0 %v12566_v61  ;;  %3772 = vmatmul.mubr.f32.gmra.mrb[38].mxu1 %v12566_v61  ;;  %v3811_v61 = vld [vmem:[#allocation11 + $0x328] sm:$0xff]  ;;  %v10512_v50 = vpack.c.bf16 %v4130_v38, %v4128_v33  ;;  %v10514_v41 = vpack.c.bf16 %v4135_v35, %v4133_v23  ;;  %v10400_v33 = vpack.c.bf16 %v3832_v49, %v3830_v47  ;;  %v3844_v2 = vld [vmem:[#allocation11 + $0x760] sm:$0xff] }
 0x2a8   :  { %3978 = vmatprep.mubr.f32.mxu0 %v12528_v19  ;;  %4292 = vmatprep.mubr.f32.mxu1 %v12528_v19  ;;  %v10504_v19 = vpack.c.bf16 %v4122_v25, %v4120_v21  ;;  %v10378_v40 = vpack.c.bf16 %v3813_v29, %v3811_v61  ;;  %v10392_v21 = vpack.c.bf16 %v3824_v43, %v3822_v28  ;;  %v3826_v61 = vld [vmem:[#allocation11 + $0x520] sm:$0xff]  ;;  %v3837_v63 = vld [vmem:[#allocation11 + $0x668] sm:$0xff] }
 0x2a9   :  { %10369 = vmatpush1.bf16.msra.mxu0 %v10368_v42  ;;  %10497 = vmatpush1.bf16.msra.mxu1 %v10496_v11  ;;  %v4132_v42 = vld [vmem:[#allocation11 + $0x430] sm:$0xff]  ;;  %v3828_v29 = vld [vmem:[#allocation11 + $0x560] sm:$0xff]  ;;  %v10402_v23 = vpack.c.bf16 %v3837_v63, %v3835_v48  ;;  %v3843_v28 = vld [vmem:[#allocation11 + $0x728] sm:$0xff] }
 0x2aa   :  { %10371 = vmatprep.subr.bf16.mxu0 %v10370_v6  ;;  %10499 = vmatprep.subr.bf16.mxu1 %v10498_v16  ;;  %v4134_v11 = vld [vmem:[#allocation11 + $0x470] sm:$0xff]  ;;  %v4137_v6 = vld [vmem:[#allocation11 + $0x4b8] sm:$0xff]  ;;  %v10396_v44 = vpack.c.bf16 %v3828_v29, %v3826_v61  ;;  %v3845_v43 = vld [vmem:[#allocation11 + $0x768] sm:$0xff] }
 0x2ab   :  { %v4139_v16 = vld [vmem:[#allocation11 + $0x4f8] sm:$0xff]  ;;  %v10516_v57 = vpack.c.bf16 %v4134_v11, %v4132_v42  ;;  %v10404_v42 = vpack.c.bf16 %v3836_v12, %v3834_v59  ;;  %v3847_v61 = vld [vmem:[#allocation11 + $0x7a8] sm:$0xff]  ;;  %v3846_v32 = vld [vmem:[#allocation11 + $0x7a0] sm:$0xff] }
 0x2ac   :  { %v10518_v7 = vpack.c.bf16 %v4139_v16, %v4137_v6  ;;  %v10406_v6 = vpack.c.bf16 %v3841_v62, %v3839_v54  ;;  %v3849_v29 = vld [vmem:[#allocation11 + $0x7e8] sm:$0xff]  ;;  %v3848_v10 = vld [vmem:[#allocation11 + $0x7e0] sm:$0xff] }
 0x2ad   :  { %10373 = vmatpush1.bf16.msra.mxu0 %v10372_v13  ;;  %10501 = vmatpush1.bf16.msra.mxu1 %v10500_v17  ;;  %v4136_v13 = vld [vmem:[#allocation11 + $0x4b0] sm:$0xff]  ;;  %v3851_v47 = vld [vmem:[#allocation11 + $0x828] sm:$0xff]  ;;  %v3854_v54 = vld [vmem:[#allocation11 + $0x8a0] sm:$0xff] }
 0x2ae   :  { %10375 = vmatprep.subr.bf16.mxu0 %v10374_v3  ;;  %10503 = vmatprep.subr.bf16.mxu1 %v10502_v15  ;;  %v4138_v17 = vld [vmem:[#allocation11 + $0x4f0] sm:$0xff]  ;;  %v4141_v3 = vld [vmem:[#allocation11 + $0x538] sm:$0xff]  ;;  %v3853_v49 = vld [vmem:[#allocation11 + $0x868] sm:$0xff] }
 0x2af   :  { %v4143_v15 = vld [vmem:[#allocation11 + $0x578] sm:$0xff]  ;;  %v10520_v25 = vpack.c.bf16 %v4138_v17, %v4136_v13  ;;  %v10408_v13 = vpack.c.bf16 %v3840_v4, %v3838_v5  ;;  %v10418_v48 = vpack.c.bf16 %v3853_v49, %v3851_v47  ;;  %v3855_v59 = vld [vmem:[#allocation11 + $0x8a8] sm:$0xff]  ;;  %v3856_v62 = vld [vmem:[#allocation11 + $0x8e0] sm:$0xff] }
 0x2b0   :  { %v10522_v36 = vpack.c.bf16 %v4143_v15, %v4141_v3  ;;  %v10410_v3 = vpack.c.bf16 %v3845_v43, %v3843_v28  ;;  %v3857_v12 = vld [vmem:[#allocation11 + $0x8e8] sm:$0xff]  ;;  %v3858_v43 = vld [vmem:[#allocation11 + $0x920] sm:$0xff] }
 0x2b1   :  { %10377 = vmatpush1.bf16.msra.mxu0 %v10376_v31  ;;  %10505 = vmatpush1.bf16.msra.mxu1 %v10504_v19  ;;  %v4140_v31 = vld [vmem:[#allocation11 + $0x530] sm:$0xff]  ;;  %v3859_v5 = vld [vmem:[#allocation11 + $0x928] sm:$0xff]  ;;  %v3866_v49 = vld [vmem:[#allocation11 + $0xa20] sm:$0xff] }
 0x2b2   :  { %10379 = vmatprep.subr.bf16.mxu0 %v10378_v40  ;;  %10507 = vmatprep.subr.bf16.mxu1 %v10506_v46  ;;  %v4142_v19 = vld [vmem:[#allocation11 + $0x570] sm:$0xff]  ;;  %v4145_v40 = vld [vmem:[#allocation11 + $0x5b8] sm:$0xff]  ;;  %v3861_v4 = vld [vmem:[#allocation11 + $0x968] sm:$0xff] }
 0x2b3   :  { %v4147_v46 = vld [vmem:[#allocation11 + $0x5f8] sm:$0xff]  ;;  %v10524_v24 = vpack.c.bf16 %v4142_v19, %v4140_v31  ;;  %v10412_v31 = vpack.c.bf16 %v3844_v2, %v3842_v58  ;;  %v4174_v58 = vld [vmem:[#allocation11 + $0x970] sm:$0xff]  ;;  %v3863_v2 = vld [vmem:[#allocation11 + $0x9a8] sm:$0xff] }
 0x2b4   :  { %v10526_v53 = vpack.c.bf16 %v4147_v46, %v4145_v40  ;;  %v10414_v40 = vpack.c.bf16 %v3849_v29, %v3847_v61  ;;  %v3862_v29 = vld [vmem:[#allocation11 + $0x9a0] sm:$0xff] }
 0x2b5   :  { %10381 = vmatpush1.bf16.msra.mxu0 %v10380_v55  ;;  %10509 = vmatpush1.bf16.msra.mxu1 %v10508_v56  ;;  %v4144_v55 = vld [vmem:[#allocation11 + $0x5b0] sm:$0xff] }
 0x2b6   :  { %10383 = vmatprep.subr.bf16.mxu0 %v10382_v20  ;;  %10511 = vmatprep.subr.bf16.mxu1 %v10510_v22  ;;  %v4146_v56 = vld [vmem:[#allocation11 + $0x5f0] sm:$0xff]  ;;  %v4149_v20 = vld [vmem:[#allocation11 + $0x638] sm:$0xff] }
 0x2b7   :  { %v4151_v22 = vld [vmem:[#allocation11 + $0x678] sm:$0xff]  ;;  %v10528_v38 = vpack.c.bf16 %v4146_v56, %v4144_v55  ;;  %v10416_v55 = vpack.c.bf16 %v3848_v10, %v3846_v32  ;;  %v4178_v32 = vld [vmem:[#allocation11 + $0x9f0] sm:$0xff]  ;;  %v3867_v10 = vld [vmem:[#allocation11 + $0xa28] sm:$0xff] }
 0x2b8   :  { %v10530_v35 = vpack.c.bf16 %v4151_v22, %v4149_v20  ;;  %v3850_v20 = vld [vmem:[#allocation11 + $0x820] sm:$0xff] }
 0x2b9   :  { %10385 = vmatpush1.bf16.msra.mxu0 %v10384_v8  ;;  %10513 = vmatpush1.bf16.msra.mxu1 %v10512_v50  ;;  %v4148_v8 = vld [vmem:[#allocation11 + $0x630] sm:$0xff]  ;;  %v3852_v22 = vld [vmem:[#allocation11 + $0x860] sm:$0xff] }
 0x2ba   :  { %10387 = vmatprep.subr.bf16.mxu0 %v10386_v26  ;;  %10515 = vmatprep.subr.bf16.mxu1 %v10514_v41  ;;  %v4150_v50 = vld [vmem:[#allocation11 + $0x670] sm:$0xff]  ;;  %v4153_v26 = vld [vmem:[#allocation11 + $0x6b8] sm:$0xff] }
 0x2bb   :  { %v4155_v41 = vld [vmem:[#allocation11 + $0x6f8] sm:$0xff]  ;;  %v10532_v11 = vpack.c.bf16 %v4150_v50, %v4148_v8  ;;  %v10420_v8 = vpack.c.bf16 %v3852_v22, %v3850_v20 }
 0x2bc   :  { %v10534_v16 = vpack.c.bf16 %v4155_v41, %v4153_v26  ;;  %v10422_v26 = vpack.c.bf16 %v3857_v12, %v3855_v59  ;;  %v4185_v20 = vld [vmem:[#allocation11 + $0xab8] sm:$0xff] }
 0x2bd   :  { %10389 = vmatpush1.bf16.msra.mxu0 %v10388_v27  ;;  %10517 = vmatpush1.bf16.msra.mxu1 %v10516_v57  ;;  %v4152_v27 = vld [vmem:[#allocation11 + $0x6b0] sm:$0xff]  ;;  %v4187_v22 = vld [vmem:[#allocation11 + $0xaf8] sm:$0xff] }
 0x2be   :  { %10391 = vmatprep.subr.bf16.mxu0 %v10390_v51  ;;  %10519 = vmatprep.subr.bf16.mxu1 %v10518_v7  ;;  %v4154_v57 = vld [vmem:[#allocation11 + $0x6f0] sm:$0xff]  ;;  %v4157_v51 = vld [vmem:[#allocation11 + $0x738] sm:$0xff] }
 0x2bf   :  { %v4159_v7 = vld [vmem:[#allocation11 + $0x778] sm:$0xff]  ;;  %v10536_v17 = vpack.c.bf16 %v4154_v57, %v4152_v27  ;;  %v11658_v27 = vld [vmem:[#allocation2 + $0x28] sm:$0xff]  ;;  %v10424_v57 = vpack.c.bf16 %v3856_v62, %v3854_v54  ;;  %v4186_v54 = vld [vmem:[#allocation11 + $0xaf0] sm:$0xff] }
 0x2c0   :  { %v10538_v15 = vpack.c.bf16 %v4159_v7, %v4157_v51  ;;  %v3860_v51 = vld [vmem:[#allocation11 + $0x960] sm:$0xff]  ;;  %v10426_v7 = vpack.c.bf16 %v3861_v4, %v3859_v5  ;;  %v3875_v62 = vld [vmem:[#allocation11 + $0xb28] sm:$0xff] }
 0x2c1   :  { %10393 = vmatpush1.bf16.msra.mxu0 %v10392_v21  ;;  %10521 = vmatpush1.bf16.msra.mxu1 %v10520_v25  ;;  %v4156_v21 = vld [vmem:[#allocation11 + $0x730] sm:$0xff]  ;;  %v3874_v4 = vld [vmem:[#allocation11 + $0xb20] sm:$0xff] }
 0x2c2   :  { %10395 = vmatprep.subr.bf16.mxu0 %v10394_v30  ;;  %10523 = vmatprep.subr.bf16.mxu1 %v10522_v36  ;;  %v4158_v25 = vld [vmem:[#allocation11 + $0x770] sm:$0xff]  ;;  %v4161_v30 = vld [vmem:[#allocation11 + $0x7b8] sm:$0xff] }
 0x2c3   :  { %v4163_v36 = vld [vmem:[#allocation11 + $0x7f8] sm:$0xff]  ;;  %v10540_v19 = vpack.c.bf16 %v4158_v25, %v4156_v21  ;;  %v11659_v21 = vld [vmem:[#allocation2 + $0x48] sm:$0xff]  ;;  %v10428_v25 = vpack.c.bf16 %v3860_v51, %v3858_v43 }
 0x2c4   :  { %v10542_v46 = vpack.c.bf16 %v4163_v36, %v4161_v30  ;;  %v3864_v30 = vld [vmem:[#allocation11 + $0x9e0] sm:$0xff]  ;;  %v3881_v43 = vld [vmem:[#allocation11 + $0xbe8] sm:$0xff]  ;;  %v4193_v51 = vld [vmem:[#allocation11 + $0xbb8] sm:$0xff] }
 0x2c5   :  { %10397 = vmatpush1.bf16.msra.mxu0 %v10396_v44  ;;  %10525 = vmatpush1.bf16.msra.mxu1 %v10524_v24  ;;  %v4160_v44 = vld [vmem:[#allocation11 + $0x7b0] sm:$0xff] }
 0x2c6   :  { %10399 = vmatprep.subr.bf16.mxu0 %v10398_v52  ;;  %10527 = vmatprep.subr.bf16.mxu1 %v10526_v53  ;;  %v4162_v24 = vld [vmem:[#allocation11 + $0x7f0] sm:$0xff]  ;;  %v4165_v52 = vld [vmem:[#allocation11 + $0x838] sm:$0xff] }
 0x2c7   :  { %v4167_v53 = vld [vmem:[#allocation11 + $0x878] sm:$0xff]  ;;  %v10544_v56 = vpack.c.bf16 %v4162_v24, %v4160_v44  ;;  %v11660_v44 = vld [vmem:[#allocation2 + $0x68] sm:$0xff]  ;;  %v10432_v24 = vpack.c.bf16 %v3864_v30, %v3862_v29 }
 0x2c8   :  { %v10546_v63 = vpack.c.bf16 %v4167_v53, %v4165_v52  ;;  %v3868_v52 = vld [vmem:[#allocation11 + $0xa60] sm:$0xff]  ;;  %v4180_v53 = vld [vmem:[#allocation11 + $0xa30] sm:$0xff]  ;;  %v4197_v29 = vld [vmem:[#allocation11 + $0xc38] sm:$0xff] }
 0x2c9   :  { %10401 = vmatpush1.bf16.msra.mxu0 %v10400_v33  ;;  %10529 = vmatpush1.bf16.msra.mxu1 %v10528_v38  ;;  %v4164_v33 = vld [vmem:[#allocation11 + $0x830] sm:$0xff]  ;;  %v4199_v30 = vld [vmem:[#allocation11 + $0xc78] sm:$0xff] }
 0x2ca   :  { %10403 = vmatprep.subr.bf16.mxu0 %v10402_v23  ;;  %10531 = vmatprep.subr.bf16.mxu1 %v10530_v35  ;;  %v4166_v38 = vld [vmem:[#allocation11 + $0x870] sm:$0xff]  ;;  %v4169_v23 = vld [vmem:[#allocation11 + $0x8b8] sm:$0xff] }
 0x2cb   :  { %v4171_v35 = vld [vmem:[#allocation11 + $0x8f8] sm:$0xff]  ;;  %v10548_v50 = vpack.c.bf16 %v4166_v38, %v4164_v33  ;;  %v10436_v38 = vpack.c.bf16 %v3868_v52, %v3866_v49 }
 0x2cc   :  { %v10550_v41 = vpack.c.bf16 %v4171_v35, %v4169_v23  ;;  %v11661_v33 = vld [vmem:[#allocation2 + $0x18] sm:$0xff]  ;;  %v3870_v23 = vld [vmem:[#allocation11 + $0xaa0] sm:$0xff] }
 0x2cd   :  { %10405 = vmatpush1.bf16.msra.mxu0 %v10404_v42  ;;  %10533 = vmatpush1.bf16.msra.mxu1 %v10532_v11  ;;  %v4168_v42 = vld [vmem:[#allocation11 + $0x8b0] sm:$0xff]  ;;  %v3872_v35 = vld [vmem:[#allocation11 + $0xae0] sm:$0xff]  ;;  %v4203_v49 = vld [vmem:[#allocation11 + $0xcf8] sm:$0xff] }
 0x2ce   :  { %10407 = vmatprep.subr.bf16.mxu0 %v10406_v6  ;;  %10535 = vmatprep.subr.bf16.mxu1 %v10534_v16  ;;  %v4170_v11 = vld [vmem:[#allocation11 + $0x8f0] sm:$0xff]  ;;  %v4173_v6 = vld [vmem:[#allocation11 + $0x938] sm:$0xff] }
 0x2cf   :  { %v4175_v16 = vld [vmem:[#allocation11 + $0x978] sm:$0xff]  ;;  %v10552_v28 = vpack.c.bf16 %v4170_v11, %v4168_v42  ;;  %v10440_v42 = vpack.c.bf16 %v3872_v35, %v3870_v23 }
 0x2d1   :  { %10409 = vmatpush1.bf16.msra.mxu0 %v10408_v13  ;;  %10537 = vmatpush1.bf16.msra.mxu1 %v10536_v17  ;;  %v10554_v13 = vpack.c.bf16 %v4175_v16, %v4173_v6  ;;  %v4172_v17 = vld [vmem:[#allocation11 + $0x930] sm:$0xff]  ;;  %v3876_v6 = vld [vmem:[#allocation11 + $0xb60] sm:$0xff] }
 0x2d2   :  { %10411 = vmatprep.subr.bf16.mxu0 %v10410_v3  ;;  %10539 = vmatprep.subr.bf16.mxu1 %v10538_v15  ;;  %v4177_v3 = vld [vmem:[#allocation11 + $0x9b8] sm:$0xff]  ;;  %v10556_v61 = vpack.c.bf16 %v4174_v58, %v4172_v17  ;;  %v4188_v16 = vld [vmem:[#allocation11 + $0xb30] sm:$0xff] }
 0x2d3   :  { %v4179_v15 = vld [vmem:[#allocation11 + $0x9f8] sm:$0xff] }
 0x2d5   :  { %10413 = vmatpush1.bf16.msra.mxu0 %v10412_v31  ;;  %10541 = vmatpush1.bf16.msra.mxu1 %v10540_v19  ;;  %v10558_v31 = vpack.c.bf16 %v4179_v15, %v4177_v3  ;;  %v4176_v19 = vld [vmem:[#allocation11 + $0x9b0] sm:$0xff] }
 0x2d6   :  { %10415 = vmatprep.subr.bf16.mxu0 %v10414_v40  ;;  %10543 = vmatprep.subr.bf16.mxu1 %v10542_v46  ;;  %v4181_v40 = vld [vmem:[#allocation11 + $0xa38] sm:$0xff]  ;;  %v10560_v47 = vpack.c.bf16 %v4178_v32, %v4176_v19  ;;  %v4192_v3 = vld [vmem:[#allocation11 + $0xbb0] sm:$0xff]  ;;  %v3882_v32 = vld [vmem:[#allocation11 + $0xc20] sm:$0xff] }
 0x2d7   :  { %v4183_v46 = vld [vmem:[#allocation11 + $0xa78] sm:$0xff] }
 0x2d9   :  { %10417 = vmatpush1.bf16.msra.mxu0 %v10416_v55  ;;  %10545 = vmatpush1.bf16.msra.mxu1 %v10544_v56  ;;  %v10562_v56 = vpack.c.bf16 %v4183_v46, %v4181_v40  ;;  %v10578_v40 = vpack.c.bf16 %v4199_v30, %v4197_v29  ;;  %v4198_v46 = vld [vmem:[#allocation11 + $0xc70] sm:$0xff]  ;;  %v3903_v29 = vld [vmem:[#allocation11 + $0xea8] sm:$0xff] }
 0x2da   :  { %10419 = vmatprep.subr.bf16.mxu0 %v10418_v48  ;;  %10547 = vmatprep.subr.bf16.mxu1 %v10546_v63  ;;  %v4182_v48 = vld [vmem:[#allocation11 + $0xa70] sm:$0xff]  ;;  %v3871_v63 = vld [vmem:[#allocation11 + $0xaa8] sm:$0xff] }
 0x2db   :  { %v10564_v59 = vpack.c.bf16 %v4182_v48, %v4180_v53  ;;  %v3888_v48 = vld [vmem:[#allocation11 + $0xce0] sm:$0xff]  ;;  %v3905_v30 = vld [vmem:[#allocation11 + $0xee8] sm:$0xff] }
 0x2dc   :  { %3979 = vmatmul.mubr.f32.vlgmr.msra.gmra.mrb[40].mxu0 %v12530_v45  ;;  %4293 = vmatmul.mubr.f32.vlgmr.msra.gmra.mrb[40].mxu1 %v12530_v45  ;;  %v3865_v45 = vld [vmem:[#allocation11 + $0x9e8] sm:$0xff] }
 0x2dd   :  { %3984 = vmatprep.mubr.f32.mxu0 %v11658_v27  ;;  %10421 = vmatpush1.bf16.msra.mxu0 %v10420_v8  ;;  %v10430_v36 = vpack.c.bf16 %v3865_v45, %v3863_v2  ;;  %v4184_v8 = vld [vmem:[#allocation11 + $0xab0] sm:$0xff]  ;;  %v3878_v2 = vld [vmem:[#allocation11 + $0xba0] sm:$0xff] }
 0x2de   :  { %4298 = vmatprep.mubr.f32.mxu1 %v11658_v27  ;;  %10549 = vmatpush1.bf16.msra.mxu1 %v10548_v50  ;;  %v10566_v50 = vpack.c.bf16 %v4187_v22, %v4185_v20  ;;  %v10568_v11 = vpack.c.bf16 %v4186_v54, %v4184_v8  ;;  %v3880_v45 = vld [vmem:[#allocation11 + $0xbe0] sm:$0xff]  ;;  %v4202_v20 = vld [vmem:[#allocation11 + $0xcf0] sm:$0xff]  ;;  %v3891_v22 = vld [vmem:[#allocation11 + $0xd28] sm:$0xff] }
 0x2df   :  { %10423 = vmatprep.subr.bf16.mxu0 %v10422_v26  ;;  %10551 = vmatprep.subr.bf16.mxu1 %v10550_v41  ;;  %v3877_v26 = vld [vmem:[#allocation11 + $0xb68] sm:$0xff]  ;;  %v4191_v41 = vld [vmem:[#allocation11 + $0xb78] sm:$0xff]  ;;  %v3890_v8 = vld [vmem:[#allocation11 + $0xd20] sm:$0xff] }
 0x2e0   :  { %3985 = vmatmul.mubr.f32.gmra.mrb[42].mxu0 %v12554_v60  ;;  %4299 = vmatmul.mubr.f32.gmra.mrb[42].mxu1 %v12554_v60  ;;  %v3869_v60 = vld [vmem:[#allocation11 + $0xa68] sm:$0xff]  ;;  %v10442_v5 = vpack.c.bf16 %v3877_v26, %v3875_v62  ;;  %v4204_v54 = vld [vmem:[#allocation11 + $0xd30] sm:$0xff] }
 0x2e1   :  { %3990 = vmatprep.mubr.f32.mxu0 %v11659_v21  ;;  %10425 = vmatpush1.bf16.msra.mxu0 %v10424_v57  ;;  %v10434_v55 = vpack.c.bf16 %v3869_v60, %v3867_v10  ;;  %v4190_v57 = vld [vmem:[#allocation11 + $0xb70] sm:$0xff]  ;;  %v3884_v10 = vld [vmem:[#allocation11 + $0xc60] sm:$0xff] }
 0x2e2   :  { %4304 = vmatprep.mubr.f32.mxu1 %v11659_v21  ;;  %10553 = vmatpush1.bf16.msra.mxu1 %v10552_v28  ;;  %v3879_v28 = vld [vmem:[#allocation11 + $0xba8] sm:$0xff]  ;;  %v10572_v17 = vpack.c.bf16 %v4190_v57, %v4188_v16  ;;  %v4194_v21 = vld [vmem:[#allocation11 + $0xbf0] sm:$0xff]  ;;  %v10452_v52 = vpack.c.bf16 %v3884_v10, %v3882_v32  ;;  %v3894_v16 = vld [vmem:[#allocation11 + $0xda0] sm:$0xff]  ;;  %v10470_v10 = vpack.c.bf16 %v3905_v30, %v3903_v29 }
 0x2e3   :  { %10427 = vmatprep.subr.bf16.mxu0 %v10426_v7  ;;  %10555 = vmatprep.subr.bf16.mxu1 %v10554_v13  ;;  %v4195_v7 = vld [vmem:[#allocation11 + $0xbf8] sm:$0xff]  ;;  %v10444_v13 = vpack.c.bf16 %v3876_v6, %v3874_v4  ;;  %v10446_v58 = vpack.c.bf16 %v3881_v43, %v3879_v28  ;;  %v4196_v60 = vld [vmem:[#allocation11 + $0xc30] sm:$0xff] }
 0x2e4   :  { %3991 = vmatmul.mubr.f32.gmra.mrb[44].mxu0 %v12576_v39  ;;  %4305 = vmatmul.mubr.f32.gmra.mrb[44].mxu1 %v12576_v39  ;;  %v3873_v39 = vld [vmem:[#allocation11 + $0xae8] sm:$0xff]  ;;  %v10574_v15 = vpack.c.bf16 %v4195_v7, %v4193_v51  ;;  %v10580_v53 = vpack.c.bf16 %v4198_v46, %v4196_v60  ;;  %v4206_v26 = vld [vmem:[#allocation11 + $0xd70] sm:$0xff]  ;;  %v3902_v60 = vld [vmem:[#allocation11 + $0xea0] sm:$0xff] }
 0x2e5   :  { %3996 = vmatprep.mubr.f32.mxu0 %v11660_v44  ;;  %10429 = vmatpush1.bf16.msra.mxu0 %v10428_v25  ;;  %v10438_v12 = vpack.c.bf16 %v3873_v39, %v3871_v63  ;;  %v3883_v25 = vld [vmem:[#allocation11 + $0xc28] sm:$0xff]  ;;  %v4200_v63 = vld [vmem:[#allocation11 + $0xcb0] sm:$0xff]  ;;  %v10588_v4 = vpack.c.bf16 %v4206_v26, %v4204_v54  ;;  %v3910_v54 = vld [vmem:[#allocation11 + $0xfa0] sm:$0xff] }
 0x2e6   :  { %4310 = vmatprep.mubr.f32.mxu1 %v11660_v44  ;;  %10557 = vmatpush1.bf16.msra.mxu1 %v10556_v61  ;;  %v3885_v61 = vld [vmem:[#allocation11 + $0xc68] sm:$0xff]  ;;  %v10584_v23 = vpack.c.bf16 %v4202_v20, %v4200_v63  ;;  %v4208_v57 = vld [vmem:[#allocation11 + $0xdb0] sm:$0xff]  ;;  %v3906_v63 = vld [vmem:[#allocation11 + $0xf20] sm:$0xff] }
 0x2e7   :  { %10431 = vmatprep.subr.bf16.mxu0 %v10430_v36  ;;  %10559 = vmatprep.subr.bf16.mxu1 %v10558_v31  ;;  %v10448_v36 = vpack.c.bf16 %v3880_v45, %v3878_v2  ;;  %v10576_v31 = vpack.c.bf16 %v4194_v21, %v4192_v3  ;;  %v10450_v19 = vpack.c.bf16 %v3885_v61, %v3883_v25  ;;  %v3887_v44 = vld [vmem:[#allocation11 + $0xca8] sm:$0xff]  ;;  %v4210_v43 = vld [vmem:[#allocation11 + $0xdf0] sm:$0xff]  ;;  %v3898_v3 = vld [vmem:[#allocation11 + $0xe20] sm:$0xff] }
 0x2e8   :  { %3997 = vmatmul.mubr.f32.gmra.mrb[46].mxu0 %v12581_v18  ;;  %4311 = vmatmul.mubr.f32.gmra.mrb[46].mxu1 %v12581_v18  ;;  %v4189_v18 = vld [vmem:[#allocation11 + $0xb38] sm:$0xff]  ;;  %v3899_v51 = vld [vmem:[#allocation11 + $0xe28] sm:$0xff]  ;;  %v10592_v2 = vpack.c.bf16 %v4210_v43, %v4208_v57  ;;  %v4212_v21 = vld [vmem:[#allocation11 + $0xe30] sm:$0xff] }
 0x2e9   :  { %10433 = vmatpush1.bf16.msra.mxu0 %v10432_v24  ;;  %4067 = vmatprep.mubr.f32.mxu0 %v11661_v33  ;;  %v10570_v27 = vpack.c.bf16 %v4191_v41, %v4189_v18  ;;  %v3889_v24 = vld [vmem:[#allocation11 + $0xce8] sm:$0xff]  ;;  %v4214_v61 = vld [vmem:[#allocation11 + $0xe70] sm:$0xff] }
 0x2ea   :  { %10561 = vmatpush1.bf16.msra.mxu1 %v10560_v47  ;;  %4381 = vmatprep.mubr.f32.mxu1 %v11661_v33  ;;  %v4201_v47 = vld [vmem:[#allocation11 + $0xcb8] sm:$0xff]  ;;  %v3893_v33 = vld [vmem:[#allocation11 + $0xd68] sm:$0xff]  ;;  %v10596_v32 = vpack.c.bf16 %v4214_v61, %v4212_v21  ;;  %v4216_v46 = vld [vmem:[#allocation11 + $0xeb0] sm:$0xff] }
 0x2eb   :  { %10435 = vmatprep.subr.bf16.mxu0 %v10434_v55  ;;  %10563 = vmatprep.subr.bf16.mxu1 %v10562_v56  ;;  %v10454_v55 = vpack.c.bf16 %v3889_v24, %v3887_v44  ;;  %v3886_v56 = vld [vmem:[#allocation11 + $0xca0] sm:$0xff]  ;;  %v10582_v39 = vpack.c.bf16 %v4203_v49, %v4201_v47  ;;  %v10458_v35 = vpack.c.bf16 %v3893_v33, %v3891_v22  ;;  %v3895_v18 = vld [vmem:[#allocation11 + $0xda8] sm:$0xff]  ;;  %v4218_v24 = vld [vmem:[#allocation11 + $0xef0] sm:$0xff] }
 0x2ec   :  { %v3897_v41 = vld [vmem:[#allocation11 + $0xde8] sm:$0xff]  ;;  %v4220_v20 = vld [vmem:[#allocation11 + $0xf30] sm:$0xff] }
 0x2ed   :  { %10437 = vmatpush1.bf16.msra.mxu0 %v10436_v38  ;;  %v4205_v38 = vld [vmem:[#allocation11 + $0xd38] sm:$0xff]  ;;  %v10462_v6 = vpack.c.bf16 %v3897_v41, %v3895_v18  ;;  %v3901_v7 = vld [vmem:[#allocation11 + $0xe68] sm:$0xff]  ;;  %v4222_v33 = vld [vmem:[#allocation11 + $0xf70] sm:$0xff] }
 0x2ee   :  { %10565 = vmatpush1.bf16.msra.mxu1 %v10564_v59  ;;  %10439 = vmatprep.subr.bf16.mxu0 %v10438_v12  ;;  %v4207_v59 = vld [vmem:[#allocation11 + $0xd78] sm:$0xff]  ;;  %v10456_v12 = vpack.c.bf16 %v3888_v48, %v3886_v56  ;;  %v10466_v45 = vpack.c.bf16 %v3901_v7, %v3899_v51  ;;  %v3907_v47 = vld [vmem:[#allocation11 + $0xf28] sm:$0xff]  ;;  %v10600_v56 = vpack.c.bf16 %v4218_v24, %v4216_v46  ;;  %v4224_v18 = vld [vmem:[#allocation11 + $0xfb0] sm:$0xff] }
 0x2ef   :  { %10567 = vmatprep.subr.bf16.mxu1 %v10566_v50  ;;  %v3892_v50 = vld [vmem:[#allocation11 + $0xd60] sm:$0xff]  ;;  %v10586_v62 = vpack.c.bf16 %v4207_v59, %v4205_v38  ;;  %v3909_v49 = vld [vmem:[#allocation11 + $0xf68] sm:$0xff]  ;;  %v4226_v41 = vld [vmem:[#allocation11 + $0xff0] sm:$0xff] }
 0x2f0   :  { %v10474_v48 = vpack.c.bf16 %v3909_v49, %v3907_v47  ;;  %v3911_v38 = vld [vmem:[#allocation11 + $0xfa8] sm:$0xff] }
 0x2f1   :  { %10441 = vmatpush1.bf16.msra.mxu0 %v10440_v42  ;;  %v4209_v42 = vld [vmem:[#allocation11 + $0xdb8] sm:$0xff]  ;;  %v3913_v59 = vld [vmem:[#allocation11 + $0xfe8] sm:$0xff] }
 0x2f2   :  { %10569 = vmatpush1.bf16.msra.mxu1 %v10568_v11  ;;  %10443 = vmatprep.subr.bf16.mxu0 %v10442_v5  ;;  %v4211_v11 = vld [vmem:[#allocation11 + $0xdf8] sm:$0xff]  ;;  %v10460_v5 = vpack.c.bf16 %v3892_v50, %v3890_v8  ;;  %v10604_v8 = vpack.c.bf16 %v4222_v33, %v4220_v20  ;;  %v10478_v50 = vpack.c.bf16 %v3913_v59, %v3911_v38  ;;  %v4832_v47 = vld [vmem:[#allocation12 + $0x8] sm:$0xff]  ;;  %v4994_v33 = vld [vmem:[#allocation12 + $0x30] sm:$0xff] }
 0x2f3   :  { %10571 = vmatprep.subr.bf16.mxu1 %v10570_v27  ;;  %v3896_v27 = vld [vmem:[#allocation11 + $0xde0] sm:$0xff]  ;;  %v10590_v28 = vpack.c.bf16 %v4211_v11, %v4209_v42  ;;  %v10608_v11 = vpack.c.bf16 %v4226_v41, %v4224_v18  ;;  %v4834_v49 = vld [vmem:[#allocation12 + $0x28] sm:$0xff]  ;;  %v4996_v18 = vld [vmem:[#allocation12 + $0x50] sm:$0xff] }
 0x2f4   :  { %v4836_v59 = vld [vmem:[#allocation12 + $0x48] sm:$0xff]  ;;  %v4998_v41 = vld [vmem:[#allocation12 + $0x70] sm:$0xff] }
 0x2f5   :  { %10445 = vmatpush1.bf16.msra.mxu0 %v10444_v13  ;;  %v4213_v13 = vld [vmem:[#allocation11 + $0xe38] sm:$0xff] }
 0x2f6   :  { %10573 = vmatpush1.bf16.msra.mxu1 %v10572_v17  ;;  %10447 = vmatprep.subr.bf16.mxu0 %v10446_v58  ;;  %v4215_v17 = vld [vmem:[#allocation11 + $0xe78] sm:$0xff]  ;;  %v10464_v58 = vpack.c.bf16 %v3896_v27, %v3894_v16  ;;  %v11665_v16 = vld [vmem:[#allocation2 + $0x50] sm:$0xff] }
 0x2f7   :  { %10575 = vmatprep.subr.bf16.mxu1 %v10574_v15  ;;  %v3900_v15 = vld [vmem:[#allocation11 + $0xe60] sm:$0xff]  ;;  %v10594_v25 = vpack.c.bf16 %v4215_v17, %v4213_v13  ;;  %v11666_v27 = vld [vmem:[#allocation2 + $0x70] sm:$0xff] }
 0x2f9   :  { %10449 = vmatpush1.bf16.msra.mxu0 %v10448_v36  ;;  %v4217_v36 = vld [vmem:[#allocation11 + $0xeb8] sm:$0xff] }
 0x2fa   :  { %10577 = vmatpush1.bf16.msra.mxu1 %v10576_v31  ;;  %10451 = vmatprep.subr.bf16.mxu0 %v10450_v19  ;;  %v4219_v31 = vld [vmem:[#allocation11 + $0xef8] sm:$0xff]  ;;  %v10468_v19 = vpack.c.bf16 %v3900_v15, %v3898_v3 }
 0x2fb   :  { %10579 = vmatprep.subr.bf16.mxu1 %v10578_v40  ;;  %v3904_v40 = vld [vmem:[#allocation11 + $0xee0] sm:$0xff]  ;;  %v10598_v44 = vpack.c.bf16 %v4219_v31, %v4217_v36 }
 0x2fd   :  { %10453 = vmatpush1.bf16.msra.mxu0 %v10452_v52  ;;  %v4221_v52 = vld [vmem:[#allocation11 + $0xf38] sm:$0xff] }
 0x2fe   :  { %10581 = vmatpush1.bf16.msra.mxu1 %v10580_v53  ;;  %10455 = vmatprep.subr.bf16.mxu0 %v10454_v55  ;;  %v4223_v53 = vld [vmem:[#allocation11 + $0xf78] sm:$0xff]  ;;  %v10472_v55 = vpack.c.bf16 %v3904_v40, %v3902_v60 }
 0x2ff   :  { %10583 = vmatprep.subr.bf16.mxu1 %v10582_v39  ;;  %v3908_v39 = vld [vmem:[#allocation11 + $0xf60] sm:$0xff]  ;;  %v10602_v22 = vpack.c.bf16 %v4223_v53, %v4221_v52  ;;  %v4993_v52 = vld [vmem:[#allocation12 + $0x18] sm:$0xff]  ;;  %v12653_v53 = vpack.c.bf16 %v4834_v49, %v4832_v47  ;;  %v5004_v49 = vld [vmem:[#allocation12 + $0xd0] sm:$0xff] }
 0x301   :  { %10457 = vmatpush1.bf16.msra.mxu0 %v10456_v12  ;;  %v4225_v12 = vld [vmem:[#allocation11 + $0xfb8] sm:$0xff] }
 0x302   :  { %10585 = vmatpush1.bf16.msra.mxu1 %v10584_v23  ;;  %10459 = vmatprep.subr.bf16.mxu0 %v10458_v35  ;;  %v4227_v23 = vld [vmem:[#allocation11 + $0xff8] sm:$0xff]  ;;  %v10476_v35 = vpack.c.bf16 %v3908_v39, %v3906_v63 }
 0x303   :  { %10587 = vmatprep.subr.bf16.mxu1 %v10586_v62  ;;  %v3912_v62 = vld [vmem:[#allocation11 + $0xfe0] sm:$0xff]  ;;  %v10606_v26 = vpack.c.bf16 %v4227_v23, %v4225_v12  ;;  %v4838_v12 = vld [vmem:[#allocation12 + $0x68] sm:$0xff]  ;;  %v4997_v23 = vld [vmem:[#allocation12 + $0x58] sm:$0xff] }
 0x304   :  { %v10480_v42 = vpack.c.bf16 %v3912_v62, %v3910_v54  ;;  %v4837_v54 = vld [vmem:[#allocation12 + $0x60] sm:$0xff] }
 0x305   :  { %10461 = vmatpush1.bf16.msra.mxu0 %v10460_v5  ;;  %v11662_v5 = vld [vmem:[#allocation2 + $0x10] sm:$0xff] }
 0x306   :  { %10589 = vmatpush1.bf16.msra.mxu1 %v10588_v4  ;;  %10463 = vmatprep.subr.bf16.mxu0 %v10462_v6  ;;  %v11663_v4 = vld [vmem:[#allocation2 + $0x38] sm:$0xff]  ;;  %v11664_v6 = vld [vmem:[#allocation2 + $0x30] sm:$0xff] }
 0x307   :  { %10591 = vmatprep.subr.bf16.mxu1 %v10590_v28 }
 0x309   :  { %10465 = vmatpush1.bf16.msra.mxu0 %v10464_v58 }
 0x30a   :  { %10593 = vmatpush1.bf16.msra.mxu1 %v10592_v2  ;;  %10467 = vmatprep.subr.bf16.mxu0 %v10466_v45 }
 0x30b   :  { %10595 = vmatprep.subr.bf16.mxu1 %v10594_v25 }
 0x30d   :  { %10469 = vmatpush1.bf16.msra.mxu0 %v10468_v19 }
 0x30e   :  { %10597 = vmatpush1.bf16.msra.mxu1 %v10596_v32  ;;  %10471 = vmatprep.subr.bf16.mxu0 %v10470_v10 }
 0x30f   :  { %10599 = vmatprep.subr.bf16.mxu1 %v10598_v44 }
 0x311   :  { %10473 = vmatpush1.bf16.msra.mxu0 %v10472_v55  ;;  %v4995_v55 = vld [vmem:[#allocation12 + $0x38] sm:$0xff] }
 0x312   :  { %10601 = vmatpush1.bf16.msra.mxu1 %v10600_v56  ;;  %10475 = vmatprep.subr.bf16.mxu0 %v10474_v48  ;;  %v4831_v56 = vld [vmem:[#allocation12] sm:$0xff]  ;;  %v12657_v39 = vpack.c.bf16 %v4995_v55, %v4993_v52  ;;  %v5006_v52 = vld [vmem:[#allocation12 + $0xf0] sm:$0xff]  ;;  %v4848_v55 = vld [vmem:[#allocation12 + $0x108] sm:$0xff] }
 0x313   :  { %10603 = vmatprep.subr.bf16.mxu1 %v10602_v22  ;;  %v4833_v48 = vld [vmem:[#allocation12 + $0x20] sm:$0xff]  ;;  %v4992_v22 = vld [vmem:[#allocation12 + $0x10] sm:$0xff] }
 0x314   :  { %v12659_v20 = vpack.c.bf16 %v4833_v48, %v4831_v56  ;;  %v12663_v38 = vpack.c.bf16 %v4994_v33, %v4992_v22  ;;  %v12699_v56 = vpack.c.bf16 %v5006_v52, %v5004_v49  ;;  %v4850_v48 = vld [vmem:[#allocation12 + $0x128] sm:$0xff]  ;;  %v5009_v22 = vld [vmem:[#allocation12 + $0x118] sm:$0xff] }
 0x315   :  { %10477 = vmatpush1.bf16.msra.mxu0 %v10476_v35  ;;  %v12668_v35 = vpack.c.bf16 %v4838_v12, %v4836_v59  ;;  %v5011_v33 = vld [vmem:[#allocation12 + $0x138] sm:$0xff]  ;;  %v12703_v59 = vpack.c.bf16 %v4850_v48, %v4848_v55  ;;  %v4855_v48 = vld [vmem:[#allocation12 + $0x180] sm:$0xff] }
 0x316   :  { %10605 = vmatpush1.bf16.msra.mxu1 %v10604_v8  ;;  %10479 = vmatprep.subr.bf16.mxu0 %v10478_v50  ;;  %v4999_v8 = vld [vmem:[#allocation12 + $0x78] sm:$0xff]  ;;  %v4835_v50 = vld [vmem:[#allocation12 + $0x40] sm:$0xff]  ;;  %v12705_v12 = vpack.c.bf16 %v5011_v33, %v5009_v22 }
 0x317   :  { %10607 = vmatprep.subr.bf16.mxu1 %v10606_v26  ;;  %v12670_v62 = vpack.c.bf16 %v4999_v8, %v4997_v23  ;;  %v12672_v26 = vpack.c.bf16 %v4837_v54, %v4835_v50  ;;  %v4847_v23 = vld [vmem:[#allocation12 + $0x100] sm:$0xff]  ;;  %v5008_v50 = vld [vmem:[#allocation12 + $0x110] sm:$0xff]  ;;  %v5019_v55 = vld [vmem:[#allocation12 + $0x1b8] sm:$0xff] }
 0x318   :  { %v4849_v8 = vld [vmem:[#allocation12 + $0x120] sm:$0xff] }
 0x319   :  { %10481 = vmatpush1.bf16.msra.mxu0 %v10480_v42  ;;  %v12675_v42 = vpack.c.bf16 %v4998_v41, %v4996_v18  ;;  %v12708_v54 = vpack.c.bf16 %v4849_v8, %v4847_v23  ;;  %v5010_v18 = vld [vmem:[#allocation12 + $0x130] sm:$0xff]  ;;  %v4852_v41 = vld [vmem:[#allocation12 + $0x148] sm:$0xff]  ;;  %v4857_v22 = vld [vmem:[#allocation12 + $0x1a0] sm:$0xff] }
 0x31a   :  { %10609 = vmatpush1.bf16.msra.mxu1 %v10608_v11  ;;  %10611 = vmatprep.subr.bf16.mxu0 %v12653_v53  ;;  %v4840_v11 = vld [vmem:[#allocation12 + $0x88] sm:$0xff]  ;;  %v5016_v23 = vld [vmem:[#allocation12 + $0x190] sm:$0xff] }
 0x31b   :  { %10675 = vmatprep.subr.bf16.mxu1 %v12657_v39  ;;  %v5018_v8 = vld [vmem:[#allocation12 + $0x1b0] sm:$0xff] }
 0x31c   :  { %4068 = vmatmul.mubr.f32.vlgmr.msra.gmra.mrb[40].mxu0 %v11662_v5 }
 0x31d   :  { %4382 = vmatmul.mubr.f32.vlgmr.msra.gmra.mrb[40].mxu1 %v11662_v5  ;;  %4073 = vmatprep.mubr.f32.mxu0 %v11663_v4  ;;  %v4842_v5 = vld [vmem:[#allocation12 + $0xa8] sm:$0xff] }
 0x31e   :  { %4387 = vmatprep.mubr.f32.mxu1 %v11663_v4  ;;  %10613 = vmatpush1.bf16.msra.mxu0 %v12659_v20  ;;  %v5001_v4 = vld [vmem:[#allocation12 + $0x98] sm:$0xff] }
 0x31f   :  { %10677 = vmatpush1.bf16.msra.mxu1 %v12663_v38  ;;  %10615 = vmatprep.subr.bf16.mxu0 %v12668_v35 }
 0x320   :  { %4074 = vmatmul.mubr.f32.gmra.mrb[42].mxu0 %v11664_v6  ;;  %10679 = vmatprep.subr.bf16.mxu1 %v12670_v62 }
 0x321   :  { %4388 = vmatmul.mubr.f32.gmra.mrb[42].mxu1 %v11664_v6  ;;  %4079 = vmatprep.mubr.f32.mxu0 %v12591_v9  ;;  %v12680_v6 = vpack.c.bf16 %v4842_v5, %v4840_v11  ;;  %v4854_v11 = vld [vmem:[#allocation12 + $0x168] sm:$0xff]  ;;  %v12712_v5 = vpack.c.bf16 %v5010_v18, %v5008_v50 }
 0x322   :  { %4393 = vmatprep.mubr.f32.mxu1 %v12591_v9  ;;  %10617 = vmatpush1.bf16.msra.mxu0 %v12672_v26  ;;  %v4860_v50 = vld [vmem:[#allocation12 + $0x1c8] sm:$0xff] }
 0x323   :  { %10681 = vmatpush1.bf16.msra.mxu1 %v12675_v42  ;;  %10619 = vmatprep.subr.bf16.mxu0 %v12680_v6  ;;  %v4862_v18 = vld [vmem:[#allocation12 + $0x1e8] sm:$0xff] }
 0x324   :  { %4080 = vmatmul.mubr.f32.gmra.mrb[44].mxu0 %v11665_v16 }
 0x325   :  { %4394 = vmatmul.mubr.f32.gmra.mrb[44].mxu1 %v11665_v16  ;;  %4085 = vmatprep.mubr.f32.mxu0 %v12597_v1  ;;  %v5003_v16 = vld [vmem:[#allocation12 + $0xb8] sm:$0xff] }
 0x326   :  { %4399 = vmatprep.mubr.f32.mxu1 %v12597_v1 }
 0x328   :  { %4086 = vmatmul.mubr.f32.gmra.mrb[46].mxu0 %v11666_v27 }
 0x329   :  { %4400 = vmatmul.mubr.f32.gmra.mrb[46].mxu1 %v11666_v27  ;;  %v4839_v27 = vld [vmem:[#allocation12 + $0x80] sm:$0xff] }
 0x36e   :  { %v3441_v57 = vpop.f32.mrb[32].mxu0  ;;  %v12617_v28 = vpop.f32.mrb[32].mxu1 }
 0x36f   :  { %3464 = vst [vmem:[#allocation4] sm:$0xff] %v3441_v57  ;;  %v3443_v43 = vpop.f32.mrb[33].mxu0  ;;  %v12619_v51 = vpop.f32.mrb[33].mxu1  ;;  %v4841_v57 = vld [vmem:[#allocation12 + $0xa0] sm:$0xff] }
 0x370   :  { %3465 = vst [vmem:[#allocation4 + $0x8] sm:$0xff] %v3443_v43  ;;  %v12682_v43 = vpack.c.bf16 %v5003_v16, %v5001_v4  ;;  %v12714_v4 = vpack.c.bf16 %v4854_v11, %v4852_v41  ;;  %v5013_v16 = vld [vmem:[#allocation12 + $0x158] sm:$0xff] }
 0x371   :  { %v5021_v41 = vld [vmem:[#allocation12 + $0x1d8] sm:$0xff] }
 0x372   :  { %v12621_v7 = vpop.f32.mrb[34].mxu0  ;;  %v12623_v9 = vpop.f32.mrb[34].mxu1  ;;  %10683 = vmatprep.subr.bf16.mxu1 %v12682_v43  ;;  %14376 = vst [vmem:[#allocation37_spill] sm:$0xff] %v12714_v4  ;;  %v5023_v11 = vld [vmem:[#allocation12 + $0x1f8] sm:$0xff] }
 0x373   :  { %v3449_v13 = vpop.f32.mrb[35].mxu0  ;;  %v12625_v17 = vpop.f32.mrb[35].mxu1  ;;  %v14302_v45 = vrot.slane %v12621_v7, 2 }
 0x374   :  { %v4484_v61 = vrot.slane %v3449_v13, 2  ;;  %v12684_v13 = vpack.c.bf16 %v4841_v57, %v4839_v27  ;;  %v5015_v27 = vld [vmem:[#allocation12 + $0x178] sm:$0xff]  ;;  %v4851_v57 = vld [vmem:[#allocation12 + $0x140] sm:$0xff] }
 0x376   :  { %v3453_v1 = vpop.f32.mrb[36].mxu0  ;;  %v12627_v58 = vpop.f32.mrb[36].mxu1  ;;  %10621 = vmatpush1.bf16.msra.mxu0 %v12684_v13 }
 0x377   :  { %v4464_v2 = vld [vmem:[#allocation4 + $0x8] sm:$0xfc]  ;;  %v4486_v3 = vrot.slane %v3453_v1, 2  ;;  %v3455_v15 = vpop.f32.mrb[37].mxu0  ;;  %v12630_v21 = vpop.f32.mrb[37].mxu1  ;;  %v5000_v1 = vld [vmem:[#allocation12 + $0x90] sm:$0xff] }
 0x378   :  { %v4483_v25 = vrot.slane %v4464_v2, 2  ;;  %v4488_v29 = vrot.slane %v3455_v15, 2  ;;  %v5002_v2 = vld [vmem:[#allocation12 + $0xb0] sm:$0xff]  ;;  %v4844_v15 = vld [vmem:[#allocation12 + $0xc8] sm:$0xff] }
 0x379   :  { %v12635_v30 = vsel %vm4479_vm1, %v14302_v45, %v4486_v3  ;;  %v5026_v45 = vld [vmem:[#allocation12 + $0x230] sm:$0xff] }
 0x37a   :  { %v12638_v36 = vsel %vm4479_vm1, %v4483_v25, %v4484_v61  ;;  %v12641_v31 = vsel %vm4479_vm1, %v4484_v61, %v4488_v29  ;;  %v3459_v19 = vpop.f32.mrb[38].mxu0  ;;  %v12643_v32 = vpop.f32.mrb[38].mxu1  ;;  %v4846_v25 = vld [vmem:[#allocation12 + $0xe8] sm:$0xff]  ;;  %v5005_v61 = vld [vmem:[#allocation12 + $0xd8] sm:$0xff] }
 0x37b   :  { %v4490_v10 = vrot.slane %v3459_v19, 2  ;;  %v3461_v60 = vpop.f32.mrb[39].mxu0  ;;  %v12645_v40 = vpop.f32.mrb[39].mxu1  ;;  %v5007_v19 = vld [vmem:[#allocation12 + $0xf8] sm:$0xff] }
 0x37c   :  { %v4492_v46 = vrot.slane %v3461_v60, 2  ;;  %v4845_v60 = vld [vmem:[#allocation12 + $0xe0] sm:$0xff] }
 0x37d   :  { %v12648_v44 = vsel %vm4479_vm1, %v4486_v3, %v4490_v10  ;;  %4508 = vst [vmem:[#allocation6 + $0x30] sm:$0x3f] %v4490_v10  ;;  %v12687_v3 = vpack.c.bf16 %v5002_v2, %v5000_v1  ;;  %v4843_v10 = vld [vmem:[#allocation12 + $0xc0] sm:$0xff]  ;;  %v12716_v1 = vpack.c.bf16 %v5015_v27, %v5013_v16  ;;  %v12731_v16 = vpack.c.bf16 %v4857_v22, %v4855_v48  ;;  %v5025_v48 = vld [vmem:[#allocation12 + $0x218] sm:$0xff] }
 0x37e   :  { %v12651_v24 = vsel %vm4479_vm1, %v4488_v29, %v4492_v46  ;;  %4509 = vst [vmem:[#allocation6 + $0x38] sm:$0x3f] %v4492_v46  ;;  %v12692_v29 = vpack.c.bf16 %v4846_v25, %v4844_v15  ;;  %v12694_v46 = vpack.c.bf16 %v5007_v19, %v5005_v61  ;;  %v12696_v47 = vpack.c.bf16 %v4845_v60, %v4843_v10  ;;  %v4853_v2 = vld [vmem:[#allocation12 + $0x160] sm:$0xff]  ;;  %v5012_v15 = vld [vmem:[#allocation12 + $0x150] sm:$0xff]  ;;  %v4856_v19 = vld [vmem:[#allocation12 + $0x188] sm:$0xff] }
 0x37f   :  { %10685 = vmatpush1.bf16.msra.mxu1 %v12687_v3  ;;  %14377 = vst [vmem:[#allocation38_spill] sm:$0xff] %v12716_v1  ;;  %v5014_v25 = vld [vmem:[#allocation12 + $0x170] sm:$0xff]  ;;  %v12719_v61 = vpack.c.bf16 %v4853_v2, %v4851_v57  ;;  %v4858_v10 = vld [vmem:[#allocation12 + $0x1a8] sm:$0xff]  ;;  %v5017_v60 = vld [vmem:[#allocation12 + $0x198] sm:$0xff]  ;;  %v12735_v27 = vpack.c.bf16 %v5018_v8, %v5016_v23  ;;  %v12737_v57 = vpack.c.bf16 %v4862_v18, %v4860_v50 }
 0x380   :  { %10623 = vmatprep.subr.bf16.mxu0 %v12692_v29  ;;  %10687 = vmatprep.subr.bf16.mxu1 %v12694_v46  ;;  %v12723_v49 = vpack.c.bf16 %v5014_v25, %v5012_v15  ;;  %v12725_v52 = vpack.c.bf16 %v4858_v10, %v4856_v19  ;;  %v12728_v33 = vpack.c.bf16 %v5019_v55, %v5017_v60  ;;  %v4859_v2 = vld [vmem:[#allocation12 + $0x1c0] sm:$0xff]  ;;  %v5020_v25 = vld [vmem:[#allocation12 + $0x1d0] sm:$0xff]  ;;  %v4864_v60 = vld [vmem:[#allocation12 + $0x208] sm:$0xff] }
 0x381   :  { %10625 = vmatpush1.bf16.msra.mxu0 %v12696_v47  ;;  %14378 = vst [vmem:[#allocation39_spill] sm:$0xff] %v12719_v61  ;;  %14382 = vst [vmem:[#allocation43_spill] sm:$0xff] %v12731_v16  ;;  %v4861_v15 = vld [vmem:[#allocation12 + $0x1e0] sm:$0xff]  ;;  %v12740_v19 = vpack.c.bf16 %v5023_v11, %v5021_v41  ;;  %v5022_v10 = vld [vmem:[#allocation12 + $0x1f0] sm:$0xff] }
 0x382   :  { %10627 = vmatprep.subr.bf16.mxu0 %v12703_v59  ;;  %14379 = vst [vmem:[#allocation40_spill] sm:$0xff] %v12723_v49  ;;  %14380 = vst [vmem:[#allocation41_spill] sm:$0xff] %v12725_v52  ;;  %v4866_v55 = vld [vmem:[#allocation12 + $0x228] sm:$0xff]  ;;  %v5027_v22 = vld [vmem:[#allocation12 + $0x238] sm:$0xff]  ;;  %v12747_v23 = vpack.c.bf16 %v5022_v10, %v5020_v25 }
 0x383   :  { %10689 = vmatpush1.bf16.msra.mxu1 %v12699_v56  ;;  %14381 = vst [vmem:[#allocation42_spill] sm:$0xff] %v12728_v33  ;;  %14383 = vst [vmem:[#allocation44_spill] sm:$0xff] %v12735_v27  ;;  %v12749_v8 = vpack.c.bf16 %v4866_v55, %v4864_v60  ;;  %v4863_v50 = vld [vmem:[#allocation12 + $0x200] sm:$0xff]  ;;  %v5024_v41 = vld [vmem:[#allocation12 + $0x210] sm:$0xff]  ;;  %v12752_v11 = vpack.c.bf16 %v5027_v22, %v5025_v48 }
 0x384   :  { %v12655_v63 = vld [vmem:[#allocation6 + $0x30] sm:$0xff]  ;;  %10691 = vmatprep.subr.bf16.mxu1 %v12705_v12  ;;  %14384 = vst [vmem:[#allocation45_spill] sm:$0xff] %v12737_v57  ;;  %14385 = vst [vmem:[#allocation46_spill] sm:$0xff] %v12740_v19  ;;  %v4865_v18 = vld [vmem:[#allocation12 + $0x220] sm:$0xff]  ;;  %v12759_v25 = vpack.c.bf16 %v5026_v45, %v5024_v41 }
 0x385   :  { %5531 = vst [vmem:[#allocation6 + $0x30] sm:$0xc0] %v14300_v0  ;;  %10629 = vmatpush1.bf16.msra.mxu0 %v12708_v54  ;;  %v12743_v0 = vpack.c.bf16 %v4861_v15, %v4859_v2  ;;  %14387 = vst [vmem:[#allocation48_spill] sm:$0xff] %v12747_v23  ;;  %v5029_v2 = vld [vmem:[#allocation12 + $0x258] sm:$0xff]  ;;  %v4867_v60 = vld [vmem:[#allocation12 + $0x240] sm:$0xff] }
 0x386   :  { %10631 = vmatprep.subr.bf16.mxu0 %v12714_v4  ;;  %14388 = vst [vmem:[#allocation49_spill] sm:$0xff] %v12749_v8  ;;  %14389 = vst [vmem:[#allocation50_spill] sm:$0xff] %v12752_v11  ;;  %v5031_v15 = vld [vmem:[#allocation12 + $0x278] sm:$0xff]  ;;  %v4869_v55 = vld [vmem:[#allocation12 + $0x260] sm:$0xff] }
 0x387   :  { %10693 = vmatpush1.bf16.msra.mxu1 %v12712_v5  ;;  %14386 = vst [vmem:[#allocation47_spill] sm:$0xff] %v12743_v0  ;;  %14391 = vst [vmem:[#allocation52_spill] sm:$0xff] %v12759_v25  ;;  %v5028_v48 = vld [vmem:[#allocation12 + $0x250] sm:$0xff]  ;;  %v12764_v22 = vpack.c.bf16 %v5031_v15, %v5029_v2  ;;  %v4873_v41 = vld [vmem:[#allocation12 + $0x2a0] sm:$0xff] }
 0x388   :  { %10695 = vmatprep.subr.bf16.mxu1 %v12716_v1  ;;  %v5032_v2 = vld [vmem:[#allocation12 + $0x290] sm:$0xff] }
 0x389   :  { %10633 = vmatpush1.bf16.msra.mxu0 %v12719_v61  ;;  %14393 = vst [vmem:[#allocation54_spill] sm:$0xff] %v12764_v22 }
 0x38a   :  { %10635 = vmatprep.subr.bf16.mxu0 %v12725_v52 }
 0x38b   :  { %10697 = vmatpush1.bf16.msra.mxu1 %v12723_v49 }
 0x38c   :  { %10699 = vmatprep.subr.bf16.mxu1 %v12728_v33  ;;  %v4868_v33 = vld [vmem:[#allocation12 + $0x248] sm:$0xff] }
 0x38d   :  { %10637 = vmatpush1.bf16.msra.mxu0 %v12731_v16  ;;  %v4870_v16 = vld [vmem:[#allocation12 + $0x268] sm:$0xff] }
 0x38e   :  { %10639 = vmatprep.subr.bf16.mxu0 %v12737_v57  ;;  %v12761_v10 = vpack.c.bf16 %v4870_v16, %v4868_v33  ;;  %v4872_v57 = vld [vmem:[#allocation12 + $0x288] sm:$0xff]  ;;  %v4871_v16 = vld [vmem:[#allocation12 + $0x280] sm:$0xff] }
 0x38f   :  { %10701 = vmatpush1.bf16.msra.mxu1 %v12735_v27  ;;  %v12755_v27 = vpack.c.bf16 %v4865_v18, %v4863_v50  ;;  %v5033_v50 = vld [vmem:[#allocation12 + $0x298] sm:$0xff] }
 0x390   :  { %10703 = vmatprep.subr.bf16.mxu1 %v12740_v19  ;;  %14392 = vst [vmem:[#allocation53_spill] sm:$0xff] %v12761_v10  ;;  %v5030_v19 = vld [vmem:[#allocation12 + $0x270] sm:$0xff]  ;;  %v5035_v18 = vld [vmem:[#allocation12 + $0x2b8] sm:$0xff] }
 0x391   :  { %10641 = vmatpush1.bf16.msra.mxu0 %v12743_v0  ;;  %14390 = vst [vmem:[#allocation51_spill] sm:$0xff] %v12755_v27  ;;  %v4874_v0 = vld [vmem:[#allocation12 + $0x2a8] sm:$0xff]  ;;  %v12771_v45 = vpack.c.bf16 %v5030_v19, %v5028_v48  ;;  %v12776_v15 = vpack.c.bf16 %v5035_v18, %v5033_v50  ;;  %v4875_v19 = vld [vmem:[#allocation12 + $0x2c0] sm:$0xff]  ;;  %v5036_v50 = vld [vmem:[#allocation12 + $0x2d0] sm:$0xff] }
 0x392   :  { %10643 = vmatprep.subr.bf16.mxu0 %v12749_v8  ;;  %v12773_v33 = vpack.c.bf16 %v4874_v0, %v4872_v57  ;;  %v4876_v8 = vld [vmem:[#allocation12 + $0x2c8] sm:$0xff]  ;;  %v4877_v48 = vld [vmem:[#allocation12 + $0x2e0] sm:$0xff] }
 0x393   :  { %10705 = vmatpush1.bf16.msra.mxu1 %v12747_v23  ;;  %v12767_v23 = vpack.c.bf16 %v4869_v55, %v4867_v60  ;;  %14395 = vst [vmem:[#allocation56_spill] sm:$0xff] %v12771_v45  ;;  %14397 = vst [vmem:[#allocation58_spill] sm:$0xff] %v12776_v15  ;;  %v5037_v60 = vld [vmem:[#allocation12 + $0x2d8] sm:$0xff] }
 0x394   :  { %10707 = vmatprep.subr.bf16.mxu1 %v12752_v11  ;;  %14396 = vst [vmem:[#allocation57_spill] sm:$0xff] %v12773_v33  ;;  %v5034_v11 = vld [vmem:[#allocation12 + $0x2b0] sm:$0xff]  ;;  %v5039_v55 = vld [vmem:[#allocation12 + $0x2f8] sm:$0xff] }
 0x395   :  { %10645 = vmatpush1.bf16.msra.mxu0 %v12755_v27  ;;  %14394 = vst [vmem:[#allocation55_spill] sm:$0xff] %v12767_v23  ;;  %v4878_v27 = vld [vmem:[#allocation12 + $0x2e8] sm:$0xff]  ;;  %v12783_v0 = vpack.c.bf16 %v5034_v11, %v5032_v2  ;;  %v12788_v18 = vpack.c.bf16 %v5039_v55, %v5037_v60  ;;  %v4879_v11 = vld [vmem:[#allocation12 + $0x300] sm:$0xff]  ;;  %v5040_v60 = vld [vmem:[#allocation12 + $0x310] sm:$0xff] }
 0x396   :  { %10647 = vmatprep.subr.bf16.mxu0 %v12761_v10  ;;  %v12785_v57 = vpack.c.bf16 %v4878_v27, %v4876_v8  ;;  %v4880_v10 = vld [vmem:[#allocation12 + $0x308] sm:$0xff]  ;;  %v4881_v2 = vld [vmem:[#allocation12 + $0x320] sm:$0xff] }
 0x397   :  { %10709 = vmatpush1.bf16.msra.mxu1 %v12759_v25  ;;  %v12779_v25 = vpack.c.bf16 %v4873_v41, %v4871_v16  ;;  %14399 = vst [vmem:[#allocation60_spill] sm:$0xff] %v12783_v0  ;;  %14401 = vst [vmem:[#allocation62_spill] sm:$0xff] %v12788_v18  ;;  %v5041_v16 = vld [vmem:[#allocation12 + $0x318] sm:$0xff] }
 0x398   :  { %10711 = vmatprep.subr.bf16.mxu1 %v12764_v22  ;;  %14400 = vst [vmem:[#allocation61_spill] sm:$0xff] %v12785_v57  ;;  %v5038_v22 = vld [vmem:[#allocation12 + $0x2f0] sm:$0xff]  ;;  %v5043_v41 = vld [vmem:[#allocation12 + $0x338] sm:$0xff] }
 0x399   :  { %10649 = vmatpush1.bf16.msra.mxu0 %v12767_v23  ;;  %14398 = vst [vmem:[#allocation59_spill] sm:$0xff] %v12779_v25  ;;  %v4882_v23 = vld [vmem:[#allocation12 + $0x328] sm:$0xff]  ;;  %v12795_v27 = vpack.c.bf16 %v5038_v22, %v5036_v50  ;;  %v12800_v55 = vpack.c.bf16 %v5043_v41, %v5041_v16  ;;  %v4883_v22 = vld [vmem:[#allocation12 + $0x340] sm:$0xff]  ;;  %v5044_v16 = vld [vmem:[#allocation12 + $0x350] sm:$0xff] }
 0x39a   :  { %10651 = vmatprep.subr.bf16.mxu0 %v12773_v33  ;;  %v12797_v8 = vpack.c.bf16 %v4882_v23, %v4880_v10  ;;  %v4884_v33 = vld [vmem:[#allocation12 + $0x348] sm:$0xff]  ;;  %v4885_v50 = vld [vmem:[#allocation12 + $0x360] sm:$0xff] }
 0x39b   :  { %10713 = vmatpush1.bf16.msra.mxu1 %v12771_v45  ;;  %v12791_v45 = vpack.c.bf16 %v4877_v48, %v4875_v19  ;;  %14403 = vst [vmem:[#allocation64_spill] sm:$0xff] %v12795_v27  ;;  %14405 = vst [vmem:[#allocation66_spill] sm:$0xff] %v12800_v55  ;;  %v5045_v19 = vld [vmem:[#allocation12 + $0x358] sm:$0xff] }
 0x39c   :  { %10715 = vmatprep.subr.bf16.mxu1 %v12776_v15  ;;  %14404 = vst [vmem:[#allocation65_spill] sm:$0xff] %v12797_v8  ;;  %v5042_v15 = vld [vmem:[#allocation12 + $0x330] sm:$0xff]  ;;  %v5047_v48 = vld [vmem:[#allocation12 + $0x378] sm:$0xff] }
 0x39d   :  { %10653 = vmatpush1.bf16.msra.mxu0 %v12779_v25  ;;  %14402 = vst [vmem:[#allocation63_spill] sm:$0xff] %v12791_v45  ;;  %v4886_v25 = vld [vmem:[#allocation12 + $0x368] sm:$0xff]  ;;  %v12807_v23 = vpack.c.bf16 %v5042_v15, %v5040_v60  ;;  %v12812_v41 = vpack.c.bf16 %v5047_v48, %v5045_v19  ;;  %v4887_v15 = vld [vmem:[#allocation12 + $0x380] sm:$0xff]  ;;  %v5048_v19 = vld [vmem:[#allocation12 + $0x390] sm:$0xff] }
 0x39e   :  { %10655 = vmatprep.subr.bf16.mxu0 %v12785_v57  ;;  %v12809_v10 = vpack.c.bf16 %v4886_v25, %v4884_v33  ;;  %v4888_v57 = vld [vmem:[#allocation12 + $0x388] sm:$0xff]  ;;  %v4889_v60 = vld [vmem:[#allocation12 + $0x3a0] sm:$0xff] }
 0x39f   :  { %10717 = vmatpush1.bf16.msra.mxu1 %v12783_v0  ;;  %v12803_v0 = vpack.c.bf16 %v4881_v2, %v4879_v11  ;;  %14407 = vst [vmem:[#allocation68_spill] sm:$0xff] %v12807_v23  ;;  %14409 = vst [vmem:[#allocation70_spill] sm:$0xff] %v12812_v41  ;;  %v5049_v11 = vld [vmem:[#allocation12 + $0x398] sm:$0xff] }
 0x3a0   :  { %10719 = vmatprep.subr.bf16.mxu1 %v12788_v18  ;;  %14408 = vst [vmem:[#allocation69_spill] sm:$0xff] %v12809_v10  ;;  %v5046_v18 = vld [vmem:[#allocation12 + $0x370] sm:$0xff]  ;;  %v5051_v2 = vld [vmem:[#allocation12 + $0x3b8] sm:$0xff] }
 0x3a1   :  { %10657 = vmatpush1.bf16.msra.mxu0 %v12791_v45  ;;  %14406 = vst [vmem:[#allocation67_spill] sm:$0xff] %v12803_v0  ;;  %v4890_v45 = vld [vmem:[#allocation12 + $0x3a8] sm:$0xff]  ;;  %v12819_v25 = vpack.c.bf16 %v5046_v18, %v5044_v16  ;;  %v12824_v48 = vpack.c.bf16 %v5051_v2, %v5049_v11  ;;  %v4891_v18 = vld [vmem:[#allocation12 + $0x3c0] sm:$0xff]  ;;  %v5052_v2 = vld [vmem:[#allocation12 + $0x3d0] sm:$0xff] }
 0x3a2   :  { %10659 = vmatprep.subr.bf16.mxu0 %v12797_v8  ;;  %v12821_v33 = vpack.c.bf16 %v4890_v45, %v4888_v57  ;;  %v4892_v8 = vld [vmem:[#allocation12 + $0x3c8] sm:$0xff]  ;;  %v4893_v16 = vld [vmem:[#allocation12 + $0x3e0] sm:$0xff] }
 0x3a3   :  { %10721 = vmatpush1.bf16.msra.mxu1 %v12795_v27  ;;  %v12815_v27 = vpack.c.bf16 %v4885_v50, %v4883_v22  ;;  %14411 = vst [vmem:[#allocation72_spill] sm:$0xff] %v12819_v25  ;;  %14413 = vst [vmem:[#allocation74_spill] sm:$0xff] %v12824_v48  ;;  %v5053_v22 = vld [vmem:[#allocation12 + $0x3d8] sm:$0xff] }
 0x3a4   :  { %10723 = vmatprep.subr.bf16.mxu1 %v12800_v55  ;;  %14412 = vst [vmem:[#allocation73_spill] sm:$0xff] %v12821_v33  ;;  %v5050_v55 = vld [vmem:[#allocation12 + $0x3b0] sm:$0xff]  ;;  %v5055_v50 = vld [vmem:[#allocation12 + $0x3f8] sm:$0xff] }
 0x3a5   :  { %10661 = vmatpush1.bf16.msra.mxu0 %v12803_v0  ;;  %14410 = vst [vmem:[#allocation71_spill] sm:$0xff] %v12815_v27  ;;  %v4894_v0 = vld [vmem:[#allocation12 + $0x3e8] sm:$0xff]  ;;  %v12831_v45 = vpack.c.bf16 %v5050_v55, %v5048_v19  ;;  %v12836_v11 = vpack.c.bf16 %v5055_v50, %v5053_v22 }
 0x3a6   :  { %10663 = vmatprep.subr.bf16.mxu0 %v12809_v10  ;;  %v12833_v57 = vpack.c.bf16 %v4894_v0, %v4892_v8  ;;  %v4463_v0 = vld [vmem:[#allocation4] sm:$0xfc] }
 0x3a7   :  { %10725 = vmatpush1.bf16.msra.mxu1 %v12807_v23  ;;  %v12827_v23 = vpack.c.bf16 %v4889_v60, %v4887_v15  ;;  %14415 = vst [vmem:[#allocation76_spill] sm:$0xff] %v12831_v45  ;;  %14417 = vst [vmem:[#allocation78_spill] sm:$0xff] %v12836_v11  ;;  %v12839_v15 = vpack.c.bf16 %v4893_v16, %v4891_v18  ;;  %v4480_v8 = vrot.slane %v4463_v0, 2  ;;  %v14420_v60 = vrot.slane %v12621_v7, 2 }
 0x3a8   :  { %10727 = vmatprep.subr.bf16.mxu1 %v12812_v41  ;;  %14416 = vst [vmem:[#allocation77_spill] sm:$0xff] %v12833_v57  ;;  %v5054_v41 = vld [vmem:[#allocation12 + $0x3f0] sm:$0xff] }
 0x3a9   :  { %10665 = vmatpush1.bf16.msra.mxu0 %v12815_v27  ;;  %14414 = vst [vmem:[#allocation75_spill] sm:$0xff] %v12827_v23  ;;  %14418 = vst [vmem:[#allocation79_spill] sm:$0xff] %v12839_v15  ;;  %v12843_v55 = vpack.c.bf16 %v5054_v41, %v5052_v2  ;;  %v4482_v19 = vsel %vm4479_vm1, %v4480_v8, %v14420_v60 }
 0x3aa   :  { %10667 = vmatprep.subr.bf16.mxu0 %v12821_v33 }
 0x3ab   :  { %10729 = vmatpush1.bf16.msra.mxu1 %v12819_v25  ;;  %14419 = vst [vmem:[#allocation80_spill] sm:$0xff] %v12843_v55 }
 0x3ac   :  { %10731 = vmatprep.subr.bf16.mxu1 %v12824_v48 }
 0x3ad   :  { %10669 = vmatpush1.bf16.msra.mxu0 %v12827_v23 }
 0x3ae   :  { %10671 = vmatprep.subr.bf16.mxu0 %v12833_v57 }
 0x3af   :  { %10733 = vmatpush1.bf16.msra.mxu1 %v12831_v45 }
 0x3b0   :  { %10735 = vmatprep.subr.bf16.mxu1 %v12836_v11 }
 0x3b1   :  { %10673 = vmatpush1.bf16.msra.mxu0 %v12839_v15 }
 0x3b2   :  { %10803 = vmatprep.subr.bf16.mxu0 %v12657_v39 }
 0x3b3   :  { %10737 = vmatpush1.bf16.msra.mxu1 %v12843_v55 }
 0x3b4   :  { %10739 = vmatprep.subr.bf16.mxu1 %v12653_v53 }
 0x3ef   :  { %v4069_v22 = vpop.f32.mrb[40].mxu0 }
 0x3f0   :  { %v4552_v50 = vadd.f32 %v4482_v19, %v4069_v22  ;;  %v4383_v41 = vpop.f32.mrb[40].mxu1  ;;  %v4071_v18 = vpop.f32.mrb[41].mxu0 }
 0x3f1   :  { %v4433_v16 = vrot.slane %v4383_v41, 6  ;;  %v4553_v2 = vadd.f32 %v12638_v36, %v4071_v18  ;;  %v4385_v15 = vpop.f32.mrb[41].mxu1 }
 0x3f2   :  { %4665 = vst [vmem:[#allocation3 + $0x40] sm:$0xff] %v4552_v50  ;;  %v4434_v55 = vrot.slane %v4385_v15, 6  ;;  %v4628_v22 = vmul.f32 %v4552_v50, %v4552_v50 }
 0x3f3   :  { %4455 = vst [vmem:[#allocation5] sm:$0xfc] %v4433_v16  ;;  %4666 = vst [vmem:[#allocation3 + $0x48] sm:$0xff] %v4553_v2  ;;  %v4075_v39 = vpop.f32.mrb[42].mxu0  ;;  %v4629_v18 = vmul.f32 %v4553_v2, %v4553_v2 }
 0x3f4   :  { %4456 = vst [vmem:[#allocation5 + $0x8] sm:$0xfc] %v4434_v55  ;;  %v4554_v53 = vadd.f32 %v12635_v30, %v4075_v39  ;;  %v4389_v0 = vpop.f32.mrb[42].mxu1  ;;  %v4077_v7 = vpop.f32.mrb[43].mxu0 }
 0x3f5   :  { %v4435_v8 = vrot.slane %v4389_v0, 6  ;;  %v4555_v60 = vadd.f32 %v12641_v31, %v4077_v7  ;;  %v4391_v19 = vpop.f32.mrb[43].mxu1 }
 0x3f6   :  { %v4580_v41 = vadd.f32 %v4554_v53, %v4552_v50  ;;  %v4630_v11 = vmul.f32 %v4554_v53, %v4554_v53  ;;  %4667 = vst [vmem:[#allocation3 + $0x50] sm:$0xff] %v4554_v53  ;;  %v4437_v36 = vrot.slane %v4391_v19, 6 }
 0x3f7   :  { %v4436_v15 = vsel %vm4432_vm2, %v4433_v16, %v4435_v8  ;;  %v4589_v57 = vadd.f32 %v4555_v60, %v4553_v2  ;;  %v4631_v45 = vmul.f32 %v4555_v60, %v4555_v60  ;;  %4668 = vst [vmem:[#allocation3 + $0x58] sm:$0xff] %v4555_v60  ;;  %v4081_v23 = vpop.f32.mrb[44].mxu0 }
 0x3f8   :  { %v4636_v30 = vadd.f32 %v4630_v11, %v4628_v22  ;;  %v12858_v39 = vadd.f32 %v4436_v15, %v12623_v9  ;;  %v4438_v0 = vsel %vm4432_vm2, %v4434_v55, %v4437_v36  ;;  %v4556_v31 = vadd.f32 %v12648_v44, %v4081_v23  ;;  %v12862_v7 = vpop.f32.mrb[44].mxu1  ;;  %v4083_v50 = vpop.f32.mrb[45].mxu0 }
 0x3f9   :  { %v4645_v53 = vadd.f32 %v4631_v45, %v4629_v18  ;;  %v14338_v19 = vrot.slane %v12862_v7, 6  ;;  %v4557_v16 = vadd.f32 %v12651_v24, %v4083_v50  ;;  %v12866_v2 = vpop.f32.mrb[45].mxu1  ;;  %v12869_v60 = vadd.f32 %v4438_v0, %v12625_v17 }
 0x3fa   :  { %v4528_v11 = vld [vmem:[#allocation5] sm:$0xff]  ;;  %v4602_v9 = vmul.f32 %v12858_v39, %v12858_v39  ;;  %v4581_v55 = vadd.f32 %v4580_v41, %v4556_v31  ;;  %v4632_v22 = vmul.f32 %v4556_v31, %v4556_v31  ;;  %4669 = vst [vmem:[#allocation3 + $0x60] sm:$0xff] %v4556_v31  ;;  %v4441_v44 = vrot.slane %v12866_v2, 6 }
 0x3fb   :  { %v12875_v23 = vadd.f32 %v4528_v11, %v12617_v28  ;;  %v14421_v45 = vmov 0.0   ;;  %v4440_v24 = vsel %vm4432_vm2, %v4435_v8, %v14338_v19  ;;  %v4590_v17 = vadd.f32 %v4589_v57, %v4557_v16  ;;  %4670 = vst [vmem:[#allocation3 + $0x68] sm:$0xff] %v4557_v16  ;;  %v4087_v15 = vpop.f32.mrb[46].mxu0  ;;  %v4529_v0 = vld [vmem:[#allocation5 + $0x8] sm:$0xff] }
 0x3fc   :  { %5484 = vst [vmem:[#allocation5] sm:$0x3] %v14421_v45  ;;  %v4633_v18 = vmul.f32 %v4557_v16, %v4557_v16  ;;  %v4637_v50 = vadd.f32 %v4636_v30, %v4632_v22  ;;  %v12882_v41 = vadd.f32 %v4440_v24, %v12627_v58  ;;  %v4442_v31 = vsel %vm4432_vm2, %v4437_v36, %v4441_v44  ;;  %v4401_v2 = vpop.f32.mrb[46].mxu1  ;;  %v4089_v11 = vpop.f32.mrb[47].mxu0  ;;  %v4543_v45 = vld [vmem:[#allocation6 + $0x38] sm:$0xff] }
 0x3fd   :  { %v4558_v28 = vadd.f32 %v12655_v63, %v4087_v15  ;;  %v4560_v48 = vadd.f32 %v12858_v39, %v12875_v23  ;;  %v4600_v57 = vmul.f32 %v12875_v23, %v12875_v23  ;;  %4412 = vst [vmem:[#allocation4 + $0xf0] sm:$0xff] %v4401_v2  ;;  %v4559_v16 = vadd.f32 %v4543_v45, %v4089_v11  ;;  %v4403_v30 = vpop.f32.mrb[47].mxu1 }
 0x3fe   :  { %v4646_v8 = vadd.f32 %v4645_v53, %v4633_v18  ;;  %v4604_v58 = vmul.f32 %v12882_v41, %v12882_v41  ;;  %4413 = vst [vmem:[#allocation4 + $0xf8] sm:$0xff] %v4403_v30  ;;  %v12893_v63 = vadd.f32 %v4529_v0, %v12619_v51  ;;  %v12897_v45 = vadd.f32 %v4442_v31, %v12630_v21 }
 0x3ff   :  { %v4582_v22 = vadd.f32 %v4581_v55, %v4558_v28  ;;  %v4634_v36 = vmul.f32 %v4558_v28, %v4558_v28  ;;  %4671 = vst [vmem:[#allocation3 + $0x70] sm:$0xff] %v4558_v28  ;;  %v4608_v24 = vadd.f32 %v4602_v9, %v4600_v57  ;;  %v4561_v15 = vadd.f32 %v4560_v48, %v12882_v41 }
 0x400   :  { %v4591_v19 = vadd.f32 %v4590_v17, %v4559_v16  ;;  %v4635_v33 = vmul.f32 %v4559_v16, %v4559_v16  ;;  %4672 = vst [vmem:[#allocation3 + $0x78] sm:$0xff] %v4559_v16  ;;  %v4569_v18 = vadd.f32 %v12869_v60, %v12893_v63  ;;  %v4601_v28 = vmul.f32 %v12893_v63, %v12893_v63 }
 0x401   :  { %v4638_v53 = vadd.f32 %v4637_v50, %v4634_v36  ;;  %v4609_v55 = vadd.f32 %v4608_v24, %v4604_v58  ;;  %v4583_v51 = vrot.slane %v4582_v22, 4  ;;  %v4603_v48 = vmul.f32 %v12869_v60, %v12869_v60 }
 0x402   :  { %v4647_v2 = vadd.f32 %v4646_v8, %v4635_v33  ;;  %v4570_v9 = vadd.f32 %v4569_v18, %v12897_v45  ;;  %v4592_v17 = vrot.slane %v4591_v19, 4  ;;  %v4605_v0 = vmul.f32 %v12897_v45, %v12897_v45 }
 0x403   :  { %v4639_v21 = vrot.slane %v4638_v53, 4  ;;  %v4617_v31 = vadd.f32 %v4603_v48, %v4601_v28  ;;  %v4584_v33 = vadd.f32 %v4583_v51, %v4582_v22  ;;  %v14422_v58 = vrot.slane %v12862_v7, 6 }
 0x404   :  { %v4422_v50 = vld [vmem:[#allocation4 + $0xf0] sm:$0x3f]  ;;  %v4648_v57 = vrot.slane %v4647_v2, 4  ;;  %v4593_v24 = vadd.f32 %v4592_v17, %v4591_v19 }
 0x405   :  { %v4443_v11 = vrot.slane %v4422_v50, 6  ;;  %v4423_v16 = vld [vmem:[#allocation4 + $0xf8] sm:$0x3f]  ;;  %v4618_v30 = vadd.f32 %v4617_v31, %v4605_v0  ;;  %v4640_v18 = vadd.f32 %v4639_v21, %v4638_v53  ;;  %v4585_v48 = vrot.slane %v4584_v33, 2 }
 0x406   :  { %v4445_v8 = vrot.slane %v4423_v16, 6  ;;  %v4649_v10 = vadd.f32 %v4648_v57, %v4647_v2  ;;  %v4594_v7 = vrot.slane %v4593_v24, 2 }
 0x407   :  { %v4444_v36 = vsel %vm4432_vm2, %v14422_v58, %v4443_v11 }
 0x408   :  { %v12912_v25 = vadd.f32 %v4444_v36, %v12643_v32  ;;  %v4446_v27 = vsel %vm4432_vm2, %v4441_v44, %v4445_v8  ;;  %v4641_v32 = vrot.slane %v4640_v18, 2  ;;  %v4650_v44 = vrot.slane %v4649_v10, 2 }
 0x409   :  { %v12916_v28 = vadd.f32 %v4446_v27, %v12645_v40  ;;  %v4586_v40 = vadd.f32 %v4585_v48, %v4584_v33  ;;  %v4595_v31 = vadd.f32 %v4594_v7, %v4593_v24 }
 0x40a   :  { %v4606_v22 = vmul.f32 %v12912_v25, %v12912_v25  ;;  %v4562_v51 = vadd.f32 %v4561_v15, %v12912_v25  ;;  %v4642_v16 = vadd.f32 %v4641_v32, %v4640_v18  ;;  %v4651_v58 = vadd.f32 %v4650_v44, %v4649_v10 }
 0x40b   :  { %v4571_v0 = vadd.f32 %v4570_v9, %v12916_v28  ;;  %v4607_v19 = vmul.f32 %v12916_v28, %v12916_v28  ;;  %v4587_v52 = vrot.slane %v4586_v40, 1 }
 0x40c   :  { %v4610_v53 = vadd.f32 %v4609_v55, %v4606_v22  ;;  %v4563_v17 = vrot.slane %v4562_v51, 4  ;;  %v4596_v55 = vrot.slane %v4595_v31, 1  ;;  %v4643_v4 = vrot.slane %v4642_v16, 1 }
 0x40d   :  { %v4572_v2 = vrot.slane %v4571_v0, 4  ;;  %v4619_v21 = vadd.f32 %v4618_v30, %v4607_v19  ;;  %v4652_v48 = vrot.slane %v4651_v58, 1  ;;  %v4588_v7 = vadd.f32 %v4587_v52, %v4586_v40 }
 0x40e   :  { %v4611_v27 = vrot.slane %v4610_v53, 4  ;;  %v4564_v50 = vadd.f32 %v4563_v17, %v4562_v51  ;;  %v4597_v19 = vadd.f32 %v4596_v55, %v4595_v31 }
 0x40f   :  { %v4573_v11 = vadd.f32 %v4572_v2, %v4571_v0  ;;  %v4620_v57 = vrot.slane %v4619_v21, 4  ;;  %v4653_v2 = vadd.f32 %v4652_v48, %v4651_v58 }
 0x410   :  { %v4565_v15 = vrot.slane %v4564_v50, 2  ;;  %v4612_v8 = vadd.f32 %v4611_v27, %v4610_v53  ;;  %v4644_v53 = vadd.f32 %v4643_v4, %v4642_v16  ;;  %v4688_v4 = vld [vmem:[#allocation20] sm:$0x3] }
 0x411   :  { %v4574_v9 = vrot.slane %v4573_v11, 2  ;;  %v4621_v36 = vadd.f32 %v4620_v57, %v4619_v21  ;;  %v4693_v16 = vrot.slane %v4688_v4, %v12451_v34  ;;  %v4697_v58 = vrot.slane %v4688_v4, %v12455_v37 }
 0x412   :  { %v4566_v49 = vadd.f32 %v4565_v15, %v4564_v50  ;;  %v4613_v61 = vrot.slane %v4612_v8, 2 }
 0x413   :  { %v4575_v22 = vadd.f32 %v4574_v9, %v4573_v11  ;;  %v4622_v1 = vrot.slane %v4621_v36, 2 }
 0x414   :  { %v4567_v30 = vrot.slane %v4566_v49, 1  ;;  %v4614_v33 = vadd.f32 %v4613_v61, %v4612_v8 }
 0x415   :  { %v4576_v51 = vrot.slane %v4575_v22, 1  ;;  %v4623_v24 = vadd.f32 %v4622_v1, %v4621_v36 }
 0x416   :  { %v4568_v0 = vadd.f32 %v4567_v30, %v4566_v49  ;;  %v4615_v18 = vrot.slane %v4614_v33, 1 }
 0x417   :  { %v4577_v32 = vadd.f32 %v4576_v51, %v4575_v22  ;;  %v4624_v10 = vrot.slane %v4623_v24, 1 }
 0x418   :  { %v4598_v17 = vadd.f32 %v4588_v7, %v4568_v0  ;;  %v4616_v44 = vadd.f32 %v4615_v18, %v4614_v33 }
 0x419   :  { %v4599_v21 = vadd.f32 %v4597_v19, %v4577_v32  ;;  %v4625_v27 = vadd.f32 %v4624_v10, %v4623_v24 }
 0x41a   :  { %v4654_v50 = vadd.f32 %v4644_v53, %v4616_v44  ;;  %v4674_v11 = vmul.f32 0.015625, %v4598_v17 }
 0x41b   :  { %v4655_v57 = vadd.f32 %v4653_v2, %v4625_v27  ;;  %v4675_v15 = vmul.f32 0.015625, %v4599_v21 }
 0x41c   :  { %v4676_v61 = vmul.f32 0.015625, %v4654_v50  ;;  %v4678_v8 = vmul.f32 %v4674_v11, %v4674_v11  ;;  %v4702_v50 = vld [vmem:[#allocation21] sm:$0x3] }
 0x41d   :  { %v4677_v9 = vmul.f32 0.015625, %v4655_v57  ;;  %v4679_v1 = vmul.f32 %v4675_v15, %v4675_v15  ;;  %v4783_v57 = vld [vmem:[#allocation3 + $0x40] sm:$0xff] }
 0x41e   :  { %v4680_v52 = vsub.f32 %v4676_v61, %v4678_v8  ;;  %v4785_v61 = vld [vmem:[#allocation3 + $0x50] sm:$0xff]  ;;  %v4787_v8 = vld [vmem:[#allocation3 + $0x60] sm:$0xff] }
 0x41f   :  { %v4681_v49 = vsub.f32 %v4677_v9, %v4679_v1  ;;  %v4790_v1 = vld [vmem:[#allocation3 + $0x78] sm:$0xff] }
 0x420   :  { %v4682_v40 = vmax.f32 %v4680_v52, 0.0  ;;  %v4789_v52 = vld [vmem:[#allocation3 + $0x70] sm:$0xff] }
 0x421   :  { %v4683_v31 = vmax.f32 %v4681_v49, 0.0 }
 0x422   :  { %v4684_v36 = vadd.f32 1e-05, %v4682_v40 }
 0x423   :  { %v4685_v55 = vadd.f32 1e-05, %v4683_v31 }
 0x424   :  { %11522 = vrsqrt.f32 %v4684_v36 }
 0x425   :  { %11524 = vrsqrt.f32 %v4685_v55 }
 0x42e   :  { %v11523_v22 = vpop.eup %11522 }
 0x42f   :  { %v11525_v30 = vpop.eup %11524  ;;  %v4700_v33 = vmul.f32 %v11523_v22, %v4693_v16 }
 0x430   :  { %v4701_v48 = vmul.f32 %v11525_v30, %v4697_v58 }
 0x431   :  { %v4703_v51 = vmul.f32 %v4700_v33, %v4674_v11  ;;  %v4735_v24 = vrot.slane %v4700_v33, %v12451_v34 }
 0x432   :  { %v4704_v7 = vmul.f32 %v4701_v48, %v4675_v15  ;;  %v4739_v0 = vrot.slane %v4701_v48, %v12451_v34 }
 0x433   :  { %v4740_v18 = vmul.f32 %v4735_v24, %v12875_v23  ;;  %v4742_v19 = vmul.f32 %v4735_v24, %v12858_v39  ;;  %v4744_v32 = vmul.f32 %v4735_v24, %v12882_v41  ;;  %v4746_v10 = vmul.f32 %v4735_v24, %v12912_v25  ;;  %v4784_v39 = vld [vmem:[#allocation3 + $0x48] sm:$0xff]  ;;  %v4786_v25 = vld [vmem:[#allocation3 + $0x58] sm:$0xff] }
 0x434   :  { %v4707_v53 = vcombine.low %v4703_v51, %v4704_v7  ;;  %v4741_v17 = vmul.f32 %v4739_v0, %v12893_v63  ;;  %v4743_v44 = vmul.f32 %v4739_v0, %v12869_v60  ;;  %v4745_v2 = vmul.f32 %v4739_v0, %v12897_v45 }
 0x435   :  { %v4747_v21 = vmul.f32 %v4739_v0, %v12916_v28  ;;  %v4792_v41 = vmul.f32 %v4784_v39, %v4739_v0  ;;  %v4791_v15 = vmul.f32 %v4783_v57, %v4735_v24  ;;  %v4794_v45 = vmul.f32 %v4786_v25, %v4739_v0  ;;  %v4788_v28 = vld [vmem:[#allocation3 + $0x68] sm:$0xff]  ;;  %v14440_v25 = vld [vmem:[#allocation54_spill] sm:$0xff] }
 0x436   :  { %v4714_v27 = vrot.slane %v4707_v53, %v12463_v14  ;;  %v4793_v9 = vmul.f32 %v4785_v61, %v4735_v24  ;;  %v4796_v49 = vmul.f32 %v4788_v28, %v4739_v0  ;;  %v4795_v40 = vmul.f32 %v4787_v8, %v4735_v24  ;;  %v14441_v61 = vld [vmem:[#allocation55_spill] sm:$0xff]  ;;  %v14442_v8 = vld [vmem:[#allocation56_spill] sm:$0xff]  ;;  %v14447_v28 = vld [vmem:[#allocation61_spill] sm:$0xff] }
 0x437   :  { %v4797_v31 = vmul.f32 %v4789_v52, %v4735_v24  ;;  %v14449_v52 = vld [vmem:[#allocation63_spill] sm:$0xff] }
 0x438   :  { %v4721_v23 = vrot.slane %v4714_v27, %v12463_v14  ;;  %v4798_v14 = vmul.f32 %v4790_v1, %v4739_v0  ;;  %v14448_v1 = vld [vmem:[#allocation62_spill] sm:$0xff] }
 0x43a   :  { %v4723_v11 = vsub.f32 %v4702_v50, %v4721_v23 }
 0x43c   :  { %v4752_v63 = vrot.slane %v4723_v11, %v12451_v34  ;;  %v4756_v60 = vrot.slane %v4723_v11, %v12455_v37 }
 0x43e   :  { %v4760_v36 = vadd.f32 %v4756_v60, %v4741_v17  ;;  %v4759_v55 = vadd.f32 %v4752_v63, %v4740_v18  ;;  %v4762_v4 = vadd.f32 %v4756_v60, %v4743_v44  ;;  %v4761_v16 = vadd.f32 %v4752_v63, %v4742_v19 }
 0x43f   :  { %v4764_v58 = vadd.f32 %v4756_v60, %v4745_v2  ;;  %v4763_v22 = vadd.f32 %v4752_v63, %v4744_v32  ;;  %v4766_v30 = vadd.f32 %v4756_v60, %v4747_v21  ;;  %v4765_v33 = vadd.f32 %v4752_v63, %v4746_v10 }
 0x440   :  { %v4768_v48 = vmax.f32 %v4760_v36, 0.0  ;;  %v4767_v51 = vmax.f32 %v4759_v55, 0.0  ;;  %v4770_v37 = vmax.f32 %v4762_v4, 0.0  ;;  %v4769_v7 = vmax.f32 %v4761_v16, 0.0  ;;  %v14454_v36 = vld [vmem:[#allocation68_spill] sm:$0xff]  ;;  %v14455_v55 = vld [vmem:[#allocation69_spill] sm:$0xff] }
 0x441   :  { %v4772_v53 = vmax.f32 %v4764_v58, 0.0  ;;  %v4771_v27 = vmax.f32 %v4763_v22, 0.0  ;;  %v4774_v50 = vmax.f32 %v4766_v30, 0.0  ;;  %v4773_v23 = vmax.f32 %v4765_v33, 0.0  ;;  %v14456_v4 = vld [vmem:[#allocation70_spill] sm:$0xff]  ;;  %v14457_v16 = vld [vmem:[#allocation71_spill] sm:$0xff] }
 0x442   :  { %4959 = vmatprep.mubr.f32.mxu0 %v4768_v48  ;;  %5120 = vmatprep.mubr.f32.mxu1 %v4768_v48  ;;  %4775 = vst [vmem:[#allocation3] sm:$0xff] %v4767_v51  ;;  %4777 = vst [vmem:[#allocation3 + $0x10] sm:$0xff] %v4769_v7  ;;  %v4800_v24 = vadd.f32 %v4792_v41, %v4756_v60  ;;  %v4799_v0 = vadd.f32 %v4791_v15, %v4752_v63  ;;  %v14439_v15 = vld [vmem:[#allocation53_spill] sm:$0xff]  ;;  %v14458_v58 = vld [vmem:[#allocation72_spill] sm:$0xff] }
 0x443   :  { %v4802_v18 = vadd.f32 %v4794_v45, %v4756_v60  ;;  %4960 = vmatmul.mubr.f32.vlgmr.msra.gmra.mrb[48].mxu0 %v4767_v51  ;;  %5121 = vmatmul.mubr.f32.vlgmr.msra.gmra.mrb[48].mxu1 %v4767_v51  ;;  %4779 = vst [vmem:[#allocation3 + $0x20] sm:$0xff] %v4771_v27  ;;  %4781 = vst [vmem:[#allocation3 + $0x30] sm:$0xff] %v4773_v23  ;;  %v4801_v19 = vadd.f32 %v4793_v9, %v4752_v63  ;;  %v14445_v45 = vld [vmem:[#allocation59_spill] sm:$0xff]  ;;  %v14446_v9 = vld [vmem:[#allocation60_spill] sm:$0xff] }
 0x444   :  { %v4804_v32 = vadd.f32 %v4796_v49, %v4756_v60  ;;  %v4803_v10 = vadd.f32 %v4795_v40, %v4752_v63  ;;  %10741 = vmatpush1.bf16.msra.mxu1 %v12659_v20  ;;  %10805 = vmatpush1.bf16.msra.mxu0 %v12663_v38  ;;  %v4808_v17 = vmax.f32 %v4800_v24, 0.0  ;;  %v12942_v44 = vmax.f32 %v4799_v0, 0.0  ;;  %v14450_v49 = vld [vmem:[#allocation64_spill] sm:$0xff]  ;;  %v14451_v40 = vld [vmem:[#allocation65_spill] sm:$0xff]  ;;  %v14460_v30 = vld [vmem:[#allocation74_spill] sm:$0xff] }
 0x445   :  { %v12944_v2 = vmax.f32 %v4802_v18, 0.0  ;;  %v4806_v21 = vadd.f32 %v4798_v14, %v4756_v60  ;;  %4965 = vmatprep.mubr.f32.mxu0 %v4770_v37  ;;  %5126 = vmatprep.mubr.f32.mxu1 %v4770_v37  ;;  %v12946_v11 = vmax.f32 %v4801_v19, 0.0  ;;  %v4805_v41 = vadd.f32 %v4797_v31, %v4752_v63  ;;  %v14443_v63 = vld [vmem:[#allocation57_spill] sm:$0xff]  ;;  %v14444_v60 = vld [vmem:[#allocation58_spill] sm:$0xff]  ;;  %v14453_v31 = vld [vmem:[#allocation67_spill] sm:$0xff] }
 0x446   :  { %v12948_v39 = vmax.f32 %v4804_v32, 0.0  ;;  %v12950_v57 = vmax.f32 %v4803_v10, 0.0  ;;  %10743 = vmatprep.subr.bf16.mxu1 %v12668_v35  ;;  %10807 = vmatprep.subr.bf16.mxu0 %v12670_v62  ;;  %4816 = vst [vmem:[#allocation3 + $0x48] sm:$0xff] %v4808_v17  ;;  %4815 = vst [vmem:[#allocation3 + $0x40] sm:$0xff] %v12942_v44  ;;  %v14423_v35 = vld [vmem:[#allocation37_spill] sm:$0xff]  ;;  %v14424_v62 = vld [vmem:[#allocation38_spill] sm:$0xff] }
 0x447   :  { %4818 = vst [vmem:[#allocation3 + $0x58] sm:$0xff] %v12944_v2  ;;  %v12956_v20 = vmax.f32 %v4806_v21, 0.0  ;;  %4966 = vmatmul.mubr.f32.gmra.mrb[50].mxu0 %v4769_v7  ;;  %5127 = vmatmul.mubr.f32.gmra.mrb[50].mxu1 %v4769_v7  ;;  %4817 = vst [vmem:[#allocation3 + $0x50] sm:$0xff] %v12946_v11  ;;  %v12961_v38 = vmax.f32 %v4805_v41, 0.0  ;;  %v14452_v14 = vld [vmem:[#allocation66_spill] sm:$0xff]  ;;  %v14459_v22 = vld [vmem:[#allocation73_spill] sm:$0xff] }
 0x448   :  { %4820 = vst [vmem:[#allocation3 + $0x68] sm:$0xff] %v12948_v39  ;;  %4819 = vst [vmem:[#allocation3 + $0x60] sm:$0xff] %v12950_v57  ;;  %10745 = vmatpush1.bf16.msra.mxu1 %v12672_v26  ;;  %10809 = vmatpush1.bf16.msra.mxu0 %v12675_v42  ;;  %v14425_v26 = vld [vmem:[#allocation39_spill] sm:$0xff]  ;;  %v14426_v42 = vld [vmem:[#allocation40_spill] sm:$0xff] }
 0x449   :  { %4822 = vst [vmem:[#allocation3 + $0x78] sm:$0xff] %v12956_v20  ;;  %4971 = vmatprep.mubr.f32.mxu0 %v4772_v53  ;;  %5132 = vmatprep.mubr.f32.mxu1 %v4772_v53  ;;  %4821 = vst [vmem:[#allocation3 + $0x70] sm:$0xff] %v12961_v38  ;;  %v14461_v33 = vld [vmem:[#allocation75_spill] sm:$0xff]  ;;  %v14462_v48 = vld [vmem:[#allocation76_spill] sm:$0xff] }
 0x44a   :  { %10747 = vmatprep.subr.bf16.mxu1 %v12680_v6  ;;  %10811 = vmatprep.subr.bf16.mxu0 %v12682_v43  ;;  %v14427_v6 = vld [vmem:[#allocation41_spill] sm:$0xff]  ;;  %v14428_v43 = vld [vmem:[#allocation42_spill] sm:$0xff]  ;;  %v14465_v7 = vld [vmem:[#allocation79_spill] sm:$0xff] }
 0x44b   :  { %4972 = vmatmul.mubr.f32.gmra.mrb[52].mxu0 %v4771_v27  ;;  %5133 = vmatmul.mubr.f32.gmra.mrb[52].mxu1 %v4771_v27  ;;  %v14463_v51 = vld [vmem:[#allocation77_spill] sm:$0xff]  ;;  %v14464_v37 = vld [vmem:[#allocation78_spill] sm:$0xff]  ;;  %v14466_v53 = vld [vmem:[#allocation80_spill] sm:$0xff]  ;;  %v14467_v27 = vmov 0.0  }
 0x44c   :  { %10749 = vmatpush1.bf16.msra.mxu1 %v12684_v13  ;;  %10813 = vmatpush1.bf16.msra.mxu0 %v12687_v3  ;;  %v14429_v13 = vld [vmem:[#allocation43_spill] sm:$0xff]  ;;  %v14430_v3 = vld [vmem:[#allocation44_spill] sm:$0xff]  ;;  %v5932_v24 = vld [vmem:[#allocation14 + $0x18] sm:$0xff] }
 0x44d   :  { %4977 = vmatprep.mubr.f32.mxu0 %v4774_v50  ;;  %5138 = vmatprep.mubr.f32.mxu1 %v4774_v50  ;;  %v5803_v50 = vld [vmem:[#allocation14 + $0x8] sm:$0xff]  ;;  %v5934_v18 = vld [vmem:[#allocation14 + $0x38] sm:$0xff]  ;;  %v5802_v19 = vld [vmem:[#allocation14] sm:$0xff] }
 0x44e   :  { %10751 = vmatprep.subr.bf16.mxu1 %v12692_v29  ;;  %10815 = vmatprep.subr.bf16.mxu0 %v12694_v46  ;;  %v14431_v29 = vld [vmem:[#allocation45_spill] sm:$0xff]  ;;  %v14432_v46 = vld [vmem:[#allocation46_spill] sm:$0xff]  ;;  %v13041_v10 = vpack.c.bf16 %v5934_v18, %v5932_v24  ;;  %v5807_v21 = vld [vmem:[#allocation14 + $0x48] sm:$0xff] }
 0x44f   :  { %4978 = vmatmul.mubr.f32.gmra.mrb[54].mxu0 %v4773_v23  ;;  %5139 = vmatmul.mubr.f32.gmra.mrb[54].mxu1 %v4773_v23  ;;  %v5805_v23 = vld [vmem:[#allocation14 + $0x28] sm:$0xff]  ;;  %v5804_v32 = vld [vmem:[#allocation14 + $0x20] sm:$0xff]  ;;  %v5938_v41 = vld [vmem:[#allocation14 + $0x78] sm:$0xff] }
 0x450   :  { %10753 = vmatpush1.bf16.msra.mxu1 %v12696_v47  ;;  %10817 = vmatpush1.bf16.msra.mxu0 %v12699_v56  ;;  %v14433_v47 = vld [vmem:[#allocation47_spill] sm:$0xff]  ;;  %v14434_v56 = vld [vmem:[#allocation48_spill] sm:$0xff]  ;;  %v13039_v0 = vpack.c.bf16 %v5805_v23, %v5803_v50  ;;  %14469 = vst [vmem:[#allocation38_spill] sm:$0xff] %v13041_v10 }
 0x451   :  { %5289 = vmatprep.mubr.f32.mxu1 %v4808_v17  ;;  %5451 = vmatprep.mubr.f32.mxu0 %v4808_v17  ;;  %v13043_v17 = vpack.c.bf16 %v5804_v32, %v5802_v19  ;;  %v5822_v18 = vld [vmem:[#allocation14 + $0x140] sm:$0xff]  ;;  %v5951_v32 = vld [vmem:[#allocation14 + $0x150] sm:$0xff] }
 0x452   :  { %10755 = vmatprep.subr.bf16.mxu1 %v12703_v59  ;;  %10819 = vmatprep.subr.bf16.mxu0 %v12705_v12  ;;  %v14435_v59 = vld [vmem:[#allocation49_spill] sm:$0xff]  ;;  %v14436_v12 = vld [vmem:[#allocation50_spill] sm:$0xff]  ;;  %14468 = vst [vmem:[#allocation37_spill] sm:$0xff] %v13039_v0 }
 0x453   :  { %v5824_v19 = vld [vmem:[#allocation14 + $0x160] sm:$0xff] }
 0x454   :  { %10757 = vmatpush1.bf16.msra.mxu1 %v12708_v54  ;;  %10821 = vmatpush1.bf16.msra.mxu0 %v12712_v5  ;;  %v14437_v54 = vld [vmem:[#allocation51_spill] sm:$0xff]  ;;  %v14438_v5 = vld [vmem:[#allocation52_spill] sm:$0xff] }
 0x455   :  { %10759 = vmatprep.subr.bf16.mxu1 %v14423_v35  ;;  %10823 = vmatprep.subr.bf16.mxu0 %v14424_v62  ;;  %v5806_v35 = vld [vmem:[#allocation14 + $0x40] sm:$0xff] }
 0x456   :  { %v5808_v62 = vld [vmem:[#allocation14 + $0x60] sm:$0xff] }
 0x458   :  { %10761 = vmatpush1.bf16.msra.mxu1 %v14425_v26  ;;  %10825 = vmatpush1.bf16.msra.mxu0 %v14426_v42  ;;  %v5935_v26 = vld [vmem:[#allocation14 + $0x50] sm:$0xff]  ;;  %v13055_v42 = vpack.c.bf16 %v5808_v62, %v5806_v35  ;;  %v13102_v35 = vpack.c.bf16 %v5824_v19, %v5822_v18 }
 0x459   :  { %10763 = vmatprep.subr.bf16.mxu1 %v14427_v6  ;;  %10827 = vmatprep.subr.bf16.mxu0 %v14428_v43  ;;  %v5937_v6 = vld [vmem:[#allocation14 + $0x70] sm:$0xff]  ;;  %v5811_v43 = vld [vmem:[#allocation14 + $0x88] sm:$0xff] }
 0x45a   :  { %14473 = vst [vmem:[#allocation42_spill] sm:$0xff] %v13102_v35 }
 0x45c   :  { %10765 = vmatpush1.bf16.msra.mxu1 %v14429_v13  ;;  %10829 = vmatpush1.bf16.msra.mxu0 %v14430_v3  ;;  %v5813_v13 = vld [vmem:[#allocation14 + $0xa8] sm:$0xff]  ;;  %v13059_v3 = vpack.c.bf16 %v5937_v6, %v5935_v26  ;;  %v5826_v6 = vld [vmem:[#allocation14 + $0x180] sm:$0xff] }
 0x45d   :  { %10767 = vmatprep.subr.bf16.mxu1 %v14431_v29  ;;  %10831 = vmatprep.subr.bf16.mxu0 %v14432_v46  ;;  %v13061_v29 = vpack.c.bf16 %v5813_v13, %v5811_v43  ;;  %v5940_v46 = vld [vmem:[#allocation14 + $0x98] sm:$0xff]  ;;  %v5828_v43 = vld [vmem:[#allocation14 + $0x1a0] sm:$0xff]  ;;  %v5955_v13 = vld [vmem:[#allocation14 + $0x190] sm:$0xff] }
 0x460   :  { %10769 = vmatpush1.bf16.msra.mxu1 %v14433_v47  ;;  %10833 = vmatpush1.bf16.msra.mxu0 %v14434_v56  ;;  %v5942_v47 = vld [vmem:[#allocation14 + $0xb8] sm:$0xff]  ;;  %v5810_v56 = vld [vmem:[#allocation14 + $0x80] sm:$0xff] }
 0x461   :  { %10771 = vmatprep.subr.bf16.mxu1 %v14435_v59  ;;  %10835 = vmatprep.subr.bf16.mxu0 %v14436_v12  ;;  %v13063_v59 = vpack.c.bf16 %v5942_v47, %v5940_v46  ;;  %v5812_v12 = vld [vmem:[#allocation14 + $0xa0] sm:$0xff]  ;;  %v5957_v47 = vld [vmem:[#allocation14 + $0x1b0] sm:$0xff] }
 0x464   :  { %10773 = vmatpush1.bf16.msra.mxu1 %v14437_v54  ;;  %10837 = vmatpush1.bf16.msra.mxu0 %v14438_v5  ;;  %v5939_v54 = vld [vmem:[#allocation14 + $0x90] sm:$0xff] }
 0x465   :  { %10775 = vmatprep.subr.bf16.mxu1 %v14439_v15  ;;  %10839 = vmatprep.subr.bf16.mxu0 %v14440_v25  ;;  %v5941_v5 = vld [vmem:[#allocation14 + $0xb0] sm:$0xff]  ;;  %v13066_v15 = vpack.c.bf16 %v5812_v12, %v5810_v56  ;;  %v5815_v25 = vld [vmem:[#allocation14 + $0xc8] sm:$0xff] }
 0x466   :  { %v5831_v56 = vld [vmem:[#allocation14 + $0x1c8] sm:$0xff] }
 0x467   :  { %v5833_v12 = vld [vmem:[#allocation14 + $0x1e8] sm:$0xff] }
 0x468   :  { %10777 = vmatpush1.bf16.msra.mxu1 %v14441_v61  ;;  %10841 = vmatpush1.bf16.msra.mxu0 %v14442_v8  ;;  %v5817_v61 = vld [vmem:[#allocation14 + $0xe8] sm:$0xff]  ;;  %v5944_v8 = vld [vmem:[#allocation14 + $0xd8] sm:$0xff] }
 0x469   :  { %10779 = vmatprep.subr.bf16.mxu1 %v14443_v63  ;;  %10843 = vmatprep.subr.bf16.mxu0 %v14444_v60  ;;  %v13070_v63 = vpack.c.bf16 %v5941_v5, %v5939_v54  ;;  %v13072_v60 = vpack.c.bf16 %v5817_v61, %v5815_v25  ;;  %v5960_v54 = vld [vmem:[#allocation14 + $0x1d8] sm:$0xff]  ;;  %v13114_v25 = vpack.c.bf16 %v5828_v43, %v5826_v6 }
 0x46a   :  { %v5962_v5 = vld [vmem:[#allocation14 + $0x1f8] sm:$0xff]  ;;  %v13118_v61 = vpack.c.bf16 %v5957_v47, %v5955_v13 }
 0x46b   :  { %14477 = vst [vmem:[#allocation46_spill] sm:$0xff] %v13114_v25 }
 0x46c   :  { %10781 = vmatpush1.bf16.msra.mxu1 %v14445_v45  ;;  %10845 = vmatpush1.bf16.msra.mxu0 %v14446_v9  ;;  %v5946_v45 = vld [vmem:[#allocation14 + $0xf8] sm:$0xff]  ;;  %v5814_v9 = vld [vmem:[#allocation14 + $0xc0] sm:$0xff]  ;;  %14478 = vst [vmem:[#allocation47_spill] sm:$0xff] %v13118_v61 }
 0x46d   :  { %10783 = vmatprep.subr.bf16.mxu1 %v14447_v28  ;;  %10847 = vmatprep.subr.bf16.mxu0 %v14448_v1  ;;  %v5816_v28 = vld [vmem:[#allocation14 + $0xe0] sm:$0xff]  ;;  %v13075_v1 = vpack.c.bf16 %v5946_v45, %v5944_v8  ;;  %v13120_v8 = vpack.c.bf16 %v5833_v12, %v5831_v56 }
 0x46e   :  { %v5830_v45 = vld [vmem:[#allocation14 + $0x1c0] sm:$0xff] }
 0x46f   :  { %14479 = vst [vmem:[#allocation48_spill] sm:$0xff] %v13120_v8 }
 0x470   :  { %10785 = vmatpush1.bf16.msra.mxu1 %v14449_v52  ;;  %10849 = vmatpush1.bf16.msra.mxu0 %v14450_v49  ;;  %v5943_v52 = vld [vmem:[#allocation14 + $0xd0] sm:$0xff] }
 0x471   :  { %10787 = vmatprep.subr.bf16.mxu1 %v14451_v40  ;;  %10851 = vmatprep.subr.bf16.mxu0 %v14452_v14  ;;  %v5945_v49 = vld [vmem:[#allocation14 + $0xf0] sm:$0xff]  ;;  %v5819_v40 = vld [vmem:[#allocation14 + $0x108] sm:$0xff] }
 0x472   :  { %v5821_v14 = vld [vmem:[#allocation14 + $0x128] sm:$0xff] }
 0x474   :  { %10789 = vmatpush1.bf16.msra.mxu1 %v14453_v31  ;;  %10853 = vmatpush1.bf16.msra.mxu0 %v14454_v36  ;;  %v5948_v31 = vld [vmem:[#allocation14 + $0x118] sm:$0xff] }
 0x475   :  { %10791 = vmatprep.subr.bf16.mxu1 %v14455_v55  ;;  %10855 = vmatprep.subr.bf16.mxu0 %v14456_v4  ;;  %v5950_v36 = vld [vmem:[#allocation14 + $0x138] sm:$0xff]  ;;  %v13078_v55 = vpack.c.bf16 %v5816_v28, %v5814_v9  ;;  %v13082_v4 = vpack.c.bf16 %v5945_v49, %v5943_v52  ;;  %v5832_v9 = vld [vmem:[#allocation14 + $0x1e0] sm:$0xff]  ;;  %v13123_v28 = vpack.c.bf16 %v5962_v5, %v5960_v54  ;;  %v5959_v52 = vld [vmem:[#allocation14 + $0x1d0] sm:$0xff] }
 0x476   :  { %v5961_v49 = vld [vmem:[#allocation14 + $0x1f0] sm:$0xff] }
 0x477   :  { %14480 = vst [vmem:[#allocation49_spill] sm:$0xff] %v13123_v28 }
 0x478   :  { %10793 = vmatpush1.bf16.msra.mxu1 %v14457_v16  ;;  %10857 = vmatpush1.bf16.msra.mxu0 %v14458_v58  ;;  %v13084_v16 = vpack.c.bf16 %v5821_v14, %v5819_v40  ;;  %v5818_v58 = vld [vmem:[#allocation14 + $0x100] sm:$0xff]  ;;  %v13126_v40 = vpack.c.bf16 %v5832_v9, %v5830_v45  ;;  %v13130_v14 = vpack.c.bf16 %v5961_v49, %v5959_v52 }
 0x479   :  { %10795 = vmatprep.subr.bf16.mxu1 %v14459_v22  ;;  %10859 = vmatprep.subr.bf16.mxu0 %v14460_v30  ;;  %v5820_v22 = vld [vmem:[#allocation14 + $0x120] sm:$0xff]  ;;  %v5947_v30 = vld [vmem:[#allocation14 + $0x110] sm:$0xff] }
 0x47a   :  { %v13090_v50 = vpack.c.bf16 %v5820_v22, %v5818_v58  ;;  %14481 = vst [vmem:[#allocation50_spill] sm:$0xff] %v13126_v40  ;;  %14482 = vst [vmem:[#allocation51_spill] sm:$0xff] %v13130_v14 }
 0x47c   :  { %10797 = vmatpush1.bf16.msra.mxu1 %v14461_v33  ;;  %10861 = vmatpush1.bf16.msra.mxu0 %v14462_v48  ;;  %v13087_v33 = vpack.c.bf16 %v5950_v36, %v5948_v31  ;;  %v5949_v48 = vld [vmem:[#allocation14 + $0x130] sm:$0xff] }
 0x47d   :  { %10799 = vmatprep.subr.bf16.mxu1 %v14463_v51  ;;  %10863 = vmatprep.subr.bf16.mxu0 %v14464_v37  ;;  %v5823_v51 = vld [vmem:[#allocation14 + $0x148] sm:$0xff]  ;;  %v13094_v23 = vpack.c.bf16 %v5949_v48, %v5947_v30 }
 0x47e   :  { %v5825_v37 = vld [vmem:[#allocation14 + $0x168] sm:$0xff] }
 0x47f   :  { %14470 = vst [vmem:[#allocation39_spill] sm:$0xff] %v13094_v23  ;;  %v13096_v24 = vpack.c.bf16 %v5825_v37, %v5823_v51 }
 0x480   :  { %10801 = vmatpush1.bf16.msra.mxu1 %v14465_v7  ;;  %10865 = vmatpush1.bf16.msra.mxu0 %v14466_v53  ;;  %v5952_v7 = vld [vmem:[#allocation14 + $0x158] sm:$0xff] }
 0x481   :  { %10867 = vmatprep.subr.bf16.mxu0 %v13039_v0  ;;  %10899 = vmatprep.subr.bf16.mxu1 %v13041_v10  ;;  %v5954_v53 = vld [vmem:[#allocation14 + $0x178] sm:$0xff]  ;;  %14471 = vst [vmem:[#allocation40_spill] sm:$0xff] %v13096_v24 }
 0x483   :  { %5290 = vmatmul.mubr.f32.vlgmr.msra.gmra.mrb[48].mxu1 %v12942_v44  ;;  %5452 = vmatmul.mubr.f32.vlgmr.msra.gmra.mrb[56].mxu0 %v12942_v44  ;;  %v5931_v44 = vld [vmem:[#allocation14 + $0x10] sm:$0xff] }
 0x484   :  { %5295 = vmatprep.mubr.f32.mxu1 %v12944_v2  ;;  %5457 = vmatprep.mubr.f32.mxu0 %v12944_v2  ;;  %v5933_v2 = vld [vmem:[#allocation14 + $0x30] sm:$0xff] }
 0x485   :  { %10869 = vmatpush1.bf16.msra.mxu0 %v13043_v17 }
 0x487   :  { %5296 = vmatmul.mubr.f32.gmra.mrb[50].mxu1 %v12946_v11  ;;  %5458 = vmatmul.mubr.f32.gmra.mrb[58].mxu0 %v12946_v11  ;;  %v13046_v11 = vpack.c.bf16 %v5933_v2, %v5931_v44  ;;  %v13099_v44 = vpack.c.bf16 %v5954_v53, %v5952_v7  ;;  %v5953_v2 = vld [vmem:[#allocation14 + $0x170] sm:$0xff] }
 0x488   :  { %5301 = vmatprep.mubr.f32.mxu1 %v12948_v39  ;;  %5463 = vmatprep.mubr.f32.mxu0 %v12948_v39  ;;  %v5809_v39 = vld [vmem:[#allocation14 + $0x68] sm:$0xff]  ;;  %v13106_v62 = vpack.c.bf16 %v5953_v2, %v5951_v32 }
 0x489   :  { %10901 = vmatpush1.bf16.msra.mxu1 %v13046_v11  ;;  %14472 = vst [vmem:[#allocation41_spill] sm:$0xff] %v13099_v44 }
 0x48a   :  { %14474 = vst [vmem:[#allocation43_spill] sm:$0xff] %v13106_v62 }
 0x48b   :  { %5302 = vmatmul.mubr.f32.gmra.mrb[52].mxu1 %v12950_v57  ;;  %5464 = vmatmul.mubr.f32.gmra.mrb[60].mxu0 %v12950_v57  ;;  %v5936_v57 = vld [vmem:[#allocation14 + $0x58] sm:$0xff] }
 0x48c   :  { %5307 = vmatprep.mubr.f32.mxu1 %v12956_v20  ;;  %5469 = vmatprep.mubr.f32.mxu0 %v12956_v20  ;;  %v13050_v20 = vpack.c.bf16 %v5809_v39, %v5807_v21  ;;  %v5827_v21 = vld [vmem:[#allocation14 + $0x188] sm:$0xff] }
 0x48d   :  { %v5829_v39 = vld [vmem:[#allocation14 + $0x1a8] sm:$0xff] }
 0x48e   :  { %10871 = vmatprep.subr.bf16.mxu0 %v13050_v20  ;;  %v13108_v26 = vpack.c.bf16 %v5829_v39, %v5827_v21 }
 0x48f   :  { %5308 = vmatmul.mubr.f32.gmra.mrb[54].mxu1 %v12961_v38  ;;  %5470 = vmatmul.mubr.f32.gmra.mrb[62].mxu0 %v12961_v38  ;;  %v13052_v38 = vpack.c.bf16 %v5938_v41, %v5936_v57  ;;  %v5956_v57 = vld [vmem:[#allocation14 + $0x198] sm:$0xff] }
 0x490   :  { %5898 = vmatprep.mubr.f32.mxu0 %v14467_v27  ;;  %6027 = vmatprep.mubr.f32.mxu1 %v14467_v27  ;;  %v5958_v41 = vld [vmem:[#allocation14 + $0x1b8] sm:$0xff]  ;;  %14475 = vst [vmem:[#allocation44_spill] sm:$0xff] %v13108_v26 }
 0x491   :  { %10903 = vmatprep.subr.bf16.mxu1 %v13052_v38  ;;  %10873 = vmatpush1.bf16.msra.mxu0 %v13055_v42  ;;  %v13111_v46 = vpack.c.bf16 %v5958_v41, %v5956_v57 }
 0x492   :  { %10905 = vmatpush1.bf16.msra.mxu1 %v13059_v3  ;;  %10875 = vmatprep.subr.bf16.mxu0 %v13061_v29 }
 0x493   :  { %10907 = vmatprep.subr.bf16.mxu1 %v13063_v59  ;;  %14476 = vst [vmem:[#allocation45_spill] sm:$0xff] %v13111_v46 }
 0x495   :  { %10877 = vmatpush1.bf16.msra.mxu0 %v13066_v15 }
 0x496   :  { %10909 = vmatpush1.bf16.msra.mxu1 %v13070_v63  ;;  %10879 = vmatprep.subr.bf16.mxu0 %v13072_v60 }
 0x497   :  { %10911 = vmatprep.subr.bf16.mxu1 %v13075_v1 }
 0x499   :  { %10881 = vmatpush1.bf16.msra.mxu0 %v13078_v55 }
 0x49a   :  { %10913 = vmatpush1.bf16.msra.mxu1 %v13082_v4  ;;  %10883 = vmatprep.subr.bf16.mxu0 %v13084_v16 }
 0x49b   :  { %10915 = vmatprep.subr.bf16.mxu1 %v13087_v33 }
 0x49d   :  { %10885 = vmatpush1.bf16.msra.mxu0 %v13090_v50 }
 0x49e   :  { %10917 = vmatpush1.bf16.msra.mxu1 %v13094_v23  ;;  %10887 = vmatprep.subr.bf16.mxu0 %v13096_v24 }
 0x49f   :  { %10919 = vmatprep.subr.bf16.mxu1 %v13099_v44 }
 0x4a1   :  { %10889 = vmatpush1.bf16.msra.mxu0 %v13102_v35 }
 0x4a2   :  { %10921 = vmatpush1.bf16.msra.mxu1 %v13106_v62  ;;  %10891 = vmatprep.subr.bf16.mxu0 %v13108_v26 }
 0x4a3   :  { %10923 = vmatprep.subr.bf16.mxu1 %v13111_v46 }
 0x4a5   :  { %10893 = vmatpush1.bf16.msra.mxu0 %v13114_v25 }
 0x4a6   :  { %10925 = vmatpush1.bf16.msra.mxu1 %v13118_v61  ;;  %10895 = vmatprep.subr.bf16.mxu0 %v13120_v8 }
 0x4a7   :  { %10927 = vmatprep.subr.bf16.mxu1 %v13123_v28 }
 0x4a9   :  { %10897 = vmatpush1.bf16.msra.mxu0 %v13126_v40 }
 0x4aa   :  { %10929 = vmatpush1.bf16.msra.mxu1 %v13130_v14  ;;  %10963 = vmatprep.subr.bf16.mxu0 %v13041_v10 }
 0x4ab   :  { %10931 = vmatprep.subr.bf16.mxu1 %v13039_v0 }
 0x516   :  { %v4961_v31 = vpop.f32.mrb[48].mxu0 }
 0x517   :  { %4984 = vst [vmem:[#allocation4] sm:$0xff] %v4961_v31  ;;  %v13137_v36 = vpop.f32.mrb[49].mxu0 }
 0x51a   :  { %v4967_v58 = vpop.f32.mrb[50].mxu0 }
 0x51b   :  { %v4969_v22 = vpop.f32.mrb[51].mxu0  ;;  %v5517_v37 = vrot.slane %v4967_v58, 2 }
 0x51e   :  { %v5508_v30 = vld [vmem:[#allocation4] sm:$0xfc]  ;;  %v4973_v48 = vpop.f32.mrb[52].mxu0 }
 0x51f   :  { %v5516_v51 = vrot.slane %v5508_v30, 2  ;;  %v5519_v7 = vrot.slane %v4973_v48, 2  ;;  %v13139_v53 = vpop.f32.mrb[53].mxu0 }
 0x521   :  { %v5518_v18 = vsel %vm4479_vm1, %v5516_v51, %v5517_v37  ;;  %v5520_v19 = vsel %vm4479_vm1, %v5517_v37, %v5519_v7 }
 0x522   :  { %5527 = vst [vmem:[#allocation6] sm:$0xff] %v5518_v18  ;;  %5528 = vst [vmem:[#allocation6 + $0x10] sm:$0xff] %v5520_v19  ;;  %v4979_v32 = vpop.f32.mrb[54].mxu0 }
 0x523   :  { %v5521_v2 = vrot.slane %v4979_v32, 2  ;;  %v13143_v21 = vpop.f32.mrb[55].mxu0 }
 0x525   :  { %v5522_v39 = vsel %vm4479_vm1, %v5519_v7, %v5521_v2  ;;  %5530 = vst [vmem:[#allocation6 + $0x30] sm:$0x3f] %v5521_v2 }
 0x526   :  { %5529 = vst [vmem:[#allocation6 + $0x20] sm:$0xff] %v5522_v39 }
 0x52c   :  { %v5628_v57 = vld [vmem:[#allocation6 + $0x30] sm:$0xff] }
 0x52d   :  { %6900 = vst.msk [vmem:[#allocation6 + $0x30] sm:$0xc0] %vm6899_vm3, %v14467_v27 }
 0x556   :  { %v13147_v41 = vpop.f32.mrb[48].mxu1  ;;  %v5453_v6 = vpop.f32.mrb[56].mxu0 }
 0x557   :  { %v5633_v43 = vadd.f32 %v5518_v18, %v5453_v6  ;;  %v13149_v13 = vpop.f32.mrb[49].mxu1  ;;  %v5455_v47 = vpop.f32.mrb[57].mxu0  ;;  %v5590_v5 = vmul.f32 %v13147_v41, %v13147_v41 }
 0x558   :  { %v5493_v56 = vrot.slane %v5455_v47, 6  ;;  %v5657_v58 = vmul.f32 %v13149_v13, %v13149_v13 }
 0x559   :  { %5691 = vst [vmem:[#allocation2 + $0x180] sm:$0xff] %v5633_v43  ;;  %v5671_v37 = vmul.f32 %v5633_v43, %v5633_v43 }
 0x55a   :  { %5504 = vst [vmem:[#allocation5] sm:$0xfc] %v5493_v56  ;;  %v13151_v12 = vpop.f32.mrb[50].mxu1  ;;  %v5459_v54 = vpop.f32.mrb[58].mxu0 }
 0x55b   :  { %v5566_v45 = vadd.f32 %v13151_v12, %v13147_v41  ;;  %v5591_v9 = vmul.f32 %v13151_v12, %v13151_v12  ;;  %v5634_v52 = vadd.f32 %v5520_v19, %v5459_v54  ;;  %v13159_v49 = vpop.f32.mrb[51].mxu1  ;;  %v5461_v31 = vpop.f32.mrb[59].mxu0 }
 0x55c   :  { %v5637_v30 = vadd.f32 %v13159_v49, %v13149_v13  ;;  %v5658_v48 = vmul.f32 %v13159_v49, %v13159_v49  ;;  %v5494_v51 = vrot.slane %v5461_v31, 6 }
 0x55d   :  { %v5594_v7 = vadd.f32 %v5591_v9, %v5590_v5  ;;  %v5647_v18 = vadd.f32 %v5634_v52, %v5633_v43  ;;  %v5672_v32 = vmul.f32 %v5634_v52, %v5634_v52  ;;  %5692 = vst [vmem:[#allocation2 + $0x1a0] sm:$0xff] %v5634_v52 }
 0x55e   :  { %v5661_v2 = vadd.f32 %v5658_v48, %v5657_v58  ;;  %v5495_v19 = vsel %vm4432_vm2, %v5493_v56, %v5494_v51  ;;  %v13168_v6 = vpop.f32.mrb[52].mxu1  ;;  %v5465_v47 = vpop.f32.mrb[60].mxu0 }
 0x55f   :  { %v5675_v54 = vadd.f32 %v5672_v32, %v5671_v37  ;;  %5505 = vst [vmem:[#allocation5 + $0x10] sm:$0xff] %v5495_v19  ;;  %v5567_v10 = vadd.f32 %v5566_v45, %v13168_v6  ;;  %v5592_v0 = vmul.f32 %v13168_v6, %v13168_v6  ;;  %v5635_v31 = vadd.f32 %v5522_v39, %v5465_v47  ;;  %v13173_v14 = vpop.f32.mrb[53].mxu1  ;;  %v5467_v43 = vpop.f32.mrb[61].mxu0 }
 0x560   :  { %v5638_v5 = vadd.f32 %v5637_v30, %v13173_v14  ;;  %v5659_v56 = vmul.f32 %v13173_v14, %v13173_v14  ;;  %v5496_v9 = vrot.slane %v5467_v43, 6  ;;  %v13178_v52 = vadd.f32 %v5495_v19, %v4969_v22 }
 0x561   :  { %v5595_v58 = vadd.f32 %v5594_v7, %v5592_v0  ;;  %v5648_v48 = vadd.f32 %v5647_v18, %v5635_v31  ;;  %v5673_v37 = vmul.f32 %v5635_v31, %v5635_v31  ;;  %5693 = vst [vmem:[#allocation2 + $0x1c0] sm:$0xff] %v5635_v31  ;;  %v5540_v45 = vld [vmem:[#allocation5] sm:$0xff] }
 0x562   :  { %v5662_v32 = vadd.f32 %v5661_v2, %v5659_v56  ;;  %v5497_v40 = vsel %vm4432_vm2, %v5494_v51, %v5496_v9  ;;  %v13181_v39 = vpop.f32.mrb[54].mxu1  ;;  %v5471_v47 = vpop.f32.mrb[62].mxu0  ;;  %v13184_v28 = vadd.f32 %v5540_v45, %v13137_v36  ;;  %6849 = vst.msk [vmem:[#allocation5] sm:$0x3] %vm6848_vm4, %v14467_v27 }
 0x563   :  { %v5676_v30 = vadd.f32 %v5675_v54, %v5673_v37  ;;  %5506 = vst [vmem:[#allocation5 + $0x20] sm:$0xff] %v5497_v40  ;;  %v5568_v0 = vadd.f32 %v5567_v10, %v13181_v39  ;;  %v5593_v22 = vmul.f32 %v13181_v39, %v13181_v39  ;;  %v5636_v7 = vadd.f32 %v5628_v57, %v5471_v47  ;;  %v13191_v18 = vpop.f32.mrb[55].mxu1  ;;  %v5473_v51 = vpop.f32.mrb[63].mxu0 }
 0x564   :  { %v5639_v2 = vadd.f32 %v5638_v5, %v13191_v18  ;;  %v5660_v36 = vmul.f32 %v13191_v18, %v13191_v18  ;;  %5483 = vst [vmem:[#allocation4 + $0x1d8] sm:$0xff] %v5473_v51  ;;  %v13197_v19 = vadd.f32 %v5497_v40, %v13139_v53  ;;  %v5556_v54 = vadd.f32 %v13178_v52, %v13184_v28 }
 0x565   :  { %v5596_v10 = vadd.f32 %v5595_v58, %v5593_v22  ;;  %v5649_v31 = vadd.f32 %v5648_v48, %v5636_v7  ;;  %v5674_v43 = vmul.f32 %v5636_v7, %v5636_v7  ;;  %5694 = vst [vmem:[#allocation2 + $0x1e0] sm:$0xff] %v5636_v7  ;;  %v5576_v5 = vmul.f32 %v13184_v28, %v13184_v28 }
 0x566   :  { %v5663_v57 = vadd.f32 %v5662_v32, %v5660_v36  ;;  %v5557_v56 = vadd.f32 %v5556_v54, %v13197_v19  ;;  %v5577_v37 = vmul.f32 %v13178_v52, %v13178_v52  ;;  %v5578_v40 = vmul.f32 %v13197_v19, %v13197_v19 }
 0x567   :  { %v5677_v45 = vadd.f32 %v5676_v30, %v5674_v43  ;;  %v5569_v47 = vrot.slane %v5568_v0, 4  ;;  %v5640_v58 = vrot.slane %v5639_v2, 4  ;;  %v5597_v22 = vrot.slane %v5596_v10, 4 }
 0x568   :  { %v5580_v53 = vadd.f32 %v5577_v37, %v5576_v5  ;;  %v5650_v36 = vrot.slane %v5649_v31, 4  ;;  %v5664_v54 = vrot.slane %v5663_v57, 4 }
 0x569   :  { %v5570_v32 = vadd.f32 %v5569_v47, %v5568_v0  ;;  %v5641_v61 = vadd.f32 %v5640_v58, %v5639_v2  ;;  %v5598_v25 = vadd.f32 %v5597_v22, %v5596_v10  ;;  %v5678_v46 = vrot.slane %v5677_v45, 4 }
 0x56a   :  { %v5581_v51 = vadd.f32 %v5580_v53, %v5578_v40  ;;  %v5651_v5 = vadd.f32 %v5650_v36, %v5649_v31  ;;  %v5665_v37 = vadd.f32 %v5664_v54, %v5663_v57 }
 0x56b   :  { %v5488_v48 = vld [vmem:[#allocation4 + $0x1d8] sm:$0x3f]  ;;  %v5571_v43 = vrot.slane %v5570_v32, 2  ;;  %v5642_v0 = vrot.slane %v5641_v61, 2  ;;  %v5599_v47 = vrot.slane %v5598_v25, 2 }
 0x56c   :  { %v5498_v7 = vrot.slane %v5488_v48, 6  ;;  %v5679_v48 = vadd.f32 %v5678_v46, %v5677_v45  ;;  %v5652_v58 = vrot.slane %v5651_v5, 2  ;;  %v5666_v10 = vrot.slane %v5665_v37, 2 }
 0x56d   :  { %v5572_v2 = vadd.f32 %v5571_v43, %v5570_v32 }
 0x56e   :  { %v5499_v8 = vsel %vm4432_vm2, %v5496_v9, %v5498_v7  ;;  %v5680_v62 = vrot.slane %v5679_v48, 2  ;;  %v5667_v54 = vadd.f32 %v5666_v10, %v5665_v37 }
 0x56f   :  { %5507 = vst [vmem:[#allocation5 + $0x30] sm:$0xff] %v5499_v8  ;;  %v13210_v30 = vadd.f32 %v5499_v8, %v13143_v21  ;;  %v5643_v8 = vadd.f32 %v5642_v0, %v5641_v61  ;;  %v5600_v21 = vadd.f32 %v5599_v47, %v5598_v25  ;;  %v5573_v36 = vrot.slane %v5572_v2, 1 }
 0x570   :  { %v5681_v46 = vadd.f32 %v5680_v62, %v5679_v48 }
 0x571   :  { %v5558_v40 = vadd.f32 %v5557_v56, %v13210_v30  ;;  %v5579_v53 = vmul.f32 %v13210_v30, %v13210_v30  ;;  %v5653_v56 = vadd.f32 %v5652_v58, %v5651_v5  ;;  %v5644_v24 = vrot.slane %v5643_v8, 1 }
 0x572   :  { %v5601_v23 = vrot.slane %v5600_v21, 1  ;;  %v5574_v32 = vadd.f32 %v5573_v36, %v5572_v2  ;;  %v5682_v0 = vrot.slane %v5681_v46, 1 }
 0x573   :  { %v5559_v26 = vrot.slane %v5558_v40, 4  ;;  %v5582_v9 = vadd.f32 %v5581_v51, %v5579_v53  ;;  %v5654_v43 = vrot.slane %v5653_v56, 1  ;;  %v5668_v53 = vrot.slane %v5667_v54, 1 }
 0x574   :  { %v5645_v61 = vadd.f32 %v5644_v24, %v5643_v8  ;;  %v5602_v25 = vadd.f32 %v5601_v23, %v5600_v21  ;;  %v5683_v10 = vadd.f32 %v5682_v0, %v5681_v46  ;;  %v5703_v24 = vld [vmem:[#allocation23] sm:$0x1]  ;;  %v5705_v21 = vld [vmem:[#allocation24] sm:$0x1] }
 0x575   :  { %v5560_v22 = vadd.f32 %v5559_v26, %v5558_v40  ;;  %v5583_v7 = vrot.slane %v5582_v9, 4  ;;  %v5669_v5 = vadd.f32 %v5668_v53, %v5667_v54 }
 0x577   :  { %v5561_v31 = vrot.slane %v5560_v22, 2  ;;  %v5584_v57 = vadd.f32 %v5583_v7, %v5582_v9  ;;  %v5655_v7 = vadd.f32 %v5654_v43, %v5653_v56 }
 0x579   :  { %v5562_v35 = vadd.f32 %v5561_v31, %v5560_v22  ;;  %v5585_v44 = vrot.slane %v5584_v57, 2 }
 0x57b   :  { %v5563_v45 = vrot.slane %v5562_v35, 1  ;;  %v5586_v51 = vadd.f32 %v5585_v44, %v5584_v57 }
 0x57d   :  { %v5564_v26 = vadd.f32 %v5563_v45, %v5562_v35  ;;  %v5587_v40 = vrot.slane %v5586_v51, 1 }
 0x57f   :  { %v5575_v47 = vadd.f32 %v5574_v32, %v5564_v26  ;;  %v5588_v9 = vadd.f32 %v5587_v40, %v5586_v51 }
 0x581   :  { %v5603_v37 = vadd.f32 %v5602_v25, %v5588_v9  ;;  %v5646_v58 = vadd.f32 %v5645_v61, %v5575_v47  ;;  %v5778_v47 = vld [vmem:[#allocation2 + $0x180] sm:$0xff] }
 0x583   :  { %v5656_v22 = vadd.f32 %v5655_v7, %v5646_v58  ;;  %v5670_v31 = vadd.f32 %v5669_v5, %v5603_v37 }
 0x585   :  { %v5684_v62 = vadd.f32 %v5683_v10, %v5670_v31  ;;  %v5696_v48 = vmul.f32 0.0078125, %v5656_v22 }
 0x587   :  { %v5697_v44 = vmul.f32 0.0078125, %v5684_v62  ;;  %v5698_v2 = vmul.f32 %v5696_v48, %v5696_v48 }
 0x589   :  { %v5699_v57 = vsub.f32 %v5697_v44, %v5698_v2 }
 0x58b   :  { %v5700_v36 = vmax.f32 %v5699_v57, 0.0 }
 0x58d   :  { %v5701_v35 = vadd.f32 1e-05, %v5700_v36 }
 0x58f   :  { %11526 = vrsqrt.f32 %v5701_v35 }
 0x599   :  { %v11527_v23 = vpop.eup %11526 }
 0x59a   :  { %v5704_v8 = vmul.f32 %v11527_v23, %v5703_v24  ;;  %v5780_v23 = vld [vmem:[#allocation2 + $0x1c0] sm:$0xff] }
 0x59c   :  { %v5706_v45 = vmul.f32 %v5704_v8, %v5696_v48  ;;  %v5715_v56 = vrot.slane %v5704_v8, %v12451_v34 }
 0x59e   :  { %v5707_v54 = vsub.f32 %v5705_v21, %v5706_v45  ;;  %v5716_v46 = vmul.f32 %v5715_v56, %v13184_v28  ;;  %v5717_v51 = vmul.f32 %v5715_v56, %v13178_v52  ;;  %v5718_v32 = vmul.f32 %v5715_v56, %v13197_v19  ;;  %v5779_v52 = vld [vmem:[#allocation2 + $0x1a0] sm:$0xff] }
 0x59f   :  { %v5719_v43 = vmul.f32 %v5715_v56, %v13210_v30  ;;  %v5742_v53 = vmul.f32 %v5715_v56, %v13147_v41  ;;  %v5743_v26 = vmul.f32 %v5715_v56, %v13151_v12  ;;  %v5744_v40 = vmul.f32 %v5715_v56, %v13168_v6 }
 0x5a0   :  { %v5724_v61 = vrot.slane %v5707_v54, %v12451_v34  ;;  %v5745_v25 = vmul.f32 %v5715_v56, %v13181_v39  ;;  %v5762_v0 = vmul.f32 %v5715_v56, %v13149_v13  ;;  %v5763_v28 = vmul.f32 %v5715_v56, %v13159_v49 }
 0x5a1   :  { %v5764_v19 = vmul.f32 %v5715_v56, %v13173_v14  ;;  %v5765_v30 = vmul.f32 %v5715_v56, %v13191_v18  ;;  %v5782_v9 = vmul.f32 %v5778_v47, %v5715_v56  ;;  %v5783_v41 = vmul.f32 %v5779_v52, %v5715_v56  ;;  %v14486_v47 = vld [vmem:[#allocation42_spill] sm:$0xff]  ;;  %v14487_v52 = vld [vmem:[#allocation43_spill] sm:$0xff] }
 0x5a2   :  { %v5726_v7 = vadd.f32 %v5724_v61, %v5716_v46  ;;  %v5727_v12 = vadd.f32 %v5724_v61, %v5717_v51  ;;  %v5728_v5 = vadd.f32 %v5724_v61, %v5718_v32  ;;  %v5729_v6 = vadd.f32 %v5724_v61, %v5719_v43  ;;  %v5781_v46 = vld [vmem:[#allocation2 + $0x1e0] sm:$0xff] }
 0x5a3   :  { %v13229_v37 = vadd.f32 %v5742_v53, %v5724_v61  ;;  %v13231_v58 = vadd.f32 %v5743_v26, %v5724_v61  ;;  %v13233_v39 = vadd.f32 %v5744_v40, %v5724_v61  ;;  %v13235_v13 = vadd.f32 %v5745_v25, %v5724_v61 }
 0x5a4   :  { %v5730_v49 = vmax.f32 %v5726_v7, 0.0  ;;  %v5731_v10 = vmax.f32 %v5727_v12, 0.0  ;;  %v5732_v22 = vmax.f32 %v5728_v5, 0.0  ;;  %v5733_v14 = vmax.f32 %v5729_v6, 0.0  ;;  %v14492_v7 = vld [vmem:[#allocation48_spill] sm:$0xff]  ;;  %v14493_v12 = vld [vmem:[#allocation49_spill] sm:$0xff] }
 0x5a5   :  { %v5750_v18 = vmax.f32 %v13229_v37, 0.0  ;;  %v5751_v31 = vmax.f32 %v13231_v58, 0.0  ;;  %v5752_v62 = vmax.f32 %v13233_v39, 0.0  ;;  %v5753_v48 = vmax.f32 %v13235_v13, 0.0  ;;  %v14494_v5 = vld [vmem:[#allocation50_spill] sm:$0xff]  ;;  %v14495_v6 = vld [vmem:[#allocation51_spill] sm:$0xff] }
 0x5a6   :  { %5734 = vst [vmem:[#allocation2] sm:$0xff] %v5730_v49  ;;  %5899 = vmatmul.mubr.f32.vlgmr.msra.gmra.mrb[64].mxu0 %v5730_v49  ;;  %6028 = vmatmul.mubr.f32.vlgmr.msra.gmra.mrb[56].mxu1 %v5730_v49  ;;  %5735 = vst [vmem:[#allocation2 + $0x20] sm:$0xff] %v5731_v10  ;;  %v13241_v44 = vadd.f32 %v5762_v0, %v5724_v61  ;;  %v13243_v2 = vadd.f32 %v5763_v28, %v5724_v61  ;;  %v14484_v0 = vld [vmem:[#allocation40_spill] sm:$0xff]  ;;  %v14485_v28 = vld [vmem:[#allocation41_spill] sm:$0xff] }
 0x5a7   :  { %5736 = vst [vmem:[#allocation2 + $0x40] sm:$0xff] %v5732_v22  ;;  %5737 = vst [vmem:[#allocation2 + $0x60] sm:$0xff] %v5733_v14  ;;  %v13245_v57 = vadd.f32 %v5764_v19, %v5724_v61  ;;  %10933 = vmatpush1.bf16.msra.mxu1 %v13043_v17  ;;  %10965 = vmatpush1.bf16.msra.mxu0 %v13046_v11  ;;  %v13249_v36 = vadd.f32 %v5765_v30, %v5724_v61  ;;  %v14488_v19 = vld [vmem:[#allocation44_spill] sm:$0xff]  ;;  %v14489_v30 = vld [vmem:[#allocation45_spill] sm:$0xff] }
 0x5a8   :  { %v5786_v35 = vadd.f32 %v5782_v9, %v5724_v61  ;;  %v5787_v24 = vadd.f32 %v5783_v41, %v5724_v61  ;;  %5904 = vmatprep.mubr.f32.mxu0 %v14467_v27  ;;  %6033 = vmatprep.mubr.f32.mxu1 %v14467_v27  ;;  %v5770_v8 = vmax.f32 %v13241_v44, 0.0  ;;  %v5771_v21 = vmax.f32 %v13243_v2, 0.0  ;;  %v14490_v9 = vld [vmem:[#allocation46_spill] sm:$0xff]  ;;  %v14491_v41 = vld [vmem:[#allocation47_spill] sm:$0xff]  ;;  %v14496_v49 = vld [vmem:[#allocation37_spill] sm:$0xff] }
 0x5a9   :  { %v5772_v45 = vmax.f32 %v13245_v57, 0.0  ;;  %v5784_v54 = vmul.f32 %v5780_v23, %v5715_v56  ;;  %10935 = vmatprep.subr.bf16.mxu1 %v13050_v20  ;;  %10967 = vmatprep.subr.bf16.mxu0 %v13052_v38  ;;  %v5773_v51 = vmax.f32 %v13249_v36, 0.0  ;;  %v5785_v53 = vmul.f32 %v5781_v46, %v5715_v56  ;;  %v6595_v37 = vld [vmem:[#allocation14 + $0x60] sm:$0xff]  ;;  %v6723_v58 = vld [vmem:[#allocation14 + $0x50] sm:$0xff]  ;;  %v6740_v57 = vld [vmem:[#allocation14 + $0x158] sm:$0xff] }
 0x5aa   :  { %v13259_v32 = vmax.f32 %v5786_v35, 0.0  ;;  %v13261_v43 = vmax.f32 %v5787_v24, 0.0  ;;  %5905 = vmatmul.mubr.f32.gmra.mrb[66].mxu0 %v5731_v10  ;;  %6034 = vmatmul.mubr.f32.gmra.mrb[58].mxu1 %v5731_v10  ;;  %v14497_v10 = vld [vmem:[#allocation38_spill] sm:$0xff]  ;;  %v6725_v39 = vld [vmem:[#allocation14 + $0x70] sm:$0xff] }
 0x5ab   :  { %v5788_v26 = vadd.f32 %v5784_v54, %v5724_v61  ;;  %10937 = vmatpush1.bf16.msra.mxu1 %v13055_v42  ;;  %10969 = vmatpush1.bf16.msra.mxu0 %v13059_v3  ;;  %v5789_v40 = vadd.f32 %v5785_v53, %v5724_v61  ;;  %v14483_v61 = vld [vmem:[#allocation39_spill] sm:$0xff]  ;;  %v11096_v35 = vpack.c.bf16 %v6725_v39, %v6723_v58  ;;  %v6727_v54 = vld [vmem:[#allocation14 + $0x90] sm:$0xff] }
 0x5ac   :  { %5794 = vst [vmem:[#allocation2 + $0x180] sm:$0xff] %v13259_v32  ;;  %5795 = vst [vmem:[#allocation2 + $0x1a0] sm:$0xff] %v13261_v43  ;;  %5910 = vmatprep.mubr.f32.mxu0 %v14467_v27  ;;  %6039 = vmatprep.mubr.f32.mxu1 %v14467_v27  ;;  %v6597_v24 = vld [vmem:[#allocation14 + $0x80] sm:$0xff]  ;;  %v6729_v46 = vld [vmem:[#allocation14 + $0xb0] sm:$0xff] }
 0x5ad   :  { %v13269_v25 = vmax.f32 %v5788_v26, 0.0  ;;  %10939 = vmatprep.subr.bf16.mxu1 %v13061_v29  ;;  %10971 = vmatprep.subr.bf16.mxu0 %v13063_v59  ;;  %v13273_v56 = vmax.f32 %v5789_v40, 0.0  ;;  %v6599_v23 = vld [vmem:[#allocation14 + $0xa0] sm:$0xff]  ;;  %v6604_v26 = vld [vmem:[#allocation14 + $0xe8] sm:$0xff]  ;;  %v6732_v40 = vld [vmem:[#allocation14 + $0xd8] sm:$0xff] }
 0x5ae   :  { %5911 = vmatmul.mubr.f32.gmra.mrb[68].mxu0 %v5732_v22  ;;  %6040 = vmatmul.mubr.f32.gmra.mrb[60].mxu1 %v5732_v22  ;;  %v6613_v58 = vld [vmem:[#allocation14 + $0x180] sm:$0xff] }
 0x5af   :  { %5796 = vst [vmem:[#allocation2 + $0x1c0] sm:$0xff] %v13269_v25  ;;  %10941 = vmatpush1.bf16.msra.mxu1 %v13066_v15  ;;  %10973 = vmatpush1.bf16.msra.mxu0 %v13070_v63  ;;  %5797 = vst [vmem:[#allocation2 + $0x1e0] sm:$0xff] %v13273_v56  ;;  %v6615_v39 = vld [vmem:[#allocation14 + $0x1a0] sm:$0xff] }
 0x5b0   :  { %5916 = vmatprep.mubr.f32.mxu0 %v14467_v27  ;;  %6045 = vmatprep.mubr.f32.mxu1 %v14467_v27 }
 0x5b1   :  { %10943 = vmatprep.subr.bf16.mxu1 %v13072_v60  ;;  %10975 = vmatprep.subr.bf16.mxu0 %v13075_v1 }
 0x5b2   :  { %5917 = vmatmul.mubr.f32.gmra.mrb[70].mxu0 %v5733_v14  ;;  %6046 = vmatmul.mubr.f32.gmra.mrb[62].mxu1 %v5733_v14  ;;  %v6598_v14 = vld [vmem:[#allocation14 + $0x88] sm:$0xff] }
 0x5b3   :  { %10945 = vmatpush1.bf16.msra.mxu1 %v13078_v55  ;;  %10977 = vmatpush1.bf16.msra.mxu0 %v13082_v4 }
 0x5b4   :  { %10947 = vmatprep.subr.bf16.mxu1 %v13084_v16  ;;  %10979 = vmatprep.subr.bf16.mxu0 %v13087_v33 }
 0x5b5   :  { %6160 = vmatprep.mubr.f32.mxu1 %v14467_v27  ;;  %6289 = vmatprep.mubr.f32.mxu0 %v14467_v27 }
 0x5b7   :  { %10949 = vmatpush1.bf16.msra.mxu1 %v13090_v50  ;;  %10981 = vmatpush1.bf16.msra.mxu0 %v14483_v61 }
 0x5b8   :  { %10951 = vmatprep.subr.bf16.mxu1 %v14484_v0  ;;  %10983 = vmatprep.subr.bf16.mxu0 %v14485_v28 }
 0x5bb   :  { %10953 = vmatpush1.bf16.msra.mxu1 %v14486_v47  ;;  %10985 = vmatpush1.bf16.msra.mxu0 %v14487_v52 }
 0x5bc   :  { %10955 = vmatprep.subr.bf16.mxu1 %v14488_v19  ;;  %10987 = vmatprep.subr.bf16.mxu0 %v14489_v30 }
 0x5bf   :  { %10957 = vmatpush1.bf16.msra.mxu1 %v14490_v9  ;;  %10989 = vmatpush1.bf16.msra.mxu0 %v14491_v41 }
 0x5c0   :  { %10959 = vmatprep.subr.bf16.mxu1 %v14492_v7  ;;  %10991 = vmatprep.subr.bf16.mxu0 %v14493_v12 }
 0x5c3   :  { %10961 = vmatpush1.bf16.msra.mxu1 %v14494_v5  ;;  %10993 = vmatpush1.bf16.msra.mxu0 %v14495_v6 }
 0x5c4   :  { %10995 = vmatprep.subr.bf16.mxu0 %v14496_v49  ;;  %11027 = vmatprep.subr.bf16.mxu1 %v14497_v10  ;;  %v6605_v49 = vld [vmem:[#allocation14 + $0x100] sm:$0xff] }
 0x5c5   :  { %v6607_v10 = vld [vmem:[#allocation14 + $0x120] sm:$0xff] }
 0x5c6   :  { %6161 = vmatmul.mubr.f32.vlgmr.msra.gmra.mrb[56].mxu1 %v5750_v18  ;;  %6290 = vmatmul.mubr.f32.vlgmr.msra.gmra.mrb[72].mxu0 %v5750_v18  ;;  %v6600_v18 = vld [vmem:[#allocation14 + $0xa8] sm:$0xff] }
 0x5c7   :  { %10997 = vmatpush1.bf16.msra.mxu0 %v13043_v17  ;;  %11029 = vmatpush1.bf16.msra.mxu1 %v13046_v11  ;;  %v6590_v17 = vld [vmem:[#allocation14 + $0x8] sm:$0xff]  ;;  %v11066_v53 = vpack.c.bf16 %v6600_v18, %v6598_v14  ;;  %v6743_v14 = vld [vmem:[#allocation14 + $0x190] sm:$0xff] }
 0x5c8   :  { %6166 = vmatprep.mubr.f32.mxu1 %v14467_v27  ;;  %6295 = vmatprep.mubr.f32.mxu0 %v14467_v27  ;;  %v6592_v11 = vld [vmem:[#allocation14 + $0x28] sm:$0xff]  ;;  %v6745_v18 = vld [vmem:[#allocation14 + $0x1b0] sm:$0xff] }
 0x5c9   :  { %10999 = vmatprep.subr.bf16.mxu0 %v13050_v20  ;;  %11031 = vmatprep.subr.bf16.mxu1 %v13052_v38  ;;  %v6720_v20 = vld [vmem:[#allocation14 + $0x18] sm:$0xff] }
 0x5ca   :  { %6167 = vmatmul.mubr.f32.gmra.mrb[58].mxu1 %v5751_v31  ;;  %6296 = vmatmul.mubr.f32.gmra.mrb[74].mxu0 %v5751_v31  ;;  %v6722_v38 = vld [vmem:[#allocation14 + $0x38] sm:$0xff] }
 0x5cb   :  { %11001 = vmatpush1.bf16.msra.mxu0 %v13055_v42  ;;  %11033 = vmatpush1.bf16.msra.mxu1 %v13059_v3  ;;  %v6589_v42 = vld [vmem:[#allocation14] sm:$0xff]  ;;  %v11058_v3 = vpack.c.bf16 %v6592_v11, %v6590_v17  ;;  %v6728_v31 = vld [vmem:[#allocation14 + $0x98] sm:$0xff] }
 0x5cc   :  { %6172 = vmatprep.mubr.f32.mxu1 %v14467_v27  ;;  %6301 = vmatprep.mubr.f32.mxu0 %v14467_v27 }
 0x5cd   :  { %11003 = vmatprep.subr.bf16.mxu0 %v13061_v29  ;;  %11035 = vmatprep.subr.bf16.mxu1 %v13063_v59  ;;  %v11090_v29 = vpack.c.bf16 %v6722_v38, %v6720_v20  ;;  %v6591_v59 = vld [vmem:[#allocation14 + $0x20] sm:$0xff]  ;;  %v6735_v20 = vld [vmem:[#allocation14 + $0x110] sm:$0xff] }
 0x5ce   :  { %6173 = vmatmul.mubr.f32.gmra.mrb[60].mxu1 %v5752_v62  ;;  %6302 = vmatmul.mubr.f32.gmra.mrb[76].mxu0 %v5752_v62  ;;  %v6730_v62 = vld [vmem:[#allocation14 + $0xb8] sm:$0xff]  ;;  %v6737_v38 = vld [vmem:[#allocation14 + $0x130] sm:$0xff] }
 0x5cf   :  { %11005 = vmatpush1.bf16.msra.mxu0 %v13066_v15  ;;  %11037 = vmatpush1.bf16.msra.mxu1 %v13070_v63  ;;  %v6719_v15 = vld [vmem:[#allocation14 + $0x10] sm:$0xff]  ;;  %v11098_v44 = vpack.c.bf16 %v6730_v62, %v6728_v31  ;;  %v6618_v31 = vld [vmem:[#allocation14 + $0x1c8] sm:$0xff] }
 0x5d0   :  { %6178 = vmatprep.mubr.f32.mxu1 %v14467_v27  ;;  %6307 = vmatprep.mubr.f32.mxu0 %v14467_v27  ;;  %v6721_v63 = vld [vmem:[#allocation14 + $0x30] sm:$0xff]  ;;  %v6620_v62 = vld [vmem:[#allocation14 + $0x1e8] sm:$0xff] }
 0x5d1   :  { %11007 = vmatprep.subr.bf16.mxu0 %v13072_v60  ;;  %11039 = vmatprep.subr.bf16.mxu1 %v13075_v1  ;;  %v6594_v60 = vld [vmem:[#allocation14 + $0x48] sm:$0xff] }
 0x5d2   :  { %6179 = vmatmul.mubr.f32.gmra.mrb[62].mxu1 %v5753_v48  ;;  %6308 = vmatmul.mubr.f32.gmra.mrb[78].mxu0 %v5753_v48  ;;  %v6596_v1 = vld [vmem:[#allocation14 + $0x68] sm:$0xff] }
 0x5d3   :  { %11009 = vmatpush1.bf16.msra.mxu0 %v13078_v55  ;;  %11041 = vmatpush1.bf16.msra.mxu1 %v13082_v4  ;;  %v6724_v55 = vld [vmem:[#allocation14 + $0x58] sm:$0xff]  ;;  %v11062_v13 = vpack.c.bf16 %v6596_v1, %v6594_v60 }
 0x5d4   :  { %11011 = vmatprep.subr.bf16.mxu0 %v13084_v16  ;;  %11043 = vmatprep.subr.bf16.mxu1 %v13087_v33  ;;  %v6726_v4 = vld [vmem:[#allocation14 + $0x78] sm:$0xff]  ;;  %v11060_v16 = vpack.c.bf16 %v6591_v59, %v6589_v42  ;;  %v11092_v33 = vpack.c.bf16 %v6721_v63, %v6719_v15  ;;  %v6610_v42 = vld [vmem:[#allocation14 + $0x148] sm:$0xff]  ;;  %v11108_v59 = vpack.c.bf16 %v6737_v38, %v6735_v20  ;;  %v6609_v15 = vld [vmem:[#allocation14 + $0x140] sm:$0xff] }
 0x5d5   :  { %6422 = vmatprep.mubr.f32.mxu0 %v14467_v27  ;;  %6552 = vmatprep.mubr.f32.mxu1 %v14467_v27  ;;  %v11094_v22 = vpack.c.bf16 %v6726_v4, %v6724_v55  ;;  %v6611_v63 = vld [vmem:[#allocation14 + $0x160] sm:$0xff]  ;;  %v6739_v55 = vld [vmem:[#allocation14 + $0x150] sm:$0xff] }
 0x5d6   :  { %v6741_v4 = vld [vmem:[#allocation14 + $0x170] sm:$0xff]  ;;  %v11080_v36 = vpack.c.bf16 %v6611_v63, %v6609_v15  ;;  %v7484_v20 = vld [vmem:[#allocation15 + $0x60] sm:$0xff]  ;;  %v7612_v63 = vld [vmem:[#allocation15 + $0x98] sm:$0xff] }
 0x5d7   :  { %11013 = vmatpush1.bf16.msra.mxu0 %v13090_v50  ;;  %11045 = vmatpush1.bf16.msra.mxu1 %v14483_v61  ;;  %v6593_v50 = vld [vmem:[#allocation14 + $0x40] sm:$0xff]  ;;  %v6734_v61 = vld [vmem:[#allocation14 + $0xf8] sm:$0xff]  ;;  %v7607_v38 = vld [vmem:[#allocation15 + $0x50] sm:$0xff] }
 0x5d8   :  { %11015 = vmatprep.subr.bf16.mxu0 %v14484_v0  ;;  %11047 = vmatprep.subr.bf16.mxu1 %v14485_v28  ;;  %v11064_v48 = vpack.c.bf16 %v6595_v37, %v6593_v50  ;;  %v11068_v0 = vpack.c.bf16 %v6599_v23, %v6597_v24  ;;  %v11100_v28 = vpack.c.bf16 %v6729_v46, %v6727_v54  ;;  %v6744_v50 = vld [vmem:[#allocation14 + $0x198] sm:$0xff]  ;;  %v6617_v54 = vld [vmem:[#allocation14 + $0x1c0] sm:$0xff] }
 0x5d9   :  { %v6746_v37 = vld [vmem:[#allocation14 + $0x1b8] sm:$0xff]  ;;  %v11084_v24 = vpack.c.bf16 %v6615_v39, %v6613_v58  ;;  %v11116_v23 = vpack.c.bf16 %v6745_v18, %v6743_v14  ;;  %v11086_v46 = vpack.c.bf16 %v6620_v62, %v6618_v31  ;;  %v7491_v58 = vld [vmem:[#allocation15 + $0xc8] sm:$0xff] }
 0x5da   :  { %v7493_v39 = vld [vmem:[#allocation15 + $0xe8] sm:$0xff]  ;;  %v7616_v62 = vld [vmem:[#allocation15 + $0xd8] sm:$0xff] }
 0x5db   :  { %11017 = vmatpush1.bf16.msra.mxu0 %v14486_v47  ;;  %11049 = vmatpush1.bf16.msra.mxu1 %v14487_v52  ;;  %v6601_v47 = vld [vmem:[#allocation14 + $0xc0] sm:$0xff]  ;;  %v13438_v31 = vpack.c.bf16 %v7493_v39, %v7491_v58 }
 0x5dc   :  { %11019 = vmatprep.subr.bf16.mxu0 %v14488_v19  ;;  %11051 = vmatprep.subr.bf16.mxu1 %v14489_v30  ;;  %v6603_v52 = vld [vmem:[#allocation14 + $0xe0] sm:$0xff]  ;;  %v6731_v19 = vld [vmem:[#allocation14 + $0xd0] sm:$0xff] }
 0x5dd   :  { %v6733_v30 = vld [vmem:[#allocation14 + $0xf0] sm:$0xff] }
 0x5df   :  { %11021 = vmatpush1.bf16.msra.mxu0 %v14490_v9  ;;  %11053 = vmatpush1.bf16.msra.mxu1 %v14491_v41  ;;  %v6606_v9 = vld [vmem:[#allocation14 + $0x108] sm:$0xff] }
 0x5e0   :  { %11023 = vmatprep.subr.bf16.mxu0 %v14492_v7  ;;  %11055 = vmatprep.subr.bf16.mxu1 %v14493_v12  ;;  %v6608_v41 = vld [vmem:[#allocation14 + $0x128] sm:$0xff]  ;;  %v6736_v7 = vld [vmem:[#allocation14 + $0x118] sm:$0xff] }
 0x5e1   :  { %v6738_v12 = vld [vmem:[#allocation14 + $0x138] sm:$0xff]  ;;  %v11074_v17 = vpack.c.bf16 %v6608_v41, %v6606_v9  ;;  %v7483_v41 = vld [vmem:[#allocation15 + $0x48] sm:$0xff] }
 0x5e2   :  { %v11106_v11 = vpack.c.bf16 %v6738_v12, %v6736_v7  ;;  %v7485_v12 = vld [vmem:[#allocation15 + $0x68] sm:$0xff] }
 0x5e3   :  { %11025 = vmatpush1.bf16.msra.mxu0 %v14494_v5  ;;  %11057 = vmatpush1.bf16.msra.mxu1 %v14495_v6  ;;  %v11072_v5 = vpack.c.bf16 %v6603_v52, %v6601_v47  ;;  %v11104_v6 = vpack.c.bf16 %v6733_v30, %v6731_v19  ;;  %v7606_v52 = vld [vmem:[#allocation15 + $0x38] sm:$0xff]  ;;  %v7478_v19 = vld [vmem:[#allocation15] sm:$0xff] }
 0x5e4   :  { %11059 = vmatprep.subr.bf16.mxu1 %v11058_v3  ;;  %11091 = vmatprep.subr.bf16.mxu0 %v11090_v29  ;;  %v6612_v3 = vld [vmem:[#allocation14 + $0x168] sm:$0xff]  ;;  %v11076_v29 = vpack.c.bf16 %v6607_v10, %v6605_v49  ;;  %v7480_v30 = vld [vmem:[#allocation15 + $0x20] sm:$0xff]  ;;  %v13412_v10 = vpack.c.bf16 %v7485_v12, %v7483_v41 }
 0x5e5   :  { %v11078_v60 = vpack.c.bf16 %v6612_v3, %v6610_v42 }
 0x5e6   :  { %6423 = vmatmul.mubr.f32.vlgmr.msra.gmra.mrb[72].mxu0 %v5770_v8  ;;  %6553 = vmatmul.mubr.f32.vlgmr.msra.gmra.mrb[64].mxu1 %v5770_v8  ;;  %v6602_v8 = vld [vmem:[#allocation14 + $0xc8] sm:$0xff] }
 0x5e7   :  { %11061 = vmatpush1.bf16.msra.mxu1 %v11060_v16  ;;  %11093 = vmatpush1.bf16.msra.mxu0 %v11092_v33  ;;  %v11070_v2 = vpack.c.bf16 %v6604_v26, %v6602_v8  ;;  %v6614_v16 = vld [vmem:[#allocation14 + $0x188] sm:$0xff]  ;;  %v6747_v8 = vld [vmem:[#allocation14 + $0x1d0] sm:$0xff] }
 0x5e8   :  { %6428 = vmatprep.mubr.f32.mxu0 %v14467_v27  ;;  %6558 = vmatprep.mubr.f32.mxu1 %v14467_v27  ;;  %v6616_v33 = vld [vmem:[#allocation14 + $0x1a8] sm:$0xff]  ;;  %v6749_v26 = vld [vmem:[#allocation14 + $0x1f0] sm:$0xff] }
 0x5e9   :  { %11063 = vmatprep.subr.bf16.mxu1 %v11062_v13  ;;  %11095 = vmatprep.subr.bf16.mxu0 %v11094_v22  ;;  %v11082_v13 = vpack.c.bf16 %v6616_v33, %v6614_v16  ;;  %v11114_v22 = vpack.c.bf16 %v6746_v37, %v6744_v50  ;;  %v7611_v16 = vld [vmem:[#allocation15 + $0x90] sm:$0xff] }
 0x5ea   :  { %6429 = vmatmul.mubr.f32.gmra.mrb[74].mxu0 %v5771_v21  ;;  %6559 = vmatmul.mubr.f32.gmra.mrb[66].mxu1 %v5771_v21  ;;  %v11102_v21 = vpack.c.bf16 %v6734_v61, %v6732_v40  ;;  %v11120_v61 = vpack.c.bf16 %v6749_v26, %v6747_v8  ;;  %v7613_v33 = vld [vmem:[#allocation15 + $0xb0] sm:$0xff] }
 0x5eb   :  { %11065 = vmatpush1.bf16.msra.mxu1 %v11064_v48  ;;  %11097 = vmatpush1.bf16.msra.mxu0 %v11096_v35  ;;  %v6748_v48 = vld [vmem:[#allocation14 + $0x1d8] sm:$0xff]  ;;  %v13436_v18 = vpack.c.bf16 %v7613_v33, %v7611_v16 }
 0x5ec   :  { %6434 = vmatprep.mubr.f32.mxu0 %v14467_v27  ;;  %6564 = vmatprep.mubr.f32.mxu1 %v14467_v27  ;;  %v6750_v35 = vld [vmem:[#allocation14 + $0x1f8] sm:$0xff] }
 0x5ed   :  { %11067 = vmatprep.subr.bf16.mxu1 %v11066_v53  ;;  %11099 = vmatprep.subr.bf16.mxu0 %v11098_v44  ;;  %v11118_v53 = vpack.c.bf16 %v6750_v35, %v6748_v48  ;;  %v6619_v44 = vld [vmem:[#allocation14 + $0x1e0] sm:$0xff]  ;;  %v7618_v48 = vld [vmem:[#allocation15 + $0xf8] sm:$0xff] }
 0x5ee   :  { %6435 = vmatmul.mubr.f32.gmra.mrb[76].mxu0 %v5772_v45  ;;  %6565 = vmatmul.mubr.f32.gmra.mrb[68].mxu1 %v5772_v45  ;;  %v6742_v45 = vld [vmem:[#allocation14 + $0x178] sm:$0xff]  ;;  %v11088_v40 = vpack.c.bf16 %v6619_v44, %v6617_v54  ;;  %v7490_v35 = vld [vmem:[#allocation15 + $0xc0] sm:$0xff]  ;;  %v7615_v54 = vld [vmem:[#allocation15 + $0xd0] sm:$0xff] }
 0x5ef   :  { %11069 = vmatpush1.bf16.msra.mxu1 %v11068_v0  ;;  %11101 = vmatpush1.bf16.msra.mxu0 %v11100_v28  ;;  %v11110_v1 = vpack.c.bf16 %v6742_v45, %v6740_v57  ;;  %v7481_v0 = vld [vmem:[#allocation15 + $0x28] sm:$0xff]  ;;  %v7604_v28 = vld [vmem:[#allocation15 + $0x18] sm:$0xff]  ;;  %v7609_v57 = vld [vmem:[#allocation15 + $0x70] sm:$0xff] }
 0x5f0   :  { %6440 = vmatprep.mubr.f32.mxu0 %v14467_v27  ;;  %6570 = vmatprep.mubr.f32.mxu1 %v14467_v27  ;;  %v13403_v9 = vpack.c.bf16 %v7606_v52, %v7604_v28  ;;  %v7487_v45 = vld [vmem:[#allocation15 + $0x88] sm:$0xff] }
 0x5f1   :  { %11071 = vmatprep.subr.bf16.mxu1 %v11070_v2  ;;  %11103 = vmatprep.subr.bf16.mxu0 %v11102_v21  ;;  %v13405_v2 = vpack.c.bf16 %v7480_v30, %v7478_v19  ;;  %v7605_v21 = vld [vmem:[#allocation15 + $0x30] sm:$0xff] }
 0x5f2   :  { %6441 = vmatmul.mubr.f32.gmra.mrb[78].mxu0 %v5773_v51  ;;  %6571 = vmatmul.mubr.f32.gmra.mrb[70].mxu1 %v5773_v51  ;;  %v11112_v51 = vpack.c.bf16 %v6741_v4, %v6739_v55  ;;  %v7488_v4 = vld [vmem:[#allocation15 + $0xa0] sm:$0xff] }
 0x5f3   :  { %11073 = vmatpush1.bf16.msra.mxu1 %v11072_v5  ;;  %11105 = vmatpush1.bf16.msra.mxu0 %v11104_v6  ;;  %v7608_v5 = vld [vmem:[#allocation15 + $0x58] sm:$0xff] }
 0x5f4   :  { %11075 = vmatprep.subr.bf16.mxu1 %v11074_v17  ;;  %11107 = vmatprep.subr.bf16.mxu0 %v11106_v11  ;;  %v7610_v6 = vld [vmem:[#allocation15 + $0x78] sm:$0xff]  ;;  %v7482_v11 = vld [vmem:[#allocation15 + $0x40] sm:$0xff] }
 0x5f5   :  { %6685 = vmatprep.mubr.f32.mxu1 %v14467_v27  ;;  %6815 = vmatprep.mubr.f32.mxu0 %v14467_v27  ;;  %v13414_v17 = vpack.c.bf16 %v7610_v6, %v7608_v5  ;;  %v13419_v3 = vpack.c.bf16 %v7484_v20, %v7482_v11 }
 0x5f7   :  { %11077 = vmatpush1.bf16.msra.mxu1 %v11076_v29  ;;  %11109 = vmatpush1.bf16.msra.mxu0 %v11108_v59  ;;  %v7489_v29 = vld [vmem:[#allocation15 + $0xa8] sm:$0xff]  ;;  %v13423_v59 = vpack.c.bf16 %v7609_v57, %v7607_v38 }
 0x5f8   :  { %11079 = vmatprep.subr.bf16.mxu1 %v11078_v60  ;;  %11111 = vmatprep.subr.bf16.mxu0 %v11110_v1  ;;  %v13425_v15 = vpack.c.bf16 %v7489_v29, %v7487_v45  ;;  %v7614_v60 = vld [vmem:[#allocation15 + $0xb8] sm:$0xff]  ;;  %v7486_v1 = vld [vmem:[#allocation15 + $0x80] sm:$0xff] }
 0x5f9   :  { %v13427_v55 = vpack.c.bf16 %v7614_v60, %v7612_v63 }
 0x5fb   :  { %11081 = vmatpush1.bf16.msra.mxu1 %v11080_v36  ;;  %11113 = vmatpush1.bf16.msra.mxu0 %v11112_v51  ;;  %v13430_v51 = vpack.c.bf16 %v7488_v4, %v7486_v1 }
 0x5fc   :  { %11083 = vmatprep.subr.bf16.mxu1 %v11082_v13  ;;  %11115 = vmatprep.subr.bf16.mxu0 %v11114_v22 }
 0x5ff   :  { %11085 = vmatpush1.bf16.msra.mxu1 %v11084_v24  ;;  %11117 = vmatpush1.bf16.msra.mxu0 %v11116_v23  ;;  %v13441_v24 = vpack.c.bf16 %v7618_v48, %v7616_v62  ;;  %v7492_v23 = vld [vmem:[#allocation15 + $0xe0] sm:$0xff] }
 0x600   :  { %11087 = vmatprep.subr.bf16.mxu1 %v11086_v46  ;;  %11119 = vmatprep.subr.bf16.mxu0 %v11118_v53  ;;  %v7617_v46 = vld [vmem:[#allocation15 + $0xf0] sm:$0xff]  ;;  %v13448_v26 = vpack.c.bf16 %v7492_v23, %v7490_v35 }
 0x603   :  { %11089 = vmatpush1.bf16.msra.mxu1 %v11088_v40  ;;  %11121 = vmatpush1.bf16.msra.mxu0 %v11120_v61 }
 0x604   :  { %11139 = vmatprep.subr.bf16.mxu1 %v13403_v9 }
 0x606   :  { %6686 = vmatmul.mubr.f32.vlgmr.msra.gmra.mrb[64].mxu1 %v13259_v32  ;;  %6816 = vmatmul.mubr.f32.vlgmr.msra.gmra.mrb[80].mxu0 %v13259_v32 }
 0x607   :  { %6691 = vmatprep.mubr.f32.mxu1 %v14467_v27  ;;  %6821 = vmatprep.mubr.f32.mxu0 %v14467_v27 }
 0x60a   :  { %6692 = vmatmul.mubr.f32.gmra.mrb[66].mxu1 %v13261_v43  ;;  %6822 = vmatmul.mubr.f32.gmra.mrb[82].mxu0 %v13261_v43  ;;  %v7479_v43 = vld [vmem:[#allocation15 + $0x8] sm:$0xff] }
 0x60b   :  { %6697 = vmatprep.mubr.f32.mxu1 %v14467_v27  ;;  %6827 = vmatprep.mubr.f32.mxu0 %v14467_v27 }
 0x60e   :  { %6698 = vmatmul.mubr.f32.gmra.mrb[68].mxu1 %v13269_v25  ;;  %6828 = vmatmul.mubr.f32.gmra.mrb[84].mxu0 %v13269_v25  ;;  %v13401_v25 = vpack.c.bf16 %v7481_v0, %v7479_v43 }
 0x60f   :  { %6703 = vmatprep.mubr.f32.mxu1 %v14467_v27  ;;  %6833 = vmatprep.mubr.f32.mxu0 %v14467_v27 }
 0x610   :  { %11123 = vmatprep.subr.bf16.mxu0 %v13401_v25 }
 0x611   :  { %11125 = vmatpush1.bf16.msra.mxu0 %v13405_v2 }
 0x612   :  { %6704 = vmatmul.mubr.f32.gmra.mrb[70].mxu1 %v13273_v56  ;;  %6834 = vmatmul.mubr.f32.gmra.mrb[86].mxu0 %v13273_v56  ;;  %v7603_v56 = vld [vmem:[#allocation15 + $0x10] sm:$0xff] }
 0x613   :  { %7570 = vmatprep.mubr.f32.mxu0 %v14467_v27  ;;  %7683 = vmatprep.mubr.f32.mxu1 %v14467_v27  ;;  %v13408_v7 = vpack.c.bf16 %v7605_v21, %v7603_v56 }
 0x614   :  { %11127 = vmatprep.subr.bf16.mxu0 %v13412_v10 }
 0x615   :  { %11141 = vmatpush1.bf16.msra.mxu1 %v13408_v7  ;;  %11129 = vmatpush1.bf16.msra.mxu0 %v13419_v3 }
 0x616   :  { %11143 = vmatprep.subr.bf16.mxu1 %v13414_v17  ;;  %11131 = vmatprep.subr.bf16.mxu0 %v13425_v15 }
 0x619   :  { %11145 = vmatpush1.bf16.msra.mxu1 %v13423_v59  ;;  %11133 = vmatpush1.bf16.msra.mxu0 %v13430_v51 }
 0x61a   :  { %11147 = vmatprep.subr.bf16.mxu1 %v13427_v55  ;;  %11135 = vmatprep.subr.bf16.mxu0 %v13438_v31 }
 0x61d   :  { %11149 = vmatpush1.bf16.msra.mxu1 %v13436_v18  ;;  %11137 = vmatpush1.bf16.msra.mxu0 %v13448_v26 }
 0x61e   :  { %11151 = vmatprep.subr.bf16.mxu1 %v13441_v24  ;;  %11171 = vmatprep.subr.bf16.mxu0 %v13403_v9 }
 0x679   :  { %v5900_v32 = vpop.f32.mrb[64].mxu0 }
 0x67a   :  { %5923 = vst [vmem:[#allocation4] sm:$0xff] %v5900_v32  ;;  %v13399_v47 = vpop.f32.mrb[65].mxu0  ;;  %v13454_v32 = vpack.c.bf16 %v7617_v46, %v7615_v54 }
 0x67c   :  { %11153 = vmatpush1.bf16.msra.mxu1 %v13454_v32 }
 0x67d   :  { %v5906_v49 = vpop.f32.mrb[66].mxu0  ;;  %11155 = vmatprep.subr.bf16.mxu1 %v13401_v25 }
 0x67e   :  { %v13416_v42 = vpop.f32.mrb[67].mxu0  ;;  %v6884_v37 = vrot.slane %v5906_v49, 2 }
 0x681   :  { %v6875_v50 = vld [vmem:[#allocation4] sm:$0xfc]  ;;  %v5912_v36 = vpop.f32.mrb[68].mxu0 }
 0x682   :  { %v6883_v13 = vrot.slane %v6875_v50, 2  ;;  %v6886_v22 = vrot.slane %v5912_v36, 2  ;;  %v13432_v14 = vpop.f32.mrb[69].mxu0 }
 0x684   :  { %v6885_v53 = vsel %vm4479_vm1, %v6883_v13, %v6884_v37  ;;  %v6887_v44 = vsel %vm4479_vm1, %v6884_v37, %v6886_v22 }
 0x685   :  { %6894 = vst.msk [vmem:[#allocation6] sm:$0xff] %vm6871_vm5, %v6885_v53  ;;  %6895 = vst.msk [vmem:[#allocation6 + $0x10] sm:$0xff] %vm6871_vm5, %v6887_v44  ;;  %v5918_v8 = vpop.f32.mrb[70].mxu0 }
 0x686   :  { %v6888_v40 = vrot.slane %v5918_v8, 2  ;;  %v13450_v61 = vpop.f32.mrb[71].mxu0 }
 0x688   :  { %v6889_v43 = vsel %vm4479_vm1, %v6886_v22, %v6888_v40  ;;  %6898 = vst.msk [vmem:[#allocation6 + $0x30] sm:$0x3f] %vm6897_vm6, %v6888_v40 }
 0x689   :  { %6896 = vst.msk [vmem:[#allocation6 + $0x20] sm:$0xff] %vm6871_vm5, %v6889_v43 }
 0x68f   :  { %v13463_v0 = vld [vmem:[#allocation6 + $0x30] sm:$0xff] }
 0x690   :  { %9466 = vst.msk [vmem:[#allocation6 + $0x30] sm:$0xc0] %vm9465_vm7, %v14467_v27 }
 0x699   :  { %v6162_v28 = vpop.f32.mrb[56].mxu1 }
 0x69a   :  { %6993 = vst.msk [vmem:[#allocation3 + $0x40] sm:$0xff] %vm6871_vm5, %v6162_v28  ;;  %v6164_v52 = vpop.f32.mrb[57].mxu1  ;;  %v6971_v19 = vmul.f32 %v6162_v28, %v6162_v28  ;;  %v6939_v21 = vsel %vm6871_vm5, %v6162_v28, 0.0 }
 0x69b   :  { %7086 = vst.msk [vmem:[#allocation3 + $0x80] sm:$0xff] %vm6871_vm5, %v6164_v52  ;;  %v7049_v30 = vmul.f32 %v6164_v52, %v6164_v52  ;;  %v7021_v6 = vsel %vm6871_vm5, %v6164_v52, 0.0 }
 0x69c   :  { %v6975_v38 = vsel %vm6871_vm5, %v6971_v19, 0.0 }
 0x69d   :  { %v6168_v56 = vpop.f32.mrb[58].mxu1  ;;  %v7053_v29 = vsel %vm6871_vm5, %v7049_v30, 0.0 }
 0x69e   :  { %v6940_v41 = vsel %vm6871_vm5, %v6168_v56, 0.0  ;;  %v6972_v12 = vmul.f32 %v6168_v56, %v6168_v56  ;;  %6994 = vst.msk [vmem:[#allocation3 + $0x50] sm:$0xff] %vm6871_vm5, %v6168_v56  ;;  %v6170_v5 = vpop.f32.mrb[59].mxu1 }
 0x69f   :  { %v6941_v49 = vadd.f32 %v6940_v41, %v6939_v21  ;;  %v7022_v11 = vsel %vm6871_vm5, %v6170_v5, 0.0  ;;  %v7050_v20 = vmul.f32 %v6170_v5, %v6170_v5  ;;  %7087 = vst.msk [vmem:[#allocation3 + $0x90] sm:$0xff] %vm6871_vm5, %v6170_v5 }
 0x6a0   :  { %v6976_v57 = vsel %vm6871_vm5, %v6972_v12, 0.0  ;;  %v7023_v45 = vadd.f32 %v7022_v11, %v7021_v6 }
 0x6a1   :  { %v6977_v63 = vadd.f32 %v6976_v57, %v6975_v38  ;;  %v7054_v60 = vsel %vm6871_vm5, %v7050_v20, 0.0  ;;  %v6174_v1 = vpop.f32.mrb[60].mxu1 }
 0x6a2   :  { %v7055_v4 = vadd.f32 %v7054_v60, %v7053_v29  ;;  %v6942_v16 = vsel %vm6871_vm5, %v6174_v1, 0.0  ;;  %v6973_v33 = vmul.f32 %v6174_v1, %v6174_v1  ;;  %6995 = vst.msk [vmem:[#allocation3 + $0x60] sm:$0xff] %vm6871_vm5, %v6174_v1  ;;  %v6176_v50 = vpop.f32.mrb[61].mxu1 }
 0x6a3   :  { %v6943_v37 = vadd.f32 %v6942_v16, %v6941_v49  ;;  %v7024_v36 = vsel %vm6871_vm5, %v6176_v50, 0.0  ;;  %v7051_v58 = vmul.f32 %v6176_v50, %v6176_v50  ;;  %7088 = vst.msk [vmem:[#allocation3 + $0xa0] sm:$0xff] %vm6871_vm5, %v6176_v50 }
 0x6a4   :  { %v6978_v39 = vsel %vm6871_vm5, %v6973_v33, 0.0  ;;  %v7025_v13 = vadd.f32 %v7024_v36, %v7023_v45 }
 0x6a5   :  { %v6979_v22 = vadd.f32 %v6978_v39, %v6977_v63  ;;  %v7056_v62 = vsel %vm6871_vm5, %v7051_v58, 0.0  ;;  %v6180_v48 = vpop.f32.mrb[62].mxu1 }
 0x6a6   :  { %v7057_v35 = vadd.f32 %v7056_v62, %v7055_v4  ;;  %v6944_v23 = vsel %vm6871_vm5, %v6180_v48, 0.0  ;;  %v6974_v54 = vmul.f32 %v6180_v48, %v6180_v48  ;;  %6996 = vst.msk [vmem:[#allocation3 + $0x70] sm:$0xff] %vm6871_vm5, %v6180_v48  ;;  %v6182_v46 = vpop.f32.mrb[63].mxu1 }
 0x6a7   :  { %v13486_v53 = vadd.f32 %v6944_v23, %v6943_v37  ;;  %v7026_v44 = vsel %vm6871_vm5, %v6182_v46, 0.0  ;;  %v7052_v8 = vmul.f32 %v6182_v46, %v6182_v46  ;;  %7089 = vst.msk [vmem:[#allocation3 + $0xb0] sm:$0xff] %vm6871_vm5, %v6182_v46 }
 0x6a8   :  { %v6980_v40 = vsel %vm6871_vm5, %v6974_v54, 0.0  ;;  %v13491_v43 = vadd.f32 %v7026_v44, %v7025_v13 }
 0x6a9   :  { %v13493_v28 = vadd.f32 %v6980_v40, %v6979_v22  ;;  %v7058_v52 = vsel %vm6871_vm5, %v7052_v8, 0.0 }
 0x6aa   :  { %v13496_v19 = vadd.f32 %v7058_v52, %v7057_v35 }
 0x6b9   :  { %v6424_v30 = vpop.f32.mrb[72].mxu0 }
 0x6ba   :  { %7091 = vst.msk [vmem:[#allocation3 + $0xc0] sm:$0xff] %vm6871_vm5, %v6424_v30  ;;  %v6426_v56 = vpop.f32.mrb[73].mxu0  ;;  %v7067_v21 = vmul.f32 %v6424_v30, %v6424_v30  ;;  %v7035_v5 = vsel %vm6871_vm5, %v6424_v30, 0.0 }
 0x6bb   :  { %7184 = vst.msk [vmem:[#allocation3 + $0x100] sm:$0xff] %vm6871_vm5, %v6426_v56  ;;  %v7147_v41 = vmul.f32 %v6426_v56, %v6426_v56  ;;  %v7119_v20 = vsel %vm6871_vm5, %v6426_v56, 0.0 }
 0x6bc   :  { %v7071_v29 = vsel %vm6871_vm5, %v7067_v21, 0.0 }
 0x6bd   :  { %v6430_v12 = vpop.f32.mrb[74].mxu0  ;;  %v7151_v1 = vsel %vm6871_vm5, %v7147_v41, 0.0 }
 0x6be   :  { %v7036_v6 = vsel %vm6871_vm5, %v6430_v12, 0.0  ;;  %v7068_v49 = vmul.f32 %v6430_v12, %v6430_v12  ;;  %7092 = vst.msk [vmem:[#allocation3 + $0xd0] sm:$0xff] %vm6871_vm5, %v6430_v12  ;;  %v6432_v11 = vpop.f32.mrb[75].mxu0 }
 0x6bf   :  { %v7037_v38 = vadd.f32 %v7036_v6, %v7035_v5  ;;  %v7120_v57 = vsel %vm6871_vm5, %v6432_v11, 0.0  ;;  %v7148_v45 = vmul.f32 %v6432_v11, %v6432_v11  ;;  %7185 = vst.msk [vmem:[#allocation3 + $0x110] sm:$0xff] %vm6871_vm5, %v6432_v11 }
 0x6c0   :  { %v7072_v63 = vsel %vm6871_vm5, %v7068_v49, 0.0  ;;  %v7121_v60 = vadd.f32 %v7120_v57, %v7119_v20  ;;  %v7205_v20 = vld [vmem:[#allocation6] sm:$0xff] }
 0x6c1   :  { %v7073_v4 = vadd.f32 %v7072_v63, %v7071_v29  ;;  %v7152_v16 = vsel %vm6871_vm5, %v7148_v45, 0.0  ;;  %v6436_v33 = vpop.f32.mrb[76].mxu0 }
 0x6c2   :  { %v7153_v50 = vadd.f32 %v7152_v16, %v7151_v1  ;;  %v7038_v37 = vsel %vm6871_vm5, %v6436_v33, 0.0  ;;  %v7069_v36 = vmul.f32 %v6436_v33, %v6436_v33  ;;  %7093 = vst.msk [vmem:[#allocation3 + $0xe0] sm:$0xff] %vm6871_vm5, %v6436_v33  ;;  %v6438_v58 = vpop.f32.mrb[77].mxu0  ;;  %v7206_v16 = vld [vmem:[#allocation6 + $0x10] sm:$0xff] }
 0x6c3   :  { %v7039_v39 = vadd.f32 %v7038_v37, %v7037_v38  ;;  %v7122_v13 = vsel %vm6871_vm5, %v6438_v58, 0.0  ;;  %v7149_v22 = vmul.f32 %v6438_v58, %v6438_v58  ;;  %7186 = vst.msk [vmem:[#allocation3 + $0x120] sm:$0xff] %vm6871_vm5, %v6438_v58 }
 0x6c4   :  { %v7074_v62 = vsel %vm6871_vm5, %v7069_v36, 0.0  ;;  %v7123_v48 = vadd.f32 %v7122_v13, %v7121_v60 }
 0x6c5   :  { %v7075_v35 = vadd.f32 %v7074_v62, %v7073_v4  ;;  %v7154_v23 = vsel %vm6871_vm5, %v7149_v22, 0.0  ;;  %v6442_v54 = vpop.f32.mrb[78].mxu0 }
 0x6c6   :  { %v7155_v46 = vadd.f32 %v7154_v23, %v7153_v50  ;;  %v7040_v44 = vsel %vm6871_vm5, %v6442_v54, 0.0  ;;  %v7070_v8 = vmul.f32 %v6442_v54, %v6442_v54  ;;  %7094 = vst.msk [vmem:[#allocation3 + $0xf0] sm:$0xff] %vm6871_vm5, %v6442_v54  ;;  %v6444_v40 = vpop.f32.mrb[79].mxu0 }
 0x6c7   :  { %v13518_v52 = vadd.f32 %v7040_v44, %v7039_v39  ;;  %v7124_v30 = vsel %vm6871_vm5, %v6444_v40, 0.0  ;;  %v7150_v56 = vmul.f32 %v6444_v40, %v6444_v40  ;;  %7187 = vst.msk [vmem:[#allocation3 + $0x130] sm:$0xff] %vm6871_vm5, %v6444_v40 }
 0x6c8   :  { %v7076_v21 = vsel %vm6871_vm5, %v7070_v8, 0.0  ;;  %v13523_v41 = vadd.f32 %v7124_v30, %v7123_v48 }
 0x6c9   :  { %v13525_v12 = vadd.f32 %v7076_v21, %v7075_v35  ;;  %v7156_v5 = vsel %vm6871_vm5, %v7150_v56, 0.0 }
 0x6ca   :  { %v13528_v6 = vadd.f32 %v7156_v5, %v7155_v46 }
 0x6d9   :  { %v6687_v49 = vpop.f32.mrb[64].mxu1  ;;  %v6817_v11 = vpop.f32.mrb[80].mxu0 }
 0x6da   :  { %v7165_v38 = vmul.f32 %v6687_v49, %v6687_v49  ;;  %7189 = vst.msk [vmem:[#allocation3 + $0x140] sm:$0xff] %vm6871_vm5, %v6687_v49  ;;  %v7213_v57 = vadd.f32 %v7205_v20, %v6817_v11  ;;  %v6689_v45 = vpop.f32.mrb[65].mxu1  ;;  %v6819_v29 = vpop.f32.mrb[81].mxu0  ;;  %v7133_v1 = vsel %vm6871_vm5, %v6687_v49, 0.0 }
 0x6db   :  { %v7245_v63 = vmul.f32 %v6689_v45, %v6689_v45  ;;  %7282 = vst.msk [vmem:[#allocation3 + $0x180] sm:$0xff] %vm6871_vm5, %v6689_v45  ;;  %v6858_v60 = vrot.slane %v6819_v29, 6  ;;  %v7217_v37 = vsel %vm6871_vm5, %v6689_v45, 0.0 }
 0x6dc   :  { %v7263_v4 = vmul.f32 %v7213_v57, %v7213_v57  ;;  %7287 = vst.msk [vmem:[#allocation3 + $0x1c0] sm:$0xff] %vm6871_vm5, %v7213_v57  ;;  %v7169_v33 = vsel %vm6871_vm5, %v7165_v38, 0.0  ;;  %v7231_v50 = vsel %vm6871_vm5, %v7213_v57, 0.0 }
 0x6dd   :  { %v7249_v36 = vsel %vm6871_vm5, %v7245_v63, 0.0  ;;  %6870 = vst.msk [vmem:[#allocation5] sm:$0xfc] %vm6869_vm8, %v6858_v60  ;;  %v6693_v58 = vpop.f32.mrb[66].mxu1  ;;  %v6823_v39 = vpop.f32.mrb[82].mxu0 }
 0x6de   :  { %v7267_v13 = vsel %vm6871_vm5, %v7263_v4, 0.0  ;;  %v7134_v22 = vsel %vm6871_vm5, %v6693_v58, 0.0  ;;  %v7166_v62 = vmul.f32 %v6693_v58, %v6693_v58  ;;  %7190 = vst.msk [vmem:[#allocation3 + $0x150] sm:$0xff] %vm6871_vm5, %v6693_v58  ;;  %v7214_v48 = vadd.f32 %v7206_v16, %v6823_v39  ;;  %v6695_v35 = vpop.f32.mrb[67].mxu1  ;;  %v6825_v23 = vpop.f32.mrb[83].mxu0  ;;  %v7207_v4 = vld [vmem:[#allocation6 + $0x20] sm:$0xff] }
 0x6df   :  { %v7135_v54 = vadd.f32 %v7134_v22, %v7133_v1  ;;  %v7218_v46 = vsel %vm6871_vm5, %v6695_v35, 0.0  ;;  %v7246_v44 = vmul.f32 %v6695_v35, %v6695_v35  ;;  %7283 = vst.msk [vmem:[#allocation3 + $0x190] sm:$0xff] %vm6871_vm5, %v6695_v35  ;;  %v6859_v8 = vrot.slane %v6825_v23, 6 }
 0x6e0   :  { %v7170_v40 = vsel %vm6871_vm5, %v7166_v62, 0.0  ;;  %v7232_v30 = vsel %vm6871_vm5, %v7214_v48, 0.0  ;;  %v7264_v56 = vmul.f32 %v7214_v48, %v7214_v48  ;;  %7288 = vst.msk [vmem:[#allocation3 + $0x1d0] sm:$0xff] %vm6871_vm5, %v7214_v48  ;;  %v7219_v21 = vadd.f32 %v7218_v46, %v7217_v37 }
 0x6e1   :  { %v7171_v5 = vadd.f32 %v7170_v40, %v7169_v33  ;;  %v7233_v49 = vadd.f32 %v7232_v30, %v7231_v50  ;;  %v7250_v11 = vsel %vm6871_vm5, %v7246_v44, 0.0  ;;  %v6860_v20 = vsel %vm4432_vm2, %v6858_v60, %v6859_v8  ;;  %v6699_v38 = vpop.f32.mrb[68].mxu1  ;;  %v6829_v57 = vpop.f32.mrb[84].mxu0 }
 0x6e2   :  { %v7268_v45 = vsel %vm6871_vm5, %v7264_v56, 0.0  ;;  %v7251_v29 = vadd.f32 %v7250_v11, %v7249_v36  ;;  %6872 = vst.msk [vmem:[#allocation5 + $0x10] sm:$0xff] %vm6871_vm5, %v6860_v20  ;;  %v7136_v63 = vsel %vm6871_vm5, %v6699_v38, 0.0  ;;  %v7167_v1 = vmul.f32 %v6699_v38, %v6699_v38  ;;  %7191 = vst.msk [vmem:[#allocation3 + $0x160] sm:$0xff] %vm6871_vm5, %v6699_v38  ;;  %v6701_v16 = vpop.f32.mrb[69].mxu1  ;;  %v13552_v33 = vpop.f32.mrb[85].mxu0 }
 0x6e3   :  { %v7269_v50 = vadd.f32 %v7268_v45, %v7267_v13  ;;  %v7137_v37 = vadd.f32 %v7136_v63, %v7135_v54  ;;  %v7215_v58 = vadd.f32 %v7207_v4, %v6829_v57  ;;  %v7220_v60 = vsel %vm6871_vm5, %v6701_v16, 0.0  ;;  %7284 = vst.msk [vmem:[#allocation3 + $0x1a0] sm:$0xff] %vm6871_vm5, %v6701_v16 }
 0x6e4   :  { %v7172_v36 = vsel %vm6871_vm5, %v7167_v1, 0.0  ;;  %v7221_v39 = vadd.f32 %v7220_v60, %v7219_v21  ;;  %v7247_v22 = vmul.f32 %v6701_v16, %v6701_v16  ;;  %v6861_v62 = vrot.slane %v13552_v33, 6  ;;  %v6909_v48 = vld [vmem:[#allocation5] sm:$0xff] }
 0x6e5   :  { %v7173_v35 = vadd.f32 %v7172_v36, %v7171_v5  ;;  %v7234_v23 = vsel %vm6871_vm5, %v7215_v58, 0.0  ;;  %v7265_v46 = vmul.f32 %v7215_v58, %v7215_v58  ;;  %7289 = vst.msk [vmem:[#allocation3 + $0x1e0] sm:$0xff] %vm6871_vm5, %v7215_v58  ;;  %v6705_v13 = vpop.f32.mrb[70].mxu1  ;;  %v6835_v54 = vpop.f32.mrb[86].mxu0  ;;  %v6917_v44 = vadd.f32 %v6909_v48, %v13399_v47 }
 0x6e6   :  { %9415 = vst.msk [vmem:[#allocation5] sm:$0x3] %vm9414_vm9, %v14467_v27  ;;  %v7235_v40 = vadd.f32 %v7234_v23, %v7233_v49  ;;  %v7252_v30 = vsel %vm6871_vm5, %v7247_v22, 0.0  ;;  %v6862_v56 = vsel %vm4432_vm2, %v6859_v8, %v6861_v62  ;;  %v7138_v21 = vsel %vm6871_vm5, %v6705_v13, 0.0  ;;  %v6707_v5 = vpop.f32.mrb[71].mxu1  ;;  %v6837_v11 = vpop.f32.mrb[87].mxu0 }
 0x6e7   :  { %7192 = vst.msk [vmem:[#allocation3 + $0x170] sm:$0xff] %vm6871_vm5, %v6705_v13  ;;  %v7270_v20 = vsel %vm6871_vm5, %v7265_v46, 0.0  ;;  %v7253_v38 = vadd.f32 %v7252_v30, %v7251_v29  ;;  %6873 = vst.msk [vmem:[#allocation5 + $0x20] sm:$0xff] %vm6871_vm5, %v6862_v56  ;;  %v13569_v47 = vadd.f32 %v7138_v21, %v7137_v37  ;;  %v7168_v57 = vmul.f32 %v6705_v13, %v6705_v13 }
 0x6e8   :  { %7285 = vst.msk [vmem:[#allocation3 + $0x1b0] sm:$0xff] %vm6871_vm5, %v6707_v5  ;;  %6847 = vst [vmem:[#allocation4 + $0x3d8] sm:$0xff] %v6837_v11  ;;  %v7271_v8 = vadd.f32 %v7270_v20, %v7269_v50  ;;  %v7216_v49 = vadd.f32 %v13463_v0, %v6835_v54  ;;  %v7222_v45 = vsel %vm6871_vm5, %v6707_v5, 0.0  ;;  %v7248_v63 = vmul.f32 %v6707_v5, %v6707_v5 }
 0x6e9   :  { %6989 = vst.msk [vmem:[#allocation3] sm:$0xff] %vm6871_vm5, %v6917_v44  ;;  %v7174_v1 = vsel %vm6871_vm5, %v7168_v57, 0.0  ;;  %v13576_v4 = vadd.f32 %v7222_v45, %v7221_v39  ;;  %v6910_v29 = vld [vmem:[#allocation5 + $0x10] sm:$0xff]  ;;  %v6946_v39 = vrot.slane %v13486_v53, 4  ;;  %v7028_v46 = vrot.slane %v13491_v43, 4 }
 0x6ea   :  { %v13578_v16 = vadd.f32 %v7174_v1, %v7173_v35  ;;  %v7236_v33 = vsel %vm6871_vm5, %v7216_v49, 0.0  ;;  %v7266_v37 = vmul.f32 %v7216_v49, %v7216_v49  ;;  %7290 = vst.msk [vmem:[#allocation3 + $0x1f0] sm:$0xff] %vm6871_vm5, %v7216_v49  ;;  %v7254_v58 = vsel %vm6871_vm5, %v7248_v63, 0.0 }
 0x6eb   :  { %v13583_v50 = vadd.f32 %v7236_v33, %v7235_v40  ;;  %v13585_v0 = vadd.f32 %v7254_v58, %v7253_v38  ;;  %v6918_v36 = vadd.f32 %v6910_v29, %v13416_v42  ;;  %v6947_v40 = vadd.f32 %v6946_v39, %v13486_v53 }
 0x6ec   :  { %v7272_v60 = vsel %vm6871_vm5, %v7266_v37, 0.0  ;;  %v6982_v30 = vrot.slane %v13493_v28, 4  ;;  %v6925_v42 = vsel %vm6871_vm5, %v6917_v44, 0.0  ;;  %v6953_v5 = vmul.f32 %v6917_v44, %v6917_v44 }
 0x6ed   :  { %v13590_v22 = vadd.f32 %v7272_v60, %v7271_v8  ;;  %6990 = vst.msk [vmem:[#allocation3 + $0x10] sm:$0xff] %vm6871_vm5, %v6918_v36  ;;  %v6926_v23 = vsel %vm6871_vm5, %v6918_v36, 0.0  ;;  %v6954_v11 = vmul.f32 %v6918_v36, %v6918_v36  ;;  %v7029_v20 = vadd.f32 %v7028_v46, %v13491_v43 }
 0x6ee   :  { %v6911_v35 = vld [vmem:[#allocation5 + $0x20] sm:$0xff]  ;;  %v6927_v21 = vadd.f32 %v6926_v23, %v6925_v42  ;;  %v7060_v38 = vrot.slane %v13496_v19, 4  ;;  %v6948_v8 = vrot.slane %v6947_v40, 2  ;;  %v6983_v49 = vadd.f32 %v6982_v30, %v13493_v28 }
 0x6ef   :  { %v6853_v48 = vld [vmem:[#allocation4 + $0x3d8] sm:$0x3f]  ;;  %v6919_v54 = vadd.f32 %v6911_v35, %v13432_v14  ;;  %v6958_v44 = vsel %vm6871_vm5, %v6954_v11, 0.0  ;;  %v7030_v1 = vrot.slane %v7029_v20, 2  ;;  %v7042_v43 = vrot.slane %v13518_v52, 4 }
 0x6f0   :  { %v6863_v13 = vrot.slane %v6853_v48, 6  ;;  %v7061_v29 = vadd.f32 %v7060_v38, %v13496_v19  ;;  %v6949_v37 = vadd.f32 %v6948_v8, %v6947_v40  ;;  %v6984_v58 = vrot.slane %v6983_v49, 2 }
 0x6f1   :  { %6991 = vst.msk [vmem:[#allocation3 + $0x20] sm:$0xff] %vm6871_vm5, %v6919_v54  ;;  %v6928_v14 = vsel %vm6871_vm5, %v6919_v54, 0.0  ;;  %v6955_v53 = vmul.f32 %v6919_v54, %v6919_v54  ;;  %v7078_v36 = vrot.slane %v13525_v12, 4  ;;  %v7126_v28 = vrot.slane %v13523_v41, 4 }
 0x6f2   :  { %v6864_v56 = vsel %vm4432_vm2, %v6861_v62, %v6863_v13  ;;  %v6929_v57 = vadd.f32 %v6928_v14, %v6927_v21  ;;  %v6957_v62 = vsel %vm6871_vm5, %v6953_v5, 0.0  ;;  %v7031_v48 = vadd.f32 %v7030_v1, %v7029_v20 }
 0x6f3   :  { %6874 = vst.msk [vmem:[#allocation5 + $0x30] sm:$0xff] %vm6871_vm5, %v6864_v56  ;;  %v6959_v45 = vadd.f32 %v6958_v44, %v6957_v62  ;;  %v6960_v63 = vsel %vm6871_vm5, %v6955_v53, 0.0  ;;  %v7062_v35 = vrot.slane %v7061_v29, 2  ;;  %v7043_v23 = vadd.f32 %v7042_v43, %v13518_v52 }
 0x6f4   :  { %v7158_v46 = vrot.slane %v13528_v6, 4  ;;  %v7140_v19 = vrot.slane %v13569_v47, 4  ;;  %v6950_v40 = vrot.slane %v6949_v37, 1  ;;  %v6985_v30 = vadd.f32 %v6984_v58, %v6983_v49 }
 0x6f5   :  { %v6961_v33 = vadd.f32 %v6960_v63, %v6959_v45  ;;  %v7079_v56 = vadd.f32 %v7078_v36, %v13525_v12  ;;  %v7224_v21 = vrot.slane %v13576_v4, 4  ;;  %v7032_v5 = vrot.slane %v7031_v48, 1 }
 0x6f6   :  { %v7176_v11 = vrot.slane %v13578_v16, 4  ;;  %v7063_v14 = vadd.f32 %v7062_v35, %v7061_v29  ;;  %v7044_v53 = vrot.slane %v7043_v23, 2  ;;  %v7159_v8 = vadd.f32 %v7158_v46, %v13528_v6 }
 0x6f7   :  { %v7141_v49 = vadd.f32 %v7140_v19, %v13569_v47  ;;  %v7256_v12 = vrot.slane %v13585_v0, 4  ;;  %v6951_v44 = vadd.f32 %v6950_v40, %v6949_v37  ;;  %v7080_v45 = vrot.slane %v7079_v56, 2 }
 0x6f8   :  { %v7225_v1 = vadd.f32 %v7224_v21, %v13576_v4  ;;  %v7177_v43 = vadd.f32 %v7176_v11, %v13578_v16  ;;  %v7274_v29 = vrot.slane %v13590_v22, 4  ;;  %v6986_v6 = vrot.slane %v6985_v30, 1 }
 0x6f9   :  { %v7160_v47 = vrot.slane %v7159_v8, 2  ;;  %v7142_v36 = vrot.slane %v7141_v49, 2  ;;  %v7033_v46 = vadd.f32 %v7032_v5, %v7031_v48  ;;  %v7081_v19 = vadd.f32 %v7080_v45, %v7079_v56 }
 0x6fa   :  { %v6912_v60 = vld [vmem:[#allocation5 + $0x30] sm:$0xff]  ;;  %v7226_v4 = vrot.slane %v7225_v1, 2  ;;  %v7275_v16 = vadd.f32 %v7274_v29, %v13590_v22  ;;  %v7064_v21 = vrot.slane %v7063_v14, 1 }
 0x6fb   :  { %v6920_v39 = vadd.f32 %v6912_v60, %v13450_v61  ;;  %v7127_v61 = vadd.f32 %v7126_v28, %v13523_v41  ;;  %v7045_v60 = vadd.f32 %v7044_v53, %v7043_v23  ;;  %v7161_v23 = vadd.f32 %v7160_v47, %v7159_v8 }
 0x6fc   :  { %v7143_v11 = vadd.f32 %v7142_v36, %v7141_v49  ;;  %v7227_v48 = vadd.f32 %v7226_v4, %v7225_v1 }
 0x6fd   :  { %v6930_v13 = vsel %vm6871_vm5, %v6920_v39, 0.0  ;;  %v6956_v54 = vmul.f32 %v6920_v39, %v6920_v39  ;;  %6992 = vst.msk [vmem:[#allocation3 + $0x30] sm:$0xff] %vm6871_vm5, %v6920_v39  ;;  %v7128_v63 = vrot.slane %v7127_v61, 2  ;;  %v7257_v39 = vadd.f32 %v7256_v12, %v13585_v0 }
 0x6fe   :  { %v6931_v42 = vadd.f32 %v6930_v13, %v6929_v57  ;;  %v7238_v57 = vrot.slane %v13583_v50, 4  ;;  %v6987_v0 = vadd.f32 %v6986_v6, %v6985_v30  ;;  %v7162_v45 = vrot.slane %v7161_v23, 1 }
 0x6ff   :  { %v6962_v52 = vsel %vm6871_vm5, %v6956_v54, 0.0  ;;  %v7129_v13 = vadd.f32 %v7128_v63, %v7127_v61  ;;  %v7178_v54 = vrot.slane %v7177_v43, 2  ;;  %v7276_v61 = vrot.slane %v7275_v16, 2 }
 0x700   :  { %v6932_v20 = vrot.slane %v6931_v42, 4  ;;  %v6963_v38 = vadd.f32 %v6962_v52, %v6961_v33  ;;  %v7239_v28 = vadd.f32 %v7238_v57, %v13583_v50  ;;  %v7046_v52 = vrot.slane %v7045_v60, 1 }
 0x701   :  { %v7082_v57 = vrot.slane %v7081_v19, 1  ;;  %v7130_v12 = vrot.slane %v7129_v13, 1  ;;  %v7179_v56 = vadd.f32 %v7178_v54, %v7177_v43  ;;  %v7144_v63 = vrot.slane %v7143_v11, 1 }
 0x702   :  { %v6933_v41 = vadd.f32 %v6932_v20, %v6931_v42  ;;  %v6964_v62 = vrot.slane %v6963_v38, 4  ;;  %v7240_v20 = vrot.slane %v7239_v28, 2  ;;  %v7047_v22 = vadd.f32 %v7046_v52, %v7045_v60 }
 0x703   :  { %v7131_v47 = vadd.f32 %v7130_v12, %v7129_v13  ;;  %v7228_v36 = vrot.slane %v7227_v48, 1  ;;  %v7277_v30 = vadd.f32 %v7276_v61, %v7275_v16  ;;  %v7163_v1 = vadd.f32 %v7162_v45, %v7161_v23  ;;  %v7299_v12 = vld [vmem:[#allocation26] sm:$0x1]  ;;  %v7301_v61 = vld [vmem:[#allocation27] sm:$0x1] }
 0x704   :  { %v6934_v33 = vrot.slane %v6933_v41, 2  ;;  %v6965_v58 = vadd.f32 %v6964_v62, %v6963_v38  ;;  %v7258_v38 = vrot.slane %v7257_v39, 2  ;;  %v7065_v62 = vadd.f32 %v7064_v21, %v7063_v14  ;;  %v7335_v45 = vld [vmem:[#allocation3 + $0x50] sm:$0xff] }
 0x705   :  { %v7241_v29 = vadd.f32 %v7240_v20, %v7239_v28  ;;  %v7145_v43 = vadd.f32 %v7144_v63, %v7143_v11  ;;  %v7229_v60 = vadd.f32 %v7228_v36, %v7227_v48  ;;  %v7355_v63 = vld [vmem:[#allocation3 + $0x90] sm:$0xff] }
 0x706   :  { %v6935_v35 = vadd.f32 %v6934_v33, %v6933_v41  ;;  %v6966_v37 = vrot.slane %v6965_v58, 2  ;;  %v7259_v33 = vadd.f32 %v7258_v38, %v7257_v39 }
 0x707   :  { %v7242_v4 = vrot.slane %v7241_v29, 1 }
 0x708   :  { %v6936_v40 = vrot.slane %v6935_v35, 1  ;;  %v6967_v42 = vadd.f32 %v6966_v37, %v6965_v58  ;;  %v7083_v58 = vadd.f32 %v7082_v57, %v7081_v19 }
 0x709   :  { %v7243_v21 = vadd.f32 %v7242_v4, %v7241_v29  ;;  %v7304_v29 = vld [vmem:[#allocation3] sm:$0xff] }
 0x70a   :  { %v6937_v50 = vadd.f32 %v6936_v40, %v6935_v35  ;;  %v6968_v53 = vrot.slane %v6967_v42, 1  ;;  %v7180_v35 = vrot.slane %v7179_v56, 1 }
 0x70c   :  { %v6952_v5 = vadd.f32 %v6951_v44, %v6937_v50  ;;  %v6969_v41 = vadd.f32 %v6968_v53, %v6967_v42  ;;  %v7260_v44 = vrot.slane %v7259_v33, 1  ;;  %v7181_v40 = vadd.f32 %v7180_v35, %v7179_v56 }
 0x70d   :  { %v7278_v42 = vrot.slane %v7277_v30, 1 }
 0x70e   :  { %v6988_v8 = vadd.f32 %v6987_v0, %v6969_v41  ;;  %v7034_v49 = vadd.f32 %v7033_v46, %v6952_v5  ;;  %v7261_v46 = vadd.f32 %v7260_v44, %v7259_v33  ;;  %v7334_v5 = vld [vmem:[#allocation3 + $0x40] sm:$0xff] }
 0x70f   :  { %v7279_v52 = vadd.f32 %v7278_v42, %v7277_v30  ;;  %v7354_v41 = vld [vmem:[#allocation3 + $0x80] sm:$0xff]  ;;  %v7357_v30 = vld [vmem:[#allocation3 + $0xb0] sm:$0xff] }
 0x710   :  { %v7048_v6 = vadd.f32 %v7047_v22, %v7034_v49  ;;  %v7066_v37 = vadd.f32 %v7065_v62, %v6988_v8  ;;  %v7336_v33 = vld [vmem:[#allocation3 + $0x60] sm:$0xff]  ;;  %v7337_v49 = vld [vmem:[#allocation3 + $0x70] sm:$0xff] }
 0x711   :  { %v7356_v8 = vld [vmem:[#allocation3 + $0xa0] sm:$0xff] }
 0x712   :  { %v7084_v54 = vadd.f32 %v7083_v58, %v7066_v37  ;;  %v7132_v14 = vadd.f32 %v7131_v47, %v7048_v6  ;;  %v7374_v6 = vld [vmem:[#allocation3 + $0xc0] sm:$0xff] }
 0x713   :  { %v7394_v37 = vld [vmem:[#allocation3 + $0x100] sm:$0xff] }
 0x714   :  { %v7146_v28 = vadd.f32 %v7145_v43, %v7132_v14  ;;  %v7164_v39 = vadd.f32 %v7163_v1, %v7084_v54  ;;  %v7375_v54 = vld [vmem:[#allocation3 + $0xd0] sm:$0xff]  ;;  %v7376_v14 = vld [vmem:[#allocation3 + $0xe0] sm:$0xff] }
 0x716   :  { %v7182_v19 = vadd.f32 %v7181_v40, %v7164_v39  ;;  %v7230_v13 = vadd.f32 %v7229_v60, %v7146_v28  ;;  %v7377_v60 = vld [vmem:[#allocation3 + $0xf0] sm:$0xff] }
 0x718   :  { %v7244_v20 = vadd.f32 %v7243_v21, %v7230_v13  ;;  %v7262_v16 = vadd.f32 %v7261_v46, %v7182_v19 }
 0x71a   :  { %v7280_v38 = vadd.f32 %v7279_v52, %v7262_v16  ;;  %v7292_v50 = vmul.f32 0.00390625, %v7244_v20 }
 0x71c   :  { %v7293_v23 = vmul.f32 0.00390625, %v7280_v38  ;;  %v7294_v11 = vmul.f32 %v7292_v50, %v7292_v50 }
 0x71e   :  { %v7295_v53 = vsub.f32 %v7293_v23, %v7294_v11 }
 0x720   :  { %v7296_v0 = vmax.f32 %v7295_v53, 0.0 }
 0x722   :  { %v7297_v57 = vadd.f32 1e-05, %v7296_v0 }
 0x724   :  { %11528 = vrsqrt.f32 %v7297_v57 }
 0x72e   :  { %v11529_v48 = vpop.eup %11528 }
 0x72f   :  { %v7300_v56 = vmul.f32 %v11529_v48, %v7299_v12 }
 0x731   :  { %v7302_v62 = vmul.f32 %v7300_v56, %v7292_v50  ;;  %v13635_v22 = vrot.slane %v7300_v56, %v12451_v34 }
 0x733   :  { %v7303_v58 = vsub.f32 %v7301_v61, %v7302_v62  ;;  %v7312_v47 = vmul.f32 %v13635_v22, %v7304_v29  ;;  %v7338_v36 = vmul.f32 %v7334_v5, %v13635_v22  ;;  %v7339_v35 = vmul.f32 %v7335_v45, %v13635_v22  ;;  %v7396_v62 = vld [vmem:[#allocation3 + $0x120] sm:$0xff] }
 0x734   :  { %v7340_v1 = vmul.f32 %v7336_v33, %v13635_v22  ;;  %v7341_v43 = vmul.f32 %v7337_v49, %v13635_v22  ;;  %v7358_v4 = vmul.f32 %v7354_v41, %v13635_v22  ;;  %v7359_v44 = vmul.f32 %v7355_v63, %v13635_v22  ;;  %v7395_v41 = vld [vmem:[#allocation3 + $0x110] sm:$0xff] }
 0x735   :  { %v13645_v40 = vrot.slane %v7303_v58, %v12451_v34  ;;  %v7360_v42 = vmul.f32 %v7356_v8, %v13635_v22  ;;  %v7361_v28 = vmul.f32 %v7357_v30, %v13635_v22  ;;  %v7378_v39 = vmul.f32 %v7374_v6, %v13635_v22  ;;  %v7397_v8 = vld [vmem:[#allocation3 + $0x130] sm:$0xff] }
 0x736   :  { %v7379_v21 = vmul.f32 %v7375_v54, %v13635_v22  ;;  %v7380_v46 = vmul.f32 %v7376_v14, %v13635_v22  ;;  %v7381_v19 = vmul.f32 %v7377_v60, %v13635_v22  ;;  %v7398_v13 = vmul.f32 %v7394_v37, %v13635_v22 }
 0x737   :  { %v7322_v52 = vadd.f32 %v13645_v40, %v7312_v47  ;;  %v7342_v20 = vadd.f32 %v7338_v36, %v13645_v40  ;;  %v7343_v34 = vadd.f32 %v7339_v35, %v13645_v40  ;;  %v7344_v16 = vadd.f32 %v7340_v1, %v13645_v40  ;;  %v7414_v1 = vld [vmem:[#allocation3 + $0x140] sm:$0xff] }
 0x738   :  { %v7345_v38 = vadd.f32 %v7341_v43, %v13645_v40  ;;  %v7362_v50 = vadd.f32 %v7358_v4, %v13645_v40  ;;  %v7363_v23 = vadd.f32 %v7359_v44, %v13645_v40  ;;  %v7364_v11 = vadd.f32 %v7360_v42, %v13645_v40  ;;  %v7415_v43 = vld [vmem:[#allocation3 + $0x150] sm:$0xff]  ;;  %v7416_v4 = vld [vmem:[#allocation3 + $0x160] sm:$0xff] }
 0x739   :  { %v7326_v53 = vmax.f32 %v7322_v52, 0.0  ;;  %v7346_v0 = vmax.f32 %v7342_v20, 0.0  ;;  %v7347_v57 = vmax.f32 %v7343_v34, 0.0  ;;  %v7348_v12 = vmax.f32 %v7344_v16, 0.0  ;;  %v7417_v42 = vld [vmem:[#allocation3 + $0x170] sm:$0xff]  ;;  %v7434_v34 = vld [vmem:[#allocation3 + $0x180] sm:$0xff] }
 0x73a   :  { %v7349_v48 = vmax.f32 %v7345_v38, 0.0  ;;  %v7365_v56 = vadd.f32 %v7361_v28, %v13645_v40  ;;  %v7366_v61 = vmax.f32 %v7362_v50, 0.0  ;;  %v7367_v5 = vmax.f32 %v7363_v23, 0.0  ;;  %v7435_v16 = vld [vmem:[#allocation3 + $0x190] sm:$0xff]  ;;  %v7436_v38 = vld [vmem:[#allocation3 + $0x1a0] sm:$0xff] }
 0x73b   :  { %7330 = vst.msk [vmem:[#allocation3] sm:$0xff] %vm6871_vm5, %v7326_v53  ;;  %7350 = vst.msk [vmem:[#allocation3 + $0x40] sm:$0xff] %vm6871_vm5, %v7346_v0  ;;  %v7368_v45 = vmax.f32 %v7364_v11, 0.0  ;;  %v7382_v63 = vadd.f32 %v7378_v39, %v13645_v40  ;;  %v7383_v29 = vadd.f32 %v7379_v21, %v13645_v40  ;;  %v7384_v33 = vadd.f32 %v7380_v46, %v13645_v40  ;;  %v7437_v0 = vld [vmem:[#allocation3 + $0x1b0] sm:$0xff] }
 0x73c   :  { %7351 = vst.msk [vmem:[#allocation3 + $0x50] sm:$0xff] %vm6871_vm5, %v7347_v57  ;;  %7352 = vst.msk [vmem:[#allocation3 + $0x60] sm:$0xff] %vm6871_vm5, %v7348_v12  ;;  %v7369_v49 = vmax.f32 %v7365_v56, 0.0  ;;  %v7385_v58 = vadd.f32 %v7381_v19, %v13645_v40  ;;  %v7399_v47 = vmul.f32 %v7395_v41, %v13635_v22  ;;  %v7400_v36 = vmul.f32 %v7396_v62, %v13635_v22 }
 0x73d   :  { %7353 = vst.msk [vmem:[#allocation3 + $0x70] sm:$0xff] %vm6871_vm5, %v7349_v48  ;;  %7370 = vst.msk [vmem:[#allocation3 + $0x80] sm:$0xff] %vm6871_vm5, %v7366_v61  ;;  %v7386_v35 = vmax.f32 %v7382_v63, 0.0  ;;  %v7387_v30 = vmax.f32 %v7383_v29, 0.0  ;;  %v7388_v6 = vmax.f32 %v7384_v33, 0.0  ;;  %v7401_v37 = vmul.f32 %v7397_v8, %v13635_v22 }
 0x73e   :  { %7371 = vst.msk [vmem:[#allocation3 + $0x90] sm:$0xff] %vm6871_vm5, %v7367_v5  ;;  %7372 = vst.msk [vmem:[#allocation3 + $0xa0] sm:$0xff] %vm6871_vm5, %v7368_v45  ;;  %v7389_v44 = vmax.f32 %v7385_v58, 0.0  ;;  %v7402_v54 = vadd.f32 %v7398_v13, %v13645_v40  ;;  %v7403_v14 = vadd.f32 %v7399_v47, %v13645_v40  ;;  %v7404_v60 = vadd.f32 %v7400_v36, %v13645_v40  ;;  %v7306_v58 = vld [vmem:[#allocation3 + $0x20] sm:$0xff] }
 0x73f   :  { %7373 = vst.msk [vmem:[#allocation3 + $0xb0] sm:$0xff] %vm6871_vm5, %v7369_v49  ;;  %7390 = vst.msk [vmem:[#allocation3 + $0xc0] sm:$0xff] %vm6871_vm5, %v7386_v35  ;;  %v7405_v28 = vadd.f32 %v7401_v37, %v13645_v40  ;;  %v7418_v39 = vmul.f32 %v7414_v1, %v13635_v22  ;;  %v7419_v21 = vmul.f32 %v7415_v43, %v13635_v22  ;;  %v7305_v49 = vld [vmem:[#allocation3 + $0x10] sm:$0xff] }
 0x740   :  { %7391 = vst.msk [vmem:[#allocation3 + $0xd0] sm:$0xff] %vm6871_vm5, %v7387_v30  ;;  %7392 = vst.msk [vmem:[#allocation3 + $0xe0] sm:$0xff] %vm6871_vm5, %v7388_v6  ;;  %v7420_v46 = vmul.f32 %v7416_v4, %v13635_v22  ;;  %v7406_v19 = vmax.f32 %v7402_v54, 0.0  ;;  %v7407_v13 = vmax.f32 %v7403_v14, 0.0  ;;  %v7408_v52 = vmax.f32 %v7404_v60, 0.0  ;;  %v7307_v30 = vld [vmem:[#allocation3 + $0x30] sm:$0xff] }
 0x741   :  { %7393 = vst.msk [vmem:[#allocation3 + $0xf0] sm:$0xff] %vm6871_vm5, %v7389_v44  ;;  %v7421_v20 = vmul.f32 %v7417_v42, %v13635_v22  ;;  %v7409_v50 = vmax.f32 %v7405_v28, 0.0  ;;  %v7422_v23 = vadd.f32 %v7418_v39, %v13645_v40  ;;  %v7423_v11 = vadd.f32 %v7419_v21, %v13645_v40  ;;  %v7454_v4 = vld [vmem:[#allocation3 + $0x1c0] sm:$0xff]  ;;  %v7455_v42 = vld [vmem:[#allocation3 + $0x1d0] sm:$0xff] }
 0x742   :  { %v7424_v53 = vadd.f32 %v7420_v46, %v13645_v40  ;;  %7410 = vst.msk [vmem:[#allocation3 + $0x100] sm:$0xff] %vm6871_vm5, %v7406_v19  ;;  %7411 = vst.msk [vmem:[#allocation3 + $0x110] sm:$0xff] %vm6871_vm5, %v7407_v13  ;;  %v7438_v12 = vmul.f32 %v7434_v34, %v13635_v22  ;;  %v7439_v48 = vmul.f32 %v7435_v16, %v13635_v22  ;;  %v7474_v61 = vld [vmem:[#allocation3] sm:$0xff]  ;;  %v7457_v19 = vld [vmem:[#allocation3 + $0x1f0] sm:$0xff] }
 0x743   :  { %7412 = vst.msk [vmem:[#allocation3 + $0x120] sm:$0xff] %vm6871_vm5, %v7408_v52  ;;  %v7425_v57 = vadd.f32 %v7421_v20, %v13645_v40  ;;  %v7440_v56 = vmul.f32 %v7436_v38, %v13635_v22  ;;  %7413 = vst.msk [vmem:[#allocation3 + $0x130] sm:$0xff] %vm6871_vm5, %v7409_v50  ;;  %v7426_v5 = vmax.f32 %v7422_v23, 0.0  ;;  %v7427_v41 = vmax.f32 %v7423_v11, 0.0  ;;  %9846 = vmatmul.mubr.msk.f32.vlgmr.msra.gmra.mrb[88].mxu0 %vm6871_vm5, %v7474_v61  ;;  %v7456_v28 = vld [vmem:[#allocation3 + $0x1e0] sm:$0xff] }
 0x744   :  { %v7428_v62 = vmax.f32 %v7424_v53, 0.0  ;;  %v7441_v45 = vmul.f32 %v7437_v0, %v13635_v22  ;;  %9850 = vmatmul.mubr.msk.f32.vlgmr.msra.gmra.mrb[72].mxu1 %vm6871_vm5, %v7474_v61  ;;  %v7442_v29 = vadd.f32 %v7438_v12, %v13645_v40  ;;  %v7443_v33 = vadd.f32 %v7439_v48, %v13645_v40  ;;  %11173 = vmatpush1.bf16.msra.mxu0 %v13408_v7  ;;  %v7716_v48 = vld [vmem:[#allocation3 + $0x40] sm:$0xff] }
 0x745   :  { %v7429_v63 = vmax.f32 %v7425_v57, 0.0  ;;  %v7444_v8 = vadd.f32 %v7440_v56, %v13645_v40  ;;  %11157 = vmatpush1.bf16.msra.mxu1 %v13405_v2  ;;  %7430 = vst.msk [vmem:[#allocation3 + $0x140] sm:$0xff] %vm6871_vm5, %v7426_v5  ;;  %7431 = vst.msk [vmem:[#allocation3 + $0x150] sm:$0xff] %vm6871_vm5, %v7427_v41  ;;  %7576 = vmatprep.mubr.f32.mxu0 %v14467_v27  ;;  %v7313_v36 = vmul.f32 %v13635_v22, %v7305_v49  ;;  %v7717_v56 = vld [vmem:[#allocation3 + $0x50] sm:$0xff]  ;;  %v7718_v61 = vld [vmem:[#allocation3 + $0x60] sm:$0xff] }
 0x746   :  { %7432 = vst.msk [vmem:[#allocation3 + $0x160] sm:$0xff] %vm6871_vm5, %v7428_v62  ;;  %v7445_v47 = vadd.f32 %v7441_v45, %v13645_v40  ;;  %7689 = vmatprep.mubr.f32.mxu1 %v14467_v27  ;;  %v7314_v35 = vmul.f32 %v13635_v22, %v7306_v58  ;;  %v7446_v6 = vmax.f32 %v7442_v29, 0.0  ;;  %v7447_v37 = vmax.f32 %v7443_v33, 0.0  ;;  %11159 = vmatprep.subr.bf16.mxu1 %v13412_v10  ;;  %v7719_v5 = vld [vmem:[#allocation3 + $0x70] sm:$0xff]  ;;  %v7958_v41 = vld [vmem:[#allocation3 + $0x80] sm:$0xff] }
 0x747   :  { %7433 = vst.msk [vmem:[#allocation3 + $0x170] sm:$0xff] %vm6871_vm5, %v7429_v63  ;;  %v7448_v1 = vmax.f32 %v7444_v8, 0.0  ;;  %11175 = vmatprep.subr.bf16.mxu0 %v13414_v17  ;;  %v7315_v43 = vmul.f32 %v13635_v22, %v7307_v30  ;;  %v7323_v54 = vadd.f32 %v13645_v40, %v7313_v36  ;;  %v7458_v60 = vmul.f32 %v7454_v4, %v13635_v22  ;;  %v7959_v62 = vld [vmem:[#allocation3 + $0x90] sm:$0xff]  ;;  %v7960_v45 = vld [vmem:[#allocation3 + $0xa0] sm:$0xff] }
 0x748   :  { %v7449_v44 = vmax.f32 %v7445_v47, 0.0  ;;  %v7324_v14 = vadd.f32 %v13645_v40, %v7314_v35  ;;  %7450 = vst.msk [vmem:[#allocation3 + $0x180] sm:$0xff] %vm6871_vm5, %v7446_v6  ;;  %7451 = vst.msk [vmem:[#allocation3 + $0x190] sm:$0xff] %vm6871_vm5, %v7447_v37  ;;  %11177 = vmatpush1.bf16.msra.mxu0 %v13423_v59  ;;  %v7459_v21 = vmul.f32 %v7455_v42, %v13635_v22  ;;  %v8581_v33 = vld [vmem:[#allocation15 + $0x98] sm:$0xff]  ;;  %v8456_v58 = vld [vmem:[#allocation15 + $0xa0] sm:$0xff] }
 0x749   :  { %7452 = vst.msk [vmem:[#allocation3 + $0x1a0] sm:$0xff] %vm6871_vm5, %v7448_v1  ;;  %11161 = vmatpush1.bf16.msra.mxu1 %v13419_v3  ;;  %v7325_v39 = vadd.f32 %v13645_v40, %v7315_v43  ;;  %v7460_v46 = vmul.f32 %v7456_v28, %v13635_v22  ;;  %v7327_v13 = vmax.f32 %v7323_v54, 0.0  ;;  %11179 = vmatprep.subr.bf16.mxu0 %v13427_v55  ;;  %v8583_v8 = vld [vmem:[#allocation15 + $0xb8] sm:$0xff]  ;;  %v8580_v47 = vld [vmem:[#allocation15 + $0x90] sm:$0xff]  ;;  %v8459_v30 = vld [vmem:[#allocation15 + $0xc8] sm:$0xff] }
 0x74a   :  { %7453 = vst.msk [vmem:[#allocation3 + $0x1b0] sm:$0xff] %vm6871_vm5, %v7449_v44  ;;  %v7328_v52 = vmax.f32 %v7324_v14, 0.0  ;;  %11163 = vmatprep.subr.bf16.mxu1 %v13425_v15  ;;  %v7462_v20 = vadd.f32 %v7458_v60, %v13645_v40  ;;  %v7461_v34 = vmul.f32 %v7457_v19, %v13635_v22  ;;  %v7463_v38 = vadd.f32 %v7459_v21, %v13645_v40  ;;  %v8582_v36 = vld [vmem:[#allocation15 + $0xb0] sm:$0xff]  ;;  %v8461_v6 = vld [vmem:[#allocation15 + $0xe8] sm:$0xff]  ;;  %v8585_v37 = vld [vmem:[#allocation15 + $0xd8] sm:$0xff] }
 0x74b   :  { %v7329_v16 = vmax.f32 %v7325_v39, 0.0  ;;  %v7464_v50 = vadd.f32 %v7460_v46, %v13645_v40  ;;  %7331 = vst.msk [vmem:[#allocation3 + $0x10] sm:$0xff] %vm6871_vm5, %v7327_v13  ;;  %v8201_v35 = vld [vmem:[#allocation3 + $0xd0] sm:$0xff]  ;;  %v8587_v1 = vld [vmem:[#allocation15 + $0xf8] sm:$0xff]  ;;  %v13858_v4 = vpack.c.bf16 %v8582_v36, %v8580_v47  ;;  %v8458_v44 = vld [vmem:[#allocation15 + $0xc0] sm:$0xff]  ;;  %v13864_v28 = vpack.c.bf16 %v8461_v6, %v8459_v30 }
 0x74c   :  { %7332 = vst.msk [vmem:[#allocation3 + $0x20] sm:$0xff] %vm6871_vm5, %v7328_v52  ;;  %v7466_v23 = vmax.f32 %v7462_v20, 0.0  ;;  %v7465_v11 = vadd.f32 %v7461_v34, %v13645_v40  ;;  %11181 = vmatpush1.bf16.msra.mxu0 %v13436_v18  ;;  %v7467_v53 = vmax.f32 %v7463_v38, 0.0  ;;  %v8460_v54 = vld [vmem:[#allocation15 + $0xe0] sm:$0xff]  ;;  %v8584_v14 = vld [vmem:[#allocation15 + $0xd0] sm:$0xff]  ;;  %v13866_v39 = vpack.c.bf16 %v8587_v1, %v8585_v37  ;;  %v8690_v21 = vld [vmem:[#allocation15 + $0x8] sm:$0xff] }
 0x74d   :  { %11165 = vmatpush1.bf16.msra.mxu1 %v13430_v51  ;;  %7333 = vst.msk [vmem:[#allocation3 + $0x30] sm:$0xff] %vm6871_vm5, %v7329_v16  ;;  %v7468_v22 = vmax.f32 %v7464_v50, 0.0  ;;  %11183 = vmatprep.subr.bf16.mxu0 %v13441_v24  ;;  %v8586_v60 = vld [vmem:[#allocation15 + $0xf0] sm:$0xff]  ;;  %v8202_v42 = vld [vmem:[#allocation3 + $0xe0] sm:$0xff]  ;;  %v8692_v46 = vld [vmem:[#allocation15 + $0x28] sm:$0xff]  ;;  %v13872_v52 = vpack.c.bf16 %v8460_v54, %v8458_v44 }
 0x74e   :  { %11167 = vmatprep.subr.bf16.mxu1 %v13438_v31  ;;  %7470 = vst.msk [vmem:[#allocation3 + $0x1c0] sm:$0xff] %vm6871_vm5, %v7466_v23  ;;  %v7469_v0 = vmax.f32 %v7465_v11, 0.0  ;;  %7471 = vst.msk [vmem:[#allocation3 + $0x1d0] sm:$0xff] %vm6871_vm5, %v7467_v53  ;;  %v8816_v19 = vld [vmem:[#allocation15 + $0x18] sm:$0xff]  ;;  %v13874_v20 = vpack.c.bf16 %v8586_v60, %v8584_v14  ;;  %v8689_v34 = vld [vmem:[#allocation15] sm:$0xff]  ;;  %v13880_v11 = vpack.c.bf16 %v8692_v46, %v8690_v21 }
 0x74f   :  { %7472 = vst.msk [vmem:[#allocation3 + $0x1e0] sm:$0xff] %vm6871_vm5, %v7468_v22  ;;  %v8818_v13 = vld [vmem:[#allocation15 + $0x38] sm:$0xff]  ;;  %v8691_v16 = vld [vmem:[#allocation15 + $0x20] sm:$0xff]  ;;  %v8815_v38 = vld [vmem:[#allocation15 + $0x10] sm:$0xff] }
 0x750   :  { %7473 = vst.msk [vmem:[#allocation3 + $0x1f0] sm:$0xff] %vm6871_vm5, %v7469_v0  ;;  %11185 = vmatpush1.bf16.msra.mxu0 %v13454_v32  ;;  %v8817_v50 = vld [vmem:[#allocation15 + $0x30] sm:$0xff]  ;;  %v13882_v53 = vpack.c.bf16 %v8818_v13, %v8816_v19  ;;  %v13888_v22 = vpack.c.bf16 %v8691_v16, %v8689_v34 }
 0x751   :  { %11169 = vmatpush1.bf16.msra.mxu1 %v13448_v26  ;;  %11187 = vmatprep.subr.bf16.mxu0 %v13401_v25  ;;  %v8203_v23 = vld [vmem:[#allocation3 + $0xf0] sm:$0xff]  ;;  %v13890_v0 = vpack.c.bf16 %v8817_v50, %v8815_v38 }
 0x752   :  { %11203 = vmatprep.subr.bf16.mxu1 %v13403_v9  ;;  %v7475_v40 = vld [vmem:[#allocation3 + $0x10] sm:$0xff] }
 0x753   :  { %9847 = vmatmul.mubr.msk.f32.gmra.mrb[90].mxu0 %vm6871_vm5, %v7475_v40  ;;  %9851 = vmatmul.mubr.msk.f32.gmra.mrb[74].mxu1 %vm6871_vm5, %v7475_v40  ;;  %v7476_v57 = vld [vmem:[#allocation3 + $0x20] sm:$0xff] }
 0x754   :  { %7582 = vmatprep.mubr.f32.mxu0 %v14467_v27  ;;  %7695 = vmatprep.mubr.f32.mxu1 %v14467_v27  ;;  %v7477_v12 = vld [vmem:[#allocation3 + $0x30] sm:$0xff]  ;;  %v8442_v40 = vld [vmem:[#allocation3 + $0x100] sm:$0xff] }
 0x757   :  { %9848 = vmatmul.mubr.msk.f32.gmra.mrb[92].mxu0 %vm6871_vm5, %v7476_v57  ;;  %9852 = vmatmul.mubr.msk.f32.gmra.mrb[76].mxu1 %vm6871_vm5, %v7476_v57  ;;  %v8443_v57 = vld [vmem:[#allocation3 + $0x110] sm:$0xff] }
 0x758   :  { %7588 = vmatprep.mubr.f32.mxu0 %v14467_v27  ;;  %7701 = vmatprep.mubr.f32.mxu1 %v14467_v27 }
 0x75b   :  { %9849 = vmatmul.mubr.msk.f32.gmra.mrb[94].mxu0 %vm6871_vm5, %v7477_v12  ;;  %9853 = vmatmul.mubr.msk.f32.gmra.mrb[78].mxu1 %vm6871_vm5, %v7477_v12  ;;  %v8444_v12 = vld [vmem:[#allocation3 + $0x120] sm:$0xff] }
 0x75c   :  { %7812 = vmatprep.mubr.f32.mxu1 %v14467_v27  ;;  %7925 = vmatprep.mubr.f32.mxu0 %v14467_v27 }
 0x75f   :  { %9854 = vmatmul.mubr.msk.f32.vlgmr.msra.gmra.mrb[72].mxu1 %vm6871_vm5, %v7716_v48  ;;  %9858 = vmatmul.mubr.msk.f32.vlgmr.msra.gmra.mrb[96].mxu0 %vm6871_vm5, %v7716_v48  ;;  %v8445_v48 = vld [vmem:[#allocation3 + $0x130] sm:$0xff] }
 0x760   :  { %11189 = vmatpush1.bf16.msra.mxu0 %v13405_v2  ;;  %11205 = vmatpush1.bf16.msra.mxu1 %v13408_v7 }
 0x761   :  { %7818 = vmatprep.mubr.f32.mxu1 %v14467_v27  ;;  %7931 = vmatprep.mubr.f32.mxu0 %v14467_v27 }
 0x762   :  { %11191 = vmatprep.subr.bf16.mxu0 %v13412_v10  ;;  %11207 = vmatprep.subr.bf16.mxu1 %v13414_v17 }
 0x763   :  { %9855 = vmatmul.mubr.msk.f32.gmra.mrb[74].mxu1 %vm6871_vm5, %v7717_v56  ;;  %9859 = vmatmul.mubr.msk.f32.gmra.mrb[98].mxu0 %vm6871_vm5, %v7717_v56  ;;  %v8685_v56 = vld [vmem:[#allocation3 + $0x140] sm:$0xff] }
 0x764   :  { %11193 = vmatpush1.bf16.msra.mxu0 %v13419_v3  ;;  %11209 = vmatpush1.bf16.msra.mxu1 %v13423_v59 }
 0x765   :  { %7824 = vmatprep.mubr.f32.mxu1 %v14467_v27  ;;  %7937 = vmatprep.mubr.f32.mxu0 %v14467_v27 }
 0x766   :  { %11195 = vmatprep.subr.bf16.mxu0 %v13425_v15  ;;  %11211 = vmatprep.subr.bf16.mxu1 %v13427_v55 }
 0x767   :  { %9856 = vmatmul.mubr.msk.f32.gmra.mrb[76].mxu1 %vm6871_vm5, %v7718_v61  ;;  %9860 = vmatmul.mubr.msk.f32.gmra.mrb[100].mxu0 %vm6871_vm5, %v7718_v61  ;;  %v8686_v61 = vld [vmem:[#allocation3 + $0x150] sm:$0xff] }
 0x768   :  { %11197 = vmatpush1.bf16.msra.mxu0 %v13430_v51  ;;  %11213 = vmatpush1.bf16.msra.mxu1 %v13436_v18 }
 0x769   :  { %7830 = vmatprep.mubr.f32.mxu1 %v14467_v27  ;;  %7943 = vmatprep.mubr.f32.mxu0 %v14467_v27 }
 0x76a   :  { %11199 = vmatprep.subr.bf16.mxu0 %v13438_v31  ;;  %11215 = vmatprep.subr.bf16.mxu1 %v13441_v24 }
 0x76b   :  { %9857 = vmatmul.mubr.msk.f32.gmra.mrb[78].mxu1 %vm6871_vm5, %v7719_v5  ;;  %9861 = vmatmul.mubr.msk.f32.gmra.mrb[102].mxu0 %vm6871_vm5, %v7719_v5  ;;  %v8687_v5 = vld [vmem:[#allocation3 + $0x160] sm:$0xff] }
 0x76c   :  { %11201 = vmatpush1.bf16.msra.mxu0 %v13448_v26  ;;  %11217 = vmatpush1.bf16.msra.mxu1 %v13454_v32 }
 0x76d   :  { %8054 = vmatprep.mubr.f32.mxu0 %v14467_v27  ;;  %8167 = vmatprep.mubr.f32.mxu1 %v14467_v27 }
 0x76e   :  { %11219 = vmatprep.subr.bf16.mxu1 %v13401_v25  ;;  %11235 = vmatprep.subr.bf16.mxu0 %v13403_v9 }
 0x76f   :  { %9862 = vmatmul.mubr.msk.f32.vlgmr.msra.gmra.mrb[96].mxu0 %vm6871_vm5, %v7958_v41  ;;  %9866 = vmatmul.mubr.msk.f32.vlgmr.msra.gmra.mrb[80].mxu1 %vm6871_vm5, %v7958_v41  ;;  %v8688_v41 = vld [vmem:[#allocation3 + $0x170] sm:$0xff] }
 0x770   :  { %11221 = vmatpush1.bf16.msra.mxu1 %v13405_v2  ;;  %11237 = vmatpush1.bf16.msra.mxu0 %v13408_v7 }
 0x771   :  { %8060 = vmatprep.mubr.f32.mxu0 %v14467_v27  ;;  %8173 = vmatprep.mubr.f32.mxu1 %v14467_v27 }
 0x772   :  { %11223 = vmatprep.subr.bf16.mxu1 %v13412_v10  ;;  %11239 = vmatprep.subr.bf16.mxu0 %v13414_v17  ;;  %v7961_v10 = vld [vmem:[#allocation3 + $0xb0] sm:$0xff] }
 0x773   :  { %9863 = vmatmul.mubr.msk.f32.gmra.mrb[98].mxu0 %vm6871_vm5, %v7959_v62  ;;  %9867 = vmatmul.mubr.msk.f32.gmra.mrb[82].mxu1 %vm6871_vm5, %v7959_v62  ;;  %v8451_v17 = vld [vmem:[#allocation15 + $0x48] sm:$0xff]  ;;  %v8928_v62 = vld [vmem:[#allocation3 + $0x180] sm:$0xff] }
 0x774   :  { %11225 = vmatpush1.bf16.msra.mxu1 %v13419_v3  ;;  %11241 = vmatpush1.bf16.msra.mxu0 %v13423_v59  ;;  %v8453_v3 = vld [vmem:[#allocation15 + $0x68] sm:$0xff]  ;;  %v8577_v59 = vld [vmem:[#allocation15 + $0x58] sm:$0xff] }
 0x775   :  { %8066 = vmatprep.mubr.f32.mxu0 %v14467_v27  ;;  %8179 = vmatprep.mubr.f32.mxu1 %v14467_v27  ;;  %v13832_v63 = vpack.c.bf16 %v8453_v3, %v8451_v17  ;;  %v8931_v17 = vld [vmem:[#allocation3 + $0x1b0] sm:$0xff]  ;;  %v9171_v3 = vld [vmem:[#allocation3 + $0x1c0] sm:$0xff] }
 0x776   :  { %11227 = vmatprep.subr.bf16.mxu1 %v13425_v15  ;;  %11243 = vmatprep.subr.bf16.mxu0 %v13427_v55  ;;  %v8579_v15 = vld [vmem:[#allocation15 + $0x78] sm:$0xff]  ;;  %v8450_v55 = vld [vmem:[#allocation15 + $0x40] sm:$0xff] }
 0x777   :  { %9864 = vmatmul.mubr.msk.f32.gmra.mrb[100].mxu0 %vm6871_vm5, %v7960_v45  ;;  %9868 = vmatmul.mubr.msk.f32.gmra.mrb[84].mxu1 %vm6871_vm5, %v7960_v45  ;;  %v13834_v29 = vpack.c.bf16 %v8579_v15, %v8577_v59  ;;  %v8929_v45 = vld [vmem:[#allocation3 + $0x190] sm:$0xff]  ;;  %v9173_v15 = vld [vmem:[#allocation3 + $0x1e0] sm:$0xff] }
 0x778   :  { %11229 = vmatpush1.bf16.msra.mxu1 %v13430_v51  ;;  %11245 = vmatpush1.bf16.msra.mxu0 %v13436_v18  ;;  %v8452_v51 = vld [vmem:[#allocation15 + $0x60] sm:$0xff]  ;;  %v8576_v18 = vld [vmem:[#allocation15 + $0x50] sm:$0xff] }
 0x779   :  { %8072 = vmatprep.mubr.f32.mxu0 %v14467_v27  ;;  %8185 = vmatprep.mubr.f32.mxu1 %v14467_v27  ;;  %v13840_v49 = vpack.c.bf16 %v8452_v51, %v8450_v55  ;;  %v9172_v59 = vld [vmem:[#allocation3 + $0x1d0] sm:$0xff] }
 0x77a   :  { %11231 = vmatprep.subr.bf16.mxu1 %v13438_v31  ;;  %11247 = vmatprep.subr.bf16.mxu0 %v13441_v24  ;;  %v8578_v31 = vld [vmem:[#allocation15 + $0x70] sm:$0xff]  ;;  %v8200_v24 = vld [vmem:[#allocation3 + $0xc0] sm:$0xff] }
 0x77b   :  { %9865 = vmatmul.mubr.msk.f32.gmra.mrb[104].mxu0 %vm6871_vm5, %v7961_v10  ;;  %9869 = vmatmul.mubr.msk.f32.gmra.mrb[86].mxu1 %vm6871_vm5, %v7961_v10  ;;  %v8930_v10 = vld [vmem:[#allocation3 + $0x1a0] sm:$0xff]  ;;  %v9174_v55 = vld [vmem:[#allocation3 + $0x1f0] sm:$0xff] }
 0x77c   :  { %11233 = vmatpush1.bf16.msra.mxu1 %v13448_v26  ;;  %11249 = vmatpush1.bf16.msra.mxu0 %v13454_v32  ;;  %v8455_v26 = vld [vmem:[#allocation15 + $0x88] sm:$0xff] }
 0x77d   :  { %8296 = vmatprep.mubr.f32.mxu1 %v14467_v27  ;;  %8409 = vmatprep.mubr.f32.mxu0 %v14467_v27  ;;  %v8457_v32 = vld [vmem:[#allocation15 + $0xa8] sm:$0xff] }
 0x77e   :  { %11251 = vmatprep.subr.bf16.mxu0 %v13401_v25  ;;  %11267 = vmatprep.subr.bf16.mxu1 %v13403_v9  ;;  %v13842_v25 = vpack.c.bf16 %v8578_v31, %v8576_v18  ;;  %v8454_v9 = vld [vmem:[#allocation15 + $0x80] sm:$0xff] }
 0x77f   :  { %9870 = vmatmul.mubr.msk.f32.vlgmr.msra.gmra.mrb[80].mxu1 %vm6871_vm5, %v8200_v24  ;;  %9874 = vmatmul.mubr.msk.f32.vlgmr.msra.gmra.mrb[106].mxu0 %vm6871_vm5, %v8200_v24  ;;  %v13856_v43 = vpack.c.bf16 %v8456_v58, %v8454_v9 }
 0x780   :  { %11253 = vmatpush1.bf16.msra.mxu0 %v13405_v2  ;;  %11269 = vmatpush1.bf16.msra.mxu1 %v13408_v7  ;;  %v13848_v2 = vpack.c.bf16 %v8457_v32, %v8455_v26  ;;  %v13850_v7 = vpack.c.bf16 %v8583_v8, %v8581_v33 }
 0x781   :  { %8302 = vmatprep.mubr.f32.mxu1 %v14467_v27  ;;  %8415 = vmatprep.mubr.f32.mxu0 %v14467_v27 }
 0x782   :  { %11255 = vmatprep.subr.bf16.mxu0 %v13832_v63  ;;  %11271 = vmatprep.subr.bf16.mxu1 %v13834_v29 }
 0x783   :  { %9871 = vmatmul.mubr.msk.f32.gmra.mrb[82].mxu1 %vm6871_vm5, %v8201_v35  ;;  %9875 = vmatmul.mubr.msk.f32.gmra.mrb[108].mxu0 %vm6871_vm5, %v8201_v35 }
 0x784   :  { %11257 = vmatpush1.bf16.msra.mxu0 %v13840_v49  ;;  %11273 = vmatpush1.bf16.msra.mxu1 %v13842_v25 }
 0x785   :  { %8308 = vmatprep.mubr.f32.mxu1 %v14467_v27  ;;  %8421 = vmatprep.mubr.f32.mxu0 %v14467_v27 }
 0x786   :  { %11259 = vmatprep.subr.bf16.mxu0 %v13848_v2  ;;  %11275 = vmatprep.subr.bf16.mxu1 %v13850_v7 }
 0x787   :  { %9872 = vmatmul.mubr.msk.f32.gmra.mrb[84].mxu1 %vm6871_vm5, %v8202_v42  ;;  %9876 = vmatmul.mubr.msk.f32.gmra.mrb[110].mxu0 %vm6871_vm5, %v8202_v42 }
 0x788   :  { %11261 = vmatpush1.bf16.msra.mxu0 %v13856_v43  ;;  %11277 = vmatpush1.bf16.msra.mxu1 %v13858_v4 }
 0x789   :  { %8314 = vmatprep.mubr.f32.mxu1 %v14467_v27  ;;  %8427 = vmatprep.mubr.f32.mxu0 %v14467_v27 }
 0x78a   :  { %11263 = vmatprep.subr.bf16.mxu0 %v13864_v28  ;;  %11279 = vmatprep.subr.bf16.mxu1 %v13866_v39 }
 0x78b   :  { %9873 = vmatmul.mubr.msk.f32.gmra.mrb[86].mxu1 %vm6871_vm5, %v8203_v23  ;;  %9877 = vmatmul.mubr.msk.f32.gmra.mrb[112].mxu0 %vm6871_vm5, %v8203_v23 }
 0x78c   :  { %11265 = vmatpush1.bf16.msra.mxu0 %v13872_v52  ;;  %11281 = vmatpush1.bf16.msra.mxu1 %v13874_v20 }
 0x78d   :  { %8538 = vmatprep.mubr.f32.mxu0 %v14467_v27  ;;  %8652 = vmatprep.mubr.f32.mxu1 %v14467_v27 }
 0x78e   :  { %11283 = vmatprep.subr.bf16.mxu1 %v13880_v11  ;;  %11299 = vmatprep.subr.bf16.mxu0 %v13882_v53 }
 0x78f   :  { %9878 = vmatmul.mubr.msk.f32.vlgmr.msra.gmra.mrb[106].mxu0 %vm6871_vm5, %v8442_v40  ;;  %9882 = vmatmul.mubr.msk.f32.vlgmr.msra.gmra.mrb[88].mxu1 %vm6871_vm5, %v8442_v40 }
 0x790   :  { %11285 = vmatpush1.bf16.msra.mxu1 %v13888_v22  ;;  %11301 = vmatpush1.bf16.msra.mxu0 %v13890_v0 }
 0x791   :  { %8544 = vmatprep.mubr.f32.mxu0 %v14467_v27  ;;  %8658 = vmatprep.mubr.f32.mxu1 %v14467_v27 }
 0x792   :  { %11287 = vmatprep.subr.bf16.mxu1 %v13832_v63  ;;  %11303 = vmatprep.subr.bf16.mxu0 %v13834_v29 }
 0x793   :  { %9879 = vmatmul.mubr.msk.f32.gmra.mrb[108].mxu0 %vm6871_vm5, %v8443_v57  ;;  %9883 = vmatmul.mubr.msk.f32.gmra.mrb[90].mxu1 %vm6871_vm5, %v8443_v57 }
 0x794   :  { %11289 = vmatpush1.bf16.msra.mxu1 %v13840_v49  ;;  %11305 = vmatpush1.bf16.msra.mxu0 %v13842_v25 }
 0x795   :  { %8550 = vmatprep.mubr.f32.mxu0 %v14467_v27  ;;  %8664 = vmatprep.mubr.f32.mxu1 %v14467_v27 }
 0x796   :  { %11291 = vmatprep.subr.bf16.mxu1 %v13848_v2  ;;  %11307 = vmatprep.subr.bf16.mxu0 %v13850_v7 }
 0x797   :  { %9880 = vmatmul.mubr.msk.f32.gmra.mrb[110].mxu0 %vm6871_vm5, %v8444_v12  ;;  %9884 = vmatmul.mubr.msk.f32.gmra.mrb[92].mxu1 %vm6871_vm5, %v8444_v12 }
 0x798   :  { %11293 = vmatpush1.bf16.msra.mxu1 %v13856_v43  ;;  %11309 = vmatpush1.bf16.msra.mxu0 %v13858_v4 }
 0x799   :  { %8556 = vmatprep.mubr.f32.mxu0 %v14467_v27  ;;  %8670 = vmatprep.mubr.f32.mxu1 %v14467_v27 }
 0x79a   :  { %11295 = vmatprep.subr.bf16.mxu1 %v13864_v28  ;;  %11311 = vmatprep.subr.bf16.mxu0 %v13866_v39 }
 0x79b   :  { %9881 = vmatmul.mubr.msk.f32.gmra.mrb[114].mxu0 %vm6871_vm5, %v8445_v48  ;;  %9885 = vmatmul.mubr.msk.f32.gmra.mrb[94].mxu1 %vm6871_vm5, %v8445_v48 }
 0x79c   :  { %11297 = vmatpush1.bf16.msra.mxu1 %v13872_v52  ;;  %11313 = vmatpush1.bf16.msra.mxu0 %v13874_v20 }
 0x79d   :  { %8781 = vmatprep.mubr.f32.mxu1 %v14467_v27  ;;  %8895 = vmatprep.mubr.f32.mxu0 %v14467_v27 }
 0x79e   :  { %11315 = vmatprep.subr.bf16.mxu0 %v13880_v11  ;;  %11331 = vmatprep.subr.bf16.mxu1 %v13882_v53 }
 0x79f   :  { %9886 = vmatmul.mubr.msk.f32.vlgmr.msra.gmra.mrb[88].mxu1 %vm6871_vm5, %v8685_v56  ;;  %9890 = vmatmul.mubr.msk.f32.vlgmr.msra.gmra.mrb[116].mxu0 %vm6871_vm5, %v8685_v56 }
 0x7a0   :  { %11317 = vmatpush1.bf16.msra.mxu0 %v13888_v22  ;;  %11333 = vmatpush1.bf16.msra.mxu1 %v13890_v0 }
 0x7a1   :  { %8787 = vmatprep.mubr.f32.mxu1 %v14467_v27  ;;  %8901 = vmatprep.mubr.f32.mxu0 %v14467_v27 }
 0x7a2   :  { %11319 = vmatprep.subr.bf16.mxu0 %v13832_v63  ;;  %11335 = vmatprep.subr.bf16.mxu1 %v13834_v29 }
 0x7a3   :  { %9887 = vmatmul.mubr.msk.f32.gmra.mrb[90].mxu1 %vm6871_vm5, %v8686_v61  ;;  %9891 = vmatmul.mubr.msk.f32.gmra.mrb[118].mxu0 %vm6871_vm5, %v8686_v61 }
 0x7a4   :  { %11321 = vmatpush1.bf16.msra.mxu0 %v13840_v49  ;;  %11337 = vmatpush1.bf16.msra.mxu1 %v13842_v25 }
 0x7a5   :  { %8793 = vmatprep.mubr.f32.mxu1 %v14467_v27  ;;  %8907 = vmatprep.mubr.f32.mxu0 %v14467_v27 }
 0x7a6   :  { %11323 = vmatprep.subr.bf16.mxu0 %v13848_v2  ;;  %11339 = vmatprep.subr.bf16.mxu1 %v13850_v7 }
 0x7a7   :  { %9888 = vmatmul.mubr.msk.f32.gmra.mrb[92].mxu1 %vm6871_vm5, %v8687_v5  ;;  %9892 = vmatmul.mubr.msk.f32.gmra.mrb[120].mxu0 %vm6871_vm5, %v8687_v5 }
 0x7a8   :  { %11325 = vmatpush1.bf16.msra.mxu0 %v13856_v43  ;;  %11341 = vmatpush1.bf16.msra.mxu1 %v13858_v4 }
 0x7a9   :  { %8799 = vmatprep.mubr.f32.mxu1 %v14467_v27  ;;  %8913 = vmatprep.mubr.f32.mxu0 %v14467_v27 }
 0x7aa   :  { %11327 = vmatprep.subr.bf16.mxu0 %v13864_v28  ;;  %11343 = vmatprep.subr.bf16.mxu1 %v13866_v39 }
 0x7ab   :  { %9889 = vmatmul.mubr.msk.f32.gmra.mrb[94].mxu1 %vm6871_vm5, %v8688_v41  ;;  %9893 = vmatmul.mubr.msk.f32.gmra.mrb[122].mxu0 %vm6871_vm5, %v8688_v41 }
 0x7ac   :  { %11329 = vmatpush1.bf16.msra.mxu0 %v13872_v52  ;;  %11345 = vmatpush1.bf16.msra.mxu1 %v13874_v20 }
 0x7ad   :  { %9024 = vmatprep.mubr.f32.mxu0 %v14467_v27  ;;  %9138 = vmatprep.mubr.f32.mxu1 %v14467_v27 }
 0x7ae   :  { %11347 = vmatprep.subr.bf16.mxu1 %v13880_v11  ;;  %11363 = vmatprep.subr.bf16.mxu0 %v13882_v53 }
 0x7af   :  { %9894 = vmatmul.mubr.msk.f32.vlgmr.msra.gmra.mrb[116].mxu0 %vm6871_vm5, %v8928_v62  ;;  %9898 = vmatmul.mubr.msk.f32.vlgmr.msra.gmra.mrb[96].mxu1 %vm6871_vm5, %v8928_v62 }
 0x7b0   :  { %11349 = vmatpush1.bf16.msra.mxu1 %v13888_v22  ;;  %11365 = vmatpush1.bf16.msra.mxu0 %v13890_v0 }
 0x7b1   :  { %9030 = vmatprep.mubr.f32.mxu0 %v14467_v27  ;;  %9144 = vmatprep.mubr.f32.mxu1 %v14467_v27 }
 0x7b2   :  { %11351 = vmatprep.subr.bf16.mxu1 %v13832_v63  ;;  %11367 = vmatprep.subr.bf16.mxu0 %v13834_v29 }
 0x7b3   :  { %9895 = vmatmul.mubr.msk.f32.gmra.mrb[118].mxu0 %vm6871_vm5, %v8929_v45  ;;  %9899 = vmatmul.mubr.msk.f32.gmra.mrb[98].mxu1 %vm6871_vm5, %v8929_v45 }
 0x7b4   :  { %11353 = vmatpush1.bf16.msra.mxu1 %v13840_v49  ;;  %11369 = vmatpush1.bf16.msra.mxu0 %v13842_v25 }
 0x7b5   :  { %9036 = vmatprep.mubr.f32.mxu0 %v14467_v27  ;;  %9150 = vmatprep.mubr.f32.mxu1 %v14467_v27 }
 0x7b6   :  { %11355 = vmatprep.subr.bf16.mxu1 %v13848_v2  ;;  %11371 = vmatprep.subr.bf16.mxu0 %v13850_v7 }
 0x7b7   :  { %9896 = vmatmul.mubr.msk.f32.gmra.mrb[120].mxu0 %vm6871_vm5, %v8930_v10  ;;  %9900 = vmatmul.mubr.msk.f32.gmra.mrb[100].mxu1 %vm6871_vm5, %v8930_v10 }
 0x7b8   :  { %11357 = vmatpush1.bf16.msra.mxu1 %v13856_v43  ;;  %11373 = vmatpush1.bf16.msra.mxu0 %v13858_v4 }
 0x7b9   :  { %9042 = vmatprep.mubr.f32.mxu0 %v14467_v27  ;;  %9156 = vmatprep.mubr.f32.mxu1 %v14467_v27 }
 0x7ba   :  { %11359 = vmatprep.subr.bf16.mxu1 %v13864_v28  ;;  %11375 = vmatprep.subr.bf16.mxu0 %v13866_v39 }
 0x7bb   :  { %9897 = vmatmul.mubr.msk.f32.gmra.mrb[122].mxu0 %vm6871_vm5, %v8931_v17  ;;  %9901 = vmatmul.mubr.msk.f32.gmra.mrb[102].mxu1 %vm6871_vm5, %v8931_v17 }
 0x7bc   :  { %11361 = vmatpush1.bf16.msra.mxu1 %v13872_v52  ;;  %11377 = vmatpush1.bf16.msra.mxu0 %v13874_v20 }
 0x7bd   :  { %9267 = vmatprep.mubr.f32.mxu1 %v14467_v27  ;;  %9381 = vmatprep.mubr.f32.mxu0 %v14467_v27 }
 0x7bf   :  { %9902 = vmatmul.mubr.msk.f32.vlgmr.msra.gmra.mrb[96].mxu1 %vm6871_vm5, %v9171_v3  ;;  %9906 = vmatmul.mubr.msk.f32.vlgmr.msra.gmra.mrb[124].mxu0 %vm6871_vm5, %v9171_v3 }
 0x7c0   :  { %9273 = vmatprep.mubr.f32.mxu1 %v14467_v27  ;;  %9387 = vmatprep.mubr.f32.mxu0 %v14467_v27 }
 0x7c3   :  { %9903 = vmatmul.mubr.msk.f32.gmra.mrb[98].mxu1 %vm6871_vm5, %v9172_v59  ;;  %9907 = vmatmul.mubr.msk.f32.gmra.mrb[126].mxu0 %vm6871_vm5, %v9172_v59 }
 0x7c4   :  { %9279 = vmatprep.mubr.f32.mxu1 %v14467_v27  ;;  %9393 = vmatprep.mubr.f32.mxu0 %v14467_v27 }
 0x7c7   :  { %9904 = vmatmul.mubr.msk.f32.gmra.mrb[100].mxu1 %vm6871_vm5, %v9173_v15  ;;  %9908 = vmatmul.mubr.msk.f32.gmra.mrb[128].mxu0 %vm6871_vm5, %v9173_v15 }
 0x7c8   :  { %9285 = vmatprep.mubr.f32.mxu1 %v14467_v27  ;;  %9399 = vmatprep.mubr.f32.mxu0 %v14467_v27 }
 0x7cb   :  { %9905 = vmatmul.mubr.msk.f32.gmra.mrb[102].mxu1 %vm6871_vm5, %v9174_v55  ;;  %9909 = vmatmul.mubr.msk.f32.gmra.mrb[130].mxu0 %vm6871_vm5, %v9174_v55 }
 0x816   :  { %v7572_v51 = vpop.f32.mrb[88].mxu0 }
 0x817   :  { %7595 = vst [vmem:[#allocation4] sm:$0xff] %v7572_v51  ;;  %v14004_v18 = vpop.f32.mrb[89].mxu0 }
 0x818   :  { %7596 = vst [vmem:[#allocation4 + $0x8] sm:$0xff] %v14004_v18 }
 0x81e   :  { %v9441_v31 = vld [vmem:[#allocation4] sm:$0xfc] }
 0x81f   :  { %v9449_v24 = vrot.slane %v9441_v31, 2 }
 0x826   :  { %v7578_v63 = vpop.f32.mrb[90].mxu0 }
 0x827   :  { %v9450_v29 = vrot.slane %v7578_v63, 2  ;;  %v14007_v26 = vpop.f32.mrb[91].mxu0 }
 0x829   :  { %v9451_v27 = vsel %vm4479_vm1, %v9449_v24, %v9450_v29 }
 0x82a   :  { %9460 = vst.msk [vmem:[#allocation6] sm:$0xff] %vm9437_vm10, %v9451_v27  ;;  %v7584_v32 = vpop.f32.mrb[92].mxu0 }
 0x82b   :  { %v9452_v33 = vrot.slane %v7584_v32, 2  ;;  %v14011_v8 = vpop.f32.mrb[93].mxu0 }
 0x82d   :  { %v9453_v49 = vsel %vm4479_vm1, %v9450_v29, %v9452_v33 }
 0x82e   :  { %9461 = vst.msk [vmem:[#allocation6 + $0x10] sm:$0xff] %vm9437_vm10, %v9453_v49  ;;  %v7590_v25 = vpop.f32.mrb[94].mxu0 }
 0x82f   :  { %v9454_v9 = vrot.slane %v7590_v25, 2  ;;  %v14015_v58 = vpop.f32.mrb[95].mxu0 }
 0x831   :  { %v9455_v47 = vsel %vm4479_vm1, %v9452_v33, %v9454_v9  ;;  %9464 = vst.msk [vmem:[#allocation6 + $0x30] sm:$0x3f] %vm9463_vm11, %v9454_v9 }
 0x832   :  { %9462 = vst.msk [vmem:[#allocation6 + $0x20] sm:$0xff] %vm9437_vm10, %v9455_v47  ;;  %v7814_v36 = vpop.f32.mrb[72].mxu1 }
 0x833   :  { %11530 = vtanh.f32 %v7814_v36  ;;  %v7816_v35 = vpop.f32.mrb[73].mxu1 }
 0x834   :  { %11532 = vtanh.f32 %v7816_v35 }
 0x836   :  { %v7820_v2 = vpop.f32.mrb[74].mxu1 }
 0x837   :  { %11534 = vtanh.f32 %v7820_v2  ;;  %v7822_v7 = vpop.f32.mrb[75].mxu1 }
 0x838   :  { %11536 = vtanh.f32 %v7822_v7 }
 0x83a   :  { %v7826_v30 = vpop.f32.mrb[76].mxu1 }
 0x83b   :  { %11538 = vtanh.f32 %v7826_v30  ;;  %v7828_v6 = vpop.f32.mrb[77].mxu1 }
 0x83c   :  { %11540 = vtanh.f32 %v7828_v6 }
 0x83d   :  { %v11531_v37 = vpop.eup %11530 }
 0x83e   :  { %v11533_v1 = vpop.eup %11532  ;;  %9910 = vst.msk [vmem:[%s14299_s14 + $0x20] sm:$0xff] %vm9437_vm10, %v11531_v37  ;;  %v7832_v43 = vpop.f32.mrb[78].mxu1 }
 0x83f   :  { %v7945_v4 = vpop.f32.mrb[102].mxu0  ;;  %9914 = vst.msk [vmem:[%s14299_s14 + $0x40] sm:$0xff] %vm9437_vm10, %v11533_v1  ;;  %11542 = vtanh.f32 %v7832_v43  ;;  %v7834_v44 = vpop.f32.mrb[79].mxu1 }
 0x840   :  { %v7947_v54 = vpop.f32.mrb[103].mxu0  ;;  %11544 = vtanh.f32 %v7834_v44 }
 0x841   :  { %7957 = vst [vmem:[#allocation4 + $0x1d8] sm:$0xff] %v7947_v54  ;;  %v11535_v14 = vpop.eup %11534 }
 0x842   :  { %v11537_v60 = vpop.eup %11536  ;;  %9911 = vst.msk [vmem:[%s14299_s14 + $0x28] sm:$0xff] %vm9437_vm10, %v11535_v14  ;;  %v8056_v42 = vpop.f32.mrb[96].mxu0 }
 0x843   :  { %9915 = vst.msk [vmem:[%s14299_s14 + $0x48] sm:$0xff] %vm9437_vm10, %v11537_v60  ;;  %11546 = vtanh.f32 %v8056_v42  ;;  %v8058_v28 = vpop.f32.mrb[97].mxu0 }
 0x844   :  { %11548 = vtanh.f32 %v8058_v28 }
 0x845   :  { %v11539_v39 = vpop.eup %11538 }
 0x846   :  { %v11541_v21 = vpop.eup %11540  ;;  %9912 = vst.msk [vmem:[%s14299_s14 + $0x30] sm:$0xff] %vm9437_vm10, %v11539_v39  ;;  %v8062_v46 = vpop.f32.mrb[98].mxu0 }
 0x847   :  { %9916 = vst.msk [vmem:[%s14299_s14 + $0x50] sm:$0xff] %vm9437_vm10, %v11541_v21  ;;  %11550 = vtanh.f32 %v8062_v46  ;;  %v8064_v19 = vpop.f32.mrb[99].mxu0 }
 0x848   :  { %11552 = vtanh.f32 %v8064_v19 }
 0x849   :  { %v11543_v13 = vpop.eup %11542 }
 0x84a   :  { %v11545_v52 = vpop.eup %11544  ;;  %9913 = vst.msk [vmem:[%s14299_s14 + $0x38] sm:$0xff] %vm9437_vm10, %v11543_v13  ;;  %v8068_v20 = vpop.f32.mrb[100].mxu0 }
 0x84b   :  { %9917 = vst.msk [vmem:[%s14299_s14 + $0x58] sm:$0xff] %vm9437_vm10, %v11545_v52  ;;  %11554 = vtanh.f32 %v8068_v20  ;;  %v8070_v34 = vpop.f32.mrb[101].mxu0 }
 0x84c   :  { %11556 = vtanh.f32 %v8070_v34 }
 0x84d   :  { %v11547_v16 = vpop.eup %11546 }
 0x84e   :  { %v11549_v38 = vpop.eup %11548  ;;  %9918 = vst.msk [vmem:[%s14299_s14 + $0x60] sm:$0xff] %vm9437_vm10, %v11547_v16  ;;  %v8074_v50 = vpop.f32.mrb[104].mxu0 }
 0x84f   :  { %9922 = vst.msk [vmem:[%s14299_s14 + $0x80] sm:$0xff] %vm9437_vm10, %v11549_v38  ;;  %v9531_v23 = vadd.f32 %v8074_v50, %v7945_v4  ;;  %v8076_v11 = vpop.f32.mrb[105].mxu0 }
 0x850   :  { %v9569_v53 = vadd.f32 %v8076_v11, %v7947_v54 }
 0x851   :  { %v11551_v22 = vpop.eup %11550  ;;  %11558 = vtanh.f32 %v9531_v23 }
 0x852   :  { %v11553_v0 = vpop.eup %11552  ;;  %9919 = vst.msk [vmem:[%s14299_s14 + $0x68] sm:$0xff] %vm9437_vm10, %v11551_v22  ;;  %11560 = vtanh.f32 %v9569_v53  ;;  %v8298_v40 = vpop.f32.mrb[80].mxu1 }
 0x853   :  { %9923 = vst.msk [vmem:[%s14299_s14 + $0x88] sm:$0xff] %vm9437_vm10, %v11553_v0  ;;  %11562 = vtanh.f32 %v8298_v40  ;;  %v8300_v57 = vpop.f32.mrb[81].mxu1 }
 0x854   :  { %11564 = vtanh.f32 %v8300_v57 }
 0x855   :  { %v11555_v12 = vpop.eup %11554 }
 0x856   :  { %v11557_v48 = vpop.eup %11556  ;;  %9920 = vst.msk [vmem:[%s14299_s14 + $0x70] sm:$0xff] %vm9437_vm10, %v11555_v12  ;;  %v8304_v56 = vpop.f32.mrb[82].mxu1 }
 0x857   :  { %9924 = vst.msk [vmem:[%s14299_s14 + $0x90] sm:$0xff] %vm9437_vm10, %v11557_v48  ;;  %11566 = vtanh.f32 %v8304_v56  ;;  %v8306_v61 = vpop.f32.mrb[83].mxu1 }
 0x858   :  { %11568 = vtanh.f32 %v8306_v61 }
 0x85a   :  { %v8310_v5 = vpop.f32.mrb[84].mxu1 }
 0x85b   :  { %v11559_v41 = vpop.eup %11558  ;;  %11570 = vtanh.f32 %v8310_v5  ;;  %v8312_v62 = vpop.f32.mrb[85].mxu1 }
 0x85c   :  { %v11561_v45 = vpop.eup %11560  ;;  %9921 = vst.msk [vmem:[%s14299_s14 + $0x78] sm:$0xff] %vm9437_vm10, %v11559_v41  ;;  %11572 = vtanh.f32 %v8312_v62 }
 0x85d   :  { %v11563_v10 = vpop.eup %11562  ;;  %9925 = vst.msk [vmem:[%s14299_s14 + $0x98] sm:$0xff] %vm9437_vm10, %v11561_v45 }
 0x85e   :  { %v11565_v17 = vpop.eup %11564  ;;  %9926 = vst.msk [vmem:[%s14299_s14 + $0xa0] sm:$0xff] %vm9437_vm10, %v11563_v10  ;;  %v8316_v3 = vpop.f32.mrb[86].mxu1  ;;  %v9772_v10 = vld [vmem:[#allocation6] sm:$0xff] }
 0x85f   :  { %v8429_v59 = vpop.f32.mrb[112].mxu0  ;;  %9930 = vst.msk [vmem:[%s14299_s14 + $0xc0] sm:$0xff] %vm9437_vm10, %v11565_v17  ;;  %11574 = vtanh.f32 %v8316_v3  ;;  %v8318_v15 = vpop.f32.mrb[87].mxu1 }
 0x860   :  { %v8431_v55 = vpop.f32.mrb[113].mxu0  ;;  %11576 = vtanh.f32 %v8318_v15 }
 0x861   :  { %8441 = vst [vmem:[#allocation4 + $0x3d8] sm:$0xff] %v8431_v55  ;;  %v11567_v51 = vpop.eup %11566 }
 0x862   :  { %v11569_v31 = vpop.eup %11568  ;;  %9927 = vst.msk [vmem:[%s14299_s14 + $0xa8] sm:$0xff] %vm9437_vm10, %v11567_v51  ;;  %v8540_v24 = vpop.f32.mrb[106].mxu0 }
 0x863   :  { %9931 = vst.msk [vmem:[%s14299_s14 + $0xc8] sm:$0xff] %vm9437_vm10, %v11569_v31  ;;  %11578 = vtanh.f32 %v8540_v24  ;;  %v8542_v63 = vpop.f32.mrb[107].mxu0 }
 0x864   :  { %11580 = vtanh.f32 %v8542_v63  ;;  %v9773_v63 = vld [vmem:[#allocation6 + $0x10] sm:$0xff] }
 0x865   :  { %v11571_v29 = vpop.eup %11570 }
 0x866   :  { %v11573_v27 = vpop.eup %11572  ;;  %9928 = vst.msk [vmem:[%s14299_s14 + $0xb0] sm:$0xff] %vm9437_vm10, %v11571_v29  ;;  %v8546_v32 = vpop.f32.mrb[108].mxu0 }
 0x867   :  { %9932 = vst.msk [vmem:[%s14299_s14 + $0xd0] sm:$0xff] %vm9437_vm10, %v11573_v27  ;;  %11582 = vtanh.f32 %v8546_v32  ;;  %v8548_v33 = vpop.f32.mrb[109].mxu0 }
 0x868   :  { %11584 = vtanh.f32 %v8548_v33 }
 0x869   :  { %v11575_v49 = vpop.eup %11574 }
 0x86a   :  { %v11577_v25 = vpop.eup %11576  ;;  %9929 = vst.msk [vmem:[%s14299_s14 + $0xb8] sm:$0xff] %vm9437_vm10, %v11575_v49  ;;  %v8552_v9 = vpop.f32.mrb[110].mxu0 }
 0x86b   :  { %9933 = vst.msk [vmem:[%s14299_s14 + $0xd8] sm:$0xff] %vm9437_vm10, %v11577_v25  ;;  %11586 = vtanh.f32 %v8552_v9  ;;  %v8554_v47 = vpop.f32.mrb[111].mxu0 }
 0x86c   :  { %11588 = vtanh.f32 %v8554_v47 }
 0x86d   :  { %v11579_v36 = vpop.eup %11578 }
 0x86e   :  { %v11581_v35 = vpop.eup %11580  ;;  %9934 = vst.msk [vmem:[%s14299_s14 + $0xe0] sm:$0xff] %vm9437_vm10, %v11579_v36  ;;  %v8558_v2 = vpop.f32.mrb[114].mxu0 }
 0x86f   :  { %9938 = vst.msk [vmem:[%s14299_s14 + $0x100] sm:$0xff] %vm9437_vm10, %v11581_v35  ;;  %v9615_v7 = vadd.f32 %v8558_v2, %v8429_v59  ;;  %v8560_v30 = vpop.f32.mrb[115].mxu0  ;;  %v9774_v35 = vld [vmem:[#allocation6 + $0x20] sm:$0xff] }
 0x870   :  { %v9653_v6 = vadd.f32 %v8560_v30, %v8431_v55 }
 0x871   :  { %v11583_v37 = vpop.eup %11582  ;;  %11590 = vtanh.f32 %v9615_v7 }
 0x872   :  { %v11585_v1 = vpop.eup %11584  ;;  %9935 = vst.msk [vmem:[%s14299_s14 + $0xe8] sm:$0xff] %vm9437_vm10, %v11583_v37  ;;  %11592 = vtanh.f32 %v9653_v6  ;;  %v8783_v43 = vpop.f32.mrb[88].mxu1 }
 0x873   :  { %9939 = vst.msk [vmem:[%s14299_s14 + $0x108] sm:$0xff] %vm9437_vm10, %v11585_v1  ;;  %11594 = vtanh.f32 %v8783_v43  ;;  %v8785_v4 = vpop.f32.mrb[89].mxu1 }
 0x874   :  { %11596 = vtanh.f32 %v8785_v4 }
 0x875   :  { %v11587_v44 = vpop.eup %11586 }
 0x876   :  { %v11589_v54 = vpop.eup %11588  ;;  %9936 = vst.msk [vmem:[%s14299_s14 + $0xf0] sm:$0xff] %vm9437_vm10, %v11587_v44  ;;  %v8789_v14 = vpop.f32.mrb[90].mxu1 }
 0x877   :  { %9940 = vst.msk [vmem:[%s14299_s14 + $0x110] sm:$0xff] %vm9437_vm10, %v11589_v54  ;;  %11598 = vtanh.f32 %v8789_v14  ;;  %v8791_v60 = vpop.f32.mrb[91].mxu1 }
 0x878   :  { %11600 = vtanh.f32 %v8791_v60  ;;  %v9775_v60 = vld [vmem:[#allocation6 + $0x30] sm:$0xff] }
 0x87a   :  { %v8795_v42 = vpop.f32.mrb[92].mxu1 }
 0x87b   :  { %v11591_v28 = vpop.eup %11590  ;;  %11602 = vtanh.f32 %v8795_v42  ;;  %v8797_v39 = vpop.f32.mrb[93].mxu1 }
 0x87c   :  { %v11593_v21 = vpop.eup %11592  ;;  %9937 = vst.msk [vmem:[%s14299_s14 + $0xf8] sm:$0xff] %vm9437_vm10, %v11591_v28  ;;  %11604 = vtanh.f32 %v8797_v39 }
 0x87d   :  { %v11595_v46 = vpop.eup %11594  ;;  %9941 = vst.msk [vmem:[%s14299_s14 + $0x118] sm:$0xff] %vm9437_vm10, %v11593_v21 }
 0x87e   :  { %v11597_v19 = vpop.eup %11596  ;;  %9942 = vst.msk [vmem:[%s14299_s14 + $0x120] sm:$0xff] %vm9437_vm10, %v11595_v46  ;;  %v8801_v13 = vpop.f32.mrb[94].mxu1 }
 0x87f   :  { %9946 = vst.msk [vmem:[%s14299_s14 + $0x140] sm:$0xff] %vm9437_vm10, %v11597_v19  ;;  %11606 = vtanh.f32 %v8801_v13  ;;  %v8803_v52 = vpop.f32.mrb[95].mxu1 }
 0x880   :  { %11608 = vtanh.f32 %v8803_v52 }
 0x881   :  { %v11599_v20 = vpop.eup %11598 }
 0x882   :  { %v11601_v34 = vpop.eup %11600  ;;  %9943 = vst.msk [vmem:[%s14299_s14 + $0x128] sm:$0xff] %vm9437_vm10, %v11599_v20  ;;  %v9026_v16 = vpop.f32.mrb[116].mxu0 }
 0x883   :  { %9947 = vst.msk [vmem:[%s14299_s14 + $0x148] sm:$0xff] %vm9437_vm10, %v11601_v34  ;;  %11610 = vtanh.f32 %v9026_v16  ;;  %v9028_v38 = vpop.f32.mrb[117].mxu0 }
 0x884   :  { %11612 = vtanh.f32 %v9028_v38 }
 0x885   :  { %v11603_v50 = vpop.eup %11602 }
 0x886   :  { %v11605_v23 = vpop.eup %11604  ;;  %9944 = vst.msk [vmem:[%s14299_s14 + $0x130] sm:$0xff] %vm9437_vm10, %v11603_v50  ;;  %v9032_v11 = vpop.f32.mrb[118].mxu0 }
 0x887   :  { %9948 = vst.msk [vmem:[%s14299_s14 + $0x150] sm:$0xff] %vm9437_vm10, %v11605_v23  ;;  %11614 = vtanh.f32 %v9032_v11  ;;  %v9034_v53 = vpop.f32.mrb[119].mxu0 }
 0x888   :  { %11616 = vtanh.f32 %v9034_v53 }
 0x889   :  { %v11607_v22 = vpop.eup %11606 }
 0x88a   :  { %v11609_v0 = vpop.eup %11608  ;;  %9945 = vst.msk [vmem:[%s14299_s14 + $0x138] sm:$0xff] %vm9437_vm10, %v11607_v22  ;;  %v9038_v40 = vpop.f32.mrb[120].mxu0 }
 0x88b   :  { %9949 = vst.msk [vmem:[%s14299_s14 + $0x158] sm:$0xff] %vm9437_vm10, %v11609_v0  ;;  %11618 = vtanh.f32 %v9038_v40  ;;  %v9040_v57 = vpop.f32.mrb[121].mxu0 }
 0x88c   :  { %11620 = vtanh.f32 %v9040_v57 }
 0x88d   :  { %v11611_v12 = vpop.eup %11610 }
 0x88e   :  { %v11613_v48 = vpop.eup %11612  ;;  %9950 = vst.msk [vmem:[%s14299_s14 + $0x160] sm:$0xff] %vm9437_vm10, %v11611_v12  ;;  %v9044_v56 = vpop.f32.mrb[122].mxu0 }
 0x88f   :  { %9954 = vst.msk [vmem:[%s14299_s14 + $0x180] sm:$0xff] %vm9437_vm10, %v11613_v48  ;;  %11622 = vtanh.f32 %v9044_v56  ;;  %v9046_v61 = vpop.f32.mrb[123].mxu0 }
 0x890   :  { %11624 = vtanh.f32 %v9046_v61 }
 0x891   :  { %v11615_v5 = vpop.eup %11614 }
 0x892   :  { %v11617_v41 = vpop.eup %11616  ;;  %9951 = vst.msk [vmem:[%s14299_s14 + $0x168] sm:$0xff] %vm9437_vm10, %v11615_v5  ;;  %v9269_v62 = vpop.f32.mrb[96].mxu1 }
 0x893   :  { %v9383_v45 = vpop.f32.mrb[124].mxu0  ;;  %9955 = vst.msk [vmem:[%s14299_s14 + $0x188] sm:$0xff] %vm9437_vm10, %v11617_v41  ;;  %11626 = vtanh.f32 %v9269_v62  ;;  %v9271_v3 = vpop.f32.mrb[97].mxu1 }
 0x894   :  { %v9780_v17 = vadd.f32 %v9772_v10, %v9383_v45  ;;  %v9385_v59 = vpop.f32.mrb[125].mxu0  ;;  %11628 = vtanh.f32 %v9271_v3 }
 0x895   :  { %v9424_v15 = vrot.slane %v9385_v59, 6  ;;  %v11619_v55 = vpop.eup %11618 }
 0x896   :  { %11630 = vtanh.f32 %v9780_v17  ;;  %v11621_v51 = vpop.eup %11620  ;;  %9952 = vst.msk [vmem:[%s14299_s14 + $0x170] sm:$0xff] %vm9437_vm10, %v11619_v55  ;;  %v9275_v31 = vpop.f32.mrb[98].mxu1 }
 0x897   :  { %9436 = vst.msk [vmem:[#allocation5] sm:$0xfc] %vm9435_vm12, %v9424_v15  ;;  %v9389_v24 = vpop.f32.mrb[126].mxu0  ;;  %11632 = vtanh.f32 %v9275_v31  ;;  %v9277_v27 = vpop.f32.mrb[99].mxu1 }
 0x898   :  { %9956 = vst.msk [vmem:[%s14299_s14 + $0x190] sm:$0xff] %vm9437_vm10, %v11621_v51  ;;  %v9781_v29 = vadd.f32 %v9773_v63, %v9389_v24  ;;  %v9391_v32 = vpop.f32.mrb[127].mxu0  ;;  %11634 = vtanh.f32 %v9277_v27 }
 0x899   :  { %v9425_v33 = vrot.slane %v9391_v32, 6  ;;  %v11623_v49 = vpop.eup %11622 }
 0x89a   :  { %11636 = vtanh.f32 %v9781_v29  ;;  %v11625_v25 = vpop.eup %11624  ;;  %9953 = vst.msk [vmem:[%s14299_s14 + $0x178] sm:$0xff] %vm9437_vm10, %v11623_v49  ;;  %v9281_v47 = vpop.f32.mrb[100].mxu1 }
 0x89b   :  { %v9426_v9 = vsel %vm4432_vm2, %v9424_v15, %v9425_v33  ;;  %v9395_v36 = vpop.f32.mrb[128].mxu0  ;;  %9957 = vst.msk [vmem:[%s14299_s14 + $0x198] sm:$0xff] %vm9437_vm10, %v11625_v25  ;;  %11638 = vtanh.f32 %v9281_v47  ;;  %v9283_v7 = vpop.f32.mrb[101].mxu1 }
 0x89c   :  { %9438 = vst.msk [vmem:[#allocation5 + $0x10] sm:$0xff] %vm9437_vm10, %v9426_v9  ;;  %v9782_v2 = vadd.f32 %v9774_v35, %v9395_v36  ;;  %v9397_v30 = vpop.f32.mrb[129].mxu0  ;;  %11640 = vtanh.f32 %v9283_v7 }
 0x89d   :  { %v9427_v6 = vrot.slane %v9397_v30, 6  ;;  %v11627_v37 = vpop.eup %11626 }
 0x89e   :  { %v9475_v1 = vld [vmem:[#allocation5] sm:$0xff]  ;;  %11642 = vtanh.f32 %v9782_v2  ;;  %v11629_v43 = vpop.eup %11628  ;;  %9958 = vst.msk [vmem:[%s14299_s14 + $0x1a0] sm:$0xff] %vm9437_vm10, %v11627_v37  ;;  %v9287_v54 = vpop.f32.mrb[102].mxu1 }
 0x89f   :  { %v9483_v4 = vadd.f32 %v9475_v1, %v14004_v18  ;;  %v9428_v44 = vsel %vm4432_vm2, %v9425_v33, %v9427_v6  ;;  %v9401_v14 = vpop.f32.mrb[130].mxu0  ;;  %9962 = vst.msk [vmem:[%s14299_s14 + $0x1c0] sm:$0xff] %vm9437_vm10, %v11629_v43  ;;  %11644 = vtanh.f32 %v9287_v54  ;;  %v9289_v39 = vpop.f32.mrb[103].mxu1 }
 0x8a0   :  { %v11631_v42 = vpop.eup %11630  ;;  %9439 = vst.msk [vmem:[#allocation5 + $0x20] sm:$0xff] %vm9437_vm10, %v9428_v44  ;;  %v9783_v28 = vadd.f32 %v9775_v60, %v9401_v14  ;;  %v9403_v21 = vpop.f32.mrb[131].mxu0 }
 0x8a1   :  { %9966 = vst.msk [vmem:[%s14299_s14 + $0x1e0] sm:$0xff] %vm9437_vm10, %v11631_v42  ;;  %11646 = vtanh.f32 %v9483_v4  ;;  %9413 = vst [vmem:[#allocation4 + $0x7d8] sm:$0xff] %v9403_v21  ;;  %v11633_v18 = vpop.eup %11632 }
 0x8a2   :  { %11648 = vtanh.f32 %v9783_v28  ;;  %v11635_v46 = vpop.eup %11634  ;;  %9959 = vst.msk [vmem:[%s14299_s14 + $0x1a8] sm:$0xff] %vm9437_vm10, %v11633_v18 }
 0x8a3   :  { %v9476_v19 = vld [vmem:[#allocation5 + $0x10] sm:$0xff]  ;;  %11650 = vtanh.f32 %v9289_v39  ;;  %9963 = vst.msk [vmem:[%s14299_s14 + $0x1c8] sm:$0xff] %vm9437_vm10, %v11635_v46 }
 0x8a4   :  { %v11637_v13 = vpop.eup %11636  ;;  %v9484_v52 = vadd.f32 %v9476_v19, %v14007_v26 }
 0x8a5   :  { %9967 = vst.msk [vmem:[%s14299_s14 + $0x1e8] sm:$0xff] %vm9437_vm10, %v11637_v13  ;;  %v11639_v20 = vpop.eup %11638 }
 0x8a6   :  { %11652 = vtanh.f32 %v9484_v52  ;;  %v11641_v34 = vpop.eup %11640  ;;  %9960 = vst.msk [vmem:[%s14299_s14 + $0x1b0] sm:$0xff] %vm9437_vm10, %v11639_v20 }
 0x8a7   :  { %v9477_v16 = vld [vmem:[#allocation5 + $0x20] sm:$0xff]  ;;  %9964 = vst.msk [vmem:[%s14299_s14 + $0x1d0] sm:$0xff] %vm9437_vm10, %v11641_v34 }
 0x8a8   :  { %v11643_v38 = vpop.eup %11642  ;;  %v9485_v26 = vadd.f32 %v9477_v16, %v14011_v8  ;;  %v9419_v50 = vld [vmem:[#allocation4 + $0x7d8] sm:$0x3f] }
 0x8a9   :  { %9968 = vst.msk [vmem:[%s14299_s14 + $0x1f0] sm:$0xff] %vm9437_vm10, %v11643_v38  ;;  %v9429_v23 = vrot.slane %v9419_v50, 6  ;;  %v11645_v11 = vpop.eup %11644 }
 0x8aa   :  { %11654 = vtanh.f32 %v9485_v26  ;;  %9961 = vst.msk [vmem:[%s14299_s14 + $0x1b8] sm:$0xff] %vm9437_vm10, %v11645_v11 }
 0x8ab   :  { %v11647_v53 = vpop.eup %11646  ;;  %v9430_v22 = vsel %vm4432_vm2, %v9427_v6, %v9429_v23 }
 0x8ac   :  { %v11649_v0 = vpop.eup %11648  ;;  %9495 = vst.msk [vmem:[%s14299_s14] sm:$0xff] %vm9437_vm10, %v11647_v53  ;;  %9440 = vst.msk [vmem:[#allocation5 + $0x30] sm:$0xff] %vm9437_vm10, %v9430_v22 }
 0x8ad   :  { %v11651_v8 = vpop.eup %11650  ;;  %9969 = vst.msk [vmem:[%s14299_s14 + $0x1f8] sm:$0xff] %vm9437_vm10, %v11649_v0 }
 0x8ae   :  { %9965 = vst.msk [vmem:[%s14299_s14 + $0x1d8] sm:$0xff] %vm9437_vm10, %v11651_v8 }
 0x8b0   :  { %v11653_v40 = vpop.eup %11652 }
 0x8b1   :  { %9496 = vst.msk [vmem:[%s14299_s14 + $0x8] sm:$0xff] %vm9437_vm10, %v11653_v40 }
 0x8b3   :  { %v9478_v57 = vld [vmem:[#allocation5 + $0x30] sm:$0xff] }
 0x8b4   :  { %v11655_v12 = vpop.eup %11654  ;;  %v9486_v48 = vadd.f32 %v9478_v57, %v14015_v58 }
 0x8b5   :  { %9497 = vst.msk [vmem:[%s14299_s14 + $0x10] sm:$0xff] %vm9437_vm10, %v11655_v12 }
 0x8b6   :  { %11656 = vtanh.f32 %v9486_v48 }
 0x8c0   :  { %v11657_v56 = vpop.eup %11656 }
 0x8c1   :  { %9498 = vst.msk [vmem:[%s14299_s14 + $0x18] sm:$0xff] %vm9437_vm10, %v11657_v56 }
 0x8c2   :  { %9806 = vsyncpa [#allocation8], 1 }
 0x8c3   :  { %9807 = vsyncpa [#allocation10], 1 }
 0x8c4   :  { %9808 = vsyncpa [#allocation13], 1 }
 0x8c5   :  { %9809 = vsyncpa [#allocation16], 1 }
 0x8c6   :  { %9810 = vsyncpa [#allocation19], 1 }
 0x8c7   :  { %9811 = vsyncpa [#allocation22], 1 }
 0x8c8   :  { %9812 = vsyncpa [#allocation25], 1 }
 0x8c9   :  { %9813 = vsyncpa [#allocation28], 1 }

</bundles_post_ra>
